<compile_context>
chip_gen: v7x
topology: tpu7x:2x2x1
jax: 0.10.0
libtpu: 0.0.40
codegen_flags: <defaults>
</compile_context>

<pallas_src>
import functools

import jax
import jax.numpy as jnp
import numpy as np
from jax import lax
from jax.experimental import pallas as pl
from jax.experimental.pallas import tpu as pltpu


# ---------------------------------------------------------------------------
# Optional single-buffering for constant-index blocks (weights / LN params).
# pipeline_mode=pl.Buffered(1) halves their resident VMEM; support is probed so
# the script degrades gracefully on lowerings without pipeline_mode.
# ---------------------------------------------------------------------------
def _probe_single_buffering():
    if not hasattr(pl, "Buffered"):
        return {}

    def _copy(x_ref, o_ref):
        o_ref[...] = x_ref[...]

    try:
        spec = pl.BlockSpec((8, 128), lambda i: (0, 0),
                            pipeline_mode=pl.Buffered(1))
        fn = pl.pallas_call(
            _copy,
            out_shape=jax.ShapeDtypeStruct((8, 128), jnp.float32),
            grid=(2,),
            in_specs=[spec],
            out_specs=pl.BlockSpec((8, 128), lambda i: (0, 0)))
        out = jax.block_until_ready(fn(jnp.ones((8, 128), jnp.float32)))
        if not bool(jnp.all(out == 1.0)):
            return {}
        return {"pipeline_mode": pl.Buffered(1)}
    except Exception:  # graceful fallback: default double buffering
        return {}


_CONST_BLOCK_KW = _probe_single_buffering()


def _vmem_limit(block_bytes):
    # double-buffered pipeline blocks + headroom for in-kernel f32 temporaries,
    # clamped so the request fits every generation (v7x physical VMEM = 64 MiB).
    return int(min(48 * 1024 * 1024, 4 * block_bytes + 16 * 1024 * 1024))


def _pick_windows_per_step(n_win, win_len, target_rows=512):
    """Largest window count per grid step with 16-aligned token rows <= target
    (more, smaller steps -> better megacore balance / DMA overlap)."""
    best = None
    for wps in range(1, n_win + 1):
        if (n_win % wps == 0 and (wps * win_len) % 16 == 0
                and wps * win_len <= target_rows):
            best = wps
    return best if best is not None else n_win


def _pick_row_tile(rows, target=512):
    best = None
    for t in range(16, min(rows, target) + 1, 16):
        if rows % t == 0:
            best = t
    return best if best is not None else rows


# ---------------------------------------------------------------------------
# Kernel 1: LN1 + 3-stream per-window attention + projections
# ---------------------------------------------------------------------------
def _attn_kernel(x_ref, g1_ref, b1_ref,
                 wq_ref, bq_ref, wk_ref, bk_ref, wv_ref, bv_ref,
                 wp_ref, bp_ref, bias_ref, o_ref,
                 *, num_heads, n_win, win_len):
    S, WN, C = x_ref.shape            # S == 3 streams, WN == n_win * win_len
    hd = C // num_heads

    def layernorm(x_bf16, g, b):      # f32 LN math on bf16 tokens
        x = x_bf16.astype(jnp.float32)
        mu = jnp.mean(x, axis=-1, keepdims=True)
        var = jnp.mean(jnp.square(x - mu), axis=-1, keepdims=True)
        return (x - mu) * lax.rsqrt(var + 1e-5) * g + b

    def mm(x_f32, w_bf16, b_f32):     # bf16 MXU operands, f32 accumulation
        return jnp.dot(x_f32.astype(jnp.bfloat16), w_bf16,
                       preferred_element_type=jnp.float32) + b_f32

    xa = layernorm(x_ref[0], g1_ref[0], b1_ref[0])           # (WN, C) f32
    xb = layernorm(x_ref[1], g1_ref[1], b1_ref[1])
    xc = layernorm(x_ref[2], g1_ref[2], b1_ref[2])

    # Separate Q/K/V projections (weights pre-split host-side -> no in-kernel
    # slicing of a fused (C, 3C) output).  Softmax scale folded into wq/bq.
    q1 = mm(xa, wq_ref[...], bq_ref[...]).astype(jnp.bfloat16)
    q1 = q1.reshape(n_win, win_len, C)
    ks, vs = [], []
    for si, x in enumerate((xa, xb, xc)):
        ks.append(mm(x, wk_ref[si], bk_ref[si])
                  .astype(jnp.bfloat16).reshape(n_win, win_len, C))
        vs.append(mm(x, wv_ref[si], bv_ref[si])
                  .astype(jnp.bfloat16).reshape(n_win, win_len, C))

    bias = bias_ref[...].astype(jnp.float32)                 # (heads, nWc, N, N)

    def attend(k3, v3):
        head_out = []
        for h in range(num_heads):                           # static unroll
            sl = slice(h * hd, (h + 1) * hd)
            sc = jnp.einsum("wqd,wkd->wqk", q1[:, :, sl], k3[:, :, sl],
                            preferred_element_type=jnp.float32)   # (nWc, N, N)
            sc = sc + bias[h]
            sc = sc - jnp.max(sc, axis=-1, keepdims=True)
            pexp = jnp.exp(sc)
            pexp = pexp * pl.reciprocal(
                jnp.sum(pexp, axis=-1, keepdims=True), approx=True)
            head_out.append(
                jnp.einsum("wqk,wkd->wqd", pexp.astype(jnp.bfloat16),
                           v3[:, :, sl],
                           preferred_element_type=jnp.float32))    # (nWc, N, hd)
        return jnp.concatenate(head_out, axis=-1).reshape(WN, C)

    for si in range(3):
        o_ref[si] = mm(attend(ks[si], vs[si]),
                       wp_ref[si], bp_ref[si]).astype(o_ref.dtype)


def fused_ln_window_attention(xw_stack, p, win_bias, *, num_heads,
                              windows_per_step):
    """xw_stack: (3, B*nW*N, C) bf16 window-partitioned tokens.
    win_bias:   (heads, nW, N, N) bf16 rel-pos bias (+ shift mask) per window.
    Returns:    (3, B*nW*N, C) bf16 attention + projection output."""
    S, R, C = xw_stack.shape
    heads, n_win, N, _ = win_bias.shape
    assert heads == num_heads
    wps = windows_per_step
    assert n_win % wps == 0
    n_chunks = n_win // wps
    tokens_per_step = wps * N
    assert R % (n_win * N) == 0
    n_img = R // (n_win * N)

    tok_spec = pl.BlockSpec((S, tokens_per_step, C),
                            lambda b, w: (0, b * n_chunks + w, 0))
    bias_spec = pl.BlockSpec((num_heads, wps, N, N), lambda b, w: (0, w, 0, 0))

    def const(shape):
        return pl.BlockSpec(shape, lambda b, w: (0,) * len(shape),
                            **_CONST_BLOCK_KW)

    kernel = functools.partial(_attn_kernel, num_heads=num_heads,
                               n_win=wps, win_len=N)

    block_bytes = (2 * S * tokens_per_step * C * 2      # token in + out (bf16)
                   + num_heads * wps * N * N * 2        # bias block (bf16)
                   + 10 * C * C * 2                     # wq + 3x(wk, wv, wp)
                   + 16 * C * 4)                        # small f32 param rows

    return pl.pallas_call(
        kernel,
        out_shape=jax.ShapeDtypeStruct((S, R, C), jnp.bfloat16),
        grid_spec=pltpu.PrefetchScalarGridSpec(
            num_scalar_prefetch=0,
            grid=(n_img, n_chunks),
            in_specs=[tok_spec,
                      const((S, 1, C)), const((S, 1, C)),
                      const((C, C)), const((1, C)),
                      const((S, C, C)), const((S, 1, C)),
                      const((S, C, C)), const((S, 1, C)),
                      const((S, C, C)), const((S, 1, C)),
                      bias_spec],
            out_specs=tok_spec),
        compiler_params=pltpu.CompilerParams(
            dimension_semantics=("parallel", "parallel"),
            vmem_limit_bytes=_vmem_limit(block_bytes)),
    )(xw_stack, p["ln1_g"], p["ln1_b"], p["wq1"], p["bq1"],
      p["wk"], p["bk"], p["wv"], p["bv"], p["wproj"], p["bproj"], win_bias)


# ---------------------------------------------------------------------------
# Kernel 2: factor-residual + LN2 + MLP + residual (row-tiled)
# ---------------------------------------------------------------------------
def _mlp_kernel(sc_ref, at_ref, g2_ref, b2_ref, f_ref,
                w1_ref, b1_ref, w2_ref, b2m_ref, o_ref):
    y = f_ref[0] * (sc_ref[0].astype(jnp.float32) + at_ref[0].astype(jnp.float32))
    mu = jnp.mean(y, axis=-1, keepdims=True)
    var = jnp.mean(jnp.square(y - mu), axis=-1, keepdims=True)
    xn = (y - mu) * lax.rsqrt(var + 1e-5) * g2_ref[0] + b2_ref[0]
    h = jnp.dot(xn.astype(jnp.bfloat16), w1_ref[...],
                preferred_element_type=jnp.float32) + b1_ref[...]
    # tanh-approx GELU (|err| < 1e-3 vs exact erf GELU; erf lowering support
    # varies across Mosaic versions).
    h = 0.5 * h * (1.0 + jnp.tanh(0.7978845608028654
                                  * (h + 0.044715 * h * h * h)))
    o = jnp.dot(h.astype(jnp.bfloat16), w2_ref[...],
                preferred_element_type=jnp.float32) + b2m_ref[...]
    o_ref[0] = (y + o).astype(o_ref.dtype)


def fused_residual_mlp(sc_stack, at_stack, g2_all, b2_all, fac_all,
                       w1, b1, w2, b2m, *, row_tile):
    S, R, C = sc_stack.shape
    Hd = w1.shape[1]
    assert R % row_tile == 0

    tok = pl.BlockSpec((1, row_tile, C), lambda s, r: (s, r, 0))
    per_stream = lambda shp: pl.BlockSpec(shp, lambda s, r: (s, 0, 0))
    shared = lambda shp: pl.BlockSpec(shp, lambda s, r: (0,) * len(shp),
                                      **_CONST_BLOCK_KW)

    block_bytes = (2 * row_tile * C * 2 + row_tile * C * 4   # sc/at in, out
                   + (C * Hd + Hd * C) * 2 + (Hd + C) * 4    # fc1 / fc2
                   + 3 * (2 * C + 1) * 4)                    # LN2 / factor
    return pl.pallas_call(
        _mlp_kernel,
        out_shape=jax.ShapeDtypeStruct((S, R, C), jnp.float32),
        grid_spec=pltpu.PrefetchScalarGridSpec(
            num_scalar_prefetch=0,
            grid=(S, R // row_tile),
            in_specs=[tok, tok,
                      per_stream((1, 1, C)), per_stream((1, 1, C)),
                      per_stream((1, 1, 1)),
                      shared((C, Hd)), shared((1, Hd)),
                      shared((Hd, C)), shared((1, C))],
            out_specs=tok),
        compiler_params=pltpu.CompilerParams(
            dimension_semantics=("parallel", "parallel"),
            vmem_limit_bytes=_vmem_limit(block_bytes)),
    )(sc_stack, at_stack, g2_all, b2_all, fac_all,
      w1, b1.reshape(1, Hd), w2, b2m.reshape(1, C))


# ---------------------------------------------------------------------------
# JAX glue: stacked shift / window partition / reverse (pure layout ops)
# ---------------------------------------------------------------------------
def swin_block_forward(a, b, c, p, *, H, W, num_heads, window_size, shift_size,
                       win_bias):
    B, L, C = a.shape
    ws = window_size
    N = ws * ws
    nW = (H // ws) * (W // ws)

    # Stack the three streams once (reused as the MLP shortcut); carry all
    # inter-kernel activations in bf16.
    x_stack = jnp.stack([a, b, c], axis=0).astype(jnp.bfloat16)   # (3, B, L, C)
    sc_stack = x_stack.reshape(3, B * L, C)

    xs = x_stack.reshape(3, B, H, W, C)
    if shift_size > 0:
        xs = jnp.roll(xs, shift=(-shift_size, -shift_size), axis=(2, 3))
    xs = xs.reshape(3, B, H // ws, ws, W // ws, ws, C)
    xw = xs.transpose(0, 1, 2, 4, 3, 5, 6).reshape(3, B * nW * N, C)

    wps = _pick_windows_per_step(nW, N)
    aw = fused_ln_window_attention(xw, p, win_bias, num_heads=num_heads,
                                   windows_per_step=wps)          # (3, B*nW*N, C)

    yr = aw.reshape(3, B, H // ws, W // ws, ws, ws, C)
    yr = yr.transpose(0, 1, 2, 4, 3, 5, 6).reshape(3, B, H, W, C)
    if shift_size > 0:
        yr = jnp.roll(yr, shift=(shift_size, shift_size), axis=(2, 3))
    at_stack = yr.reshape(3, B * L, C)

    out = fused_residual_mlp(sc_stack, at_stack,
                             p["ln2_g"], p["ln2_b"], p["factor"],
                             p["w1"], p["b1"], p["w2"], p["b2"],
                             row_tile=_pick_row_tile(B * L))       # (3, B*L, C)
    return (out[0].reshape(B, L, C), out[1].reshape(B, L, C),
            out[2].reshape(B, L, C))


# ---------------------------------------------------------------------------
# Host-side bias / mask construction
# ---------------------------------------------------------------------------
def make_relative_position_bias_np(table_np, ws):
    coords = np.stack(np.meshgrid(np.arange(ws), np.arange(ws), indexing="ij"))
    coords_flatten = coords.reshape(2, -1)
    rel = coords_flatten[:, :, None] - coords_flatten[:, None, :]
    rel = rel.transpose(1, 2, 0).astype(np.int64)
    rel[:, :, 0] += ws - 1
    rel[:, :, 1] += ws - 1
    rel[:, :, 0] *= 2 * ws - 1
    idx = rel.sum(-1)
    N = ws * ws
    bias = table_np[idx.reshape(-1)].reshape(N, N, -1).transpose(2, 0, 1)
    return bias.astype(np.float32)                         # (heads, N, N)


def make_attn_mask_np(H, W, ws, shift):
    if shift == 0:
        return None
    img = np.zeros((1, H, W, 1), np.float32)
    slices = (slice(0, -ws), slice(-ws, -shift), slice(-shift, None))
    cnt = 0
    for hs in slices:
        for wsl in slices:
            img[:, hs, wsl, :] = cnt
            cnt += 1
    mw = (img.reshape(1, H // ws, ws, W // ws, ws, 1)
             .transpose(0, 1, 3, 2, 4, 5).reshape(-1, ws * ws))
    m = mw[:, None, :] - mw[:, :, None]
    return np.where(m != 0, -100.0, 0.0).astype(np.float32)   # (nW, N, N)


def make_window_bias(rel_np, mask_np, nW):
    """Pre-combined per-window additive bias: (heads, nW, N, N) bf16."""
    heads, N, _ = rel_np.shape
    wb = np.broadcast_to(rel_np[:, None, :, :], (heads, nW, N, N)).copy()
    if mask_np is not None:
        wb = wb + mask_np[None, :, :, :]
    return jnp.asarray(wb, dtype=jnp.bfloat16)


# ---------------------------------------------------------------------------
# Pure-JAX (f32) reference of the PyTorch module, for validation
# ---------------------------------------------------------------------------
def reference_forward(a, b, c, raw, *, H, W, num_heads, ws, shift,
                      rel_bias, mask):
    B, L, C = a.shape
    hd = C // num_heads
    scale = hd ** -0.5
    N = ws * ws
    nW = (H // ws) * (W // ws)

    def ln(x, g, bt):
        mu = x.mean(-1, keepdims=True)
        var = ((x - mu) ** 2).mean(-1, keepdims=True)
        return (x - mu) / jnp.sqrt(var + 1e-5) * g + bt

    def to_windows(x):
        x = x.reshape(B, H, W, C)
        if shift > 0:
            x = jnp.roll(x, (-shift, -shift), (1, 2))
        x = x.reshape(B, H // ws, ws, W // ws, ws, C).transpose(0, 1, 3, 2, 4, 5)
        return x.reshape(B * nW, N, C)

    def from_windows(xw):
        x = xw.reshape(B, H // ws, W // ws, ws, ws, C).transpose(0, 1, 3, 2, 4, 5)
        x = x.reshape(B, H, W, C)
        if shift > 0:
            x = jnp.roll(x, (shift, shift), (1, 2))
        return x.reshape(B, L, C)

    def heads_split(y):
        return y.reshape(-1, N, num_heads, hd).transpose(0, 2, 1, 3)

    aw = to_windows(ln(a, raw["ln1_1_g"], raw["ln1_1_b"]))
    bw = to_windows(ln(b, raw["ln1_2_g"], raw["ln1_2_b"]))
    cw = to_windows(ln(c, raw["ln1_3_g"], raw["ln1_3_b"]))

    def qkv(x, i):
        y = x @ raw[f"wqkv_{i}"] + raw[f"bqkv_{i}"]
        return (heads_split(y[..., :C]), heads_split(y[..., C:2 * C]),
                heads_split(y[..., 2 * C:]))

    q1, k1, v1 = qkv(aw, 1)
    _, k2, v2 = qkv(bw, 2)
    _, k3, v3 = qkv(cw, 3)
    q1 = q1 * scale

    def one_stream(k, v, i):
        att = jnp.einsum("bhnd,bhmd->bhnm", q1, k) + rel_bias[None]
        if mask is not None:
            att = att.reshape(B, nW, num_heads, N, N) + mask[None, :, None]
            att = att.reshape(B * nW, num_heads, N, N)
        att = jax.nn.softmax(att, axis=-1)
        o = jnp.einsum("bhnm,bhmd->bhnd", att, v)
        o = o.transpose(0, 2, 1, 3).reshape(B * nW, N, C)
        o = o @ raw[f"wproj_{i}"] + raw[f"bproj_{i}"]
        return from_windows(o)

    def mlp(x):
        h = x @ raw["w1"] + raw["b1"]
        h = 0.5 * h * (1.0 + lax.erf(h * 0.7071067811865476))
        return h @ raw["w2"] + raw["b2"]

    attn_outs = (one_stream(k1, v1, 1), one_stream(k2, v2, 2),
                 one_stream(k3, v3, 3))
    outs = []
    for i, (x0, o_att) in enumerate(zip((a, b, c), attn_outs), start=1):
        y = raw[f"factor_{i}"] * (x0 + o_att)
        outs.append(y + mlp(ln(y, raw[f"ln2_{i}_g"], raw[f"ln2_{i}_b"])))
    return outs


# ---------------------------------------------------------------------------
# Main
# ---------------------------------------------------------------------------
if __name__ == "__main__":
    # Small, module-consistent config: dim=32, 8x8 resolution, 4 heads,
    # window 4, shift 2, mlp_ratio 4.
    B, H, W, C = 2, 8, 8, 32
    num_heads, ws, shift = 4, 4, 2
    hidden = int(C * 4.0)
    N = ws * ws
    L = H * W
    nW = (H // ws) * (W // ws)
    scale = (C // num_heads) ** -0.5

    key = jax.random.PRNGKey(0)
    ks = iter(jax.random.split(key, 64))
    nrm = lambda shp, s=0.02: (s * jax.random.normal(next(ks), shp)).astype(jnp.float32)

    # "torch-like" raw f32 parameters (used by the pure-JAX reference)
    raw = {}
    for i in (1, 2, 3):
        raw[f"ln1_{i}_g"] = 1.0 + nrm((C,), 0.1)
        raw[f"ln1_{i}_b"] = nrm((C,), 0.1)
        raw[f"ln2_{i}_g"] = 1.0 + nrm((C,), 0.1)
        raw[f"ln2_{i}_b"] = nrm((C,), 0.1)
        raw[f"wqkv_{i}"] = nrm((C, 3 * C))          # (in, out) == torch weight.T
        raw[f"bqkv_{i}"] = nrm((3 * C,))
        raw[f"wproj_{i}"] = nrm((C, C))
        raw[f"bproj_{i}"] = nrm((C,))
        raw[f"factor_{i}"] = jnp.asarray(1.0 + 0.1 * (i - 2), dtype=jnp.float32)
    raw["w1"] = nrm((C, hidden))
    raw["b1"] = nrm((hidden,))
    raw["w2"] = nrm((hidden, C))
    raw["b2"] = nrm((C,))
    rpb_table = nrm(((2 * ws - 1) * (2 * ws - 1), num_heads))

    # kernel-side parameter packing: per-stream params stacked, bf16 weights,
    # softmax scale folded into the stream-a Q projection.
    def stack3(fmt):
        return jnp.stack([raw[fmt.format(i)] for i in (1, 2, 3)])

    p = {
        "ln1_g": stack3("ln1_{}_g").reshape(3, 1, C),
        "ln1_b": stack3("ln1_{}_b").reshape(3, 1, C),
        "ln2_g": stack3("ln2_{}_g").reshape(3, 1, C),
        "ln2_b": stack3("ln2_{}_b").reshape(3, 1, C),
        "factor": stack3("factor_{}").reshape(3, 1, 1),
        "wq1": (raw["wqkv_1"][:, :C] * scale).astype(jnp.bfloat16),
        "bq1": (raw["bqkv_1"][:C] * scale).reshape(1, C),
        "wk": jnp.stack([raw[f"wqkv_{i}"][:, C:2 * C]
                         for i in (1, 2, 3)]).astype(jnp.bfloat16),
        "bk": jnp.stack([raw[f"bqkv_{i}"][C:2 * C]
                         for i in (1, 2, 3)]).reshape(3, 1, C),
        "wv": jnp.stack([raw[f"wqkv_{i}"][:, 2 * C:]
                         for i in (1, 2, 3)]).astype(jnp.bfloat16),
        "bv": jnp.stack([raw[f"bqkv_{i}"][2 * C:]
                         for i in (1, 2, 3)]).reshape(3, 1, C),
        "wproj": stack3("wproj_{}").astype(jnp.bfloat16),
        "bproj": stack3("bproj_{}").reshape(3, 1, C),
        "w1": raw["w1"].astype(jnp.bfloat16),
        "b1": raw["b1"],
        "w2": raw["w2"].astype(jnp.bfloat16),
        "b2": raw["b2"],
    }

    rel_np = make_relative_position_bias_np(np.asarray(rpb_table), ws)  # (h,N,N)
    mask_np = make_attn_mask_np(H, W, ws, shift)                        # (nW,N,N)
    win_bias = make_window_bias(rel_np, mask_np, nW)                    # bf16

    a = jax.random.normal(next(ks), (B, L, C), jnp.float32)
    b = jax.random.normal(next(ks), (B, L, C), jnp.float32)
    c = jax.random.normal(next(ks), (B, L, C), jnp.float32)

    fwd = jax.jit(functools.partial(
        swin_block_forward, p=p, H=H, W=W, num_heads=num_heads,
        window_size=ws, shift_size=shift, win_bias=win_bias))

    aa, ab, ac = fwd(a, b, c)
    jax.block_until_ready((aa, ab, ac))
    assert aa.shape == (B, L, C) and ab.shape == (B, L, C) and ac.shape == (B, L, C)

    # validate against a pure-JAX f32 reference (tolerance covers bf16 traffic)
    ref_a, ref_b, ref_c = reference_forward(
        a, b, c, raw, H=H, W=W, num_heads=num_heads, ws=ws, shift=shift,
        rel_bias=jnp.asarray(rel_np),
        mask=None if mask_np is None else jnp.asarray(mask_np))
    for got, ref in ((aa, ref_a), (ab, ref_b), (ac, ref_c)):
        np.testing.assert_allclose(np.asarray(got), np.asarray(ref),
                                   atol=1.5e-1, rtol=5e-2)

    print("KERNEL_OK")
</pallas_src>

<mosaic_0001>
module attributes {stable_mosaic.version = 11 : i64} {
  func.func @_copy(%arg0: i32, %arg1: memref<8x128xf32, #tpu.memory_space<vmem>>, %arg2: memref<8x128xf32, #tpu.memory_space<vmem>>) attributes {dimension_semantics = [#tpu.dimension_semantics<arbitrary>], iteration_bounds = array<i64: 2>, scalar_prefetch = 0 : i64, scratch_operands = 0 : i64, tpu.core_type = #tpu.core_type<tc>, window_params = [{pipeline_mode = #tpu.pipeline_mode<synchronous>, transform_indices = @transform_0, window_bounds = array<i64: 8, 128>}, {pipeline_mode = #tpu.pipeline_mode<synchronous>, transform_indices = @transform_1, window_bounds = array<i64: 8, 128>}]} {
    %c0 = arith.constant 0 : index
    %c0_0 = arith.constant 0 : index
    %0 = vector.load %arg1[%c0, %c0_0] : memref<8x128xf32, #tpu.memory_space<vmem>>, vector<8x128xf32>
    %c0_1 = arith.constant 0 : index
    %c0_2 = arith.constant 0 : index
    %1 = vector.load %arg2[%c0_1, %c0_2] : memref<8x128xf32, #tpu.memory_space<vmem>>, vector<8x128xf32>
    tpu.vector_store %arg2[%c0_1, %c0_2], %0 {strides = array<i32>} : memref<8x128xf32, #tpu.memory_space<vmem>>, vector<8x128xf32>,
    return
  }
  func.func @transform_0(%arg0: i32) -> (i32, i32) {
    %c0_i32 = arith.constant 0 : i32
    %c0_i32_0 = arith.constant 0 : i32
    %c0_i32_1 = arith.constant 0 : i32
    return %c0_i32, %c0_i32_0 : i32, i32
  }
  func.func @transform_1(%arg0: i32) -> (i32, i32) {
    %c0_i32 = arith.constant 0 : i32
    %c0_i32_0 = arith.constant 0 : i32
    %c0_i32_1 = arith.constant 0 : i32
    return %c0_i32, %c0_i32_0 : i32, i32
  }
}

module attributes {stable_mosaic.version = 11 : i64} {
  func.func @_attn_kernel(%arg0: i32, %arg1: i32, %arg2: memref<3x64x32xbf16, #tpu.memory_space<vmem>>, %arg3: memref<3x1x32xf32, #tpu.memory_space<vmem>>, %arg4: memref<3x1x32xf32, #tpu.memory_space<vmem>>, %arg5: memref<32x32xbf16, #tpu.memory_space<vmem>>, %arg6: memref<1x32xf32, #tpu.memory_space<vmem>>, %arg7: memref<3x32x32xbf16, #tpu.memory_space<vmem>>, %arg8: memref<3x1x32xf32, #tpu.memory_space<vmem>>, %arg9: memref<3x32x32xbf16, #tpu.memory_space<vmem>>, %arg10: memref<3x1x32xf32, #tpu.memory_space<vmem>>, %arg11: memref<3x32x32xbf16, #tpu.memory_space<vmem>>, %arg12: memref<3x1x32xf32, #tpu.memory_space<vmem>>, %arg13: memref<4x4x16x16xbf16, #tpu.memory_space<vmem>>, %arg14: memref<3x64x32xbf16, #tpu.memory_space<vmem>>) attributes {dimension_semantics = [#tpu.dimension_semantics<parallel>, #tpu.dimension_semantics<parallel>], iteration_bounds = array<i64: 2, 1>, scalar_prefetch = 0 : i64, scratch_operands = 0 : i64, tpu.core_type = #tpu.core_type<tc>, window_params = [{transform_indices = @transform_0, window_bounds = array<i64: 3, 64, 32>}, {pipeline_mode = #tpu.pipeline_mode<synchronous>, transform_indices = @transform_1, window_bounds = array<i64: 3, 1, 32>}, {pipeline_mode = #tpu.pipeline_mode<synchronous>, transform_indices = @transform_2, window_bounds = array<i64: 3, 1, 32>}, {pipeline_mode = #tpu.pipeline_mode<synchronous>, transform_indices = @transform_3, window_bounds = array<i64: 32, 32>}, {pipeline_mode = #tpu.pipeline_mode<synchronous>, transform_indices = @transform_4, window_bounds = array<i64: 1, 32>}, {pipeline_mode = #tpu.pipeline_mode<synchronous>, transform_indices = @transform_5, window_bounds = array<i64: 3, 32, 32>}, {pipeline_mode = #tpu.pipeline_mode<synchronous>, transform_indices = @transform_6, window_bounds = array<i64: 3, 1, 32>}, {pipeline_mode = #tpu.pipeline_mode<synchronous>, transform_indices = @transform_7, window_bounds = array<i64: 3, 32, 32>}, {pipeline_mode = #tpu.pipeline_mode<synchronous>, transform_indices = @transform_8, window_bounds = array<i64: 3, 1, 32>}, {pipeline_mode = #tpu.pipeline_mode<synchronous>, transform_indices = @transform_9, window_bounds = array<i64: 3, 32, 32>}, {pipeline_mode = #tpu.pipeline_mode<synchronous>, transform_indices = @transform_10, window_bounds = array<i64: 3, 1, 32>}, {transform_indices = @transform_11, window_bounds = array<i64: 4, 4, 16, 16>}, {transform_indices = @transform_12, window_bounds = array<i64: 3, 64, 32>}]} {
    %c0 = arith.constant 0 : index
    %c0_0 = arith.constant 0 : index
    %c0_1 = arith.constant 0 : index
    %0 = vector.load %arg2[%c0, %c0_0, %c0_1] : memref<3x64x32xbf16, #tpu.memory_space<vmem>>, vector<1x64x32xbf16>
    %1 = vector.shape_cast %0 : vector<1x64x32xbf16> to vector<64x32xbf16>
    %c0_2 = arith.constant 0 : index
    %c0_3 = arith.constant 0 : index
    %c0_4 = arith.constant 0 : index
    %2 = vector.load %arg3[%c0_2, %c0_3, %c0_4] : memref<3x1x32xf32, #tpu.memory_space<vmem>>, vector<1x1x32xf32>
    %3 = vector.shape_cast %2 : vector<1x1x32xf32> to vector<1x32xf32>
    %c0_5 = arith.constant 0 : index
    %c0_6 = arith.constant 0 : index
    %c0_7 = arith.constant 0 : index
    %4 = vector.load %arg4[%c0_5, %c0_6, %c0_7] : memref<3x1x32xf32, #tpu.memory_space<vmem>>, vector<1x1x32xf32>
    %5 = vector.shape_cast %4 : vector<1x1x32xf32> to vector<1x32xf32>
    %6 = arith.extf %1 : vector<64x32xbf16> to vector<64x32xf32>
    %cst = arith.constant dense<0.000000e+00> : vector<64xf32>
    %7 = vector.multi_reduction <add>, %6, %cst [1] : vector<64x32xf32> to vector<64xf32>
    %8 = vector.shape_cast %7 : vector<64xf32> to vector<64x1xf32>
    %cst_8 = arith.constant 3.200000e+01 : f32
    %9 = vector.broadcast %cst_8 : f32 to vector<64x1xf32>
    %10 = arith.divf %8, %9 : vector<64x1xf32>
    %11 = vector.broadcast %10 : vector<64x1xf32> to vector<64x32xf32>
    %12 = arith.subf %6, %11 : vector<64x32xf32>
    %13 = arith.mulf %12, %12 : vector<64x32xf32>
    %cst_9 = arith.constant dense<0.000000e+00> : vector<64xf32>
    %14 = vector.multi_reduction <add>, %13, %cst_9 [1] : vector<64x32xf32> to vector<64xf32>
    %15 = vector.shape_cast %14 : vector<64xf32> to vector<64x1xf32>
    %cst_10 = arith.constant 3.200000e+01 : f32
    %16 = vector.broadcast %cst_10 : f32 to vector<64x1xf32>
    %17 = arith.divf %15, %16 : vector<64x1xf32>
    %18 = vector.broadcast %10 : vector<64x1xf32> to vector<64x32xf32>
    %19 = arith.subf %6, %18 : vector<64x32xf32>
    %cst_11 = arith.constant 9.99999974E-6 : f32
    %20 = vector.broadcast %cst_11 : f32 to vector<64x1xf32>
    %21 = arith.addf %17, %20 : vector<64x1xf32>
    %22 = math.rsqrt %21 : vector<64x1xf32>
    %23 = vector.broadcast %22 : vector<64x1xf32> to vector<64x32xf32>
    %24 = arith.mulf %19, %23 : vector<64x32xf32>
    %25 = vector.broadcast %3 : vector<1x32xf32> to vector<64x32xf32>
    %26 = arith.mulf %24, %25 : vector<64x32xf32>
    %27 = vector.broadcast %5 : vector<1x32xf32> to vector<64x32xf32>
    %28 = arith.addf %26, %27 : vector<64x32xf32>
    %c1 = arith.constant 1 : index
    %c0_12 = arith.constant 0 : index
    %c0_13 = arith.constant 0 : index
    %29 = vector.load %arg2[%c1, %c0_12, %c0_13] : memref<3x64x32xbf16, #tpu.memory_space<vmem>>, vector<1x64x32xbf16>
    %30 = vector.shape_cast %29 : vector<1x64x32xbf16> to vector<64x32xbf16>
    %c1_14 = arith.constant 1 : index
    %c0_15 = arith.constant 0 : index
    %c0_16 = arith.constant 0 : index
    %31 = vector.load %arg3[%c1_14, %c0_15, %c0_16] : memref<3x1x32xf32, #tpu.memory_space<vmem>>, vector<1x1x32xf32>
    %32 = vector.shape_cast %31 : vector<1x1x32xf32> to vector<1x32xf32>
    %c1_17 = arith.constant 1 : index
    %c0_18 = arith.constant 0 : index
    %c0_19 = arith.constant 0 : index
    %33 = vector.load %arg4[%c1_17, %c0_18, %c0_19] : memref<3x1x32xf32, #tpu.memory_space<vmem>>, vector<1x1x32xf32>
    %34 = vector.shape_cast %33 : vector<1x1x32xf32> to vector<1x32xf32>
    %35 = arith.extf %30 : vector<64x32xbf16> to vector<64x32xf32>
    %cst_20 = arith.constant dense<0.000000e+00> : vector<64xf32>
    %36 = vector.multi_reduction <add>, %35, %cst_20 [1] : vector<64x32xf32> to vector<64xf32>
    %37 = vector.shape_cast %36 : vector<64xf32> to vector<64x1xf32>
    %cst_21 = arith.constant 3.200000e+01 : f32
    %38 = vector.broadcast %cst_21 : f32 to vector<64x1xf32>
    %39 = arith.divf %37, %38 : vector<64x1xf32>
    %40 = vector.broadcast %39 : vector<64x1xf32> to vector<64x32xf32>
    %41 = arith.subf %35, %40 : vector<64x32xf32>
    %42 = arith.mulf %41, %41 : vector<64x32xf32>
    %cst_22 = arith.constant dense<0.000000e+00> : vector<64xf32>
    %43 = vector.multi_reduction <add>, %42, %cst_22 [1] : vector<64x32xf32> to vector<64xf32>
    %44 = vector.shape_cast %43 : vector<64xf32> to vector<64x1xf32>
    %cst_23 = arith.constant 3.200000e+01 : f32
    %45 = vector.broadcast %cst_23 : f32 to vector<64x1xf32>
    %46 = arith.divf %44, %45 : vector<64x1xf32>
    %47 = vector.broadcast %39 : vector<64x1xf32> to vector<64x32xf32>
    %48 = arith.subf %35, %47 : vector<64x32xf32>
    %cst_24 = arith.constant 9.99999974E-6 : f32
    %49 = vector.broadcast %cst_24 : f32 to vector<64x1xf32>
    %50 = arith.addf %46, %49 : vector<64x1xf32>
    %51 = math.rsqrt %50 : vector<64x1xf32>
    %52 = vector.broadcast %51 : vector<64x1xf32> to vector<64x32xf32>
    %53 = arith.mulf %48, %52 : vector<64x32xf32>
    %54 = vector.broadcast %32 : vector<1x32xf32> to vector<64x32xf32>
    %55 = arith.mulf %53, %54 : vector<64x32xf32>
    %56 = vector.broadcast %34 : vector<1x32xf32> to vector<64x32xf32>
    %57 = arith.addf %55, %56 : vector<64x32xf32>
    %c2 = arith.constant 2 : index
    %c0_25 = arith.constant 0 : index
    %c0_26 = arith.constant 0 : index
    %58 = vector.load %arg2[%c2, %c0_25, %c0_26] : memref<3x64x32xbf16, #tpu.memory_space<vmem>>, vector<1x64x32xbf16>
    %59 = vector.shape_cast %58 : vector<1x64x32xbf16> to vector<64x32xbf16>
    %c2_27 = arith.constant 2 : index
    %c0_28 = arith.constant 0 : index
    %c0_29 = arith.constant 0 : index
    %60 = vector.load %arg3[%c2_27, %c0_28, %c0_29] : memref<3x1x32xf32, #tpu.memory_space<vmem>>, vector<1x1x32xf32>
    %61 = vector.shape_cast %60 : vector<1x1x32xf32> to vector<1x32xf32>
    %c2_30 = arith.constant 2 : index
    %c0_31 = arith.constant 0 : index
    %c0_32 = arith.constant 0 : index
    %62 = vector.load %arg4[%c2_30, %c0_31, %c0_32] : memref<3x1x32xf32, #tpu.memory_space<vmem>>, vector<1x1x32xf32>
    %63 = vector.shape_cast %62 : vector<1x1x32xf32> to vector<1x32xf32>
    %64 = arith.extf %59 : vector<64x32xbf16> to vector<64x32xf32>
    %cst_33 = arith.constant dense<0.000000e+00> : vector<64xf32>
    %65 = vector.multi_reduction <add>, %64, %cst_33 [1] : vector<64x32xf32> to vector<64xf32>
    %66 = vector.shape_cast %65 : vector<64xf32> to vector<64x1xf32>
    %cst_34 = arith.constant 3.200000e+01 : f32
    %67 = vector.broadcast %cst_34 : f32 to vector<64x1xf32>
    %68 = arith.divf %66, %67 : vector<64x1xf32>
    %69 = vector.broadcast %68 : vector<64x1xf32> to vector<64x32xf32>
    %70 = arith.subf %64, %69 : vector<64x32xf32>
    %71 = arith.mulf %70, %70 : vector<64x32xf32>
    %cst_35 = arith.constant dense<0.000000e+00> : vector<64xf32>
    %72 = vector.multi_reduction <add>, %71, %cst_35 [1] : vector<64x32xf32> to vector<64xf32>
    %73 = vector.shape_cast %72 : vector<64xf32> to vector<64x1xf32>
    %cst_36 = arith.constant 3.200000e+01 : f32
    %74 = vector.broadcast %cst_36 : f32 to vector<64x1xf32>
    %75 = arith.divf %73, %74 : vector<64x1xf32>
    %76 = vector.broadcast %68 : vector<64x1xf32> to vector<64x32xf32>
    %77 = arith.subf %64, %76 : vector<64x32xf32>
    %cst_37 = arith.constant 9.99999974E-6 : f32
    %78 = vector.broadcast %cst_37 : f32 to vector<64x1xf32>
    %79 = arith.addf %75, %78 : vector<64x1xf32>
    %80 = math.rsqrt %79 : vector<64x1xf32>
    %81 = vector.broadcast %80 : vector<64x1xf32> to vector<64x32xf32>
    %82 = arith.mulf %77, %81 : vector<64x32xf32>
    %83 = vector.broadcast %61 : vector<1x32xf32> to vector<64x32xf32>
    %84 = arith.mulf %82, %83 : vector<64x32xf32>
    %85 = vector.broadcast %63 : vector<1x32xf32> to vector<64x32xf32>
    %86 = arith.addf %84, %85 : vector<64x32xf32>
    %c0_38 = arith.constant 0 : index
    %c0_39 = arith.constant 0 : index
    %87 = vector.load %arg5[%c0_38, %c0_39] : memref<32x32xbf16, #tpu.memory_space<vmem>>, vector<32x32xbf16>
    %c0_40 = arith.constant 0 : index
    %c0_41 = arith.constant 0 : index
    %88 = vector.load %arg6[%c0_40, %c0_41] : memref<1x32xf32, #tpu.memory_space<vmem>>, vector<1x32xf32>
    %89 = arith.truncf %28 : vector<64x32xf32> to vector<64x32xbf16>
    %cst_42 = arith.constant dense<0.000000e+00> : vector<64x32xf32>
    %90 = tpu.matmul %89, %87, %cst_42 {dimension_numbers = #tpu.dot_dimension_numbers<[1], [0], [0], [1], [0, 0, 1, 1], [], []>} : vector<64x32xbf16>, vector<32x32xbf16>, vector<64x32xf32> -> vector<64x32xf32>
    %91 = vector.broadcast %88 : vector<1x32xf32> to vector<64x32xf32>
    %92 = arith.addf %90, %91 : vector<64x32xf32>
    %93 = arith.truncf %92 : vector<64x32xf32> to vector<64x32xbf16>
    %94 = vector.shape_cast %93 : vector<64x32xbf16> to vector<4x16x32xbf16>
    %c0_43 = arith.constant 0 : index
    %c0_44 = arith.constant 0 : index
    %c0_45 = arith.constant 0 : index
    %95 = vector.load %arg7[%c0_43, %c0_44, %c0_45] : memref<3x32x32xbf16, #tpu.memory_space<vmem>>, vector<1x32x32xbf16>
    %96 = vector.shape_cast %95 : vector<1x32x32xbf16> to vector<32x32xbf16>
    %c0_46 = arith.constant 0 : index
    %c0_47 = arith.constant 0 : index
    %c0_48 = arith.constant 0 : index
    %97 = vector.load %arg8[%c0_46, %c0_47, %c0_48] : memref<3x1x32xf32, #tpu.memory_space<vmem>>, vector<1x1x32xf32>
    %98 = vector.shape_cast %97 : vector<1x1x32xf32> to vector<1x32xf32>
    %99 = arith.truncf %28 : vector<64x32xf32> to vector<64x32xbf16>
    %cst_49 = arith.constant dense<0.000000e+00> : vector<64x32xf32>
    %100 = tpu.matmul %99, %96, %cst_49 {dimension_numbers = #tpu.dot_dimension_numbers<[1], [0], [0], [1], [0, 0, 1, 1], [], []>} : vector<64x32xbf16>, vector<32x32xbf16>, vector<64x32xf32> -> vector<64x32xf32>
    %101 = vector.broadcast %98 : vector<1x32xf32> to vector<64x32xf32>
    %102 = arith.addf %100, %101 : vector<64x32xf32>
    %103 = arith.truncf %102 : vector<64x32xf32> to vector<64x32xbf16>
    %104 = vector.shape_cast %103 : vector<64x32xbf16> to vector<4x16x32xbf16>
    %c0_50 = arith.constant 0 : index
    %c0_51 = arith.constant 0 : index
    %c0_52 = arith.constant 0 : index
    %105 = vector.load %arg9[%c0_50, %c0_51, %c0_52] : memref<3x32x32xbf16, #tpu.memory_space<vmem>>, vector<1x32x32xbf16>
    %106 = vector.shape_cast %105 : vector<1x32x32xbf16> to vector<32x32xbf16>
    %c0_53 = arith.constant 0 : index
    %c0_54 = arith.constant 0 : index
    %c0_55 = arith.constant 0 : index
    %107 = vector.load %arg10[%c0_53, %c0_54, %c0_55] : memref<3x1x32xf32, #tpu.memory_space<vmem>>, vector<1x1x32xf32>
    %108 = vector.shape_cast %107 : vector<1x1x32xf32> to vector<1x32xf32>
    %109 = arith.truncf %28 : vector<64x32xf32> to vector<64x32xbf16>
    %cst_56 = arith.constant dense<0.000000e+00> : vector<64x32xf32>
    %110 = tpu.matmul %109, %106, %cst_56 {dimension_numbers = #tpu.dot_dimension_numbers<[1], [0], [0], [1], [0, 0, 1, 1], [], []>} : vector<64x32xbf16>, vector<32x32xbf16>, vector<64x32xf32> -> vector<64x32xf32>
    %111 = vector.broadcast %108 : vector<1x32xf32> to vector<64x32xf32>
    %112 = arith.addf %110, %111 : vector<64x32xf32>
    %113 = arith.truncf %112 : vector<64x32xf32> to vector<64x32xbf16>
    %114 = vector.shape_cast %113 : vector<64x32xbf16> to vector<4x16x32xbf16>
    %c1_57 = arith.constant 1 : index
    %c0_58 = arith.constant 0 : index
    %c0_59 = arith.constant 0 : index
    %115 = vector.load %arg7[%c1_57, %c0_58, %c0_59] : memref<3x32x32xbf16, #tpu.memory_space<vmem>>, vector<1x32x32xbf16>
    %116 = vector.shape_cast %115 : vector<1x32x32xbf16> to vector<32x32xbf16>
    %c1_60 = arith.constant 1 : index
    %c0_61 = arith.constant 0 : index
    %c0_62 = arith.constant 0 : index
    %117 = vector.load %arg8[%c1_60, %c0_61, %c0_62] : memref<3x1x32xf32, #tpu.memory_space<vmem>>, vector<1x1x32xf32>
    %118 = vector.shape_cast %117 : vector<1x1x32xf32> to vector<1x32xf32>
    %119 = arith.truncf %57 : vector<64x32xf32> to vector<64x32xbf16>
    %cst_63 = arith.constant dense<0.000000e+00> : vector<64x32xf32>
    %120 = tpu.matmul %119, %116, %cst_63 {dimension_numbers = #tpu.dot_dimension_numbers<[1], [0], [0], [1], [0, 0, 1, 1], [], []>} : vector<64x32xbf16>, vector<32x32xbf16>, vector<64x32xf32> -> vector<64x32xf32>
    %121 = vector.broadcast %118 : vector<1x32xf32> to vector<64x32xf32>
    %122 = arith.addf %120, %121 : vector<64x32xf32>
    %123 = arith.truncf %122 : vector<64x32xf32> to vector<64x32xbf16>
    %124 = vector.shape_cast %123 : vector<64x32xbf16> to vector<4x16x32xbf16>
    %c1_64 = arith.constant 1 : index
    %c0_65 = arith.constant 0 : index
    %c0_66 = arith.constant 0 : index
    %125 = vector.load %arg9[%c1_64, %c0_65, %c0_66] : memref<3x32x32xbf16, #tpu.memory_space<vmem>>, vector<1x32x32xbf16>
    %126 = vector.shape_cast %125 : vector<1x32x32xbf16> to vector<32x32xbf16>
    %c1_67 = arith.constant 1 : index
    %c0_68 = arith.constant 0 : index
    %c0_69 = arith.constant 0 : index
    %127 = vector.load %arg10[%c1_67, %c0_68, %c0_69] : memref<3x1x32xf32, #tpu.memory_space<vmem>>, vector<1x1x32xf32>
    %128 = vector.shape_cast %127 : vector<1x1x32xf32> to vector<1x32xf32>
    %129 = arith.truncf %57 : vector<64x32xf32> to vector<64x32xbf16>
    %cst_70 = arith.constant dense<0.000000e+00> : vector<64x32xf32>
    %130 = tpu.matmul %129, %126, %cst_70 {dimension_numbers = #tpu.dot_dimension_numbers<[1], [0], [0], [1], [0, 0, 1, 1], [], []>} : vector<64x32xbf16>, vector<32x32xbf16>, vector<64x32xf32> -> vector<64x32xf32>
    %131 = vector.broadcast %128 : vector<1x32xf32> to vector<64x32xf32>
    %132 = arith.addf %130, %131 : vector<64x32xf32>
    %133 = arith.truncf %132 : vector<64x32xf32> to vector<64x32xbf16>
    %134 = vector.shape_cast %133 : vector<64x32xbf16> to vector<4x16x32xbf16>
    %c2_71 = arith.constant 2 : index
    %c0_72 = arith.constant 0 : index
    %c0_73 = arith.constant 0 : index
    %135 = vector.load %arg7[%c2_71, %c0_72, %c0_73] : memref<3x32x32xbf16, #tpu.memory_space<vmem>>, vector<1x32x32xbf16>
    %136 = vector.shape_cast %135 : vector<1x32x32xbf16> to vector<32x32xbf16>
    %c2_74 = arith.constant 2 : index
    %c0_75 = arith.constant 0 : index
    %c0_76 = arith.constant 0 : index
    %137 = vector.load %arg8[%c2_74, %c0_75, %c0_76] : memref<3x1x32xf32, #tpu.memory_space<vmem>>, vector<1x1x32xf32>
    %138 = vector.shape_cast %137 : vector<1x1x32xf32> to vector<1x32xf32>
    %139 = arith.truncf %86 : vector<64x32xf32> to vector<64x32xbf16>
    %cst_77 = arith.constant dense<0.000000e+00> : vector<64x32xf32>
    %140 = tpu.matmul %139, %136, %cst_77 {dimension_numbers = #tpu.dot_dimension_numbers<[1], [0], [0], [1], [0, 0, 1, 1], [], []>} : vector<64x32xbf16>, vector<32x32xbf16>, vector<64x32xf32> -> vector<64x32xf32>
    %141 = vector.broadcast %138 : vector<1x32xf32> to vector<64x32xf32>
    %142 = arith.addf %140, %141 : vector<64x32xf32>
    %143 = arith.truncf %142 : vector<64x32xf32> to vector<64x32xbf16>
    %144 = vector.shape_cast %143 : vector<64x32xbf16> to vector<4x16x32xbf16>
    %c2_78 = arith.constant 2 : index
    %c0_79 = arith.constant 0 : index
    %c0_80 = arith.constant 0 : index
    %145 = vector.load %arg9[%c2_78, %c0_79, %c0_80] : memref<3x32x32xbf16, #tpu.memory_space<vmem>>, vector<1x32x32xbf16>
    %146 = vector.shape_cast %145 : vector<1x32x32xbf16> to vector<32x32xbf16>
    %c2_81 = arith.constant 2 : index
    %c0_82 = arith.constant 0 : index
    %c0_83 = arith.constant 0 : index
    %147 = vector.load %arg10[%c2_81, %c0_82, %c0_83] : memref<3x1x32xf32, #tpu.memory_space<vmem>>, vector<1x1x32xf32>
    %148 = vector.shape_cast %147 : vector<1x1x32xf32> to vector<1x32xf32>
    %149 = arith.truncf %86 : vector<64x32xf32> to vector<64x32xbf16>
    %cst_84 = arith.constant dense<0.000000e+00> : vector<64x32xf32>
    %150 = tpu.matmul %149, %146, %cst_84 {dimension_numbers = #tpu.dot_dimension_numbers<[1], [0], [0], [1], [0, 0, 1, 1], [], []>} : vector<64x32xbf16>, vector<32x32xbf16>, vector<64x32xf32> -> vector<64x32xf32>
    %151 = vector.broadcast %148 : vector<1x32xf32> to vector<64x32xf32>
    %152 = arith.addf %150, %151 : vector<64x32xf32>
    %153 = arith.truncf %152 : vector<64x32xf32> to vector<64x32xbf16>
    %154 = vector.shape_cast %153 : vector<64x32xbf16> to vector<4x16x32xbf16>
    %c0_85 = arith.constant 0 : index
    %c0_86 = arith.constant 0 : index
    %c0_87 = arith.constant 0 : index
    %c0_88 = arith.constant 0 : index
    %155 = vector.load %arg13[%c0_85, %c0_86, %c0_87, %c0_88] : memref<4x4x16x16xbf16, #tpu.memory_space<vmem>>, vector<4x4x16x16xbf16>
    %156 = arith.extf %155 : vector<4x4x16x16xbf16> to vector<4x4x16x16xf32>
    %157 = vector.extract_strided_slice %94 {offsets = [0, 0, 0], sizes = [4, 16, 8], strides = [1, 1, 1]} : vector<4x16x32xbf16> to vector<4x16x8xbf16>
    %158 = vector.extract_strided_slice %104 {offsets = [0, 0, 0], sizes = [4, 16, 8], strides = [1, 1, 1]} : vector<4x16x32xbf16> to vector<4x16x8xbf16>
    "tpu.trace_start"() <{level = 10 : i32, message = "wqd,wkd->wqk"}> : () -> ()
    %cst_89 = arith.constant dense<0.000000e+00> : vector<4x16x16xf32>
    %159 = tpu.matmul %157, %158, %cst_89 {dimension_numbers = #tpu.dot_dimension_numbers<[2], [2], [1], [1], [0, 0, 0, 1, 1, 1], [0], [0]>} : vector<4x16x8xbf16>, vector<4x16x8xbf16>, vector<4x16x16xf32> -> vector<4x16x16xf32>
    "tpu.trace_stop"() : () -> ()
    %160 = vector.extract_strided_slice %156 {offsets = [0, 0, 0, 0], sizes = [1, 4, 16, 16], strides = [1, 1, 1, 1]} : vector<4x4x16x16xf32> to vector<1x4x16x16xf32>
    %161 = vector.shape_cast %160 : vector<1x4x16x16xf32> to vector<4x16x16xf32>
    %162 = arith.addf %159, %161 : vector<4x16x16xf32>
    %cst_90 = arith.constant dense<0xFF800000> : vector<4x16xf32>
    %163 = vector.multi_reduction <maximumf>, %162, %cst_90 [2] : vector<4x16x16xf32> to vector<4x16xf32>
    %164 = vector.shape_cast %163 : vector<4x16xf32> to vector<4x16x1xf32>
    %165 = vector.broadcast %164 : vector<4x16x1xf32> to vector<4x16x16xf32>
    %166 = arith.subf %162, %165 : vector<4x16x16xf32>
    %167 = math.exp %166 : vector<4x16x16xf32>
    %cst_91 = arith.constant dense<0.000000e+00> : vector<4x16xf32>
    %168 = vector.multi_reduction <add>, %167, %cst_91 [2] : vector<4x16x16xf32> to vector<4x16xf32>
    %169 = vector.shape_cast %168 : vector<4x16xf32> to vector<4x16x1xf32>
    %170 = tpu.reciprocal %169 {approx = true} : vector<4x16x1xf32> -> vector<4x16x1xf32>
    %171 = vector.broadcast %170 : vector<4x16x1xf32> to vector<4x16x16xf32>
    %172 = arith.mulf %167, %171 : vector<4x16x16xf32>
    %173 = arith.truncf %172 : vector<4x16x16xf32> to vector<4x16x16xbf16>
    %174 = vector.extract_strided_slice %114 {offsets = [0, 0, 0], sizes = [4, 16, 8], strides = [1, 1, 1]} : vector<4x16x32xbf16> to vector<4x16x8xbf16>
    "tpu.trace_start"() <{level = 10 : i32, message = "wqk,wkd->wqd"}> : () -> ()
    %cst_92 = arith.constant dense<0.000000e+00> : vector<4x16x8xf32>
    %175 = tpu.matmul %173, %174, %cst_92 {dimension_numbers = #tpu.dot_dimension_numbers<[2], [1], [1], [2], [0, 0, 0, 1, 1, 2], [0], [0]>} : vector<4x16x16xbf16>, vector<4x16x8xbf16>, vector<4x16x8xf32> -> vector<4x16x8xf32>
    "tpu.trace_stop"() : () -> ()
    %176 = vector.extract_strided_slice %94 {offsets = [0, 0, 8], sizes = [4, 16, 8], strides = [1, 1, 1]} : vector<4x16x32xbf16> to vector<4x16x8xbf16>
    %177 = vector.extract_strided_slice %104 {offsets = [0, 0, 8], sizes = [4, 16, 8], strides = [1, 1, 1]} : vector<4x16x32xbf16> to vector<4x16x8xbf16>
    "tpu.trace_start"() <{level = 10 : i32, message = "wqd,wkd->wqk"}> : () -> ()
    %cst_93 = arith.constant dense<0.000000e+00> : vector<4x16x16xf32>
    %178 = tpu.matmul %176, %177, %cst_93 {dimension_numbers = #tpu.dot_dimension_numbers<[2], [2], [1], [1], [0, 0, 0, 1, 1, 1], [0], [0]>} : vector<4x16x8xbf16>, vector<4x16x8xbf16>, vector<4x16x16xf32> -> vector<4x16x16xf32>
    "tpu.trace_stop"() : () -> ()
    %179 = vector.extract_strided_slice %156 {offsets = [1, 0, 0, 0], sizes = [1, 4, 16, 16], strides = [1, 1, 1, 1]} : vector<4x4x16x16xf32> to vector<1x4x16x16xf32>
    %180 = vector.shape_cast %179 : vector<1x4x16x16xf32> to vector<4x16x16xf32>
    %181 = arith.addf %178, %180 : vector<4x16x16xf32>
    %cst_94 = arith.constant dense<0xFF800000> : vector<4x16xf32>
    %182 = vector.multi_reduction <maximumf>, %181, %cst_94 [2] : vector<4x16x16xf32> to vector<4x16xf32>
    %183 = vector.shape_cast %182 : vector<4x16xf32> to vector<4x16x1xf32>
    %184 = vector.broadcast %183 : vector<4x16x1xf32> to vector<4x16x16xf32>
    %185 = arith.subf %181, %184 : vector<4x16x16xf32>
    %186 = math.exp %185 : vector<4x16x16xf32>
    %cst_95 = arith.constant dense<0.000000e+00> : vector<4x16xf32>
    %187 = vector.multi_reduction <add>, %186, %cst_95 [2] : vector<4x16x16xf32> to vector<4x16xf32>
    %188 = vector.shape_cast %187 : vector<4x16xf32> to vector<4x16x1xf32>
    %189 = tpu.reciprocal %188 {approx = true} : vector<4x16x1xf32> -> vector<4x16x1xf32>
    %190 = vector.broadcast %189 : vector<4x16x1xf32> to vector<4x16x16xf32>
    %191 = arith.mulf %186, %190 : vector<4x16x16xf32>
    %192 = arith.truncf %191 : vector<4x16x16xf32> to vector<4x16x16xbf16>
    %193 = vector.extract_strided_slice %114 {offsets = [0, 0, 8], sizes = [4, 16, 8], strides = [1, 1, 1]} : vector<4x16x32xbf16> to vector<4x16x8xbf16>
    "tpu.trace_start"() <{level = 10 : i32, message = "wqk,wkd->wqd"}> : () -> ()
    %cst_96 = arith.constant dense<0.000000e+00> : vector<4x16x8xf32>
    %194 = tpu.matmul %192, %193, %cst_96 {dimension_numbers = #tpu.dot_dimension_numbers<[2], [1], [1], [2], [0, 0, 0, 1, 1, 2], [0], [0]>} : vector<4x16x16xbf16>, vector<4x16x8xbf16>, vector<4x16x8xf32> -> vector<4x16x8xf32>
    "tpu.trace_stop"() : () -> ()
    %195 = vector.extract_strided_slice %94 {offsets = [0, 0, 16], sizes = [4, 16, 8], strides = [1, 1, 1]} : vector<4x16x32xbf16> to vector<4x16x8xbf16>
    %196 = vector.extract_strided_slice %104 {offsets = [0, 0, 16], sizes = [4, 16, 8], strides = [1, 1, 1]} : vector<4x16x32xbf16> to vector<4x16x8xbf16>
    "tpu.trace_start"() <{level = 10 : i32, message = "wqd,wkd->wqk"}> : () -> ()
    %cst_97 = arith.constant dense<0.000000e+00> : vector<4x16x16xf32>
    %197 = tpu.matmul %195, %196, %cst_97 {dimension_numbers = #tpu.dot_dimension_numbers<[2], [2], [1], [1], [0, 0, 0, 1, 1, 1], [0], [0]>} : vector<4x16x8xbf16>, vector<4x16x8xbf16>, vector<4x16x16xf32> -> vector<4x16x16xf32>
    "tpu.trace_stop"() : () -> ()
    %198 = vector.extract_strided_slice %156 {offsets = [2, 0, 0, 0], sizes = [1, 4, 16, 16], strides = [1, 1, 1, 1]} : vector<4x4x16x16xf32> to vector<1x4x16x16xf32>
    %199 = vector.shape_cast %198 : vector<1x4x16x16xf32> to vector<4x16x16xf32>
    %200 = arith.addf %197, %199 : vector<4x16x16xf32>
    %cst_98 = arith.constant dense<0xFF800000> : vector<4x16xf32>
    %201 = vector.multi_reduction <maximumf>, %200, %cst_98 [2] : vector<4x16x16xf32> to vector<4x16xf32>
    %202 = vector.shape_cast %201 : vector<4x16xf32> to vector<4x16x1xf32>
    %203 = vector.broadcast %202 : vector<4x16x1xf32> to vector<4x16x16xf32>
    %204 = arith.subf %200, %203 : vector<4x16x16xf32>
    %205 = math.exp %204 : vector<4x16x16xf32>
    %cst_99 = arith.constant dense<0.000000e+00> : vector<4x16xf32>
    %206 = vector.multi_reduction <add>, %205, %cst_99 [2] : vector<4x16x16xf32> to vector<4x16xf32>
    %207 = vector.shape_cast %206 : vector<4x16xf32> to vector<4x16x1xf32>
    %208 = tpu.reciprocal %207 {approx = true} : vector<4x16x1xf32> -> vector<4x16x1xf32>
    %209 = vector.broadcast %208 : vector<4x16x1xf32> to vector<4x16x16xf32>
    %210 = arith.mulf %205, %209 : vector<4x16x16xf32>
    %211 = arith.truncf %210 : vector<4x16x16xf32> to vector<4x16x16xbf16>
    %212 = vector.extract_strided_slice %114 {offsets = [0, 0, 16], sizes = [4, 16, 8], strides = [1, 1, 1]} : vector<4x16x32xbf16> to vector<4x16x8xbf16>
    "tpu.trace_start"() <{level = 10 : i32, message = "wqk,wkd->wqd"}> : () -> ()
    %cst_100 = arith.constant dense<0.000000e+00> : vector<4x16x8xf32>
    %213 = tpu.matmul %211, %212, %cst_100 {dimension_numbers = #tpu.dot_dimension_numbers<[2], [1], [1], [2], [0, 0, 0, 1, 1, 2], [0], [0]>} : vector<4x16x16xbf16>, vector<4x16x8xbf16>, vector<4x16x8xf32> -> vector<4x16x8xf32>
    "tpu.trace_stop"() : () -> ()
    %214 = vector.extract_strided_slice %94 {offsets = [0, 0, 24], sizes = [4, 16, 8], strides = [1, 1, 1]} : vector<4x16x32xbf16> to vector<4x16x8xbf16>
    %215 = vector.extract_strided_slice %104 {offsets = [0, 0, 24], sizes = [4, 16, 8], strides = [1, 1, 1]} : vector<4x16x32xbf16> to vector<4x16x8xbf16>
    "tpu.trace_start"() <{level = 10 : i32, message = "wqd,wkd->wqk"}> : () -> ()
    %cst_101 = arith.constant dense<0.000000e+00> : vector<4x16x16xf32>
    %216 = tpu.matmul %214, %215, %cst_101 {dimension_numbers = #tpu.dot_dimension_numbers<[2], [2], [1], [1], [0, 0, 0, 1, 1, 1], [0], [0]>} : vector<4x16x8xbf16>, vector<4x16x8xbf16>, vector<4x16x16xf32> -> vector<4x16x16xf32>
    "tpu.trace_stop"() : () -> ()
    %217 = vector.extract_strided_slice %156 {offsets = [3, 0, 0, 0], sizes = [1, 4, 16, 16], strides = [1, 1, 1, 1]} : vector<4x4x16x16xf32> to vector<1x4x16x16xf32>
    %218 = vector.shape_cast %217 : vector<1x4x16x16xf32> to vector<4x16x16xf32>
    %219 = arith.addf %216, %218 : vector<4x16x16xf32>
    %cst_102 = arith.constant dense<0xFF800000> : vector<4x16xf32>
    %220 = vector.multi_reduction <maximumf>, %219, %cst_102 [2] : vector<4x16x16xf32> to vector<4x16xf32>
    %221 = vector.shape_cast %220 : vector<4x16xf32> to vector<4x16x1xf32>
    %222 = vector.broadcast %221 : vector<4x16x1xf32> to vector<4x16x16xf32>
    %223 = arith.subf %219, %222 : vector<4x16x16xf32>
    %224 = math.exp %223 : vector<4x16x16xf32>
    %cst_103 = arith.constant dense<0.000000e+00> : vector<4x16xf32>
    %225 = vector.multi_reduction <add>, %224, %cst_103 [2] : vector<4x16x16xf32> to vector<4x16xf32>
    %226 = vector.shape_cast %225 : vector<4x16xf32> to vector<4x16x1xf32>
    %227 = tpu.reciprocal %226 {approx = true} : vector<4x16x1xf32> -> vector<4x16x1xf32>
    %228 = vector.broadcast %227 : vector<4x16x1xf32> to vector<4x16x16xf32>
    %229 = arith.mulf %224, %228 : vector<4x16x16xf32>
    %230 = arith.truncf %229 : vector<4x16x16xf32> to vector<4x16x16xbf16>
    %231 = vector.extract_strided_slice %114 {offsets = [0, 0, 24], sizes = [4, 16, 8], strides = [1, 1, 1]} : vector<4x16x32xbf16> to vector<4x16x8xbf16>
    "tpu.trace_start"() <{level = 10 : i32, message = "wqk,wkd->wqd"}> : () -> ()
    %cst_104 = arith.constant dense<0.000000e+00> : vector<4x16x8xf32>
    %232 = tpu.matmul %230, %231, %cst_104 {dimension_numbers = #tpu.dot_dimension_numbers<[2], [1], [1], [2], [0, 0, 0, 1, 1, 2], [0], [0]>} : vector<4x16x16xbf16>, vector<4x16x8xbf16>, vector<4x16x8xf32> -> vector<4x16x8xf32>
    "tpu.trace_stop"() : () -> ()
    %233 = tpu.concatenate %175, %194, %213, %232 in 2 : vector<4x16x8xf32>, vector<4x16x8xf32>, vector<4x16x8xf32>, vector<4x16x8xf32> -> vector<4x16x32xf32>
    %234 = vector.shape_cast %233 : vector<4x16x32xf32> to vector<64x32xf32>
    %c0_105 = arith.constant 0 : index
    %c0_106 = arith.constant 0 : index
    %c0_107 = arith.constant 0 : index
    %235 = vector.load %arg11[%c0_105, %c0_106, %c0_107] : memref<3x32x32xbf16, #tpu.memory_space<vmem>>, vector<1x32x32xbf16>
    %236 = vector.shape_cast %235 : vector<1x32x32xbf16> to vector<32x32xbf16>
    %c0_108 = arith.constant 0 : index
    %c0_109 = arith.constant 0 : index
    %c0_110 = arith.constant 0 : index
    %237 = vector.load %arg12[%c0_108, %c0_109, %c0_110] : memref<3x1x32xf32, #tpu.memory_space<vmem>>, vector<1x1x32xf32>
    %238 = vector.shape_cast %237 : vector<1x1x32xf32> to vector<1x32xf32>
    %239 = arith.truncf %234 : vector<64x32xf32> to vector<64x32xbf16>
    %cst_111 = arith.constant dense<0.000000e+00> : vector<64x32xf32>
    %240 = tpu.matmul %239, %236, %cst_111 {dimension_numbers = #tpu.dot_dimension_numbers<[1], [0], [0], [1], [0, 0, 1, 1], [], []>} : vector<64x32xbf16>, vector<32x32xbf16>, vector<64x32xf32> -> vector<64x32xf32>
    %241 = vector.broadcast %238 : vector<1x32xf32> to vector<64x32xf32>
    %242 = arith.addf %240, %241 : vector<64x32xf32>
    %243 = arith.truncf %242 : vector<64x32xf32> to vector<64x32xbf16>
    %c0_112 = arith.constant 0 : index
    %c0_113 = arith.constant 0 : index
    %c0_114 = arith.constant 0 : index
    %244 = vector.load %arg14[%c0_112, %c0_113, %c0_114] : memref<3x64x32xbf16, #tpu.memory_space<vmem>>, vector<1x64x32xbf16>
    %245 = vector.shape_cast %244 : vector<1x64x32xbf16> to vector<64x32xbf16>
    %246 = vector.shape_cast %243 : vector<64x32xbf16> to vector<1x64x32xbf16>
    tpu.vector_store %arg14[%c0_112, %c0_113, %c0_114], %246 {strides = array<i32>} : memref<3x64x32xbf16, #tpu.memory_space<vmem>>, vector<1x64x32xbf16>,
    %247 = vector.extract_strided_slice %94 {offsets = [0, 0, 0], sizes = [4, 16, 8], strides = [1, 1, 1]} : vector<4x16x32xbf16> to vector<4x16x8xbf16>
    %248 = vector.extract_strided_slice %124 {offsets = [0, 0, 0], sizes = [4, 16, 8], strides = [1, 1, 1]} : vector<4x16x32xbf16> to vector<4x16x8xbf16>
    "tpu.trace_start"() <{level = 10 : i32, message = "wqd,wkd->wqk"}> : () -> ()
    %cst_115 = arith.constant dense<0.000000e+00> : vector<4x16x16xf32>
    %249 = tpu.matmul %247, %248, %cst_115 {dimension_numbers = #tpu.dot_dimension_numbers<[2], [2], [1], [1], [0, 0, 0, 1, 1, 1], [0], [0]>} : vector<4x16x8xbf16>, vector<4x16x8xbf16>, vector<4x16x16xf32> -> vector<4x16x16xf32>
    "tpu.trace_stop"() : () -> ()
    %250 = vector.extract_strided_slice %156 {offsets = [0, 0, 0, 0], sizes = [1, 4, 16, 16], strides = [1, 1, 1, 1]} : vector<4x4x16x16xf32> to vector<1x4x16x16xf32>
    %251 = vector.shape_cast %250 : vector<1x4x16x16xf32> to vector<4x16x16xf32>
    %252 = arith.addf %249, %251 : vector<4x16x16xf32>
    %cst_116 = arith.constant dense<0xFF800000> : vector<4x16xf32>
    %253 = vector.multi_reduction <maximumf>, %252, %cst_116 [2] : vector<4x16x16xf32> to vector<4x16xf32>
    %254 = vector.shape_cast %253 : vector<4x16xf32> to vector<4x16x1xf32>
    %255 = vector.broadcast %254 : vector<4x16x1xf32> to vector<4x16x16xf32>
    %256 = arith.subf %252, %255 : vector<4x16x16xf32>
    %257 = math.exp %256 : vector<4x16x16xf32>
    %cst_117 = arith.constant dense<0.000000e+00> : vector<4x16xf32>
    %258 = vector.multi_reduction <add>, %257, %cst_117 [2] : vector<4x16x16xf32> to vector<4x16xf32>
    %259 = vector.shape_cast %258 : vector<4x16xf32> to vector<4x16x1xf32>
    %260 = tpu.reciprocal %259 {approx = true} : vector<4x16x1xf32> -> vector<4x16x1xf32>
    %261 = vector.broadcast %260 : vector<4x16x1xf32> to vector<4x16x16xf32>
    %262 = arith.mulf %257, %261 : vector<4x16x16xf32>
    %263 = arith.truncf %262 : vector<4x16x16xf32> to vector<4x16x16xbf16>
    %264 = vector.extract_strided_slice %134 {offsets = [0, 0, 0], sizes = [4, 16, 8], strides = [1, 1, 1]} : vector<4x16x32xbf16> to vector<4x16x8xbf16>
    "tpu.trace_start"() <{level = 10 : i32, message = "wqk,wkd->wqd"}> : () -> ()
    %cst_118 = arith.constant dense<0.000000e+00> : vector<4x16x8xf32>
    %265 = tpu.matmul %263, %264, %cst_118 {dimension_numbers = #tpu.dot_dimension_numbers<[2], [1], [1], [2], [0, 0, 0, 1, 1, 2], [0], [0]>} : vector<4x16x16xbf16>, vector<4x16x8xbf16>, vector<4x16x8xf32> -> vector<4x16x8xf32>
    "tpu.trace_stop"() : () -> ()
    %266 = vector.extract_strided_slice %94 {offsets = [0, 0, 8], sizes = [4, 16, 8], strides = [1, 1, 1]} : vector<4x16x32xbf16> to vector<4x16x8xbf16>
    %267 = vector.extract_strided_slice %124 {offsets = [0, 0, 8], sizes = [4, 16, 8], strides = [1, 1, 1]} : vector<4x16x32xbf16> to vector<4x16x8xbf16>
    "tpu.trace_start"() <{level = 10 : i32, message = "wqd,wkd->wqk"}> : () -> ()
    %cst_119 = arith.constant dense<0.000000e+00> : vector<4x16x16xf32>
    %268 = tpu.matmul %266, %267, %cst_119 {dimension_numbers = #tpu.dot_dimension_numbers<[2], [2], [1], [1], [0, 0, 0, 1, 1, 1], [0], [0]>} : vector<4x16x8xbf16>, vector<4x16x8xbf16>, vector<4x16x16xf32> -> vector<4x16x16xf32>
    "tpu.trace_stop"() : () -> ()
    %269 = vector.extract_strided_slice %156 {offsets = [1, 0, 0, 0], sizes = [1, 4, 16, 16], strides = [1, 1, 1, 1]} : vector<4x4x16x16xf32> to vector<1x4x16x16xf32>
    %270 = vector.shape_cast %269 : vector<1x4x16x16xf32> to vector<4x16x16xf32>
    %271 = arith.addf %268, %270 : vector<4x16x16xf32>
    %cst_120 = arith.constant dense<0xFF800000> : vector<4x16xf32>
    %272 = vector.multi_reduction <maximumf>, %271, %cst_120 [2] : vector<4x16x16xf32> to vector<4x16xf32>
    %273 = vector.shape_cast %272 : vector<4x16xf32> to vector<4x16x1xf32>
    %274 = vector.broadcast %273 : vector<4x16x1xf32> to vector<4x16x16xf32>
    %275 = arith.subf %271, %274 : vector<4x16x16xf32>
    %276 = math.exp %275 : vector<4x16x16xf32>
    %cst_121 = arith.constant dense<0.000000e+00> : vector<4x16xf32>
    %277 = vector.multi_reduction <add>, %276, %cst_121 [2] : vector<4x16x16xf32> to vector<4x16xf32>
    %278 = vector.shape_cast %277 : vector<4x16xf32> to vector<4x16x1xf32>
    %279 = tpu.reciprocal %278 {approx = true} : vector<4x16x1xf32> -> vector<4x16x1xf32>
    %280 = vector.broadcast %279 : vector<4x16x1xf32> to vector<4x16x16xf32>
    %281 = arith.mulf %276, %280 : vector<4x16x16xf32>
    %282 = arith.truncf %281 : vector<4x16x16xf32> to vector<4x16x16xbf16>
    %283 = vector.extract_strided_slice %134 {offsets = [0, 0, 8], sizes = [4, 16, 8], strides = [1, 1, 1]} : vector<4x16x32xbf16> to vector<4x16x8xbf16>
    "tpu.trace_start"() <{level = 10 : i32, message = "wqk,wkd->wqd"}> : () -> ()
    %cst_122 = arith.constant dense<0.000000e+00> : vector<4x16x8xf32>
    %284 = tpu.matmul %282, %283, %cst_122 {dimension_numbers = #tpu.dot_dimension_numbers<[2], [1], [1], [2], [0, 0, 0, 1, 1, 2], [0], [0]>} : vector<4x16x16xbf16>, vector<4x16x8xbf16>, vector<4x16x8xf32> -> vector<4x16x8xf32>
    "tpu.trace_stop"() : () -> ()
    %285 = vector.extract_strided_slice %94 {offsets = [0, 0, 16], sizes = [4, 16, 8], strides = [1, 1, 1]} : vector<4x16x32xbf16> to vector<4x16x8xbf16>
    %286 = vector.extract_strided_slice %124 {offsets = [0, 0, 16], sizes = [4, 16, 8], strides = [1, 1, 1]} : vector<4x16x32xbf16> to vector<4x16x8xbf16>
    "tpu.trace_start"() <{level = 10 : i32, message = "wqd,wkd->wqk"}> : () -> ()
    %cst_123 = arith.constant dense<0.000000e+00> : vector<4x16x16xf32>
    %287 = tpu.matmul %285, %286, %cst_123 {dimension_numbers = #tpu.dot_dimension_numbers<[2], [2], [1], [1], [0, 0, 0, 1, 1, 1], [0], [0]>} : vector<4x16x8xbf16>, vector<4x16x8xbf16>, vector<4x16x16xf32> -> vector<4x16x16xf32>
    "tpu.trace_stop"() : () -> ()
    %288 = vector.extract_strided_slice %156 {offsets = [2, 0, 0, 0], sizes = [1, 4, 16, 16], strides = [1, 1, 1, 1]} : vector<4x4x16x16xf32> to vector<1x4x16x16xf32>
    %289 = vector.shape_cast %288 : vector<1x4x16x16xf32> to vector<4x16x16xf32>
    %290 = arith.addf %287, %289 : vector<4x16x16xf32>
    %cst_124 = arith.constant dense<0xFF800000> : vector<4x16xf32>
    %291 = vector.multi_reduction <maximumf>, %290, %cst_124 [2] : vector<4x16x16xf32> to vector<4x16xf32>
    %292 = vector.shape_cast %291 : vector<4x16xf32> to vector<4x16x1xf32>
    %293 = vector.broadcast %292 : vector<4x16x1xf32> to vector<4x16x16xf32>
    %294 = arith.subf %290, %293 : vector<4x16x16xf32>
    %295 = math.exp %294 : vector<4x16x16xf32>
    %cst_125 = arith.constant dense<0.000000e+00> : vector<4x16xf32>
    %296 = vector.multi_reduction <add>, %295, %cst_125 [2] : vector<4x16x16xf32> to vector<4x16xf32>
    %297 = vector.shape_cast %296 : vector<4x16xf32> to vector<4x16x1xf32>
    %298 = tpu.reciprocal %297 {approx = true} : vector<4x16x1xf32> -> vector<4x16x1xf32>
    %299 = vector.broadcast %298 : vector<4x16x1xf32> to vector<4x16x16xf32>
    %300 = arith.mulf %295, %299 : vector<4x16x16xf32>
    %301 = arith.truncf %300 : vector<4x16x16xf32> to vector<4x16x16xbf16>
    %302 = vector.extract_strided_slice %134 {offsets = [0, 0, 16], sizes = [4, 16, 8], strides = [1, 1, 1]} : vector<4x16x32xbf16> to vector<4x16x8xbf16>
    "tpu.trace_start"() <{level = 10 : i32, message = "wqk,wkd->wqd"}> : () -> ()
    %cst_126 = arith.constant dense<0.000000e+00> : vector<4x16x8xf32>
    %303 = tpu.matmul %301, %302, %cst_126 {dimension_numbers = #tpu.dot_dimension_numbers<[2], [1], [1], [2], [0, 0, 0, 1, 1, 2], [0], [0]>} : vector<4x16x16xbf16>, vector<4x16x8xbf16>, vector<4x16x8xf32> -> vector<4x16x8xf32>
    "tpu.trace_stop"() : () -> ()
    %304 = vector.extract_strided_slice %94 {offsets = [0, 0, 24], sizes = [4, 16, 8], strides = [1, 1, 1]} : vector<4x16x32xbf16> to vector<4x16x8xbf16>
    %305 = vector.extract_strided_slice %124 {offsets = [0, 0, 24], sizes = [4, 16, 8], strides = [1, 1, 1]} : vector<4x16x32xbf16> to vector<4x16x8xbf16>
    "tpu.trace_start"() <{level = 10 : i32, message = "wqd,wkd->wqk"}> : () -> ()
    %cst_127 = arith.constant dense<0.000000e+00> : vector<4x16x16xf32>
    %306 = tpu.matmul %304, %305, %cst_127 {dimension_numbers = #tpu.dot_dimension_numbers<[2], [2], [1], [1], [0, 0, 0, 1, 1, 1], [0], [0]>} : vector<4x16x8xbf16>, vector<4x16x8xbf16>, vector<4x16x16xf32> -> vector<4x16x16xf32>
    "tpu.trace_stop"() : () -> ()
    %307 = vector.extract_strided_slice %156 {offsets = [3, 0, 0, 0], sizes = [1, 4, 16, 16], strides = [1, 1, 1, 1]} : vector<4x4x16x16xf32> to vector<1x4x16x16xf32>
    %308 = vector.shape_cast %307 : vector<1x4x16x16xf32> to vector<4x16x16xf32>
    %309 = arith.addf %306, %308 : vector<4x16x16xf32>
    %cst_128 = arith.constant dense<0xFF800000> : vector<4x16xf32>
    %310 = vector.multi_reduction <maximumf>, %309, %cst_128 [2] : vector<4x16x16xf32> to vector<4x16xf32>
    %311 = vector.shape_cast %310 : vector<4x16xf32> to vector<4x16x1xf32>
    %312 = vector.broadcast %311 : vector<4x16x1xf32> to vector<4x16x16xf32>
    %313 = arith.subf %309, %312 : vector<4x16x16xf32>
    %314 = math.exp %313 : vector<4x16x16xf32>
    %cst_129 = arith.constant dense<0.000000e+00> : vector<4x16xf32>
    %315 = vector.multi_reduction <add>, %314, %cst_129 [2] : vector<4x16x16xf32> to vector<4x16xf32>
    %316 = vector.shape_cast %315 : vector<4x16xf32> to vector<4x16x1xf32>
    %317 = tpu.reciprocal %316 {approx = true} : vector<4x16x1xf32> -> vector<4x16x1xf32>
    %318 = vector.broadcast %317 : vector<4x16x1xf32> to vector<4x16x16xf32>
    %319 = arith.mulf %314, %318 : vector<4x16x16xf32>
    %320 = arith.truncf %319 : vector<4x16x16xf32> to vector<4x16x16xbf16>
    %321 = vector.extract_strided_slice %134 {offsets = [0, 0, 24], sizes = [4, 16, 8], strides = [1, 1, 1]} : vector<4x16x32xbf16> to vector<4x16x8xbf16>
    "tpu.trace_start"() <{level = 10 : i32, message = "wqk,wkd->wqd"}> : () -> ()
    %cst_130 = arith.constant dense<0.000000e+00> : vector<4x16x8xf32>
    %322 = tpu.matmul %320, %321, %cst_130 {dimension_numbers = #tpu.dot_dimension_numbers<[2], [1], [1], [2], [0, 0, 0, 1, 1, 2], [0], [0]>} : vector<4x16x16xbf16>, vector<4x16x8xbf16>, vector<4x16x8xf32> -> vector<4x16x8xf32>
    "tpu.trace_stop"() : () -> ()
    %323 = tpu.concatenate %265, %284, %303, %322 in 2 : vector<4x16x8xf32>, vector<4x16x8xf32>, vector<4x16x8xf32>, vector<4x16x8xf32> -> vector<4x16x32xf32>
    %324 = vector.shape_cast %323 : vector<4x16x32xf32> to vector<64x32xf32>
    %c1_131 = arith.constant 1 : index
    %c0_132 = arith.constant 0 : index
    %c0_133 = arith.constant 0 : index
    %325 = vector.load %arg11[%c1_131, %c0_132, %c0_133] : memref<3x32x32xbf16, #tpu.memory_space<vmem>>, vector<1x32x32xbf16>
    %326 = vector.shape_cast %325 : vector<1x32x32xbf16> to vector<32x32xbf16>
    %c1_134 = arith.constant 1 : index
    %c0_135 = arith.constant 0 : index
    %c0_136 = arith.constant 0 : index
    %327 = vector.load %arg12[%c1_134, %c0_135, %c0_136] : memref<3x1x32xf32, #tpu.memory_space<vmem>>, vector<1x1x32xf32>
    %328 = vector.shape_cast %327 : vector<1x1x32xf32> to vector<1x32xf32>
    %329 = arith.truncf %324 : vector<64x32xf32> to vector<64x32xbf16>
    %cst_137 = arith.constant dense<0.000000e+00> : vector<64x32xf32>
    %330 = tpu.matmul %329, %326, %cst_137 {dimension_numbers = #tpu.dot_dimension_numbers<[1], [0], [0], [1], [0, 0, 1, 1], [], []>} : vector<64x32xbf16>, vector<32x32xbf16>, vector<64x32xf32> -> vector<64x32xf32>
    %331 = vector.broadcast %328 : vector<1x32xf32> to vector<64x32xf32>
    %332 = arith.addf %330, %331 : vector<64x32xf32>
    %333 = arith.truncf %332 : vector<64x32xf32> to vector<64x32xbf16>
    %c1_138 = arith.constant 1 : index
    %c0_139 = arith.constant 0 : index
    %c0_140 = arith.constant 0 : index
    %334 = vector.load %arg14[%c1_138, %c0_139, %c0_140] : memref<3x64x32xbf16, #tpu.memory_space<vmem>>, vector<1x64x32xbf16>
    %335 = vector.shape_cast %334 : vector<1x64x32xbf16> to vector<64x32xbf16>
    %336 = vector.shape_cast %333 : vector<64x32xbf16> to vector<1x64x32xbf16>
    tpu.vector_store %arg14[%c1_138, %c0_139, %c0_140], %336 {strides = array<i32>} : memref<3x64x32xbf16, #tpu.memory_space<vmem>>, vector<1x64x32xbf16>,
    %337 = vector.extract_strided_slice %94 {offsets = [0, 0, 0], sizes = [4, 16, 8], strides = [1, 1, 1]} : vector<4x16x32xbf16> to vector<4x16x8xbf16>
    %338 = vector.extract_strided_slice %144 {offsets = [0, 0, 0], sizes = [4, 16, 8], strides = [1, 1, 1]} : vector<4x16x32xbf16> to vector<4x16x8xbf16>
    "tpu.trace_start"() <{level = 10 : i32, message = "wqd,wkd->wqk"}> : () -> ()
    %cst_141 = arith.constant dense<0.000000e+00> : vector<4x16x16xf32>
    %339 = tpu.matmul %337, %338, %cst_141 {dimension_numbers = #tpu.dot_dimension_numbers<[2], [2], [1], [1], [0, 0, 0, 1, 1, 1], [0], [0]>} : vector<4x16x8xbf16>, vector<4x16x8xbf16>, vector<4x16x16xf32> -> vector<4x16x16xf32>
    "tpu.trace_stop"() : () -> ()
    %340 = vector.extract_strided_slice %156 {offsets = [0, 0, 0, 0], sizes = [1, 4, 16, 16], strides = [1, 1, 1, 1]} : vector<4x4x16x16xf32> to vector<1x4x16x16xf32>
    %341 = vector.shape_cast %340 : vector<1x4x16x16xf32> to vector<4x16x16xf32>
    %342 = arith.addf %339, %341 : vector<4x16x16xf32>
    %cst_142 = arith.constant dense<0xFF800000> : vector<4x16xf32>
    %343 = vector.multi_reduction <maximumf>, %342, %cst_142 [2] : vector<4x16x16xf32> to vector<4x16xf32>
    %344 = vector.shape_cast %343 : vector<4x16xf32> to vector<4x16x1xf32>
    %345 = vector.broadcast %344 : vector<4x16x1xf32> to vector<4x16x16xf32>
    %346 = arith.subf %342, %345 : vector<4x16x16xf32>
    %347 = math.exp %346 : vector<4x16x16xf32>
    %cst_143 = arith.constant dense<0.000000e+00> : vector<4x16xf32>
    %348 = vector.multi_reduction <add>, %347, %cst_143 [2] : vector<4x16x16xf32> to vector<4x16xf32>
    %349 = vector.shape_cast %348 : vector<4x16xf32> to vector<4x16x1xf32>
    %350 = tpu.reciprocal %349 {approx = true} : vector<4x16x1xf32> -> vector<4x16x1xf32>
    %351 = vector.broadcast %350 : vector<4x16x1xf32> to vector<4x16x16xf32>
    %352 = arith.mulf %347, %351 : vector<4x16x16xf32>
    %353 = arith.truncf %352 : vector<4x16x16xf32> to vector<4x16x16xbf16>
    %354 = vector.extract_strided_slice %154 {offsets = [0, 0, 0], sizes = [4, 16, 8], strides = [1, 1, 1]} : vector<4x16x32xbf16> to vector<4x16x8xbf16>
    "tpu.trace_start"() <{level = 10 : i32, message = "wqk,wkd->wqd"}> : () -> ()
    %cst_144 = arith.constant dense<0.000000e+00> : vector<4x16x8xf32>
    %355 = tpu.matmul %353, %354, %cst_144 {dimension_numbers = #tpu.dot_dimension_numbers<[2], [1], [1], [2], [0, 0, 0, 1, 1, 2], [0], [0]>} : vector<4x16x16xbf16>, vector<4x16x8xbf16>, vector<4x16x8xf32> -> vector<4x16x8xf32>
    "tpu.trace_stop"() : () -> ()
    %356 = vector.extract_strided_slice %94 {offsets = [0, 0, 8], sizes = [4, 16, 8], strides = [1, 1, 1]} : vector<4x16x32xbf16> to vector<4x16x8xbf16>
    %357 = vector.extract_strided_slice %144 {offsets = [0, 0, 8], sizes = [4, 16, 8], strides = [1, 1, 1]} : vector<4x16x32xbf16> to vector<4x16x8xbf16>
    "tpu.trace_start"() <{level = 10 : i32, message = "wqd,wkd->wqk"}> : () -> ()
    %cst_145 = arith.constant dense<0.000000e+00> : vector<4x16x16xf32>
    %358 = tpu.matmul %356, %357, %cst_145 {dimension_numbers = #tpu.dot_dimension_numbers<[2], [2], [1], [1], [0, 0, 0, 1, 1, 1], [0], [0]>} : vector<4x16x8xbf16>, vector<4x16x8xbf16>, vector<4x16x16xf32> -> vector<4x16x16xf32>
    "tpu.trace_stop"() : () -> ()
    %359 = vector.extract_strided_slice %156 {offsets = [1, 0, 0, 0], sizes = [1, 4, 16, 16], strides = [1, 1, 1, 1]} : vector<4x4x16x16xf32> to vector<1x4x16x16xf32>
    %360 = vector.shape_cast %359 : vector<1x4x16x16xf32> to vector<4x16x16xf32>
    %361 = arith.addf %358, %360 : vector<4x16x16xf32>
    %cst_146 = arith.constant dense<0xFF800000> : vector<4x16xf32>
    %362 = vector.multi_reduction <maximumf>, %361, %cst_146 [2] : vector<4x16x16xf32> to vector<4x16xf32>
    %363 = vector.shape_cast %362 : vector<4x16xf32> to vector<4x16x1xf32>
    %364 = vector.broadcast %363 : vector<4x16x1xf32> to vector<4x16x16xf32>
    %365 = arith.subf %361, %364 : vector<4x16x16xf32>
    %366 = math.exp %365 : vector<4x16x16xf32>
    %cst_147 = arith.constant dense<0.000000e+00> : vector<4x16xf32>
    %367 = vector.multi_reduction <add>, %366, %cst_147 [2] : vector<4x16x16xf32> to vector<4x16xf32>
    %368 = vector.shape_cast %367 : vector<4x16xf32> to vector<4x16x1xf32>
    %369 = tpu.reciprocal %368 {approx = true} : vector<4x16x1xf32> -> vector<4x16x1xf32>
    %370 = vector.broadcast %369 : vector<4x16x1xf32> to vector<4x16x16xf32>
    %371 = arith.mulf %366, %370 : vector<4x16x16xf32>
    %372 = arith.truncf %371 : vector<4x16x16xf32> to vector<4x16x16xbf16>
    %373 = vector.extract_strided_slice %154 {offsets = [0, 0, 8], sizes = [4, 16, 8], strides = [1, 1, 1]} : vector<4x16x32xbf16> to vector<4x16x8xbf16>
    "tpu.trace_start"() <{level = 10 : i32, message = "wqk,wkd->wqd"}> : () -> ()
    %cst_148 = arith.constant dense<0.000000e+00> : vector<4x16x8xf32>
    %374 = tpu.matmul %372, %373, %cst_148 {dimension_numbers = #tpu.dot_dimension_numbers<[2], [1], [1], [2], [0, 0, 0, 1, 1, 2], [0], [0]>} : vector<4x16x16xbf16>, vector<4x16x8xbf16>, vector<4x16x8xf32> -> vector<4x16x8xf32>
    "tpu.trace_stop"() : () -> ()
    %375 = vector.extract_strided_slice %94 {offsets = [0, 0, 16], sizes = [4, 16, 8], strides = [1, 1, 1]} : vector<4x16x32xbf16> to vector<4x16x8xbf16>
    %376 = vector.extract_strided_slice %144 {offsets = [0, 0, 16], sizes = [4, 16, 8], strides = [1, 1, 1]} : vector<4x16x32xbf16> to vector<4x16x8xbf16>
    "tpu.trace_start"() <{level = 10 : i32, message = "wqd,wkd->wqk"}> : () -> ()
    %cst_149 = arith.constant dense<0.000000e+00> : vector<4x16x16xf32>
    %377 = tpu.matmul %375, %376, %cst_149 {dimension_numbers = #tpu.dot_dimension_numbers<[2], [2], [1], [1], [0, 0, 0, 1, 1, 1], [0], [0]>} : vector<4x16x8xbf16>, vector<4x16x8xbf16>, vector<4x16x16xf32> -> vector<4x16x16xf32>
    "tpu.trace_stop"() : () -> ()
    %378 = vector.extract_strided_slice %156 {offsets = [2, 0, 0, 0], sizes = [1, 4, 16, 16], strides = [1, 1, 1, 1]} : vector<4x4x16x16xf32> to vector<1x4x16x16xf32>
    %379 = vector.shape_cast %378 : vector<1x4x16x16xf32> to vector<4x16x16xf32>
    %380 = arith.addf %377, %379 : vector<4x16x16xf32>
    %cst_150 = arith.constant dense<0xFF800000> : vector<4x16xf32>
    %381 = vector.multi_reduction <maximumf>, %380, %cst_150 [2] : vector<4x16x16xf32> to vector<4x16xf32>
    %382 = vector.shape_cast %381 : vector<4x16xf32> to vector<4x16x1xf32>
    %383 = vector.broadcast %382 : vector<4x16x1xf32> to vector<4x16x16xf32>
    %384 = arith.subf %380, %383 : vector<4x16x16xf32>
    %385 = math.exp %384 : vector<4x16x16xf32>
    %cst_151 = arith.constant dense<0.000000e+00> : vector<4x16xf32>
    %386 = vector.multi_reduction <add>, %385, %cst_151 [2] : vector<4x16x16xf32> to vector<4x16xf32>
    %387 = vector.shape_cast %386 : vector<4x16xf32> to vector<4x16x1xf32>
    %388 = tpu.reciprocal %387 {approx = true} : vector<4x16x1xf32> -> vector<4x16x1xf32>
    %389 = vector.broadcast %388 : vector<4x16x1xf32> to vector<4x16x16xf32>
    %390 = arith.mulf %385, %389 : vector<4x16x16xf32>
    %391 = arith.truncf %390 : vector<4x16x16xf32> to vector<4x16x16xbf16>
    %392 = vector.extract_strided_slice %154 {offsets = [0, 0, 16], sizes = [4, 16, 8], strides = [1, 1, 1]} : vector<4x16x32xbf16> to vector<4x16x8xbf16>
    "tpu.trace_start"() <{level = 10 : i32, message = "wqk,wkd->wqd"}> : () -> ()
    %cst_152 = arith.constant dense<0.000000e+00> : vector<4x16x8xf32>
    %393 = tpu.matmul %391, %392, %cst_152 {dimension_numbers = #tpu.dot_dimension_numbers<[2], [1], [1], [2], [0, 0, 0, 1, 1, 2], [0], [0]>} : vector<4x16x16xbf16>, vector<4x16x8xbf16>, vector<4x16x8xf32> -> vector<4x16x8xf32>
    "tpu.trace_stop"() : () -> ()
    %394 = vector.extract_strided_slice %94 {offsets = [0, 0, 24], sizes = [4, 16, 8], strides = [1, 1, 1]} : vector<4x16x32xbf16> to vector<4x16x8xbf16>
    %395 = vector.extract_strided_slice %144 {offsets = [0, 0, 24], sizes = [4, 16, 8], strides = [1, 1, 1]} : vector<4x16x32xbf16> to vector<4x16x8xbf16>
    "tpu.trace_start"() <{level = 10 : i32, message = "wqd,wkd->wqk"}> : () -> ()
    %cst_153 = arith.constant dense<0.000000e+00> : vector<4x16x16xf32>
    %396 = tpu.matmul %394, %395, %cst_153 {dimension_numbers = #tpu.dot_dimension_numbers<[2], [2], [1], [1], [0, 0, 0, 1, 1, 1], [0], [0]>} : vector<4x16x8xbf16>, vector<4x16x8xbf16>, vector<4x16x16xf32> -> vector<4x16x16xf32>
    "tpu.trace_stop"() : () -> ()
    %397 = vector.extract_strided_slice %156 {offsets = [3, 0, 0, 0], sizes = [1, 4, 16, 16], strides = [1, 1, 1, 1]} : vector<4x4x16x16xf32> to vector<1x4x16x16xf32>
    %398 = vector.shape_cast %397 : vector<1x4x16x16xf32> to vector<4x16x16xf32>
    %399 = arith.addf %396, %398 : vector<4x16x16xf32>
    %cst_154 = arith.constant dense<0xFF800000> : vector<4x16xf32>
    %400 = vector.multi_reduction <maximumf>, %399, %cst_154 [2] : vector<4x16x16xf32> to vector<4x16xf32>
    %401 = vector.shape_cast %400 : vector<4x16xf32> to vector<4x16x1xf32>
    %402 = vector.broadcast %401 : vector<4x16x1xf32> to vector<4x16x16xf32>
    %403 = arith.subf %399, %402 : vector<4x16x16xf32>
    %404 = math.exp %403 : vector<4x16x16xf32>
    %cst_155 = arith.constant dense<0.000000e+00> : vector<4x16xf32>
    %405 = vector.multi_reduction <add>, %404, %cst_155 [2] : vector<4x16x16xf32> to vector<4x16xf32>
    %406 = vector.shape_cast %405 : vector<4x16xf32> to vector<4x16x1xf32>
    %407 = tpu.reciprocal %406 {approx = true} : vector<4x16x1xf32> -> vector<4x16x1xf32>
    %408 = vector.broadcast %407 : vector<4x16x1xf32> to vector<4x16x16xf32>
    %409 = arith.mulf %404, %408 : vector<4x16x16xf32>
    %410 = arith.truncf %409 : vector<4x16x16xf32> to vector<4x16x16xbf16>
    %411 = vector.extract_strided_slice %154 {offsets = [0, 0, 24], sizes = [4, 16, 8], strides = [1, 1, 1]} : vector<4x16x32xbf16> to vector<4x16x8xbf16>
    "tpu.trace_start"() <{level = 10 : i32, message = "wqk,wkd->wqd"}> : () -> ()
    %cst_156 = arith.constant dense<0.000000e+00> : vector<4x16x8xf32>
    %412 = tpu.matmul %410, %411, %cst_156 {dimension_numbers = #tpu.dot_dimension_numbers<[2], [1], [1], [2], [0, 0, 0, 1, 1, 2], [0], [0]>} : vector<4x16x16xbf16>, vector<4x16x8xbf16>, vector<4x16x8xf32> -> vector<4x16x8xf32>
    "tpu.trace_stop"() : () -> ()
    %413 = tpu.concatenate %355, %374, %393, %412 in 2 : vector<4x16x8xf32>, vector<4x16x8xf32>, vector<4x16x8xf32>, vector<4x16x8xf32> -> vector<4x16x32xf32>
    %414 = vector.shape_cast %413 : vector<4x16x32xf32> to vector<64x32xf32>
    %c2_157 = arith.constant 2 : index
    %c0_158 = arith.constant 0 : index
    %c0_159 = arith.constant 0 : index
    %415 = vector.load %arg11[%c2_157, %c0_158, %c0_159] : memref<3x32x32xbf16, #tpu.memory_space<vmem>>, vector<1x32x32xbf16>
    %416 = vector.shape_cast %415 : vector<1x32x32xbf16> to vector<32x32xbf16>
    %c2_160 = arith.constant 2 : index
    %c0_161 = arith.constant 0 : index
    %c0_162 = arith.constant 0 : index
    %417 = vector.load %arg12[%c2_160, %c0_161, %c0_162] : memref<3x1x32xf32, #tpu.memory_space<vmem>>, vector<1x1x32xf32>
    %418 = vector.shape_cast %417 : vector<1x1x32xf32> to vector<1x32xf32>
    %419 = arith.truncf %414 : vector<64x32xf32> to vector<64x32xbf16>
    %cst_163 = arith.constant dense<0.000000e+00> : vector<64x32xf32>
    %420 = tpu.matmul %419, %416, %cst_163 {dimension_numbers = #tpu.dot_dimension_numbers<[1], [0], [0], [1], [0, 0, 1, 1], [], []>} : vector<64x32xbf16>, vector<32x32xbf16>, vector<64x32xf32> -> vector<64x32xf32>
    %421 = vector.broadcast %418 : vector<1x32xf32> to vector<64x32xf32>
    %422 = arith.addf %420, %421 : vector<64x32xf32>
    %423 = arith.truncf %422 : vector<64x32xf32> to vector<64x32xbf16>
    %c2_164 = arith.constant 2 : index
    %c0_165 = arith.constant 0 : index
    %c0_166 = arith.constant 0 : index
    %424 = vector.load %arg14[%c2_164, %c0_165, %c0_166] : memref<3x64x32xbf16, #tpu.memory_space<vmem>>, vector<1x64x32xbf16>
    %425 = vector.shape_cast %424 : vector<1x64x32xbf16> to vector<64x32xbf16>
    %426 = vector.shape_cast %423 : vector<64x32xbf16> to vector<1x64x32xbf16>
    tpu.vector_store %arg14[%c2_164, %c0_165, %c0_166], %426 {strides = array<i32>} : memref<3x64x32xbf16, #tpu.memory_space<vmem>>, vector<1x64x32xbf16>,
    return
  }
  func.func @transform_0(%arg0: i32, %arg1: i32) -> (i32, i32, i32) {
    %c1_i32 = arith.constant 1 : i32
    %0 = arith.muli %arg0, %c1_i32 : i32
    %1 = arith.addi %0, %arg1 : i32
    %c0_i32 = arith.constant 0 : i32
    %c0_i32_0 = arith.constant 0 : i32
    %c0_i32_1 = arith.constant 0 : i32
    return %c0_i32, %1, %c0_i32_0 : i32, i32, i32
  }
  func.func @transform_1(%arg0: i32, %arg1: i32) -> (i32, i32, i32) {
    %c0_i32 = arith.constant 0 : i32
    %c0_i32_0 = arith.constant 0 : i32
    %c0_i32_1 = arith.constant 0 : i32
    %c0_i32_2 = arith.constant 0 : i32
    return %c0_i32, %c0_i32_0, %c0_i32_1 : i32, i32, i32
  }
  func.func @transform_2(%arg0: i32, %arg1: i32) -> (i32, i32, i32) {
    %c0_i32 = arith.constant 0 : i32
    %c0_i32_0 = arith.constant 0 : i32
    %c0_i32_1 = arith.constant 0 : i32
    %c0_i32_2 = arith.constant 0 : i32
    return %c0_i32, %c0_i32_0, %c0_i32_1 : i32, i32, i32
  }
  func.func @transform_3(%arg0: i32, %arg1: i32) -> (i32, i32) {
    %c0_i32 = arith.constant 0 : i32
    %c0_i32_0 = arith.constant 0 : i32
    %c0_i32_1 = arith.constant 0 : i32
    return %c0_i32, %c0_i32_0 : i32, i32
  }
  func.func @transform_4(%arg0: i32, %arg1: i32) -> (i32, i32) {
    %c0_i32 = arith.constant 0 : i32
    %c0_i32_0 = arith.constant 0 : i32
    %c0_i32_1 = arith.constant 0 : i32
    return %c0_i32, %c0_i32_0 : i32, i32
  }
  func.func @transform_5(%arg0: i32, %arg1: i32) -> (i32, i32, i32) {
    %c0_i32 = arith.constant 0 : i32
    %c0_i32_0 = arith.constant 0 : i32
    %c0_i32_1 = arith.constant 0 : i32
    %c0_i32_2 = arith.constant 0 : i32
    return %c0_i32, %c0_i32_0, %c0_i32_1 : i32, i32, i32
  }
  func.func @transform_6(%arg0: i32, %arg1: i32) -> (i32, i32, i32) {
    %c0_i32 = arith.constant 0 : i32
    %c0_i32_0 = arith.constant 0 : i32
    %c0_i32_1 = arith.constant 0 : i32
    %c0_i32_2 = arith.constant 0 : i32
    return %c0_i32, %c0_i32_0, %c0_i32_1 : i32, i32, i32
  }
  func.func @transform_7(%arg0: i32, %arg1: i32) -> (i32, i32, i32) {
    %c0_i32 = arith.constant 0 : i32
    %c0_i32_0 = arith.constant 0 : i32
    %c0_i32_1 = arith.constant 0 : i32
    %c0_i32_2 = arith.constant 0 : i32
    return %c0_i32, %c0_i32_0, %c0_i32_1 : i32, i32, i32
  }
  func.func @transform_8(%arg0: i32, %arg1: i32) -> (i32, i32, i32) {
    %c0_i32 = arith.constant 0 : i32
    %c0_i32_0 = arith.constant 0 : i32
    %c0_i32_1 = arith.constant 0 : i32
    %c0_i32_2 = arith.constant 0 : i32
    return %c0_i32, %c0_i32_0, %c0_i32_1 : i32, i32, i32
  }
  func.func @transform_9(%arg0: i32, %arg1: i32) -> (i32, i32, i32) {
    %c0_i32 = arith.constant 0 : i32
    %c0_i32_0 = arith.constant 0 : i32
    %c0_i32_1 = arith.constant 0 : i32
    %c0_i32_2 = arith.constant 0 : i32
    return %c0_i32, %c0_i32_0, %c0_i32_1 : i32, i32, i32
  }
  func.func @transform_10(%arg0: i32, %arg1: i32) -> (i32, i32, i32) {
    %c0_i32 = arith.constant 0 : i32
    %c0_i32_0 = arith.constant 0 : i32
    %c0_i32_1 = arith.constant 0 : i32
    %c0_i32_2 = arith.constant 0 : i32
    return %c0_i32, %c0_i32_0, %c0_i32_1 : i32, i32, i32
  }
  func.func @transform_11(%arg0: i32, %arg1: i32) -> (i32, i32, i32, i32) {
    %c0_i32 = arith.constant 0 : i32
    %c0_i32_0 = arith.constant 0 : i32
    %c0_i32_1 = arith.constant 0 : i32
    %c0_i32_2 = arith.constant 0 : i32
    return %c0_i32, %arg1, %c0_i32_0, %c0_i32_1 : i32, i32, i32, i32
  }
  func.func @transform_12(%arg0: i32, %arg1: i32) -> (i32, i32, i32) {
    %c1_i32 = arith.constant 1 : i32
    %0 = arith.muli %arg0, %c1_i32 : i32
    %1 = arith.addi %0, %arg1 : i32
    %c0_i32 = arith.constant 0 : i32
    %c0_i32_0 = arith.constant 0 : i32
    %c0_i32_1 = arith.constant 0 : i32
    return %c0_i32, %1, %c0_i32_0 : i32, i32, i32
  }
}

module attributes {stable_mosaic.version = 11 : i64} {
  func.func @_mlp_kernel(%arg0: i32, %arg1: i32, %arg2: memref<1x128x32xbf16, #tpu.memory_space<vmem>>, %arg3: memref<1x128x32xbf16, #tpu.memory_space<vmem>>, %arg4: memref<1x1x32xf32, #tpu.memory_space<vmem>>, %arg5: memref<1x1x32xf32, #tpu.memory_space<vmem>>, %arg6: memref<1x1x1xf32, #tpu.memory_space<vmem>>, %arg7: memref<32x128xbf16, #tpu.memory_space<vmem>>, %arg8: memref<1x128xf32, #tpu.memory_space<vmem>>, %arg9: memref<128x32xbf16, #tpu.memory_space<vmem>>, %arg10: memref<1x32xf32, #tpu.memory_space<vmem>>, %arg11: memref<1x128x32xf32, #tpu.memory_space<vmem>>) attributes {dimension_semantics = [#tpu.dimension_semantics<parallel>, #tpu.dimension_semantics<parallel>], iteration_bounds = array<i64: 3, 1>, scalar_prefetch = 0 : i64, scratch_operands = 0 : i64, tpu.core_type = #tpu.core_type<tc>, window_params = [{transform_indices = @transform_0, window_bounds = array<i64: 1, 128, 32>}, {transform_indices = @transform_1, window_bounds = array<i64: 1, 128, 32>}, {transform_indices = @transform_2, window_bounds = array<i64: 1, 1, 32>}, {transform_indices = @transform_3, window_bounds = array<i64: 1, 1, 32>}, {transform_indices = @transform_4, window_bounds = array<i64: 1, 1, 1>}, {pipeline_mode = #tpu.pipeline_mode<synchronous>, transform_indices = @transform_5, window_bounds = array<i64: 32, 128>}, {pipeline_mode = #tpu.pipeline_mode<synchronous>, transform_indices = @transform_6, window_bounds = array<i64: 1, 128>}, {pipeline_mode = #tpu.pipeline_mode<synchronous>, transform_indices = @transform_7, window_bounds = array<i64: 128, 32>}, {pipeline_mode = #tpu.pipeline_mode<synchronous>, transform_indices = @transform_8, window_bounds = array<i64: 1, 32>}, {transform_indices = @transform_9, window_bounds = array<i64: 1, 128, 32>}]} {
    %c0 = arith.constant 0 : index
    %c0_0 = arith.constant 0 : index
    %c0_1 = arith.constant 0 : index
    %0 = vector.load %arg6[%c0, %c0_0, %c0_1] : memref<1x1x1xf32, #tpu.memory_space<vmem>>, vector<1x1x1xf32>
    %1 = vector.shape_cast %0 : vector<1x1x1xf32> to vector<1x1xf32>
    %c0_2 = arith.constant 0 : index
    %c0_3 = arith.constant 0 : index
    %c0_4 = arith.constant 0 : index
    %2 = vector.load %arg2[%c0_2, %c0_3, %c0_4] : memref<1x128x32xbf16, #tpu.memory_space<vmem>>, vector<1x128x32xbf16>
    %3 = vector.shape_cast %2 : vector<1x128x32xbf16> to vector<128x32xbf16>
    %4 = arith.extf %3 : vector<128x32xbf16> to vector<128x32xf32>
    %c0_5 = arith.constant 0 : index
    %c0_6 = arith.constant 0 : index
    %c0_7 = arith.constant 0 : index
    %5 = vector.load %arg3[%c0_5, %c0_6, %c0_7] : memref<1x128x32xbf16, #tpu.memory_space<vmem>>, vector<1x128x32xbf16>
    %6 = vector.shape_cast %5 : vector<1x128x32xbf16> to vector<128x32xbf16>
    %7 = arith.extf %6 : vector<128x32xbf16> to vector<128x32xf32>
    %8 = arith.addf %4, %7 : vector<128x32xf32>
    %9 = vector.broadcast %1 : vector<1x1xf32> to vector<128x32xf32>
    %10 = arith.mulf %9, %8 : vector<128x32xf32>
    %cst = arith.constant dense<0.000000e+00> : vector<128xf32>
    %11 = vector.multi_reduction <add>, %10, %cst [1] : vector<128x32xf32> to vector<128xf32>
    %12 = vector.shape_cast %11 : vector<128xf32> to vector<128x1xf32>
    %cst_8 = arith.constant 3.200000e+01 : f32
    %13 = vector.broadcast %cst_8 : f32 to vector<128x1xf32>
    %14 = arith.divf %12, %13 : vector<128x1xf32>
    %15 = vector.broadcast %14 : vector<128x1xf32> to vector<128x32xf32>
    %16 = arith.subf %10, %15 : vector<128x32xf32>
    %17 = arith.mulf %16, %16 : vector<128x32xf32>
    %cst_9 = arith.constant dense<0.000000e+00> : vector<128xf32>
    %18 = vector.multi_reduction <add>, %17, %cst_9 [1] : vector<128x32xf32> to vector<128xf32>
    %19 = vector.shape_cast %18 : vector<128xf32> to vector<128x1xf32>
    %cst_10 = arith.constant 3.200000e+01 : f32
    %20 = vector.broadcast %cst_10 : f32 to vector<128x1xf32>
    %21 = arith.divf %19, %20 : vector<128x1xf32>
    %22 = vector.broadcast %14 : vector<128x1xf32> to vector<128x32xf32>
    %23 = arith.subf %10, %22 : vector<128x32xf32>
    %cst_11 = arith.constant 9.99999974E-6 : f32
    %24 = vector.broadcast %cst_11 : f32 to vector<128x1xf32>
    %25 = arith.addf %21, %24 : vector<128x1xf32>
    %26 = math.rsqrt %25 : vector<128x1xf32>
    %27 = vector.broadcast %26 : vector<128x1xf32> to vector<128x32xf32>
    %28 = arith.mulf %23, %27 : vector<128x32xf32>
    %c0_12 = arith.constant 0 : index
    %c0_13 = arith.constant 0 : index
    %c0_14 = arith.constant 0 : index
    %29 = vector.load %arg4[%c0_12, %c0_13, %c0_14] : memref<1x1x32xf32, #tpu.memory_space<vmem>>, vector<1x1x32xf32>
    %30 = vector.shape_cast %29 : vector<1x1x32xf32> to vector<1x32xf32>
    %31 = vector.broadcast %30 : vector<1x32xf32> to vector<128x32xf32>
    %32 = arith.mulf %28, %31 : vector<128x32xf32>
    %c0_15 = arith.constant 0 : index
    %c0_16 = arith.constant 0 : index
    %c0_17 = arith.constant 0 : index
    %33 = vector.load %arg5[%c0_15, %c0_16, %c0_17] : memref<1x1x32xf32, #tpu.memory_space<vmem>>, vector<1x1x32xf32>
    %34 = vector.shape_cast %33 : vector<1x1x32xf32> to vector<1x32xf32>
    %35 = vector.broadcast %34 : vector<1x32xf32> to vector<128x32xf32>
    %36 = arith.addf %32, %35 : vector<128x32xf32>
    %37 = arith.truncf %36 : vector<128x32xf32> to vector<128x32xbf16>
    %c0_18 = arith.constant 0 : index
    %c0_19 = arith.constant 0 : index
    %38 = vector.load %arg7[%c0_18, %c0_19] : memref<32x128xbf16, #tpu.memory_space<vmem>>, vector<32x128xbf16>
    %cst_20 = arith.constant dense<0.000000e+00> : vector<128x128xf32>
    %39 = tpu.matmul %37, %38, %cst_20 {dimension_numbers = #tpu.dot_dimension_numbers<[1], [0], [0], [1], [0, 0, 1, 1], [], []>} : vector<128x32xbf16>, vector<32x128xbf16>, vector<128x128xf32> -> vector<128x128xf32>
    %c0_21 = arith.constant 0 : index
    %c0_22 = arith.constant 0 : index
    %40 = vector.load %arg8[%c0_21, %c0_22] : memref<1x128xf32, #tpu.memory_space<vmem>>, vector<1x128xf32>
    %41 = vector.broadcast %40 : vector<1x128xf32> to vector<128x128xf32>
    %42 = arith.addf %39, %41 : vector<128x128xf32>
    %cst_23 = arith.constant 5.000000e-01 : f32
    %43 = vector.broadcast %cst_23 : f32 to vector<128x128xf32>
    %44 = arith.mulf %43, %42 : vector<128x128xf32>
    %cst_24 = arith.constant 4.471500e-02 : f32
    %45 = vector.broadcast %cst_24 : f32 to vector<128x128xf32>
    %46 = arith.mulf %45, %42 : vector<128x128xf32>
    %47 = arith.mulf %46, %42 : vector<128x128xf32>
    %48 = arith.mulf %47, %42 : vector<128x128xf32>
    %49 = arith.addf %42, %48 : vector<128x128xf32>
    %cst_25 = arith.constant 0.797884583 : f32
    %50 = vector.broadcast %cst_25 : f32 to vector<128x128xf32>
    %51 = arith.mulf %50, %49 : vector<128x128xf32>
    %52 = math.tanh %51 : vector<128x128xf32>
    %cst_26 = arith.constant 1.000000e+00 : f32
    %53 = vector.broadcast %cst_26 : f32 to vector<128x128xf32>
    %54 = arith.addf %53, %52 : vector<128x128xf32>
    %55 = arith.mulf %44, %54 : vector<128x128xf32>
    %56 = arith.truncf %55 : vector<128x128xf32> to vector<128x128xbf16>
    %c0_27 = arith.constant 0 : index
    %c0_28 = arith.constant 0 : index
    %57 = vector.load %arg9[%c0_27, %c0_28] : memref<128x32xbf16, #tpu.memory_space<vmem>>, vector<128x32xbf16>
    %cst_29 = arith.constant dense<0.000000e+00> : vector<128x32xf32>
    %58 = tpu.matmul %56, %57, %cst_29 {dimension_numbers = #tpu.dot_dimension_numbers<[1], [0], [0], [1], [0, 0, 1, 1], [], []>} : vector<128x128xbf16>, vector<128x32xbf16>, vector<128x32xf32> -> vector<128x32xf32>
    %c0_30 = arith.constant 0 : index
    %c0_31 = arith.constant 0 : index
    %59 = vector.load %arg10[%c0_30, %c0_31] : memref<1x32xf32, #tpu.memory_space<vmem>>, vector<1x32xf32>
    %60 = vector.broadcast %59 : vector<1x32xf32> to vector<128x32xf32>
    %61 = arith.addf %58, %60 : vector<128x32xf32>
    %62 = arith.addf %10, %61 : vector<128x32xf32>
    %c0_32 = arith.constant 0 : index
    %c0_33 = arith.constant 0 : index
    %c0_34 = arith.constant 0 : index
    %63 = vector.load %arg11[%c0_32, %c0_33, %c0_34] : memref<1x128x32xf32, #tpu.memory_space<vmem>>, vector<1x128x32xf32>
    %64 = vector.shape_cast %63 : vector<1x128x32xf32> to vector<128x32xf32>
    %65 = vector.shape_cast %62 : vector<128x32xf32> to vector<1x128x32xf32>
    tpu.vector_store %arg11[%c0_32, %c0_33, %c0_34], %65 {strides = array<i32>} : memref<1x128x32xf32, #tpu.memory_space<vmem>>, vector<1x128x32xf32>,
    return
  }
  func.func @transform_0(%arg0: i32, %arg1: i32) -> (i32, i32, i32) {
    %c0_i32 = arith.constant 0 : i32
    %c0_i32_0 = arith.constant 0 : i32
    return %arg0, %arg1, %c0_i32 : i32, i32, i32
  }
  func.func @transform_1(%arg0: i32, %arg1: i32) -> (i32, i32, i32) {
    %c0_i32 = arith.constant 0 : i32
    %c0_i32_0 = arith.constant 0 : i32
    return %arg0, %arg1, %c0_i32 : i32, i32, i32
  }
  func.func @transform_2(%arg0: i32, %arg1: i32) -> (i32, i32, i32) {
    %c0_i32 = arith.constant 0 : i32
    %c0_i32_0 = arith.constant 0 : i32
    %c0_i32_1 = arith.constant 0 : i32
    return %arg0, %c0_i32, %c0_i32_0 : i32, i32, i32
  }
  func.func @transform_3(%arg0: i32, %arg1: i32) -> (i32, i32, i32) {
    %c0_i32 = arith.constant 0 : i32
    %c0_i32_0 = arith.constant 0 : i32
    %c0_i32_1 = arith.constant 0 : i32
    return %arg0, %c0_i32, %c0_i32_0 : i32, i32, i32
  }
  func.func @transform_4(%arg0: i32, %arg1: i32) -> (i32, i32, i32) {
    %c0_i32 = arith.constant 0 : i32
    %c0_i32_0 = arith.constant 0 : i32
    %c0_i32_1 = arith.constant 0 : i32
    return %arg0, %c0_i32, %c0_i32_0 : i32, i32, i32
  }
  func.func @transform_5(%arg0: i32, %arg1: i32) -> (i32, i32) {
    %c0_i32 = arith.constant 0 : i32
    %c0_i32_0 = arith.constant 0 : i32
    %c0_i32_1 = arith.constant 0 : i32
    return %c0_i32, %c0_i32_0 : i32, i32
  }
  func.func @transform_6(%arg0: i32, %arg1: i32) -> (i32, i32) {
    %c0_i32 = arith.constant 0 : i32
    %c0_i32_0 = arith.constant 0 : i32
    %c0_i32_1 = arith.constant 0 : i32
    return %c0_i32, %c0_i32_0 : i32, i32
  }
  func.func @transform_7(%arg0: i32, %arg1: i32) -> (i32, i32) {
    %c0_i32 = arith.constant 0 : i32
    %c0_i32_0 = arith.constant 0 : i32
    %c0_i32_1 = arith.constant 0 : i32
    return %c0_i32, %c0_i32_0 : i32, i32
  }
  func.func @transform_8(%arg0: i32, %arg1: i32) -> (i32, i32) {
    %c0_i32 = arith.constant 0 : i32
    %c0_i32_0 = arith.constant 0 : i32
    %c0_i32_1 = arith.constant 0 : i32
    return %c0_i32, %c0_i32_0 : i32, i32
  }
  func.func @transform_9(%arg0: i32, %arg1: i32) -> (i32, i32, i32) {
    %c0_i32 = arith.constant 0 : i32
    %c0_i32_0 = arith.constant 0 : i32
    return %arg0, %arg1, %c0_i32 : i32, i32, i32
  }
}

</mosaic_0001>

<bundles_post_ra>
// kernel: tpu_custom_call.1
= control target key start
LH: loop header
LB: loop body
LE: loop exit
PB: predicated region body
PF: predicated region fallthrough
CT: control target
= control target key end

     0   :  { %6 = vsyncpa [#allocation3], 0  ;;  %s340_s0 = inlined_call_operand.hbm [shape: f32[8,128], index: 0, kind: input, shape index: {}]   ;;  %s341_s1 = inlined_call_operand.hbm [shape: f32[8,128], index: 1, kind: output, shape index: {}]  }
   0x1   :  { %7 = vsyncpa [#allocation4], 0  ;;  %s261_s6 = smov 0  }
   0x2 LB: > { %s144_s7 = sadd.s32 4294967295, %s247_s6   ;;  %p145_p0 = scmp.ge.s32.totalorder %s247_s6, 1  ;;  %s247_s6 = sphi %s261_s6, %s13_s6  }
   0x3   : > { %p60_p1 = scmp.lt.s32.totalorder %s247_s6, 3  ;;  %p275_p3 = scmp.eq.s32.totalorder %s144_s7, 0 }
   0x4   : > { %s249_s10 = smov [#allocation2]   ;;  %s179_s15 = scalar_lea.hbm %s340_s0, 128 }
   0x5   : > { %p269_p2 = pnand %p145_p0, %p60_p1  ;;  %s73_s11 = sshll.u32 %s249_s10, 4  ;;  %s74_s11 = int_to_ptr.vmem [resolvable:$true] %s73_s11 }
   0x6   : > { %s346_s9 = scalar_select %p275_p3, 1, 0 }
   0x7   : > { %s345_s8 = scalar_select %p269_p2, 1, 0 }
   0x8   : > { %p161_p4 = pneg %p269_p2  ;;  %p180_p6 = scmp.ne.s32.totalorder %s340_s0, %s179_s15 }
   0x9   : > { %p186_p10 = scmp.lt.u32.totalorder %s179_s15, %s340_s0 }
   0xa   : > { %p283_p5 = pnand %p275_p3, %p161_p4 }
   0xc   : > { %p181_p7 = pneg %p283_p5 }
   0xe   : > { %p182_p8 = pnand %p181_p7, %p180_p6 }
  0x10   : > { %p183_p9 = pneg %p182_p8 }
  0x12   : > { %p188_p11 = pnand %p186_p10, %p183_p9 }
  0x14   : > { %191 = shalt.err (!%p188_p11)
}
  0x15   : > { %s192_s20 = scalar_lea.vmem %s74_s11, 128  ;;  %p200_p1 = scmp.lt.s32.totalorder %s74_s11, %s74_s11 }
  0x16   : > { %p193_p12 = scmp.ne.s32.totalorder %s74_s11, %s192_s20  ;;  %p201_p4 = scmp.lt.s32.totalorder %s192_s20, %s192_s20 }
  0x18   : > { %p195_p13 = pnand %p193_p12, %p181_p7  ;;  %p202_p3 = por %p201_p4, %p200_p1 }
  0x1a   : > { %p196_p0 = pneg %p195_p13 }
  0x1c   : > { %p203_p2 = pnand %p202_p3, %p196_p0 }
  0x1e   : > { %206 = shalt.err (!%p203_p2)
}
  0x1f   : > { %164 = dma.hbm_to_vmem [thread:$0]  (!%p283_p5), %s340_s0, 128, %s74_s11, [#allocation3]  }
  0x20   : > { %p348_p6 = scmp.ne.s32.totalorder %s345_s8, 0 }
  0x21   : > { %p349_p8 = scmp.ne.s32.totalorder (!%p348_p6), %s346_s9, 0 }
  0x22   : > { %86 = sbr.rel (%p348_p6) target bundleno = 67 (0x43), region = 24 }
  0x29   : > { %238 = dma.done.wait (%p349_p8), [#allocation3], 128  }
  0x2a   : > { %240 = vsyncadd (%p349_p8), [#allocation3], 4294967168  ;;  %s250_s23 = smov [#allocation5]   ;;  %p311_p2 = scmp.eq.s32.totalorder %s144_s7, 1  ;;  %v96_v0 = vld [vmem:[#allocation2] sm:$0xff] }
  0x2b   : > { %s105_s24 = sshll.u32 %s250_s23, 4  ;;  %97 = vst [vmem:[#allocation5] sm:$0xff] %v96_v0  ;;  %s106_s24 = int_to_ptr.vmem [resolvable:$true] %s105_s24 }
  0x2c   : > { %s207_s26 = scalar_lea.vmem %s106_s24, 128  ;;  %p214_p9 = scmp.lt.s32.totalorder %s106_s24, %s106_s24 }
  0x2d   : > { %p208_p3 = scmp.ne.s32.totalorder %s106_s24, %s207_s26  ;;  %p215_p10 = scmp.lt.s32.totalorder %s207_s26, %s207_s26 }
  0x2f   : > { %p209_p5 = pnand %p208_p3, %p311_p2  ;;  %p216_p11 = por %p215_p10, %p214_p9 }
  0x31   : > { %p210_p7 = pneg %p209_p5 }
  0x33   : > { %p217_p12 = pnand %p216_p11, %p210_p7 }
  0x35   : > { %220 = shalt.err (!%p217_p12)
}
  0x36   : > { %s221_s29 = scalar_lea.hbm %s341_s1, 128 }
  0x37   : > { %p222_p13 = scmp.ne.s32.totalorder %s341_s1, %s221_s29  ;;  %p227_p4 = scmp.lt.u32.totalorder %s221_s29, %s341_s1 }
  0x39   : > { %p223_p0 = pnand %p222_p13, %p311_p2 }
  0x3b   : > { %p224_p1 = pneg %p223_p0 }
  0x3d   : > { %p229_p6 = pnand %p227_p4, %p224_p1 }
  0x3f   : > { %232 = shalt.err (!%p229_p6)
}
  0x40   : > { %158 = dma.vmem_to_hbm [thread:$0]  (%p311_p2), %s106_s24, 128, %s341_s1, [#allocation4]  }
  0x41   : > { %242 = dma.done.wait (%p311_p2), [#allocation4], 128  }
  0x42   : > { %244 = vsyncadd (%p311_p2), [#allocation4], 4294967168 }
  0x43 PF: > { %s13_s6 = sadd.s32 1, %s247_s6  }
  0x44   : > { %p10_p8 = scmp.ge.s32.totalorder %s13_s6, 4  }
  0x46   :  { %12 = sbr.rel (!%p10_p8) target bundleno = 2 (0x2), region = 53 }
  0x4d   :  { %118 = vsyncpa [#allocation3], 1 }
  0x4e   :  { %120 = vsyncpa [#allocation3 + $0x1], 1 }
  0x4f   :  { %121 = vsyncpa [#allocation4], 1 }
  0x50   :  { %123 = vsyncpa [#allocation4 + $0x1], 1 }

// kernel: swin_block_forward.3
= control target key start
LH: loop header
LB: loop body
LE: loop exit
PB: predicated region body
PF: predicated region fallthrough
CT: control target
= control target key end

     0   :  { %s1835_s30 = smov 0   ;;  %s1837_s10 = smov 0   ;;  %s2357_s0 = inlined_call_operand.vmem [shape: bf16[3,128,32], index: 0, kind: input, shape index: {}]   ;;  %s2358_s1 = inlined_call_operand.vmem [shape: bf16[3,128,32], index: 1, kind: input, shape index: {}]   ;;  %s2359_s2 = inlined_call_operand.vmem [shape: f32[3,1,32], index: 2, kind: input, shape index: {}]   ;;  %s2360_s3 = inlined_call_operand.vmem [shape: f32[3,1,32], index: 3, kind: input, shape index: {}]   ;;  %s2361_s4 = inlined_call_operand.vmem [shape: f32[3,1,1], index: 4, kind: input, shape index: {}]   ;;  %s2362_s5 = inlined_call_operand.vmem [shape: bf16[32,128], index: 5, kind: input, shape index: {}]   ;;  %s2363_s6 = inlined_call_operand.vmem [shape: f32[1,128], index: 6, kind: input, shape index: {}]   ;;  %s2364_s7 = inlined_call_operand.vmem [shape: bf16[128,32], index: 7, kind: input, shape index: {}]   ;;  %s2365_s8 = inlined_call_operand.vmem [shape: f32[1,32], index: 8, kind: input, shape index: {}]   ;;  %s2366_s9 = inlined_call_operand.vmem [shape: f32[3,128,32], index: 9, kind: output, shape index: {}]  }
   0x1   :  { %s1839_s11 = smov 0  }
   0x2 LB: > { %s31_s12 = sadd.s32 1, %s1778_s10  ;;  %p1453_p0 = scmp.ge.s32.totalorder %s1782_s11, 1  ;;  %s1782_s11 = sphi %s1839_s11, %s19_s11   ;;  %s1778_s10 = sphi %s1837_s10, %s2368_s10   ;;  %s1774_s30 = sphi %s1835_s30, %s2367_s30  }
   0x3   : > { %p33_p1 = scmp.ge.s32.totalorder %s31_s12, 3  ;;  %p349_p2 = scmp.lt.s32.totalorder %s1782_s11, 4 }
   0x5   : > { %s2370_s12 = smov (%p33_p1, %s31_s12), 0  ;;  %p350_p3 = pnand %p1453_p0, %p349_p2 }
   0x6   : > { %p412_p4 = scmp.lt.s32.totalorder (!%p350_p3), %s1774_s30, 2  ;;  %v1784_v0 = vmov (!%p350_p3), 0   ;;  %vm557_vm0 = vcmask (!%p350_p3), 261120  }
   0x7   : > { %353 = sbr.rel (%p350_p3) target bundleno = 974 (0x3ce), region = 56  ;;  %1685 = vset.pattern.permute.xlu0 (!%p350_p3), %v1784_v0 }
   0xe   : > { %s2372_s30 = smov (!%p412_p4, %s1774_s30), 2 }
   0xf   : > { %s439_s15 = scalar_lea.vmem %s2361_s4, %s2372_s30  ;;  %s1485_s16 = sshll.u32 %s2372_s30, 6 }
  0x10   : > { %v1460_v1 = vld [vmem:[%s439_s15] ss:$0 sm:$0xff]  ;;  %s1863_s19 = scalar_lea.vmem %s2357_s0, %s1485_s16  ;;  %s1868_s22 = scalar_lea.vmem %s2358_s1, %s1485_s16 }
  0x11   : > { %538 = vperm.xlu0 %1685, %v1460_v1   ;;  %v1489_v2 = vld [vmem:[%s1863_s19] sm:$0xff]   ;;  %v1552_v4 = vld [vmem:[%s1863_s19 + $0x8] sm:$0xff]   ;;  %v1883_v16 = vld [vmem:[%s1863_s19 + $0x30] sm:$0xff]   ;;  %s433_s29 = scalar_lea.vmem %s2359_s2, %s2372_s30  ;;  %s436_s15 = scalar_lea.vmem %s2360_s3, %s2372_s30 }
  0x12   : > { %v1521_v3 = vld [vmem:[%s1868_s22] sm:$0xff]   ;;  %v1559_v5 = vld [vmem:[%s1868_s22 + $0x8] sm:$0xff]   ;;  %v1491_v8 = vunpack.c.h.bf16 %v1489_v2  ;;  %v1490_v10 = vunpack.c.l.bf16 %v1489_v2  ;;  %v1494_v12 = vunpack.c.l.bf16 %v1552_v4  ;;  %v1886_v17 = vld [vmem:[%s1868_s22 + $0x30] sm:$0xff]   ;;  %v1495_v20 = vunpack.c.h.bf16 %v1552_v4 }
  0x13   : > { %v1875_v6 = vld [vmem:[%s1863_s19 + $0x28] sm:$0xff]   ;;  %v1523_v9 = vunpack.c.h.bf16 %v1521_v3  ;;  %v1522_v11 = vunpack.c.l.bf16 %v1521_v3  ;;  %v1526_v13 = vunpack.c.l.bf16 %v1559_v5  ;;  %v1527_v21 = vunpack.c.h.bf16 %v1559_v5  ;;  %v1553_v24 = vld [vmem:[%s1863_s19 + $0x10] sm:$0xff]   ;;  %v1893_v28 = vld [vmem:[%s1863_s19 + $0x38] sm:$0xff]  }
  0x14   : > { %v1878_v7 = vld [vmem:[%s1868_s22 + $0x28] sm:$0xff]   ;;  %v1510_v14 = vunpack.c.l.bf16 %v1875_v6  ;;  %v1514_v22 = vunpack.c.l.bf16 %v1883_v16  ;;  %v1546_v23 = vunpack.c.l.bf16 %v1886_v17  ;;  %v1560_v27 = vld [vmem:[%s1868_s22 + $0x10] sm:$0xff]   ;;  %v1896_v29 = vld [vmem:[%s1868_s22 + $0x38] sm:$0xff]   ;;  %v1498_v34 = vunpack.c.l.bf16 %v1553_v24 }
  0x15   : > { %v1542_v15 = vunpack.c.l.bf16 %v1878_v7  ;;  %v517_v18 = vadd.f32 %v1523_v9, %v1491_v8  ;;  %v516_v19 = vadd.f32 %v1522_v11, %v1490_v10  ;;  %v518_v25 = vadd.f32 %v1526_v13, %v1494_v12  ;;  %v1554_v51 = vld [vmem:[%s1863_s19 + $0x18] sm:$0xff]   ;;  %v1555_v2 = vld [vmem:[%s1863_s19 + $0x20] sm:$0xff]   ;;  %s1487_s19 = sshll.u32 %s2372_s30, 7 }
  0x16   : > { %v519_v33 = vadd.f32 %v1527_v21, %v1495_v20  ;;  %v528_v35 = vadd.f32 %v1546_v23, %v1514_v22  ;;  %v1530_v36 = vunpack.c.l.bf16 %v1560_v27  ;;  %v1518_v37 = vunpack.c.l.bf16 %v1893_v28  ;;  %v1561_v52 = vld [vmem:[%s1868_s22 + $0x18] sm:$0xff]   ;;  %v1562_v3 = vld [vmem:[%s1868_s22 + $0x20] sm:$0xff]   ;;  %s2298_s22 = scalar_lea.vmem %s2366_s9, %s1487_s19 }
  0x17   : > { %v526_v26 = vadd.f32 %v1542_v15, %v1510_v14  ;;  %v1550_v38 = vunpack.c.l.bf16 %v1896_v29  ;;  %v1499_v45 = vunpack.c.h.bf16 %v1553_v24  ;;  %v1531_v46 = vunpack.c.h.bf16 %v1560_v27 }
  0x18   : > { %v520_v43 = vadd.f32 %v1530_v36, %v1498_v34  ;;  %v1502_v54 = vunpack.c.l.bf16 %v1554_v51  ;;  %v1534_v55 = vunpack.c.l.bf16 %v1561_v52  ;;  %v1503_v60 = vunpack.c.h.bf16 %v1554_v51 }
  0x19   : > { %v530_v44 = vadd.f32 %v1550_v38, %v1518_v37  ;;  %v521_v53 = vadd.f32 %v1531_v46, %v1499_v45  ;;  %v1535_v61 = vunpack.c.h.bf16 %v1561_v52  ;;  %v1506_v4 = vunpack.c.l.bf16 %v1555_v2 }
  0x1a   : > { %v522_v1 = vadd.f32 %v1534_v55, %v1502_v54  ;;  %v1538_v10 = vunpack.c.l.bf16 %v1562_v3  ;;  %v1507_v11 = vunpack.c.h.bf16 %v1555_v2  ;;  %v1539_v15 = vunpack.c.h.bf16 %v1562_v3 }
  0x1b   : > { %v523_v9 = vadd.f32 %v1535_v61, %v1503_v60  ;;  %v1543_v22 = vunpack.c.h.bf16 %v1878_v7  ;;  %v1515_v23 = vunpack.c.h.bf16 %v1883_v16  ;;  %v1519_v27 = vunpack.c.h.bf16 %v1893_v28 }
  0x1c   : > { %v524_v14 = vadd.f32 %v1538_v10, %v1506_v4  ;;  %v525_v21 = vadd.f32 %v1539_v15, %v1507_v11  ;;  %v1551_v16 = vunpack.c.h.bf16 %v1896_v29 }
  0x90   : > { %v1898_v30 = vpop.permute.xlu0 %538 }
  0x91   : > { %v1901_v31 = vmul.f32 %v1898_v30, %v517_v18  ;;  %v1904_v32 = vmul.f32 %v1898_v30, %v516_v19  ;;  %v1913_v41 = vmul.f32 %v1898_v30, %v518_v25  ;;  %v1916_v42 = vmul.f32 %v1898_v30, %v526_v26 }
  0x92   : > { %v1923_v49 = vmul.f32 %v1898_v30, %v519_v33  ;;  %v1926_v50 = vmul.f32 %v1898_v30, %v528_v35  ;;  %v1935_v58 = vmul.f32 %v1898_v30, %v520_v43  ;;  %v1938_v59 = vmul.f32 %v1898_v30, %v530_v44 }
  0x93   : > { %v561_v39 = vsel %vm557_vm0, %v1901_v31, 0.0  ;;  %v558_v40 = vsel %vm557_vm0, %v1904_v32, 0.0  ;;  %v564_v47 = vsel %vm557_vm0, %v1913_v41, 0.0  ;;  %v588_v48 = vsel %vm557_vm0, %v1916_v42, 0.0 }
  0x94   : > { %562 = vadd.xlane.f32.xlu1 %v561_v39  ;;  %559 = vadd.xlane.f32.xlu0 %v558_v40  ;;  %v567_v56 = vsel %vm557_vm0, %v1923_v49, 0.0  ;;  %v594_v57 = vsel %vm557_vm0, %v1926_v50, 0.0  ;;  %v570_v62 = vsel %vm557_vm0, %v1935_v58, 0.0  ;;  %v600_v63 = vsel %vm557_vm0, %v1938_v59, 0.0 }
  0x95   : > { %v1945_v0 = vmul.f32 %v1898_v30, %v521_v53  ;;  %v1952_v8 = vmul.f32 %v1898_v30, %v522_v1  ;;  %v1957_v13 = vmul.f32 %v1898_v30, %v523_v9  ;;  %v1511_v18 = vunpack.c.h.bf16 %v1875_v6 }
  0x96   : > { %v1963_v20 = vmul.f32 %v1898_v30, %v524_v14  ;;  %v1970_v25 = vmul.f32 %v1898_v30, %v525_v21  ;;  %v1547_v6 = vunpack.c.h.bf16 %v1886_v17  ;;  %v531_v17 = vadd.f32 %v1551_v16, %v1519_v27 }
  0x97   : > { %v573_v5 = vsel %vm557_vm0, %v1945_v0, 0.0  ;;  %v576_v12 = vsel %vm557_vm0, %v1952_v8, 0.0  ;;  %v579_v19 = vsel %vm557_vm0, %v1957_v13, 0.0  ;;  %v527_v26 = vadd.f32 %v1543_v22, %v1511_v18 }
  0x98   : > { %565 = vadd.xlane.f32.xlu1 %v564_v47  ;;  %589 = vadd.xlane.f32.xlu0 %v588_v48  ;;  %v582_v24 = vsel %vm557_vm0, %v1963_v20, 0.0  ;;  %v585_v33 = vsel %vm557_vm0, %v1970_v25, 0.0  ;;  %v529_v34 = vadd.f32 %v1547_v6, %v1515_v23  ;;  %v1988_v37 = vmul.f32 %v1898_v30, %v531_v17 }
  0x99   : > { %v1977_v7 = vmul.f32 %v1898_v30, %v527_v26 }
  0x9a   : > { %v1983_v36 = vmul.f32 %v1898_v30, %v529_v34  ;;  %v603_v38 = vsel %vm557_vm0, %v1988_v37, 0.0 }
  0x9b   : > { %v591_v35 = vsel %vm557_vm0, %v1977_v7, 0.0 }
  0x9c   : > { %568 = vadd.xlane.f32.xlu1 %v567_v56  ;;  %595 = vadd.xlane.f32.xlu0 %v594_v57  ;;  %v597_v28 = vsel %vm557_vm0, %v1983_v36, 0.0 }
  0xa0   : > { %571 = vadd.xlane.f32.xlu1 %v570_v62  ;;  %601 = vadd.xlane.f32.xlu0 %v600_v63 }
  0xa4   : > { %574 = vadd.xlane.f32.xlu1 %v573_v5 }
  0xa8   : > { %577 = vadd.xlane.f32.xlu1 %v576_v12 }
  0xac   : > { %580 = vadd.xlane.f32.xlu1 %v579_v19 }
  0xb0   : > { %583 = vadd.xlane.f32.xlu1 %v582_v24 }
  0xb4   : > { %586 = vadd.xlane.f32.xlu1 %v585_v33 }
  0xb8   : > { %592 = vadd.xlane.f32.xlu1 %v591_v35 }
  0xbc   : > { %598 = vadd.xlane.f32.xlu1 %v597_v28 }
  0xc0   : > { %604 = vadd.xlane.f32.xlu1 %v603_v38 }
 0x121   : > { %v563_v29 = vpop.xlane.xlu1 %562  ;;  %v560_v39 = vpop.xlane.xlu0 %559 }
 0x122   : > { %v608_v40 = vmul.f32 0.03125, %v563_v29  ;;  %v607_v43 = vmul.f32 0.03125, %v560_v39 }
 0x124   : > { %v1993_v44 = vsub.f32 %v1901_v31, %v608_v40  ;;  %v1996_v45 = vsub.f32 %v1904_v32, %v607_v43 }
 0x125   : > { %v566_v46 = vpop.xlane.xlu1 %565  ;;  %v590_v11 = vpop.xlane.xlu0 %589 }
 0x126   : > { %v609_v47 = vmul.f32 0.03125, %v566_v46  ;;  %v640_v30 = vmul.f32 %v1993_v44, %v1993_v44  ;;  %v639_v48 = vmul.f32 %v1996_v45, %v1996_v45  ;;  %v617_v24 = vmul.f32 0.03125, %v590_v11 }
 0x128   : > { %v2003_v51 = vsub.f32 %v1913_v41, %v609_v47  ;;  %v658_v52 = vsel %vm557_vm0, %v640_v30, 0.0  ;;  %v655_v53 = vsel %vm557_vm0, %v639_v48, 0.0  ;;  %v2040_v35 = vsub.f32 %v1916_v42, %v617_v24  ;;  %v1686_v24 = vld [vmem:[%s2362_s5] sm:$0xff]  }
 0x129   : > { %659 = vadd.xlane.f32.xlu1 %v658_v52  ;;  %v569_v54 = vpop.xlane.xlu1 %568  ;;  %656 = vadd.xlane.f32.xlu0 %v655_v53  ;;  %v596_v26 = vpop.xlane.xlu0 %595 }
 0x12a   : > { %v610_v55 = vmul.f32 0.03125, %v569_v54  ;;  %v641_v56 = vmul.f32 %v2003_v51, %v2003_v51  ;;  %v619_v17 = vmul.f32 0.03125, %v596_v26  ;;  %v649_v46 = vmul.f32 %v2040_v35, %v2040_v35  ;;  %1592 = vmatprep.subr.bf16.mxu0 %v1686_v24 }
 0x12b   : > { %1593 = vmatpush3.bf16.msra.mxu0 %v1686_v24 }
 0x12c   : > { %v2010_v57 = vsub.f32 %v1923_v49, %v610_v55  ;;  %v661_v60 = vsel %vm557_vm0, %v641_v56, 0.0  ;;  %v2051_v47 = vsub.f32 %v1926_v50, %v619_v17  ;;  %v685_v56 = vsel %vm557_vm0, %v649_v46, 0.0 }
 0x12d   : > { %v572_v61 = vpop.xlane.xlu1 %571  ;;  %662 = vadd.xlane.f32.xlu0 %v661_v60  ;;  %v602_v29 = vpop.xlane.xlu0 %601 }
 0x12e   : > { %v611_v62 = vmul.f32 0.03125, %v572_v61  ;;  %v642_v63 = vmul.f32 %v2010_v57, %v2010_v57  ;;  %v621_v30 = vmul.f32 0.03125, %v602_v29 }
 0x130   : > { %v2016_v1 = vsub.f32 %v1935_v58, %v611_v62  ;;  %v664_v2 = vsel %vm557_vm0, %v642_v63, 0.0  ;;  %v2061_v60 = vsub.f32 %v1938_v59, %v621_v30  ;;  %v651_v63 = vmul.f32 %v2051_v47, %v2051_v47 }
 0x131   : > { %665 = vadd.xlane.f32.xlu1 %v664_v2  ;;  %v575_v3 = vpop.xlane.xlu1 %574 }
 0x132   : > { %v612_v4 = vmul.f32 0.03125, %v575_v3  ;;  %v643_v5 = vmul.f32 %v2016_v1, %v2016_v1  ;;  %v691_v11 = vsel %vm557_vm0, %v651_v63, 0.0 }
 0x134   : > { %v2022_v9 = vsub.f32 %v1945_v0, %v612_v4  ;;  %v667_v10 = vsel %vm557_vm0, %v643_v5, 0.0 }
 0x135   : > { %v578_v12 = vpop.xlane.xlu1 %577  ;;  %668 = vadd.xlane.f32.xlu0 %v667_v10 }
 0x136   : > { %v613_v14 = vmul.f32 0.03125, %v578_v12  ;;  %v644_v15 = vmul.f32 %v2022_v9, %v2022_v9  ;;  %v653_v12 = vmul.f32 %v2061_v60, %v2061_v60 }
 0x138   : > { %v2028_v18 = vsub.f32 %v1952_v8, %v613_v14  ;;  %v670_v19 = vsel %vm557_vm0, %v644_v15, 0.0 }
 0x139   : > { %671 = vadd.xlane.f32.xlu1 %v670_v19  ;;  %v581_v21 = vpop.xlane.xlu1 %580 }
 0x13a   : > { %v614_v22 = vmul.f32 0.03125, %v581_v21  ;;  %v645_v23 = vmul.f32 %v2028_v18, %v2028_v18 }
 0x13c   : > { %v2034_v6 = vsub.f32 %v1957_v13, %v614_v22  ;;  %v673_v27 = vsel %vm557_vm0, %v645_v23, 0.0  ;;  %v697_v23 = vsel %vm557_vm0, %v653_v12, 0.0 }
 0x13d   : > { %v584_v33 = vpop.xlane.xlu1 %583  ;;  %674 = vadd.xlane.f32.xlu0 %v673_v27 }
 0x13e   : > { %v615_v34 = vmul.f32 0.03125, %v584_v33  ;;  %v646_v16 = vmul.f32 %v2034_v6, %v2034_v6  ;;  %v1687_v33 = vld [vmem:[%s2362_s5 + $0x8] sm:$0xff]  }
 0x13f   : > { %1594 = vmatprep.subr.bf16.mxu0 %v1687_v33 }
 0x140   : > { %v2043_v28 = vsub.f32 %v1963_v20, %v615_v34  ;;  %v676_v38 = vsel %vm557_vm0, %v646_v16, 0.0  ;;  %1595 = vmatpush3.bf16.msra.mxu0 %v1687_v33 }
 0x141   : > { %677 = vadd.xlane.f32.xlu1 %v676_v38  ;;  %v587_v39 = vpop.xlane.xlu1 %586 }
 0x142   : > { %v616_v40 = vmul.f32 0.03125, %v587_v39  ;;  %v647_v43 = vmul.f32 %v2043_v28, %v2043_v28 }
 0x144   : > { %v2054_v48 = vsub.f32 %v1970_v25, %v616_v40  ;;  %v679_v52 = vsel %vm557_vm0, %v647_v43, 0.0 }
 0x145   : > { %v593_v53 = vpop.xlane.xlu1 %592  ;;  %680 = vadd.xlane.f32.xlu0 %v679_v52 }
 0x146   : > { %v618_v54 = vmul.f32 0.03125, %v593_v53  ;;  %v648_v55 = vmul.f32 %v2054_v48, %v2054_v48 }
 0x148   : > { %v2064_v61 = vsub.f32 %v1977_v7, %v618_v54  ;;  %v682_v62 = vsel %vm557_vm0, %v648_v55, 0.0 }
 0x149   : > { %683 = vadd.xlane.f32.xlu1 %v682_v62  ;;  %v599_v2 = vpop.xlane.xlu1 %598  ;;  %686 = vadd.xlane.f32.xlu0 %v685_v56  ;;  %v2102_v62 = vld [vmem:[%s433_s29] ss:$0 sm:$0xff] }
 0x14a   : > { %v620_v3 = vmul.f32 0.03125, %v599_v2  ;;  %v650_v4 = vmul.f32 %v2064_v61, %v2064_v61 }
 0x14c   : > { %v2072_v5 = vsub.f32 %v1983_v36, %v620_v3  ;;  %v688_v10 = vsel %vm557_vm0, %v650_v4, 0.0 }
 0x14d   : > { %689 = vadd.xlane.f32.xlu1 %v688_v10  ;;  %v605_v14 = vpop.xlane.xlu1 %604  ;;  %692 = vadd.xlane.f32.xlu0 %v691_v11  ;;  %v2105_v10 = vld [vmem:[%s436_s15] ss:$0 sm:$0xff] }
 0x14e   : > { %v622_v15 = vmul.f32 0.03125, %v605_v14  ;;  %v652_v19 = vmul.f32 %v2072_v5, %v2072_v5 }
 0x150   : > { %v2081_v21 = vsub.f32 %v1988_v37, %v622_v15  ;;  %v694_v22 = vsel %vm557_vm0, %v652_v19, 0.0 }
 0x151   : > { %695 = vadd.xlane.f32.xlu1 %v694_v22  ;;  %698 = vadd.xlane.f32.xlu0 %v697_v23 }
 0x152   : > { %v654_v26 = vmul.f32 %v2081_v21, %v2081_v21 }
 0x154   : > { %v700_v27 = vsel %vm557_vm0, %v654_v26, 0.0 }
 0x155   : > { %701 = vadd.xlane.f32.xlu1 %v700_v27 }
 0x1b6   : > { %v660_v34 = vpop.xlane.xlu1 %659  ;;  %v657_v16 = vpop.xlane.xlu0 %656 }
 0x1b7   : > { %v704_v17 = vmul.f32 0.03125, %v660_v34  ;;  %v703_v38 = vmul.f32 0.03125, %v657_v16 }
 0x1b9   : > { %v720_v29 = vadd.f32 1e-05, %v704_v17  ;;  %v719_v39 = vadd.f32 1e-05, %v703_v38 }
 0x1ba   : > { %v663_v40 = vpop.xlane.xlu0 %662 }
 0x1bb   : > { %1696 = vrsqrt.f32 %v720_v29  ;;  %v705_v43 = vmul.f32 0.03125, %v663_v40 }
 0x1bc   : > { %1698 = vrsqrt.f32 %v719_v39 }
 0x1bd   : > { %v721_v46 = vadd.f32 1e-05, %v705_v43 }
 0x1be   : > { %v666_v30 = vpop.xlane.xlu1 %665 }
 0x1bf   : > { %1700 = vrsqrt.f32 %v721_v46  ;;  %v706_v52 = vmul.f32 0.03125, %v666_v30 }
 0x1c1   : > { %v722_v53 = vadd.f32 1e-05, %v706_v52 }
 0x1c2   : > { %v669_v54 = vpop.xlane.xlu0 %668 }
 0x1c3   : > { %1702 = vrsqrt.f32 %v722_v53  ;;  %v707_v55 = vmul.f32 0.03125, %v669_v54 }
 0x1c5   : > { %v1697_v56 = vpop.eup %1696  ;;  %v723_v63 = vadd.f32 1e-05, %v707_v55 }
 0x1c6   : > { %v1699_v2 = vpop.eup %1698  ;;  %v672_v3 = vpop.xlane.xlu1 %671  ;;  %v752_v4 = vmul.f32 %v1697_v56, %v1993_v44 }
 0x1c7   : > { %1704 = vrsqrt.f32 %v723_v63  ;;  %v708_v11 = vmul.f32 0.03125, %v672_v3  ;;  %v751_v12 = vmul.f32 %v1699_v2, %v1996_v45 }
 0x1c8   : > { %v775_v14 = vmul.f32 %v2102_v62, %v752_v4 }
 0x1c9   : > { %v1701_v15 = vpop.eup %1700  ;;  %v724_v19 = vadd.f32 1e-05, %v708_v11  ;;  %v774_v22 = vmul.f32 %v2102_v62, %v751_v12 }
 0x1ca   : > { %v753_v23 = vmul.f32 %v1701_v15, %v2003_v51  ;;  %v675_v24 = vpop.xlane.xlu0 %674  ;;  %v798_v26 = vadd.f32 %v2105_v10, %v775_v14 }
 0x1cb   : > { %1706 = vrsqrt.f32 %v724_v19  ;;  %v709_v27 = vmul.f32 0.03125, %v675_v24  ;;  %v797_v44 = vadd.f32 %v2105_v10, %v774_v22 }
 0x1cc   : > { %v776_v38 = vmul.f32 %v2102_v62, %v753_v23 }
 0x1cd   : > { %v1703_v33 = vpop.eup %1702  ;;  %v725_v34 = vadd.f32 1e-05, %v709_v27  ;;  %v813_v16 = vpack.c.bf16 %v798_v26, %v797_v44 }
 0x1ce   : > { %v754_v45 = vmul.f32 %v1703_v33, %v2010_v57  ;;  %v678_v17 = vpop.xlane.xlu1 %677  ;;  %v799_v30 = vadd.f32 %v2105_v10, %v776_v38 }
 0x1cf   : > { %1708 = vrsqrt.f32 %v725_v34  ;;  %v710_v29 = vmul.f32 0.03125, %v678_v17  ;;  %1596 = vmatprep.mubr.msk.bf16.mxu0 %vm557_vm0, %v813_v16 }
 0x1d0   : > { %v777_v51 = vmul.f32 %v2102_v62, %v754_v45 }
 0x1d1   : > { %v1705_v39 = vpop.eup %1704  ;;  %v726_v40 = vadd.f32 1e-05, %v710_v29 }
 0x1d2   : > { %v755_v43 = vmul.f32 %v1705_v39, %v2016_v1  ;;  %v681_v46 = vpop.xlane.xlu0 %680  ;;  %v800_v52 = vadd.f32 %v2105_v10, %v777_v51 }
 0x1d3   : > { %1710 = vrsqrt.f32 %v726_v40  ;;  %v711_v57 = vmul.f32 0.03125, %v681_v46 }
 0x1d4   : > { %v814_v53 = vpack.c.bf16 %v800_v52, %v799_v30  ;;  %v778_v3 = vmul.f32 %v2102_v62, %v755_v43 }
 0x1d5   : > { %v1707_v54 = vpop.eup %1706  ;;  %v727_v55 = vadd.f32 1e-05, %v711_v57 }
 0x1d6   : > { %v756_v56 = vmul.f32 %v1707_v54, %v2022_v9  ;;  %v684_v63 = vpop.xlane.xlu1 %683  ;;  %1597 = vmatmul.mubr.msk.bf16.vlgmr.msra.gmra.mrb[0].mxu0 %vm557_vm0, %v814_v53  ;;  %v687_v2 = vpop.xlane.xlu0 %686  ;;  %v801_v9 = vadd.f32 %v2105_v10, %v778_v3 }
 0x1d7   : > { %1712 = vrsqrt.f32 %v727_v55  ;;  %v712_v1 = vmul.f32 0.03125, %v684_v63  ;;  %v713_v4 = vmul.f32 0.03125, %v687_v2 }
 0x1d8   : > { %v779_v11 = vmul.f32 %v2102_v62, %v756_v56 }
 0x1d9   : > { %v1709_v12 = vpop.eup %1708  ;;  %v728_v14 = vadd.f32 1e-05, %v712_v1  ;;  %v729_v15 = vadd.f32 1e-05, %v713_v4 }
 0x1da   : > { %v757_v19 = vmul.f32 %v1709_v12, %v2028_v18  ;;  %v690_v22 = vpop.xlane.xlu1 %689  ;;  %v693_v23 = vpop.xlane.xlu0 %692  ;;  %v802_v24 = vadd.f32 %v2105_v10, %v779_v11 }
 0x1db   : > { %1714 = vrsqrt.f32 %v728_v14  ;;  %v714_v26 = vmul.f32 0.03125, %v690_v22  ;;  %v715_v27 = vmul.f32 0.03125, %v693_v23 }
 0x1dc   : > { %1716 = vrsqrt.f32 %v729_v15  ;;  %v815_v44 = vpack.c.bf16 %v802_v24, %v801_v9  ;;  %v780_v38 = vmul.f32 %v2102_v62, %v757_v19 }
 0x1dd   : > { %v1711_v33 = vpop.eup %1710  ;;  %v730_v34 = vadd.f32 1e-05, %v714_v26  ;;  %v731_v16 = vadd.f32 1e-05, %v715_v27 }
 0x1de   : > { %v758_v45 = vmul.f32 %v1711_v33, %v2034_v6  ;;  %v696_v17 = vpop.xlane.xlu1 %695  ;;  %1600 = vmatprep.mubr.msk.bf16.mxu0 %vm557_vm0, %v815_v44  ;;  %v699_v18 = vpop.xlane.xlu0 %698  ;;  %v803_v6 = vadd.f32 %v2105_v10, %v780_v38 }
 0x1df   : > { %1718 = vrsqrt.f32 %v730_v34  ;;  %v716_v29 = vmul.f32 0.03125, %v696_v17  ;;  %v717_v51 = vmul.f32 0.03125, %v699_v18 }
 0x1e0   : > { %1720 = vrsqrt.f32 %v731_v16  ;;  %v781_v39 = vmul.f32 %v2102_v62, %v758_v45 }
 0x1e1   : > { %v1713_v40 = vpop.eup %1712  ;;  %v732_v43 = vadd.f32 1e-05, %v716_v29  ;;  %v733_v46 = vadd.f32 1e-05, %v717_v51 }
 0x1e2   : > { %v759_v30 = vmul.f32 %v1713_v40, %v2043_v28  ;;  %v702_v52 = vpop.xlane.xlu1 %701  ;;  %v804_v57 = vadd.f32 %v2105_v10, %v781_v39  ;;  %v1691_v39 = vld [vmem:[%s2364_s7 + $0x18] sm:$0xff]   ;;  %v1692_v40 = vld [vmem:[%s2364_s7 + $0x20] sm:$0xff]  }
 0x1e3   : > { %1722 = vrsqrt.f32 %v732_v43  ;;  %v718_v53 = vmul.f32 0.03125, %v702_v52  ;;  %v1693_v43 = vld [vmem:[%s2364_s7 + $0x28] sm:$0xff]   ;;  %v2189_v52 = vld [vmem:[%s2363_s6] ss:$0 sm:$0xff] }
 0x1e4   : > { %1724 = vrsqrt.f32 %v733_v46  ;;  %v816_v54 = vpack.c.bf16 %v804_v57, %v803_v6  ;;  %v782_v3 = vmul.f32 %v2102_v62, %v759_v30  ;;  %v1694_v46 = vld [vmem:[%s2364_s7 + $0x30] sm:$0xff]   ;;  %v1695_v30 = vld [vmem:[%s2364_s7 + $0x38] sm:$0xff]  }
 0x1e5   : > { %v1715_v55 = vpop.eup %1714  ;;  %v734_v56 = vadd.f32 1e-05, %v718_v53 }
 0x1e6   : > { %v1717_v63 = vpop.eup %1716  ;;  %v760_v2 = vmul.f32 %v1715_v55, %v2054_v48  ;;  %1601 = vmatmul.mubr.msk.bf16.gmra.mrb[4].mxu0 %vm557_vm0, %v816_v54  ;;  %v805_v14 = vadd.f32 %v2105_v10, %v782_v3 }
 0x1e7   : > { %v761_v28 = vmul.f32 %v1717_v63, %v2040_v35  ;;  %1726 = vrsqrt.f32 %v734_v56 }
 0x1e8   : > { %v783_v1 = vmul.f32 %v2102_v62, %v760_v2 }
 0x1e9   : > { %v1719_v4 = vpop.eup %1718  ;;  %v784_v19 = vmul.f32 %v2102_v62, %v761_v28 }
 0x1ea   : > { %v1721_v11 = vpop.eup %1720  ;;  %v762_v12 = vmul.f32 %v1719_v4, %v2064_v61  ;;  %v806_v15 = vadd.f32 %v2105_v10, %v783_v1 }
 0x1eb   : > { %v763_v48 = vmul.f32 %v1721_v11, %v2051_v47  ;;  %v807_v26 = vadd.f32 %v2105_v10, %v784_v19 }
 0x1ec   : > { %v817_v22 = vpack.c.bf16 %v806_v15, %v805_v14  ;;  %v785_v23 = vmul.f32 %v2102_v62, %v762_v12 }
 0x1ed   : > { %v1723_v9 = vpop.eup %1722  ;;  %v786_v27 = vmul.f32 %v2102_v62, %v763_v48 }
 0x1ee   : > { %v1725_v35 = vpop.eup %1724  ;;  %v764_v24 = vmul.f32 %v1723_v9, %v2072_v5  ;;  %1604 = vmatprep.mubr.msk.bf16.mxu0 %vm557_vm0, %v817_v22  ;;  %v808_v61 = vadd.f32 %v2105_v10, %v785_v23 }
 0x1ef   : > { %v765_v44 = vmul.f32 %v1725_v35, %v2061_v60  ;;  %v809_v5 = vadd.f32 %v2105_v10, %v786_v27 }
 0x1f0   : > { %v818_v33 = vpack.c.bf16 %v808_v61, %v807_v26  ;;  %v787_v47 = vmul.f32 %v2102_v62, %v764_v24 }
 0x1f1   : > { %v1727_v34 = vpop.eup %1726  ;;  %v788_v17 = vmul.f32 %v2102_v62, %v765_v44 }
 0x1f2   : > { %v766_v16 = vmul.f32 %v1727_v34, %v2081_v21  ;;  %1605 = vmatmul.mubr.msk.bf16.gmra.mrb[8].mxu0 %vm557_vm0, %v818_v33  ;;  %v810_v45 = vadd.f32 %v2105_v10, %v787_v47  ;;  %v1688_v21 = vld [vmem:[%s2364_s7] sm:$0xff]  }
 0x1f3   : > { %v811_v60 = vadd.f32 %v2105_v10, %v788_v17  ;;  %1612 = vmatprep.subr.bf16.mxu0 %v1688_v21  ;;  %1644 = vmatprep.subr.bf16.mxu1 %v1688_v21 }
 0x1f4   : > { %v819_v18 = vpack.c.bf16 %v810_v45, %v809_v5  ;;  %v789_v38 = vmul.f32 %v2102_v62, %v766_v16  ;;  %1613 = vmatpush3.bf16.msra.mxu0 %v1688_v21  ;;  %1652 = vmatpush3.bf16.msra.mxu1 %v1688_v21  ;;  %v1689_v62 = vld [vmem:[%s2364_s7 + $0x8] sm:$0xff]  }
 0x1f5   : > { %1614 = vmatprep.subr.bf16.mxu0 %v1689_v62  ;;  %1645 = vmatprep.subr.bf16.mxu1 %v1689_v62 }
 0x1f6   : > { %1608 = vmatprep.mubr.msk.bf16.mxu0 %vm557_vm0, %v819_v18  ;;  %v812_v29 = vadd.f32 %v2105_v10, %v789_v38  ;;  %v1690_v10 = vld [vmem:[%s2364_s7 + $0x10] sm:$0xff]  }
 0x1f8   : > { %v820_v51 = vpack.c.bf16 %v812_v29, %v811_v60  ;;  %1615 = vmatpush3.bf16.msra.mxu0 %v1689_v62  ;;  %1653 = vmatpush3.bf16.msra.mxu1 %v1689_v62 }
 0x1f9   : > { %1616 = vmatprep.subr.bf16.mxu0 %v1690_v10  ;;  %1646 = vmatprep.subr.bf16.mxu1 %v1690_v10 }
 0x1fa   : > { %1609 = vmatmul.mubr.msk.bf16.gmra.mrb[12].mxu0 %vm557_vm0, %v820_v51 }
 0x1fc   : > { %1617 = vmatpush3.bf16.msra.mxu0 %v1690_v10  ;;  %1654 = vmatpush3.bf16.msra.mxu1 %v1690_v10 }
 0x1fd   : > { %1618 = vmatprep.subr.bf16.mxu0 %v1691_v39  ;;  %1647 = vmatprep.subr.bf16.mxu1 %v1691_v39 }
 0x200   : > { %1619 = vmatpush3.bf16.msra.mxu0 %v1691_v39  ;;  %1655 = vmatpush3.bf16.msra.mxu1 %v1691_v39 }
 0x201   : > { %1620 = vmatprep.subr.bf16.mxu0 %v1692_v40  ;;  %1648 = vmatprep.subr.bf16.mxu1 %v1692_v40 }
 0x204   : > { %1621 = vmatpush3.bf16.msra.mxu0 %v1692_v40  ;;  %1656 = vmatpush3.bf16.msra.mxu1 %v1692_v40 }
 0x205   : > { %1622 = vmatprep.subr.bf16.mxu0 %v1693_v43  ;;  %1649 = vmatprep.subr.bf16.mxu1 %v1693_v43 }
 0x208   : > { %1623 = vmatpush3.bf16.msra.mxu0 %v1693_v43  ;;  %1657 = vmatpush3.bf16.msra.mxu1 %v1693_v43 }
 0x209   : > { %1624 = vmatprep.subr.bf16.mxu0 %v1694_v46  ;;  %1650 = vmatprep.subr.bf16.mxu1 %v1694_v46 }
 0x20c   : > { %1625 = vmatpush3.bf16.msra.mxu0 %v1694_v46  ;;  %1658 = vmatpush3.bf16.msra.mxu1 %v1694_v46 }
 0x20d   : > { %1626 = vmatprep.subr.bf16.mxu0 %v1695_v30  ;;  %1651 = vmatprep.subr.bf16.mxu1 %v1695_v30 }
 0x210   : > { %1627 = vmatpush3.bf16.msra.mxu0 %v1695_v30  ;;  %1659 = vmatpush3.bf16.msra.mxu1 %v1695_v30 }
 0x2a9   : > { %v1598_v6 = vpop.f32.mrb[0].mxu0 }
 0x2aa   : > { %v911_v57 = vadd.f32 %v1598_v6, %v2189_v52  ;;  %v902_v53 = vpop.f32.mrb[1].mxu0 }
 0x2ab   : > { %v903_v54 = vadd.f32 %v2189_v52, %v902_v53  ;;  %v1599_v55 = vpop.f32.mrb[2].mxu0 }
 0x2ac   : > { %v983_v56 = vmul.f32 0.044715, %v911_v57  ;;  %v914_v63 = vadd.f32 %v1599_v55, %v2189_v52  ;;  %v905_v2 = vpop.f32.mrb[3].mxu0  ;;  %v967_v40 = vmul.f32 0.5, %v911_v57 }
 0x2ad   : > { %v981_v3 = vmul.f32 0.044715, %v903_v54  ;;  %v906_v28 = vadd.f32 %v2189_v52, %v905_v2  ;;  %v965_v6 = vmul.f32 0.5, %v903_v54 }
 0x2ae   : > { %v999_v1 = vmul.f32 %v983_v56, %v911_v57  ;;  %v984_v4 = vmul.f32 0.044715, %v914_v63 }
 0x2af   : > { %v997_v11 = vmul.f32 %v981_v3, %v903_v54  ;;  %v982_v12 = vmul.f32 0.044715, %v906_v28  ;;  %v968_v3 = vmul.f32 0.5, %v914_v63 }
 0x2b0   : > { %v1015_v14 = vmul.f32 %v999_v1, %v911_v57  ;;  %v1000_v15 = vmul.f32 %v984_v4, %v914_v63 }
 0x2b1   : > { %v1013_v19 = vmul.f32 %v997_v11, %v903_v54  ;;  %v998_v48 = vmul.f32 %v982_v12, %v906_v28 }
 0x2b2   : > { %v1031_v22 = vadd.f32 %v1015_v14, %v911_v57  ;;  %v1016_v23 = vmul.f32 %v1000_v15, %v914_v63  ;;  %v966_v57 = vmul.f32 0.5, %v906_v28 }
 0x2b3   : > { %v1014_v9 = vmul.f32 %v998_v48, %v906_v28  ;;  %v1029_v35 = vadd.f32 %v1013_v19, %v903_v54 }
 0x2b4   : > { %v1047_v24 = vmul.f32 0.7978846, %v1031_v22  ;;  %v1032_v26 = vadd.f32 %v1016_v23, %v914_v63 }
 0x2b5   : > { %v1030_v61 = vadd.f32 %v1014_v9, %v906_v28  ;;  %v1045_v27 = vmul.f32 0.7978846, %v1029_v35 }
 0x2b6   : > { %1728 = vtanh.f32 %v1047_v24  ;;  %v1048_v44 = vmul.f32 0.7978846, %v1032_v26 }
 0x2b7   : > { %v1046_v33 = vmul.f32 0.7978846, %v1030_v61  ;;  %1730 = vtanh.f32 %v1045_v27 }
 0x2b8   : > { %1732 = vtanh.f32 %v1048_v44 }
 0x2b9   : > { %v1602_v47 = vpop.f32.mrb[4].mxu0  ;;  %1734 = vtanh.f32 %v1046_v33 }
 0x2ba   : > { %v2196_v34 = vadd.f32 %v1602_v47, %v2189_v52  ;;  %v918_v16 = vpop.f32.mrb[5].mxu0 }
 0x2bb   : > { %v2199_v5 = vadd.f32 %v2189_v52, %v918_v16  ;;  %v1603_v45 = vpop.f32.mrb[6].mxu0 }
 0x2bc   : > { %v987_v17 = vmul.f32 0.044715, %v2196_v34  ;;  %v2203_v18 = vadd.f32 %v1603_v45, %v2189_v52  ;;  %v921_v38 = vpop.f32.mrb[7].mxu0 }
 0x2bd   : > { %v985_v60 = vmul.f32 0.044715, %v2199_v5  ;;  %v2207_v29 = vadd.f32 %v2189_v52, %v921_v38 }
 0x2be   : > { %v1003_v51 = vmul.f32 %v987_v17, %v2196_v34  ;;  %v988_v21 = vmul.f32 0.044715, %v2203_v18 }
 0x2bf   : > { %v986_v62 = vmul.f32 0.044715, %v2207_v29  ;;  %v1001_v10 = vmul.f32 %v985_v60, %v2199_v5 }
 0x2c0   : > { %v1729_v39 = vpop.eup %1728  ;;  %v1019_v43 = vmul.f32 %v1003_v51, %v2196_v34  ;;  %v1004_v46 = vmul.f32 %v988_v21, %v2203_v18 }
 0x2c1   : > { %v1731_v30 = vpop.eup %1730  ;;  %v1079_v53 = vadd.f32 1.0, %v1729_v39  ;;  %v1002_v55 = vmul.f32 %v986_v62, %v2207_v29  ;;  %v1017_v56 = vmul.f32 %v1001_v10, %v2199_v5 }
 0x2c2   : > { %v1733_v2 = vpop.eup %1732  ;;  %v1020_v1 = vmul.f32 %v1004_v46, %v2203_v18  ;;  %v1077_v4 = vadd.f32 1.0, %v1731_v30  ;;  %v1035_v11 = vadd.f32 %v1019_v43, %v2196_v34 }
 0x2c3   : > { %v1735_v12 = vpop.eup %1734  ;;  %v1080_v14 = vadd.f32 1.0, %v1733_v2  ;;  %v1018_v15 = vmul.f32 %v1002_v55, %v2207_v29  ;;  %v1033_v19 = vadd.f32 %v1017_v56, %v2199_v5  ;;  %v1095_v48 = vmul.f32 %v1079_v53, %v967_v40 }
 0x2c4   : > { %v1078_v54 = vadd.f32 1.0, %v1735_v12  ;;  %v1036_v22 = vadd.f32 %v1020_v1, %v2203_v18  ;;  %v1051_v23 = vmul.f32 0.7978846, %v1035_v11  ;;  %v1093_v35 = vmul.f32 %v1077_v4, %v965_v6 }
 0x2c5   : > { %v1606_v9 = vpop.f32.mrb[8].mxu0  ;;  %v1096_v63 = vmul.f32 %v1080_v14, %v968_v3  ;;  %v1034_v24 = vadd.f32 %v1018_v15, %v2207_v29  ;;  %v1049_v26 = vmul.f32 0.7978846, %v1033_v19  ;;  %v969_v56 = vmul.f32 0.5, %v2199_v5 }
 0x2c6   : > { %v2224_v61 = vadd.f32 %v1606_v9, %v2189_v52  ;;  %v934_v28 = vpop.f32.mrb[9].mxu0  ;;  %v1094_v27 = vmul.f32 %v1078_v54, %v966_v57  ;;  %v1052_v44 = vmul.f32 0.7978846, %v1036_v22  ;;  %1736 = vtanh.f32 %v1051_v23 }
 0x2c7   : > { %v2227_v33 = vadd.f32 %v2189_v52, %v934_v28  ;;  %v1607_v47 = vpop.f32.mrb[10].mxu0  ;;  %v1110_v16 = vpack.c.bf16 %v1096_v63, %v1095_v48  ;;  %v1050_v45 = vmul.f32 0.7978846, %v1034_v24  ;;  %1738 = vtanh.f32 %v1049_v26 }
 0x2c8   : > { %v991_v17 = vmul.f32 0.044715, %v2224_v61  ;;  %v2231_v38 = vadd.f32 %v1607_v47, %v2189_v52  ;;  %v937_v60 = vpop.f32.mrb[11].mxu0  ;;  %v1109_v51 = vpack.c.bf16 %v1094_v27, %v1093_v35  ;;  %1740 = vtanh.f32 %v1052_v44 }
 0x2c9   : > { %v989_v21 = vmul.f32 0.044715, %v2227_v33  ;;  %v2235_v62 = vadd.f32 %v2189_v52, %v937_v60  ;;  %1742 = vtanh.f32 %v1050_v45  ;;  %v971_v2 = vmul.f32 0.5, %v2196_v34 }
 0x2ca   : > { %v1007_v10 = vmul.f32 %v991_v17, %v2224_v61  ;;  %v992_v39 = vmul.f32 0.044715, %v2231_v38  ;;  %1628 = vmatprep.mubr.bf16.mxu0 %v1109_v51  ;;  %v972_v11 = vmul.f32 0.5, %v2203_v18  ;;  %v970_v5 = vmul.f32 0.5, %v2207_v29 }
 0x2cb   : > { %v1005_v40 = vmul.f32 %v989_v21, %v2227_v33  ;;  %v990_v43 = vmul.f32 0.044715, %v2235_v62  ;;  %1629 = vmatmul.mubr.bf16.vlgmr.msra.gmra.mrb[16].mxu0 %v1110_v16 }
 0x2cc   : > { %v1023_v46 = vmul.f32 %v1007_v10, %v2224_v61  ;;  %v1008_v30 = vmul.f32 %v992_v39, %v2231_v38 }
 0x2cd   : > { %v1021_v6 = vmul.f32 %v1005_v40, %v2227_v33  ;;  %v1006_v53 = vmul.f32 %v990_v43, %v2235_v62  ;;  %v1610_v55 = vpop.f32.mrb[12].mxu0 }
 0x2ce   : > { %v1024_v3 = vmul.f32 %v1008_v30, %v2231_v38  ;;  %v2249_v1 = vadd.f32 %v1610_v55, %v2189_v52  ;;  %v950_v4 = vpop.f32.mrb[13].mxu0  ;;  %v1039_v12 = vadd.f32 %v1023_v46, %v2224_v61 }
 0x2cf   : > { %v1022_v57 = vmul.f32 %v1006_v53, %v2235_v62  ;;  %v2255_v14 = vadd.f32 %v2189_v52, %v950_v4  ;;  %v1611_v15 = vpop.f32.mrb[14].mxu0  ;;  %v1037_v34 = vadd.f32 %v1021_v6, %v2227_v33 }
 0x2d0   : > { %v1737_v19 = vpop.eup %1736  ;;  %v995_v54 = vmul.f32 0.044715, %v2249_v1  ;;  %v2261_v48 = vadd.f32 %v1611_v15, %v2189_v52  ;;  %v953_v22 = vpop.f32.mrb[15].mxu0  ;;  %v1040_v18 = vadd.f32 %v1024_v3, %v2231_v38  ;;  %v1055_v23 = vmul.f32 0.7978846, %v1039_v12 }
 0x2d1   : > { %v1739_v9 = vpop.eup %1738  ;;  %v993_v35 = vmul.f32 0.044715, %v2255_v14  ;;  %v2266_v63 = vadd.f32 %v2189_v52, %v953_v22  ;;  %v1083_v24 = vadd.f32 1.0, %v1737_v19  ;;  %v1038_v29 = vadd.f32 %v1022_v57, %v2235_v62 }
 0x2d2   : > { %v1741_v26 = vpop.eup %1740  ;;  %v1011_v28 = vmul.f32 %v995_v54, %v2249_v1  ;;  %v996_v27 = vmul.f32 0.044715, %v2261_v48  ;;  %v1081_v44 = vadd.f32 1.0, %v1739_v9  ;;  %v1053_v47 = vmul.f32 0.7978846, %v1037_v34 }
 0x2d3   : > { %v1743_v16 = vpop.eup %1742  ;;  %v1009_v45 = vmul.f32 %v993_v35, %v2255_v14  ;;  %v994_v17 = vmul.f32 0.044715, %v2266_v63  ;;  %v1084_v60 = vadd.f32 1.0, %v1741_v26  ;;  %v1099_v51 = vmul.f32 %v1083_v24, %v971_v2 }
 0x2d4   : > { %v1027_v52 = vmul.f32 %v1011_v28, %v2249_v1  ;;  %v1012_v21 = vmul.f32 %v996_v27, %v2261_v48  ;;  %v1082_v10 = vadd.f32 1.0, %v1743_v16  ;;  %v1097_v39 = vmul.f32 %v1081_v44, %v969_v56 }
 0x2d5   : > { %v1025_v40 = vmul.f32 %v1009_v45, %v2255_v14  ;;  %v1010_v43 = vmul.f32 %v994_v17, %v2266_v63  ;;  %v1100_v46 = vmul.f32 %v1084_v60, %v972_v11  ;;  %v1054_v30 = vmul.f32 0.7978846, %v1038_v29 }
 0x2d6   : > { %v1028_v6 = vmul.f32 %v1012_v21, %v2261_v48  ;;  %v1098_v53 = vmul.f32 %v1082_v10, %v970_v5  ;;  %1744 = vtanh.f32 %v1053_v47  ;;  %v1056_v55 = vmul.f32 0.7978846, %v1040_v18 }
 0x2d7   : > { %v1026_v3 = vmul.f32 %v1010_v43, %v2266_v63  ;;  %v1112_v2 = vpack.c.bf16 %v1100_v46, %v1099_v51  ;;  %1746 = vtanh.f32 %v1054_v30  ;;  %v1041_v12 = vadd.f32 %v1025_v40, %v2255_v14 }
 0x2d8   : > { %v1111_v4 = vpack.c.bf16 %v1098_v53, %v1097_v39  ;;  %1748 = vtanh.f32 %v1055_v23  ;;  %v1043_v11 = vadd.f32 %v1027_v52, %v2249_v1  ;;  %v1044_v15 = vadd.f32 %v1028_v6, %v2261_v48 }
 0x2d9   : > { %1750 = vtanh.f32 %v1056_v55  ;;  %v1042_v56 = vadd.f32 %v1026_v3, %v2266_v63  ;;  %v1057_v57 = vmul.f32 0.7978846, %v1041_v12  ;;  %v973_v9 = vmul.f32 0.5, %v2227_v33 }
 0x2da   : > { %1632 = vmatprep.mubr.bf16.mxu1 %v1111_v4  ;;  %v1059_v34 = vmul.f32 0.7978846, %v1043_v11  ;;  %v1060_v19 = vmul.f32 0.7978846, %v1044_v15  ;;  %v974_v35 = vmul.f32 0.5, %v2235_v62  ;;  %v975_v26 = vmul.f32 0.5, %v2224_v61 }
 0x2db   : > { %1633 = vmatmul.mubr.bf16.vlgmr.msra.gmra.mrb[0].mxu1 %v1112_v2  ;;  %v1058_v5 = vmul.f32 0.7978846, %v1042_v56  ;;  %1752 = vtanh.f32 %v1057_v57  ;;  %v976_v47 = vmul.f32 0.5, %v2231_v38  ;;  %v977_v62 = vmul.f32 0.5, %v2255_v14  ;;  %v1474_v14 = vld [vmem:[%s2365_s8] ss:$0 sm:$0xff] }
 0x2dc   : > { %v978_v39 = vmul.f32 0.5, %v2266_v63  ;;  %v979_v43 = vmul.f32 0.5, %v2249_v1  ;;  %v980_v6 = vmul.f32 0.5, %v2261_v48 }
 0x2dd   : > { %1754 = vtanh.f32 %v1058_v5 }
 0x2de   : > { %1756 = vtanh.f32 %v1059_v34 }
 0x2df   : > { %1758 = vtanh.f32 %v1060_v19 }
 0x2e0   : > { %v1745_v54 = vpop.eup %1744 }
 0x2e1   : > { %v1747_v22 = vpop.eup %1746  ;;  %v1085_v18 = vadd.f32 1.0, %v1745_v54 }
 0x2e2   : > { %v1749_v23 = vpop.eup %1748  ;;  %v1086_v24 = vadd.f32 1.0, %v1747_v22 }
 0x2e3   : > { %v1751_v29 = vpop.eup %1750  ;;  %v1087_v28 = vadd.f32 1.0, %v1749_v23  ;;  %v1101_v27 = vmul.f32 %v1085_v18, %v973_v9 }
 0x2e4   : > { %v1102_v44 = vmul.f32 %v1086_v24, %v974_v35  ;;  %v1088_v16 = vadd.f32 1.0, %v1751_v29 }
 0x2e5   : > { %v1753_v45 = vpop.eup %1752  ;;  %v1103_v60 = vmul.f32 %v1087_v28, %v975_v26 }
 0x2e6   : > { %v1113_v17 = vpack.c.bf16 %v1102_v44, %v1101_v27  ;;  %v1104_v51 = vmul.f32 %v1088_v16, %v976_v47  ;;  %v1089_v21 = vadd.f32 1.0, %v1753_v45 }
 0x2e7   : > { %v1755_v52 = vpop.eup %1754 }
 0x2e8   : > { %v1757_v10 = vpop.eup %1756  ;;  %1636 = vmatprep.mubr.bf16.mxu1 %v1113_v17  ;;  %v1114_v33 = vpack.c.bf16 %v1104_v51, %v1103_v60  ;;  %v1090_v61 = vadd.f32 1.0, %v1755_v52  ;;  %v1105_v46 = vmul.f32 %v1089_v21, %v977_v62 }
 0x2e9   : > { %v1759_v40 = vpop.eup %1758  ;;  %v1091_v38 = vadd.f32 1.0, %v1757_v10 }
 0x2ea   : > { %1637 = vmatmul.mubr.bf16.gmra.mrb[4].mxu1 %v1114_v33  ;;  %v1106_v30 = vmul.f32 %v1090_v61, %v978_v39  ;;  %v1092_v53 = vadd.f32 1.0, %v1759_v40 }
 0x2eb   : > { %v1107_v3 = vmul.f32 %v1091_v38, %v979_v43 }
 0x2ec   : > { %v1115_v55 = vpack.c.bf16 %v1106_v30, %v1105_v46  ;;  %v1108_v2 = vmul.f32 %v1092_v53, %v980_v6 }
 0x2ee   : > { %1640 = vmatprep.mubr.bf16.mxu1 %v1115_v55  ;;  %v1116_v4 = vpack.c.bf16 %v1108_v2, %v1107_v3 }
 0x2f2   : > { %1641 = vmatmul.mubr.bf16.gmra.mrb[8].mxu1 %v1116_v4 }
 0x39e   : > { %v1630_v63 = vpop.f32.mrb[16].mxu0 }
 0x39f   : > { %v1231_v1 = vadd.f32 %v1630_v63, %v1474_v14  ;;  %v1222_v12 = vpop.f32.mrb[17].mxu0 }
 0x3a0   : > { %v1223_v48 = vadd.f32 %v1474_v14, %v1222_v12  ;;  %v1631_v56 = vpop.f32.mrb[18].mxu0 }
 0x3a1   : > { %v1287_v57 = vadd.f32 %v1231_v1, %v1913_v41  ;;  %v1234_v11 = vadd.f32 %v1631_v56, %v1474_v14  ;;  %v1225_v15 = vpop.f32.mrb[19].mxu0 }
 0x3a2   : > { %v1285_v5 = vadd.f32 %v1223_v48, %v1904_v32  ;;  %v1226_v34 = vadd.f32 %v1474_v14, %v1225_v15 }
 0x3a3   : > { %1303 = vst.msk [vmem:[%s2298_s22 + $0x10] sm:$0xff] %vm557_vm0, %v1287_v57  ;;  %v1288_v19 = vadd.f32 %v1234_v11, %v1923_v49 }
 0x3a4   : > { %1301 = vst.msk [vmem:[%s2298_s22] sm:$0xff] %vm557_vm0, %v1285_v5  ;;  %v1286_v54 = vadd.f32 %v1226_v34, %v1901_v31 }
 0x3a5   : > { %1304 = vst.msk [vmem:[%s2298_s22 + $0x18] sm:$0xff] %vm557_vm0, %v1288_v19 }
 0x3a6   : > { %1302 = vst.msk [vmem:[%s2298_s22 + $0x8] sm:$0xff] %vm557_vm0, %v1286_v54 }
 0x3ae   : > { %v1634_v41 = vpop.f32.mrb[0].mxu1 }
 0x3af   : > { %v1247_v22 = vadd.f32 %v1634_v41, %v1474_v14  ;;  %v1238_v32 = vpop.f32.mrb[1].mxu1 }
 0x3b0   : > { %v1239_v18 = vadd.f32 %v1474_v14, %v1238_v32  ;;  %v1635_v23 = vpop.f32.mrb[2].mxu1 }
 0x3b1   : > { %v1291_v9 = vadd.f32 %v1247_v22, %v1952_v8  ;;  %v1250_v35 = vadd.f32 %v1635_v23, %v1474_v14  ;;  %v1241_v49 = vpop.f32.mrb[3].mxu1 }
 0x3b2   : > { %v1289_v24 = vadd.f32 %v1239_v18, %v1935_v58  ;;  %v1242_v29 = vadd.f32 %v1474_v14, %v1241_v49 }
 0x3b3   : > { %1307 = vst.msk [vmem:[%s2298_s22 + $0x30] sm:$0xff] %vm557_vm0, %v1291_v9  ;;  %v1292_v31 = vadd.f32 %v1250_v35, %v1957_v13 }
 0x3b4   : > { %1305 = vst.msk [vmem:[%s2298_s22 + $0x20] sm:$0xff] %vm557_vm0, %v1289_v24  ;;  %v1290_v26 = vadd.f32 %v1242_v29, %v1945_v0 }
 0x3b5   : > { %1308 = vst.msk [vmem:[%s2298_s22 + $0x38] sm:$0xff] %vm557_vm0, %v1292_v31 }
 0x3b6   : > { %1306 = vst.msk [vmem:[%s2298_s22 + $0x28] sm:$0xff] %vm557_vm0, %v1290_v26 }
 0x3bd   : > { %v1638_v8 = vpop.f32.mrb[4].mxu1 }
 0x3be   : > { %v1263_v28 = vadd.f32 %v1638_v8, %v1474_v14  ;;  %v1254_v58 = vpop.f32.mrb[5].mxu1 }
 0x3bf   : > { %v1255_v27 = vadd.f32 %v1474_v14, %v1254_v58  ;;  %v1639_v44 = vpop.f32.mrb[6].mxu1 }
 0x3c0   : > { %v1295_v47 = vadd.f32 %v1263_v28, %v1916_v42  ;;  %v1266_v16 = vadd.f32 %v1639_v44, %v1474_v14  ;;  %v1257_v13 = vpop.f32.mrb[7].mxu1 }
 0x3c1   : > { %v1293_v45 = vadd.f32 %v1255_v27, %v1963_v20  ;;  %v1258_v17 = vadd.f32 %v1474_v14, %v1257_v13 }
 0x3c2   : > { %1311 = vst.msk [vmem:[%s2298_s22 + $0x50] sm:$0xff] %vm557_vm0, %v1295_v47  ;;  %v1296_v0 = vadd.f32 %v1266_v16, %v1977_v7 }
 0x3c3   : > { %1309 = vst.msk [vmem:[%s2298_s22 + $0x40] sm:$0xff] %vm557_vm0, %v1293_v45  ;;  %v1294_v60 = vadd.f32 %v1258_v17, %v1970_v25 }
 0x3c4   : > { %1312 = vst.msk [vmem:[%s2298_s22 + $0x58] sm:$0xff] %vm557_vm0, %v1296_v0 }
 0x3c5   : > { %1310 = vst.msk [vmem:[%s2298_s22 + $0x48] sm:$0xff] %vm557_vm0, %v1294_v60  ;;  %v1642_v42 = vpop.f32.mrb[8].mxu1 }
 0x3c6   : > { %v1279_v51 = vadd.f32 %v1642_v42, %v1474_v14  ;;  %v1270_v20 = vpop.f32.mrb[9].mxu1 }
 0x3c7   : > { %v1271_v52 = vadd.f32 %v1474_v14, %v1270_v20  ;;  %v1643_v21 = vpop.f32.mrb[10].mxu1 }
 0x3c8   : > { %v1299_v10 = vadd.f32 %v1279_v51, %v1938_v59  ;;  %v1282_v33 = vadd.f32 %v1643_v21, %v1474_v14  ;;  %v1273_v7 = vpop.f32.mrb[11].mxu1 }
 0x3c9   : > { %v1297_v62 = vadd.f32 %v1271_v52, %v1926_v50  ;;  %v1274_v39 = vadd.f32 %v1474_v14, %v1273_v7 }
 0x3ca   : > { %1315 = vst.msk [vmem:[%s2298_s22 + $0x70] sm:$0xff] %vm557_vm0, %v1299_v10  ;;  %v1300_v25 = vadd.f32 %v1282_v33, %v1988_v37 }
 0x3cb   : > { %1313 = vst.msk [vmem:[%s2298_s22 + $0x60] sm:$0xff] %vm557_vm0, %v1297_v62  ;;  %v1298_v61 = vadd.f32 %v1274_v39, %v1983_v36 }
 0x3cc   : > { %1316 = vst.msk [vmem:[%s2298_s22 + $0x78] sm:$0xff] %vm557_vm0, %v1300_v25 }
 0x3cd   : > { %1314 = vst.msk [vmem:[%s2298_s22 + $0x68] sm:$0xff] %vm557_vm0, %v1298_v61 }
 0x3ce PF: > { %s19_s11 = sadd.s32 1, %s1782_s11   ;;  %s2367_s30 = smov %s1778_s10 }
 0x3cf   : > { %p16_p5 = scmp.ge.s32.totalorder %s19_s11, 5   ;;  %s2368_s10 = smov %s2370_s12 }
 0x3d1   :  { %18 = sbr.rel (!%p16_p5) target bundleno = 2 (0x2), region = 98 }

// kernel: swin_block_forward.2
= control target key start
LH: loop header
LB: loop body
LE: loop exit
PB: predicated region body
PF: predicated region fallthrough
CT: control target
= control target key end

     0   :  { %s10630_s21 = smov 0   ;;  %s10632_s22 = smov 0   ;;  %s13064_s0 = inlined_call_operand.vmem [shape: bf16[3,128,32], index: 0, kind: input, shape index: {}]   ;;  %s13065_s1 = inlined_call_operand.vmem [shape: f32[3,1,32], index: 1, kind: input, shape index: {}]   ;;  %s13066_s2 = inlined_call_operand.vmem [shape: f32[3,1,32], index: 2, kind: input, shape index: {}]   ;;  %s13067_s3 = inlined_call_operand.vmem [shape: bf16[32,32], index: 3, kind: input, shape index: {}]   ;;  %s13068_s4 = inlined_call_operand.vmem [shape: f32[1,32], index: 4, kind: input, shape index: {}]   ;;  %s13069_s5 = inlined_call_operand.vmem [shape: bf16[3,32,32], index: 5, kind: input, shape index: {}]   ;;  %s13070_s6 = inlined_call_operand.vmem [shape: f32[3,1,32], index: 6, kind: input, shape index: {}]   ;;  %s13071_s7 = inlined_call_operand.vmem [shape: bf16[3,32,32], index: 7, kind: input, shape index: {}]   ;;  %s13072_s8 = inlined_call_operand.vmem [shape: f32[3,1,32], index: 8, kind: input, shape index: {}]   ;;  %s13073_s9 = inlined_call_operand.vmem [shape: bf16[3,32,32], index: 9, kind: input, shape index: {}]   ;;  %s13074_s10 = inlined_call_operand.vmem [shape: f32[3,1,32], index: 10, kind: input, shape index: {}]   ;;  %s13075_s11 = inlined_call_operand.vmem [shape: bf16[4,4,16,16], index: 11, kind: input, shape index: {}]   ;;  %s13076_s12 = inlined_call_operand.vmem [shape: bf16[3,128,32], index: 12, kind: output, shape index: {}]  }
   0x1   :  { %s10634_s23 = smov 0   ;;  %s10636_s24 = smov 0  }
   0x2   :  { %s10638_s25 = smov 0  }
   0x3 LB: > { %s34_s26 = sadd.s32 1, %s10551_s24  ;;  %s8445_s27 = sadd.s32 4294967295, %s10555_s25   ;;  %s10555_s25 = sphi %s10638_s25, %s22_s25   ;;  %s10551_s24 = sphi %s10636_s24, %s13343_s24   ;;  %s10547_s23 = sphi %s10634_s23, %s13342_s23   ;;  %s10543_s22 = sphi %s10632_s22, %s13341_s22   ;;  %s10539_s21 = sphi %s10630_s21, %s13340_s21  }
   0x4   : > { %p36_p0 = scmp.ge.s32.totalorder %s34_s26, 2  ;;  %p50_p1 = scmp.ne.s32.totalorder %s10543_s22, %s10539_s21 }
   0x5   : > { %p51_p2 = scmp.eq.s32.totalorder %s10555_s25, 0  ;;  %p318_p4 = scmp.eq.s32.totalorder %s8445_s27, 1 }
   0x6   : > { %s13345_s26 = smov (%p36_p0, %s34_s26), 0  ;;  %s43_s29 = sadd.s32 1, %s10543_s22 }
   0x7   : > { %p52_p3 = por %p51_p2, %p50_p1  ;;  %s40_s28 = ssub.s32 %s10551_s24, %s13345_s26 }
   0x8   : > { %p41_p5 = scmp.eq.s32.totalorder %s40_s28, 0  ;;  %p10665_p6 = por %p318_p4, %p50_p1 }
   0x9   : > { %p8449_p7 = scmp.ge.s32.totalorder %s10555_s25, 2 }
   0xa   : > { %s10670_s13 = scalar_select %p41_p5, %s10543_s22, %s43_s29  }
   0xb   : > { %380 = sbr.rel (%p8449_p7) target bundleno = 29 (0x1d), region = 60 }
  0x12   : > { %383 = sbr.rel (!%p52_p3) target bundleno = 29 (0x1d), region = 64  ;;  %s385_s14 = sand.u32 (%p52_p3), 1, %s10543_s22  }
  0x13   : > { %s8719_s15 = sshll.u32 (%p52_p3), %s10551_s24, 5  ;;  %s9835_s16 = smul.u32 (%p52_p3), 96, %s385_s14 }
  0x14   : > { %s391_s19 = scalar_lea.vmem (%p52_p3), %s13064_s0, %s8719_s15 }
  0x15   : > { %v407_v0 = vld [vmem:[%s391_s19] sm:$0xff] (%p52_p3)   ;;  %v411_v1 = vld [vmem:[%s391_s19 + $0x8] sm:$0xff] (%p52_p3)   ;;  %v415_v2 = vld [vmem:[%s391_s19 + $0x10] sm:$0xff] (%p52_p3)   ;;  %s387_s20 = scalar_lea.vmem (%p52_p3), [#allocation2], %s9835_s16 }
  0x16   : > { %v419_v3 = vld [vmem:[%s391_s19 + $0x18] sm:$0xff] (%p52_p3)   ;;  %v423_v4 = vld [vmem:[%s391_s19 + $0x40] sm:$0xff] (%p52_p3)   ;;  %v427_v5 = vld [vmem:[%s391_s19 + $0x48] sm:$0xff] (%p52_p3)   ;;  %408 = vst [vmem:[%s387_s20] sm:$0xff] (%p52_p3), %v407_v0  }
  0x17   : > { %412 = vst [vmem:[%s387_s20 + $0x8] sm:$0xff] (%p52_p3), %v411_v1   ;;  %416 = vst [vmem:[%s387_s20 + $0x10] sm:$0xff] (%p52_p3), %v415_v2   ;;  %v431_v6 = vld [vmem:[%s391_s19 + $0x50] sm:$0xff] (%p52_p3)   ;;  %v435_v7 = vld [vmem:[%s391_s19 + $0x58] sm:$0xff] (%p52_p3)  }
  0x18   : > { %420 = vst [vmem:[%s387_s20 + $0x18] sm:$0xff] (%p52_p3), %v419_v3   ;;  %424 = vst [vmem:[%s387_s20 + $0x20] sm:$0xff] (%p52_p3), %v423_v4   ;;  %v439_v8 = vld [vmem:[%s391_s19 + $0x80] sm:$0xff] (%p52_p3)   ;;  %v443_v9 = vld [vmem:[%s391_s19 + $0x88] sm:$0xff] (%p52_p3)  }
  0x19   : > { %428 = vst [vmem:[%s387_s20 + $0x28] sm:$0xff] %v427_v5   ;;  %432 = vst [vmem:[%s387_s20 + $0x30] sm:$0xff] %v431_v6   ;;  %v447_v10 = vld [vmem:[%s391_s19 + $0x90] sm:$0xff]   ;;  %v451_v11 = vld [vmem:[%s391_s19 + $0x98] sm:$0xff]  }
  0x1a   : > { %436 = vst [vmem:[%s387_s20 + $0x38] sm:$0xff] %v435_v7   ;;  %440 = vst [vmem:[%s387_s20 + $0x40] sm:$0xff] %v439_v8  }
  0x1b   : > { %444 = vst [vmem:[%s387_s20 + $0x48] sm:$0xff] %v443_v9   ;;  %448 = vst [vmem:[%s387_s20 + $0x50] sm:$0xff] %v447_v10  }
  0x1c   : > { %452 = vst [vmem:[%s387_s20 + $0x58] sm:$0xff] %v451_v11  }
  0x1d PF: > { %p8452_p8 = scmp.ge.s32.totalorder %s10555_s25, 1  ;;  %p524_p9 = scmp.lt.s32.totalorder %s10555_s25, 3 }
  0x1f   : > { %p525_p10 = pnand %p8452_p8, %p524_p9 }
  0x21   : > { %528 = sbr.rel (%p525_p10) target bundleno = 9154 (0x23c2), region = 105 }
  0x28   : > { %s531_s27 = sand.u32 1, %s10539_s21   ;;  %vm607_vm0 = vcmask 261120   ;;  %vm10558_vm1 = vmmov 0   ;;  %vm1811_vm2 = vcmask 64512   ;;  %vm2000_vm3 = vcmask 130048   ;;  %s10559_s15 = smov 120  }
  0x29   : > { %s10681_s28 = smul.u32 96, %s531_s27  ;;  %s10560_s14 = smov 112   ;;  %vm3845_vm4 = vcmask 195584   ;;  %vm3990_vm5 = vcmask 257024  }
  0x2a   : > { %s10561_s16 = smov 104   ;;  %s10562_s18 = smov 8  }
  0x2b   : > { %s10684_s29 = scalar_lea.vmem [#allocation2], %s10681_s28  ;;  %s10563_s19 = smov 16  }
  0x2c   : > { %v8858_v12 = vld [vmem:[%s10684_s29 + $0x10] sm:$0xff]   ;;  %v8859_v13 = vld [vmem:[%s10684_s29 + $0x18] sm:$0xff]   ;;  %v8746_v14 = vld [vmem:[%s10684_s29] sm:$0xff]   ;;  %s10564_s17 = smov 24  }
  0x2d   : > { %v8755_v15 = vunpack.c.l.bf16 %v8858_v12  ;;  %v8759_v16 = vunpack.c.l.bf16 %v8859_v13  ;;  %v8756_v17 = vunpack.c.h.bf16 %v8858_v12  ;;  %v8760_v18 = vunpack.c.h.bf16 %v8859_v13  ;;  %v8857_v27 = vld [vmem:[%s10684_s29 + $0x8] sm:$0xff]   ;;  %v10727_v0 = vld [vmem:[%s10684_s29 + $0x20] sm:$0xff]  }
  0x2e   : > { %v8747_v19 = vunpack.c.l.bf16 %v8746_v14  ;;  %v8748_v20 = vunpack.c.h.bf16 %v8746_v14  ;;  %v8751_v28 = vunpack.c.l.bf16 %v8857_v27  ;;  %v8752_v29 = vunpack.c.h.bf16 %v8857_v27  ;;  %v10741_v8 = vld [vmem:[%s10684_s29 + $0x28] sm:$0xff]   ;;  %v10751_v14 = vld [vmem:[%s10684_s29 + $0x30] sm:$0xff]  }
  0x2f   : > { %v620_v21 = vsel %vm607_vm0, %v8755_v15, 0.0  ;;  %v626_v22 = vsel %vm607_vm0, %v8759_v16, 0.0  ;;  %v623_v23 = vsel %vm607_vm0, %v8756_v17, 0.0  ;;  %v629_v24 = vsel %vm607_vm0, %v8760_v18, 0.0 }
  0x30   : > { %621 = vadd.xlane.f32.xlu0 %v620_v21  ;;  %627 = vadd.xlane.f32.xlu1 %v626_v22  ;;  %v608_v25 = vsel %vm607_vm0, %v8747_v19, 0.0  ;;  %v611_v26 = vsel %vm607_vm0, %v8748_v20, 0.0  ;;  %v614_v30 = vsel %vm607_vm0, %v8751_v28, 0.0  ;;  %v617_v31 = vsel %vm607_vm0, %v8752_v29, 0.0 }
  0x31   : > { %v8763_v7 = vunpack.c.l.bf16 %v10727_v0  ;;  %v8764_v12 = vunpack.c.h.bf16 %v10727_v0  ;;  %v8767_v13 = vunpack.c.l.bf16 %v10741_v8  ;;  %v8772_v22 = vunpack.c.h.bf16 %v10751_v14 }
  0x33   : > { %v762_v11 = vsel %vm607_vm0, %v8763_v7, 0.0 }
  0x34   : > { %624 = vadd.xlane.f32.xlu0 %v623_v23  ;;  %630 = vadd.xlane.f32.xlu1 %v629_v24  ;;  %v10773_v24 = vld [vmem:[%s10684_s29 + $0x40] sm:$0xff]  }
  0x38   : > { %609 = vadd.xlane.f32.xlu0 %v608_v25  ;;  %612 = vadd.xlane.f32.xlu1 %v611_v26  ;;  %v777_v25 = vsel %vm607_vm0, %v8772_v22, 0.0 }
  0x3c   : > { %615 = vadd.xlane.f32.xlu0 %v614_v30  ;;  %618 = vadd.xlane.f32.xlu1 %v617_v31 }
  0xbd   : > { %v622_v32 = vpop.xlane.xlu0 %621  ;;  %v628_v33 = vpop.xlane.xlu1 %627 }
  0xbe   : > { %v637_v34 = vmul.f32 0.03125, %v622_v32  ;;  %v639_v35 = vmul.f32 0.03125, %v628_v33  ;;  %v8780_v32 = vunpack.c.h.bf16 %v10773_v24 }
  0xc0   : > { %v10698_v36 = vsub.f32 %v8755_v15, %v637_v34  ;;  %v10700_v37 = vsub.f32 %v8759_v16, %v639_v35  ;;  %v765_v15 = vsel %vm607_vm0, %v8764_v12, 0.0  ;;  %v768_v16 = vsel %vm607_vm0, %v8767_v13, 0.0  ;;  %v10795_v34 = vld [vmem:[%s10684_s29 + $0x50] sm:$0xff]  }
  0xc1   : > { %v625_v38 = vpop.xlane.xlu0 %624  ;;  %v631_v39 = vpop.xlane.xlu1 %630  ;;  %v918_v35 = vsel %vm607_vm0, %v8780_v32, 0.0 }
  0xc2   : > { %v638_v40 = vmul.f32 0.03125, %v625_v38  ;;  %v640_v41 = vmul.f32 0.03125, %v631_v39  ;;  %v653_v42 = vmul.f32 %v10698_v36, %v10698_v36  ;;  %v655_v43 = vmul.f32 %v10700_v37, %v10700_v37 }
  0xc4   : > { %v10706_v44 = vsub.f32 %v8756_v17, %v638_v40  ;;  %v10708_v45 = vsub.f32 %v8760_v18, %v640_v41  ;;  %v669_v46 = vsel %vm607_vm0, %v653_v42, 0.0  ;;  %v675_v49 = vsel %vm607_vm0, %v655_v43, 0.0  ;;  %v10806_v41 = vld [vmem:[%s10684_s29 + $0x58] sm:$0xff]   ;;  %v10065_v42 = vld [vmem:[%s13067_s3] sm:$0xff]  }
  0xc5   : > { %670 = vadd.xlane.f32.xlu0 %v669_v46  ;;  %v610_v47 = vpop.xlane.xlu0 %609  ;;  %v613_v48 = vpop.xlane.xlu1 %612  ;;  %v8768_v17 = vunpack.c.h.bf16 %v10741_v8  ;;  %v8771_v18 = vunpack.c.l.bf16 %v10751_v14  ;;  %v8787_v40 = vunpack.c.l.bf16 %v10795_v34  ;;  %9831 = vmatprep.subr.bf16.mxu1 %v10065_v42 }
  0xc6   : > { %v633_v50 = vmul.f32 0.03125, %v610_v47  ;;  %v654_v51 = vmul.f32 %v10706_v44, %v10706_v44  ;;  %v634_v52 = vmul.f32 0.03125, %v613_v48  ;;  %v656_v53 = vmul.f32 %v10708_v45, %v10708_v45  ;;  %9135 = vmatprep.subr.bf16.mxu0 %v10065_v42  ;;  %9833 = vmatpush3.bf16.msra.mxu1 %v10065_v42 }
  0xc7   : > { %v774_v21 = vsel %vm607_vm0, %v8771_v18, 0.0  ;;  %v927_v46 = vsel %vm607_vm0, %v8787_v40, 0.0  ;;  %v8788_v47 = vunpack.c.h.bf16 %v10795_v34  ;;  %v8791_v48 = vunpack.c.l.bf16 %v10806_v41  ;;  %9136 = vmatpush3.bf16.msra.mxu0 %v10065_v42 }
  0xc8   : > { %v10716_v54 = vsub.f32 %v8747_v19, %v633_v50  ;;  %v672_v55 = vsel %vm607_vm0, %v654_v51, 0.0  ;;  %v10719_v56 = vsub.f32 %v8748_v20, %v634_v52  ;;  %v678_v58 = vsel %vm607_vm0, %v656_v53, 0.0  ;;  %v10762_v19 = vld [vmem:[%s10684_s29 + $0x38] sm:$0xff]   ;;  %v10832_v53 = vld [vmem:[%s13069_s5] sm:$0xff]  }
  0xc9   : > { %673 = vadd.xlane.f32.xlu1 %v672_v55  ;;  %676 = vadd.xlane.f32.xlu0 %v675_v49  ;;  %v616_v57 = vpop.xlane.xlu0 %615  ;;  %v619_v59 = vpop.xlane.xlu1 %618  ;;  %v771_v20 = vsel %vm607_vm0, %v8768_v17, 0.0  ;;  %v8775_v23 = vunpack.c.l.bf16 %v10762_v19  ;;  %v8776_v27 = vunpack.c.h.bf16 %v10762_v19  ;;  %v10066_v49 = vld [vmem:[%s13067_s3 + $0x8] sm:$0xff]   ;;  %v930_v50 = vsel %vm607_vm0, %v8788_v47, 0.0 }
  0xca   : > { %v635_v60 = vmul.f32 0.03125, %v616_v57  ;;  %v636_v61 = vmul.f32 0.03125, %v619_v59  ;;  %v649_v62 = vmul.f32 %v10716_v54, %v10716_v54  ;;  %v650_v63 = vmul.f32 %v10719_v56, %v10719_v56  ;;  %9832 = vmatprep.subr.bf16.mxu1 %v10066_v49  ;;  %9137 = vmatprep.subr.bf16.mxu0 %v10066_v49  ;;  %v10841_v57 = vld [vmem:[%s13071_s7] sm:$0xff]  }
  0xcb   : > { %v780_v26 = vsel %vm607_vm0, %v8775_v23, 0.0  ;;  %v783_v30 = vsel %vm607_vm0, %v8776_v27, 0.0  ;;  %v933_v51 = vsel %vm607_vm0, %v8791_v48, 0.0  ;;  %v8792_v52 = vunpack.c.h.bf16 %v10806_v41  ;;  %9834 = vmatpush3.bf16.msra.mxu1 %v10066_v49  ;;  %9138 = vmatpush3.bf16.msra.mxu0 %v10066_v49  ;;  %v10071_v41 = vld [vmem:[%s13069_s5 + $0x10] sm:$0xff]  }
  0xcc   : > { %v10729_v1 = vsub.f32 %v8751_v28, %v635_v60  ;;  %v10731_v2 = vsub.f32 %v8752_v29, %v636_v61  ;;  %v657_v3 = vsel %vm607_vm0, %v649_v62, 0.0  ;;  %v660_v4 = vsel %vm607_vm0, %v650_v63, 0.0  ;;  %v10784_v29 = vld [vmem:[%s10684_s29 + $0x48] sm:$0xff]   ;;  %9147 = vmatprep.subr.bf16.mxu1 %v10832_v53  ;;  %9159 = vmatprep.subr.bf16.mxu0 %v10841_v57  ;;  %s11957_s29 = scalar_lea.vmem [#allocation3], %s10681_s28 }
  0xcd   : > { %679 = vadd.xlane.f32.xlu1 %v678_v58  ;;  %658 = vadd.xlane.f32.xlu0 %v657_v3  ;;  %v8779_v28 = vunpack.c.l.bf16 %v10773_v24  ;;  %v8783_v33 = vunpack.c.l.bf16 %v10784_v29  ;;  %v8784_v39 = vunpack.c.h.bf16 %v10784_v29  ;;  %v936_v55 = vsel %vm607_vm0, %v8792_v52, 0.0 }
  0xce   : > { %v651_v5 = vmul.f32 %v10729_v1, %v10729_v1  ;;  %v652_v6 = vmul.f32 %v10731_v2, %v10731_v2 }
  0xcf   : > { %v915_v31 = vsel %vm607_vm0, %v8779_v28, 0.0  ;;  %v921_v38 = vsel %vm607_vm0, %v8783_v33, 0.0  ;;  %v924_v43 = vsel %vm607_vm0, %v8784_v39, 0.0 }
  0xd0   : > { %v663_v9 = vsel %vm607_vm0, %v651_v5, 0.0  ;;  %v666_v10 = vsel %vm607_vm0, %v652_v6, 0.0 }
  0xd1   : > { %661 = vadd.xlane.f32.xlu1 %v660_v4  ;;  %664 = vadd.xlane.f32.xlu0 %v663_v9 }
  0xd5   : > { %667 = vadd.xlane.f32.xlu1 %v666_v10  ;;  %763 = vadd.xlane.f32.xlu0 %v762_v11 }
  0xd9   : > { %766 = vadd.xlane.f32.xlu1 %v765_v15  ;;  %769 = vadd.xlane.f32.xlu0 %v768_v16 }
  0xdd   : > { %772 = vadd.xlane.f32.xlu1 %v771_v20  ;;  %775 = vadd.xlane.f32.xlu0 %v774_v21 }
  0xe1   : > { %778 = vadd.xlane.f32.xlu1 %v777_v25  ;;  %781 = vadd.xlane.f32.xlu0 %v780_v26 }
  0xe5   : > { %784 = vadd.xlane.f32.xlu1 %v783_v30  ;;  %916 = vadd.xlane.f32.xlu0 %v915_v31 }
  0xe9   : > { %919 = vadd.xlane.f32.xlu1 %v918_v35  ;;  %922 = vadd.xlane.f32.xlu0 %v921_v38 }
  0xed   : > { %925 = vadd.xlane.f32.xlu1 %v924_v43  ;;  %928 = vadd.xlane.f32.xlu0 %v927_v46 }
  0xf1   : > { %931 = vadd.xlane.f32.xlu1 %v930_v50  ;;  %934 = vadd.xlane.f32.xlu0 %v933_v51  ;;  %v10848_v50 = vld [vmem:[%s13065_s1] ss:$0 sm:$0xff] }
  0xf5   : > { %937 = vadd.xlane.f32.xlu1 %v936_v55 }
 0x152   : > { %v671_v58 = vpop.xlane.xlu0 %670 }
 0x153   : > { %v685_v59 = vmul.f32 0.03125, %v671_v58 }
 0x155   : > { %v693_v60 = vadd.f32 1e-05, %v685_v59 }
 0x156   : > { %v674_v61 = vpop.xlane.xlu1 %673  ;;  %v677_v62 = vpop.xlane.xlu0 %676 }
 0x157   : > { %10085 = vrsqrt.f32 %v693_v60  ;;  %v686_v63 = vmul.f32 0.03125, %v674_v61  ;;  %v687_v3 = vmul.f32 0.03125, %v677_v62 }
 0x159   : > { %v694_v4 = vadd.f32 1e-05, %v686_v63  ;;  %v695_v5 = vadd.f32 1e-05, %v687_v3 }
 0x15a   : > { %v680_v6 = vpop.xlane.xlu1 %679  ;;  %v659_v9 = vpop.xlane.xlu0 %658 }
 0x15b   : > { %10087 = vrsqrt.f32 %v694_v4  ;;  %v688_v10 = vmul.f32 0.03125, %v680_v6  ;;  %v681_v11 = vmul.f32 0.03125, %v659_v9 }
 0x15c   : > { %10089 = vrsqrt.f32 %v695_v5  ;;  %v10861_v5 = vld [vmem:[%s13066_s2] ss:$0 sm:$0xff] }
 0x15d   : > { %v696_v15 = vadd.f32 1e-05, %v688_v10  ;;  %v689_v16 = vadd.f32 1e-05, %v681_v11 }
 0x15e   : > { %v662_v20 = vpop.xlane.xlu1 %661  ;;  %v665_v21 = vpop.xlane.xlu0 %664 }
 0x15f   : > { %10091 = vrsqrt.f32 %v696_v15  ;;  %v682_v25 = vmul.f32 0.03125, %v662_v20  ;;  %v683_v26 = vmul.f32 0.03125, %v665_v21 }
 0x160   : > { %10093 = vrsqrt.f32 %v689_v16 }
 0x161   : > { %v10086_v30 = vpop.eup %10085  ;;  %v690_v31 = vadd.f32 1e-05, %v682_v25  ;;  %v691_v35 = vadd.f32 1e-05, %v683_v26 }
 0x162   : > { %v668_v38 = vpop.xlane.xlu1 %667  ;;  %v764_v42 = vpop.xlane.xlu0 %763  ;;  %v709_v43 = vmul.f32 %v10086_v30, %v10698_v36 }
 0x163   : > { %10095 = vrsqrt.f32 %v690_v31  ;;  %v684_v46 = vmul.f32 0.03125, %v668_v38  ;;  %v786_v49 = vmul.f32 0.03125, %v764_v42 }
 0x164   : > { %10097 = vrsqrt.f32 %v691_v35  ;;  %v723_v62 = vmul.f32 %v10848_v50, %v709_v43 }
 0x165   : > { %v10088_v51 = vpop.eup %10087  ;;  %v692_v55 = vadd.f32 1e-05, %v684_v46  ;;  %v10852_v58 = vsub.f32 %v8763_v7, %v786_v49 }
 0x166   : > { %v10090_v59 = vpop.eup %10089  ;;  %v767_v60 = vpop.xlane.xlu1 %766  ;;  %v710_v36 = vmul.f32 %v10088_v51, %v10706_v44  ;;  %v737_v21 = vadd.f32 %v10861_v5, %v723_v62 }
 0x167   : > { %v770_v61 = vpop.xlane.xlu0 %769  ;;  %10099 = vrsqrt.f32 %v692_v55  ;;  %v787_v63 = vmul.f32 0.03125, %v767_v60  ;;  %v802_v4 = vmul.f32 %v10852_v58, %v10852_v58  ;;  %v711_v6 = vmul.f32 %v10090_v59, %v10700_v37 }
 0x168   : > { %v788_v3 = vmul.f32 0.03125, %v770_v61  ;;  %v724_v7 = vmul.f32 %v10848_v50, %v710_v36 }
 0x169   : > { %v10092_v9 = vpop.eup %10091  ;;  %v10867_v44 = vsub.f32 %v8764_v12, %v787_v63  ;;  %v810_v11 = vsel %vm607_vm0, %v802_v4, 0.0  ;;  %v725_v0 = vmul.f32 %v10848_v50, %v711_v6 }
 0x16a   : > { %v10871_v10 = vsub.f32 %v8767_v13, %v788_v3  ;;  %v10094_v15 = vpop.eup %10093  ;;  %v773_v16 = vpop.xlane.xlu1 %772  ;;  %811 = vadd.xlane.f32.xlu0 %v810_v11  ;;  %v738_v25 = vadd.f32 %v10861_v5, %v724_v7  ;;  %v712_v37 = vmul.f32 %v10092_v9, %v10708_v45 }
 0x16b   : > { %v776_v20 = vpop.xlane.xlu0 %775  ;;  %v789_v12 = vmul.f32 0.03125, %v773_v16  ;;  %v803_v13 = vmul.f32 %v10867_v44, %v10867_v44  ;;  %v739_v38 = vadd.f32 %v10861_v5, %v725_v0  ;;  %v705_v42 = vmul.f32 %v10094_v15, %v10716_v54 }
 0x16c   : > { %v790_v26 = vmul.f32 0.03125, %v776_v20  ;;  %v804_v30 = vmul.f32 %v10871_v10, %v10871_v10  ;;  %v10882_v31 = vpack.c.bf16 %v738_v25, %v737_v21  ;;  %v726_v35 = vmul.f32 %v10848_v50, %v712_v37 }
 0x16d   : > { %v10096_v43 = vpop.eup %10095  ;;  %v10889_v45 = vsub.f32 %v8768_v17, %v789_v12  ;;  %v813_v49 = vsel %vm607_vm0, %v803_v13, 0.0  ;;  %v719_v17 = vmul.f32 %v10848_v50, %v705_v42 }
 0x16e   : > { %v10893_v46 = vsub.f32 %v8771_v18, %v790_v26  ;;  %v816_v51 = vsel %vm607_vm0, %v804_v30, 0.0  ;;  %v10098_v55 = vpop.eup %10097  ;;  %814 = vadd.xlane.f32.xlu1 %v813_v49  ;;  %v779_v59 = vpop.xlane.xlu1 %778  ;;  %9143 = vmatprep.mubr.msk.bf16.mxu1 %vm607_vm0, %v10882_v31  ;;  %v740_v60 = vadd.f32 %v10861_v5, %v726_v35  ;;  %v706_v8 = vmul.f32 %v10096_v43, %v10719_v56  ;;  %v10068_v56 = vld [vmem:[%s13069_s5 + $0x8] sm:$0xff]  }
 0x16f   : > { %v782_v54 = vpop.xlane.xlu0 %781  ;;  %v791_v61 = vmul.f32 0.03125, %v779_v59  ;;  %817 = vadd.xlane.f32.xlu0 %v816_v51  ;;  %v805_v36 = vmul.f32 %v10889_v45, %v10889_v45  ;;  %v733_v4 = vadd.f32 %v10861_v5, %v719_v17  ;;  %v707_v7 = vmul.f32 %v10098_v55, %v10729_v1 }
 0x170   : > { %v792_v18 = vmul.f32 0.03125, %v782_v54  ;;  %v806_v62 = vmul.f32 %v10893_v46, %v10893_v46  ;;  %v10906_v63 = vpack.c.bf16 %v740_v60, %v739_v38  ;;  %v720_v3 = vmul.f32 %v10848_v50, %v706_v8  ;;  %v10070_v54 = vld [vmem:[%s13071_s7 + $0x8] sm:$0xff]  }
 0x171   : > { %v10100_v6 = vpop.eup %10099  ;;  %v10916_v9 = vsub.f32 %v8772_v22, %v791_v61  ;;  %v819_v15 = vsel %vm607_vm0, %v805_v36, 0.0  ;;  %v721_v22 = vmul.f32 %v10848_v50, %v707_v7 }
 0x172   : > { %v10920_v11 = vsub.f32 %v8775_v23, %v792_v18  ;;  %v822_v16 = vsel %vm607_vm0, %v806_v62, 0.0  ;;  %820 = vadd.xlane.f32.xlu1 %v819_v15  ;;  %v785_v20 = vpop.xlane.xlu1 %784  ;;  %9144 = vmatmul.mubr.msk.bf16.vlgmr.msra.gmra.mrb[0].mxu1 %vm607_vm0, %v10906_v63  ;;  %v734_v1 = vadd.f32 %v10861_v5, %v720_v3  ;;  %v708_v14 = vmul.f32 %v10100_v6, %v10731_v2 }
 0x173   : > { %v917_v21 = vpop.xlane.xlu0 %916  ;;  %v793_v25 = vmul.f32 0.03125, %v785_v20  ;;  %823 = vadd.xlane.f32.xlu0 %v822_v16  ;;  %9148 = vmatpush3.bf16.msra.mxu1 %v10832_v53  ;;  %v807_v37 = vmul.f32 %v10916_v9, %v10916_v9  ;;  %v735_v42 = vadd.f32 %v10861_v5, %v721_v22 }
 0x174   : > { %v939_v23 = vmul.f32 0.03125, %v917_v21  ;;  %v808_v0 = vmul.f32 %v10920_v11, %v10920_v11  ;;  %v1052_v12 = vpack.c.bf16 %v734_v1, %v733_v4  ;;  %9149 = vmatprep.subr.bf16.mxu1 %v10068_v56  ;;  %v722_v26 = vmul.f32 %v10848_v50, %v708_v14 }
 0x175   : > { %v10937_v2 = vsub.f32 %v8776_v27, %v793_v25  ;;  %v825_v53 = vsel %vm607_vm0, %v807_v37, 0.0  ;;  %v11035_v25 = vld [vmem:[%s13069_s5 + $0x20] sm:$0xff]  }
 0x176   : > { %v10941_v13 = vsub.f32 %v8779_v28, %v939_v23  ;;  %v828_v30 = vsel %vm607_vm0, %v808_v0, 0.0  ;;  %826 = vadd.xlane.f32.xlu1 %v825_v53  ;;  %v920_v35 = vpop.xlane.xlu1 %919  ;;  %9139 = vmatprep.mubr.msk.bf16.mxu0 %vm607_vm0, %v1052_v12  ;;  %v736_v50 = vadd.f32 %v10861_v5, %v722_v26  ;;  %v11040_v23 = vld [vmem:[%s13071_s7 + $0x20] sm:$0xff]  }
 0x177   : > { %v923_v38 = vpop.xlane.xlu0 %922  ;;  %v940_v19 = vmul.f32 0.03125, %v920_v35  ;;  %9151 = vmatprep.mubr.msk.bf16.mxu1 %vm607_vm0, %v1052_v12  ;;  %829 = vadd.xlane.f32.xlu0 %v828_v30  ;;  %v809_v28 = vmul.f32 %v10937_v2, %v10937_v2 }
 0x178   : > { %v941_v27 = vmul.f32 0.03125, %v923_v38  ;;  %v955_v43 = vmul.f32 %v10941_v13, %v10941_v13  ;;  %9150 = vmatpush3.bf16.msra.mxu1 %v10068_v56  ;;  %v1053_v49 = vpack.c.bf16 %v736_v50, %v735_v42 }
 0x179   : > { %v10955_v51 = vsub.f32 %v8780_v32, %v940_v19  ;;  %v831_v55 = vsel %vm607_vm0, %v809_v28, 0.0  ;;  %9171 = vmatprep.subr.bf16.mxu1 %v10071_v41 }
 0x17a   : > { %v10959_v5 = vsub.f32 %v8783_v33, %v941_v27  ;;  %v963_v59 = vsel %vm607_vm0, %v955_v43, 0.0  ;;  %832 = vadd.xlane.f32.xlu1 %v831_v55  ;;  %v926_v60 = vpop.xlane.xlu1 %925  ;;  %9140 = vmatmul.mubr.msk.bf16.vlgmr.msra.gmra.mrb[0].mxu0 %vm607_vm0, %v1053_v49 }
 0x17b   : > { %v929_v8 = vpop.xlane.xlu0 %928  ;;  %v942_v24 = vmul.f32 0.03125, %v926_v60  ;;  %9152 = vmatmul.mubr.msk.bf16.vlgmr.msra.gmra.mrb[4].mxu1 %vm607_vm0, %v1053_v49  ;;  %964 = vadd.xlane.f32.xlu0 %v963_v59  ;;  %v956_v33 = vmul.f32 %v10955_v51, %v10955_v51 }
 0x17c   : > { %v943_v32 = vmul.f32 0.03125, %v929_v8  ;;  %v957_v17 = vmul.f32 %v10959_v5, %v10959_v5  ;;  %9155 = vmatprep.mubr.msk.bf16.mxu1 %vm607_vm0, %v10882_v31  ;;  %9160 = vmatpush3.bf16.msra.mxu0 %v10841_v57 }
 0x17d   : > { %v10977_v61 = vsub.f32 %v8784_v39, %v942_v24  ;;  %9163 = vmatprep.mubr.msk.bf16.mxu0 %vm607_vm0, %v1052_v12  ;;  %v966_v36 = vsel %vm607_vm0, %v956_v33, 0.0  ;;  %9161 = vmatprep.subr.bf16.mxu0 %v10070_v54 }
 0x17e   : > { %v10981_v18 = vsub.f32 %v8787_v40, %v943_v32  ;;  %v969_v62 = vsel %vm607_vm0, %v957_v17, 0.0  ;;  %967 = vadd.xlane.f32.xlu1 %v966_v36  ;;  %v932_v3 = vpop.xlane.xlu1 %931  ;;  %9172 = vmatpush3.bf16.msra.mxu1 %v10071_v41  ;;  %v11047_v32 = vld [vmem:[%s13065_s1 + $0x1] ss:$0 sm:$0xff] }
 0x17f   : > { %v935_v4 = vpop.xlane.xlu0 %934  ;;  %v944_v56 = vmul.f32 0.03125, %v932_v3  ;;  %970 = vadd.xlane.f32.xlu0 %v969_v62  ;;  %v958_v29 = vmul.f32 %v10977_v61, %v10977_v61 }
 0x180   : > { %v945_v57 = vmul.f32 0.03125, %v935_v4  ;;  %v959_v39 = vmul.f32 %v10981_v18, %v10981_v18  ;;  %9162 = vmatpush3.bf16.msra.mxu0 %v10070_v54 }
 0x181   : > { %v10992_v40 = vsub.f32 %v8788_v47, %v944_v56  ;;  %v972_v6 = vsel %vm607_vm0, %v958_v29, 0.0 }
 0x182   : > { %v10996_v7 = vsub.f32 %v8791_v48, %v945_v57  ;;  %v975_v15 = vsel %vm607_vm0, %v959_v39, 0.0  ;;  %973 = vadd.xlane.f32.xlu1 %v972_v6  ;;  %v938_v16 = vpop.xlane.xlu1 %937  ;;  %v11054_v6 = vld [vmem:[%s13066_s2 + $0x1] ss:$0 sm:$0xff] }
 0x183   : > { %v946_v20 = vmul.f32 0.03125, %v938_v16  ;;  %9156 = vmatmul.mubr.msk.bf16.gmra.mrb[8].mxu1 %vm607_vm0, %v10906_v63  ;;  %9164 = vmatmul.mubr.msk.bf16.vlgmr.msra.gmra.mrb[4].mxu0 %vm607_vm0, %v1053_v49  ;;  %v960_v34 = vmul.f32 %v10992_v40, %v10992_v40 }
 0x184   : > { %v961_v47 = vmul.f32 %v10996_v7, %v10996_v7  ;;  %976 = vadd.xlane.f32.xlu0 %v975_v15  ;;  %9167 = vmatprep.mubr.msk.bf16.mxu0 %vm607_vm0, %v10882_v31  ;;  %v10073_v31 = vld [vmem:[%s13069_s5 + $0x18] sm:$0xff]  }
 0x185   : > { %v11011_v48 = vsub.f32 %v8792_v52, %v946_v20  ;;  %v978_v21 = vsel %vm607_vm0, %v960_v34, 0.0  ;;  %v10072_v52 = vld [vmem:[%s13071_s7 + $0x10] sm:$0xff]   ;;  %9173 = vmatprep.subr.bf16.mxu1 %v10073_v31 }
 0x186   : > { %v981_v1 = vsel %vm607_vm0, %v961_v47, 0.0  ;;  %979 = vadd.xlane.f32.xlu1 %v978_v21  ;;  %9183 = vmatprep.subr.bf16.mxu0 %v10072_v52 }
 0x187   : > { %v962_v14 = vmul.f32 %v11011_v48, %v11011_v48  ;;  %9184 = vmatpush3.bf16.msra.mxu0 %v10072_v52  ;;  %9174 = vmatpush3.bf16.msra.mxu1 %v10073_v31 }
 0x188   : > { %982 = vadd.xlane.f32.xlu0 %v981_v1  ;;  %9195 = vmatprep.subr.bf16.mxu1 %v11035_v25 }
 0x189   : > { %v984_v22 = vsel %vm607_vm0, %v962_v14, 0.0 }
 0x18a   : > { %985 = vadd.xlane.f32.xlu1 %v984_v22 }
 0x18b   : > { %9168 = vmatmul.mubr.msk.bf16.gmra.mrb[8].mxu0 %vm607_vm0, %v10906_v63  ;;  %v10074_v63 = vld [vmem:[%s13071_s7 + $0x18] sm:$0xff]  }
 0x18c   : > { %9185 = vmatprep.subr.bf16.mxu0 %v10074_v63 }
 0x18d   : > { %9186 = vmatpush3.bf16.msra.mxu0 %v10074_v63 }
 0x18e   : > { %9207 = vmatprep.subr.bf16.mxu0 %v11040_v23 }
 0x1f7   : > { %v812_v37 = vpop.xlane.xlu0 %811 }
 0x1f8   : > { %v834_v0 = vmul.f32 0.03125, %v812_v37 }
 0x1fa   : > { %v842_v12 = vadd.f32 1e-05, %v834_v0 }
 0x1fb   : > { %v815_v26 = vpop.xlane.xlu1 %814 }
 0x1fc   : > { %10101 = vrsqrt.f32 %v842_v12  ;;  %v835_v53 = vmul.f32 0.03125, %v815_v26  ;;  %v818_v30 = vpop.xlane.xlu0 %817 }
 0x1fd   : > { %v836_v35 = vmul.f32 0.03125, %v818_v30 }
 0x1fe   : > { %v843_v38 = vadd.f32 1e-05, %v835_v53 }
 0x1ff   : > { %v844_v42 = vadd.f32 1e-05, %v836_v35  ;;  %v821_v50 = vpop.xlane.xlu1 %820 }
 0x200   : > { %10103 = vrsqrt.f32 %v843_v38  ;;  %v837_v19 = vmul.f32 0.03125, %v821_v50  ;;  %v824_v27 = vpop.xlane.xlu0 %823 }
 0x201   : > { %10105 = vrsqrt.f32 %v844_v42  ;;  %v838_v28 = vmul.f32 0.03125, %v824_v27 }
 0x202   : > { %v845_v43 = vadd.f32 1e-05, %v837_v19 }
 0x203   : > { %v846_v49 = vadd.f32 1e-05, %v838_v28  ;;  %v827_v55 = vpop.xlane.xlu1 %826 }
 0x204   : > { %10107 = vrsqrt.f32 %v845_v43  ;;  %v839_v59 = vmul.f32 0.03125, %v827_v55  ;;  %v830_v54 = vpop.xlane.xlu0 %829 }
 0x205   : > { %10109 = vrsqrt.f32 %v846_v49  ;;  %v840_v60 = vmul.f32 0.03125, %v830_v54 }
 0x206   : > { %v10102_v8 = vpop.eup %10101  ;;  %v847_v24 = vadd.f32 1e-05, %v839_v59 }
 0x207   : > { %v848_v33 = vadd.f32 1e-05, %v840_v60  ;;  %v833_v17 = vpop.xlane.xlu1 %832  ;;  %v858_v36 = vmul.f32 %v10102_v8, %v10852_v58  ;;  %v10077_v8 = vld [vmem:[%s13069_s5 + $0x28] sm:$0xff]  }
 0x208   : > { %10111 = vrsqrt.f32 %v847_v24  ;;  %v841_v62 = vmul.f32 0.03125, %v833_v17  ;;  %v965_v3 = vpop.xlane.xlu0 %964  ;;  %v10078_v24 = vld [vmem:[%s13071_s7 + $0x28] sm:$0xff]  }
 0x209   : > { %10113 = vrsqrt.f32 %v848_v33  ;;  %v987_v4 = vmul.f32 0.03125, %v965_v3  ;;  %v872_v29 = vmul.f32 %v11047_v32, %v858_v36 }
 0x20a   : > { %v10104_v56 = vpop.eup %10103  ;;  %v849_v57 = vadd.f32 1e-05, %v841_v62 }
 0x20b   : > { %v10106_v39 = vpop.eup %10105  ;;  %v995_v15 = vadd.f32 1e-05, %v987_v4  ;;  %v968_v16 = vpop.xlane.xlu1 %967  ;;  %v859_v20 = vmul.f32 %v10104_v56, %v10867_v44  ;;  %v886_v41 = vadd.f32 %v11054_v6, %v872_v29 }
 0x20c   : > { %v860_v58 = vmul.f32 %v10106_v39, %v10871_v10  ;;  %10115 = vrsqrt.f32 %v849_v57  ;;  %v988_v34 = vmul.f32 0.03125, %v968_v16  ;;  %v971_v47 = vpop.xlane.xlu0 %970  ;;  %v8477_v57 = vld [vmem:[%s13065_s1 + $0x2] ss:$0 sm:$0xff] }
 0x20d   : > { %10117 = vrsqrt.f32 %v995_v15  ;;  %v989_v21 = vmul.f32 0.03125, %v971_v47  ;;  %v873_v1 = vmul.f32 %v11047_v32, %v859_v20 }
 0x20e   : > { %v10108_v14 = vpop.eup %10107  ;;  %v996_v22 = vadd.f32 1e-05, %v988_v34  ;;  %v874_v31 = vmul.f32 %v11047_v32, %v860_v58 }
 0x20f   : > { %v10110_v52 = vpop.eup %10109  ;;  %v861_v63 = vmul.f32 %v10108_v14, %v10889_v45  ;;  %v997_v37 = vadd.f32 1e-05, %v989_v21  ;;  %v974_v44 = vpop.xlane.xlu1 %973  ;;  %v887_v10 = vadd.f32 %v11054_v6, %v873_v1 }
 0x210   : > { %10119 = vrsqrt.f32 %v996_v22  ;;  %v990_v0 = vmul.f32 0.03125, %v974_v44  ;;  %v862_v12 = vmul.f32 %v10110_v52, %v10893_v46  ;;  %v888_v45 = vadd.f32 %v11054_v6, %v874_v31 }
 0x211   : > { %v875_v26 = vmul.f32 %v11047_v32, %v861_v63  ;;  %10121 = vrsqrt.f32 %v997_v37  ;;  %v977_v53 = vpop.xlane.xlu0 %976  ;;  %v1346_v30 = vpack.c.bf16 %v887_v10, %v886_v41  ;;  %v13077_v22 = vmov 0.0  }
 0x212   : > { %v10112_v35 = vpop.eup %10111  ;;  %v998_v38 = vadd.f32 1e-05, %v990_v0  ;;  %v991_v42 = vmul.f32 0.03125, %v977_v53  ;;  %v876_v50 = vmul.f32 %v11047_v32, %v862_v12 }
 0x213   : > { %v10114_v19 = vpop.eup %10113  ;;  %v889_v27 = vadd.f32 %v11054_v6, %v875_v26  ;;  %v980_v28 = vpop.xlane.xlu1 %979  ;;  %9175 = vmatprep.mubr.msk.bf16.mxu1 %vm607_vm0, %v1346_v30  ;;  %9187 = vmatprep.mubr.msk.bf16.mxu0 %vm607_vm0, %v1346_v30  ;;  %v863_v46 = vmul.f32 %v10112_v35, %v10916_v9 }
 0x214   : > { %10123 = vrsqrt.f32 %v998_v38  ;;  %v999_v43 = vadd.f32 1e-05, %v991_v42  ;;  %v992_v49 = vmul.f32 0.03125, %v980_v28  ;;  %v864_v60 = vmul.f32 %v10114_v19, %v10920_v11 }
 0x215   : > { %v983_v55 = vpop.xlane.xlu0 %982  ;;  %v1347_v59 = vpack.c.bf16 %v889_v27, %v888_v45  ;;  %v877_v54 = vmul.f32 %v11047_v32, %v863_v46  ;;  %v890_v36 = vadd.f32 %v11054_v6, %v876_v50 }
 0x216   : > { %v10116_v33 = vpop.eup %10115  ;;  %10125 = vrsqrt.f32 %v999_v43  ;;  %v1000_v9 = vadd.f32 1e-05, %v992_v49  ;;  %v993_v17 = vmul.f32 0.03125, %v983_v55  ;;  %v878_v56 = vmul.f32 %v11047_v32, %v864_v60 }
 0x217   : > { %v10118_v62 = vpop.eup %10117  ;;  %v986_v3 = vpop.xlane.xlu1 %985  ;;  %9176 = vmatmul.mubr.msk.bf16.vlgmr.msra.gmra.mrb[12].mxu1 %vm607_vm0, %v1347_v59  ;;  %9188 = vmatmul.mubr.msk.bf16.vlgmr.msra.gmra.mrb[12].mxu0 %vm607_vm0, %v1347_v59  ;;  %v891_v11 = vadd.f32 %v11054_v6, %v877_v54  ;;  %v865_v4 = vmul.f32 %v10116_v33, %v10937_v2 }
 0x218   : > { %10127 = vrsqrt.f32 %v1000_v9  ;;  %v1001_v29 = vadd.f32 1e-05, %v993_v17  ;;  %v994_v39 = vmul.f32 0.03125, %v986_v3  ;;  %9196 = vmatpush3.bf16.msra.mxu1 %v11035_v25  ;;  %9208 = vmatpush3.bf16.msra.mxu0 %v11040_v23  ;;  %v1011_v15 = vmul.f32 %v10118_v62, %v10941_v13  ;;  %v8486_v62 = vld [vmem:[%s13070_s6] ss:$0 sm:$0xff] }
 0x219   : > { %v1348_v16 = vpack.c.bf16 %v891_v11, %v890_v36  ;;  %v879_v20 = vmul.f32 %v11047_v32, %v865_v4  ;;  %9197 = vmatprep.subr.bf16.mxu1 %v10077_v8  ;;  %9209 = vmatprep.subr.bf16.mxu0 %v10078_v24  ;;  %v892_v34 = vadd.f32 %v11054_v6, %v878_v56  ;;  %v8478_v32 = vld [vmem:[%s13066_s2 + $0x2] ss:$0 sm:$0xff] }
 0x21a   : > { %v10120_v2 = vpop.eup %10119  ;;  %10129 = vrsqrt.f32 %v1001_v29  ;;  %v1002_v58 = vadd.f32 1e-05, %v994_v39  ;;  %v1025_v13 = vmul.f32 %v8477_v57, %v1011_v15 }
 0x21b   : > { %v10122_v47 = vpop.eup %10121  ;;  %9179 = vmatprep.mubr.msk.bf16.mxu1 %vm607_vm0, %v1348_v16  ;;  %9191 = vmatprep.mubr.msk.bf16.mxu0 %vm607_vm0, %v1348_v16  ;;  %v893_v25 = vadd.f32 %v11054_v6, %v879_v20  ;;  %v1012_v23 = vmul.f32 %v10120_v2, %v10955_v51 }
 0x21c   : > { %v1013_v21 = vmul.f32 %v10122_v47, %v10959_v5  ;;  %10131 = vrsqrt.f32 %v1002_v58  ;;  %9198 = vmatpush3.bf16.msra.mxu1 %v10077_v8  ;;  %9210 = vmatpush3.bf16.msra.mxu0 %v10078_v24  ;;  %v1039_v52 = vadd.f32 %v8478_v32, %v1025_v13 }
 0x21d   : > { %v1349_v1 = vpack.c.bf16 %v893_v25, %v892_v34  ;;  %v1026_v14 = vmul.f32 %v8477_v57, %v1012_v23  ;;  %9219 = vmatprep.subr.bf16.mxu1 %v13077_v22  ;;  %9231 = vmatprep.subr.bf16.mxu0 %v13077_v22 }
 0x21e   : > { %v10124_v6 = vpop.eup %10123  ;;  %v1027_v41 = vmul.f32 %v8477_v57, %v1013_v21 }
 0x21f   : > { %v1014_v51 = vmul.f32 %v10124_v6, %v10977_v61  ;;  %9180 = vmatmul.mubr.msk.bf16.gmra.mrb[16].mxu1 %vm607_vm0, %v1349_v1  ;;  %9192 = vmatmul.mubr.msk.bf16.gmra.mrb[16].mxu0 %vm607_vm0, %v1349_v1  ;;  %v1040_v5 = vadd.f32 %v8478_v32, %v1026_v14  ;;  %v8493_v14 = vld [vmem:[%s13072_s8] ss:$0 sm:$0xff] }
 0x220   : > { %v10126_v31 = vpop.eup %10125  ;;  %v1041_v0 = vadd.f32 %v8478_v32, %v1027_v41 }
 0x221   : > { %v1028_v63 = vmul.f32 %v8477_v57, %v1014_v51  ;;  %v1550_v37 = vpack.c.bf16 %v1040_v5, %v1039_v52  ;;  %v1015_v44 = vmul.f32 %v10126_v31, %v10981_v18 }
 0x222   : > { %v10128_v10 = vpop.eup %10127 }
 0x223   : > { %v1042_v12 = vadd.f32 %v8478_v32, %v1028_v63  ;;  %9199 = vmatprep.mubr.msk.bf16.mxu1 %vm607_vm0, %v1550_v37  ;;  %9211 = vmatprep.mubr.msk.bf16.mxu0 %vm607_vm0, %v1550_v37  ;;  %v1016_v61 = vmul.f32 %v10128_v10, %v10992_v40  ;;  %v1029_v26 = vmul.f32 %v8477_v57, %v1015_v44 }
 0x224   : > { %v10130_v53 = vpop.eup %10129 }
 0x225   : > { %v1551_v30 = vpack.c.bf16 %v1042_v12, %v1041_v0  ;;  %v1030_v35 = vmul.f32 %v8477_v57, %v1016_v61  ;;  %v1017_v38 = vmul.f32 %v10130_v53, %v10996_v7  ;;  %v1043_v50 = vadd.f32 %v8478_v32, %v1029_v26  ;;  %v8479_v7 = vld [vmem:[%s13068_s4] ss:$0 sm:$0xff] }
 0x226   : > { %v10132_v42 = vpop.eup %10131 }
 0x227   : > { %9200 = vmatmul.mubr.msk.bf16.vlgmr.msra.gmra.mrb[20].mxu1 %vm607_vm0, %v1551_v30  ;;  %9212 = vmatmul.mubr.msk.bf16.vlgmr.msra.gmra.mrb[20].mxu0 %vm607_vm0, %v1551_v30  ;;  %v1044_v18 = vadd.f32 %v8478_v32, %v1030_v35  ;;  %v1018_v19 = vmul.f32 %v10132_v42, %v11011_v48  ;;  %v1031_v45 = vmul.f32 %v8477_v57, %v1017_v38 }
 0x229   : > { %v1552_v27 = vpack.c.bf16 %v1044_v18, %v1043_v50  ;;  %v1032_v28 = vmul.f32 %v8477_v57, %v1018_v19  ;;  %v1045_v40 = vadd.f32 %v8478_v32, %v1031_v45 }
 0x22b   : > { %9203 = vmatprep.mubr.msk.bf16.mxu1 %vm607_vm0, %v1552_v27  ;;  %9215 = vmatprep.mubr.msk.bf16.mxu0 %vm607_vm0, %v1552_v27  ;;  %v1046_v46 = vadd.f32 %v8478_v32, %v1032_v28 }
 0x22d   : > { %v1553_v43 = vpack.c.bf16 %v1046_v46, %v1045_v40 }
 0x22f   : > { %9204 = vmatmul.mubr.msk.bf16.gmra.mrb[24].mxu1 %vm607_vm0, %v1553_v43  ;;  %9216 = vmatmul.mubr.msk.bf16.gmra.mrb[24].mxu0 %vm607_vm0, %v1553_v43 }
 0x230   : > { %9221 = vmatprep.mubr.msk.bf16.mxu1 %vm10558_vm1, %v13077_v22  ;;  %9233 = vmatprep.mubr.msk.bf16.mxu0 %vm10558_vm1, %v13077_v22 }
 0x245   : > { %v9145_v48 = vpop.f32.mrb[0].mxu1 }
 0x246   : > { %v1136_v49 = vpop.f32.mrb[1].mxu1  ;;  %v1145_v59 = vadd.f32 %v9145_v48, %v8479_v7 }
 0x247   : > { %v9146_v55 = vpop.f32.mrb[2].mxu1  ;;  %v1137_v8 = vadd.f32 %v8479_v7, %v1136_v49 }
 0x248   : > { %v1148_v54 = vadd.f32 %v9146_v55, %v8479_v7  ;;  %v1139_v60 = vpop.f32.mrb[3].mxu1 }
 0x249   : > { %v1140_v24 = vadd.f32 %v8479_v7, %v1139_v60  ;;  %v8505_v60 = vld [vmem:[%s13070_s6 + $0x1] ss:$0 sm:$0xff] }
 0x24a   : > { %v11125_v33 = vpack.c.bf16 %v1148_v54, %v1145_v59  ;;  %v8517_v59 = vld [vmem:[%s13072_s8 + $0x1] ss:$0 sm:$0xff] }
 0x24b   : > { %v11127_v9 = vpack.c.bf16 %v1140_v24, %v1137_v8 }
 0x24d   : > { %13173 = vst [vmem:[#allocation4_spill] sm:$0xff] %v11127_v9  ;;  %v9141_v17 = vpop.f32.mrb[0].mxu0 }
 0x24e   : > { %v9153_v36 = vpop.f32.mrb[4].mxu1  ;;  %v1120_v3 = vpop.f32.mrb[1].mxu0  ;;  %v1129_v56 = vadd.f32 %v9141_v17, %v8479_v7 }
 0x24f   : > { %v1212_v11 = vpop.f32.mrb[5].mxu1  ;;  %v9142_v4 = vpop.f32.mrb[2].mxu0  ;;  %v1221_v15 = vadd.f32 %v9153_v36, %v8486_v62  ;;  %v1121_v16 = vadd.f32 %v8479_v7, %v1120_v3 }
 0x250   : > { %v1132_v57 = vadd.f32 %v9142_v4, %v8479_v7  ;;  %v9154_v29 = vpop.f32.mrb[6].mxu1  ;;  %v1123_v39 = vpop.f32.mrb[3].mxu0  ;;  %v1213_v34 = vadd.f32 %v8486_v62, %v1212_v11 }
 0x251   : > { %v1224_v20 = vadd.f32 %v9154_v29, %v8486_v62  ;;  %v1124_v2 = vadd.f32 %v8479_v7, %v1123_v39  ;;  %v1215_v58 = vpop.f32.mrb[7].mxu1 }
 0x252   : > { %v11132_v47 = vpack.c.bf16 %v1132_v57, %v1129_v56  ;;  %v1216_v25 = vadd.f32 %v8486_v62, %v1215_v58 }
 0x253   : > { %v11134_v23 = vpack.c.bf16 %v1224_v20, %v1221_v15  ;;  %v11136_v13 = vpack.c.bf16 %v1124_v2, %v1121_v16 }
 0x254   : > { %v11138_v32 = vpack.c.bf16 %v1216_v25, %v1213_v34 }
 0x255   : > { %v1863_v18 = vsel %vm1811_vm2, %v11134_v23, 0 }
 0x256   : > { %v9157_v21 = vpop.f32.mrb[8].mxu1  ;;  %v9165_v1 = vpop.f32.mrb[4].mxu0  ;;  %v1816_v6 = vsel %vm1811_vm2, %v11138_v32, 0 }
 0x257   : > { %v1228_v41 = vpop.f32.mrb[9].mxu1  ;;  %v1304_v51 = vpop.f32.mrb[5].mxu0  ;;  %9220 = vmatpush3.bf16.xpose.msra.mxu1 %v1816_v6  ;;  %v1237_v31 = vadd.f32 %v9157_v21, %v8486_v62  ;;  %v1313_v63 = vadd.f32 %v9165_v1, %v8493_v14 }
 0x258   : > { %v9158_v52 = vpop.f32.mrb[10].mxu1  ;;  %v9166_v5 = vpop.f32.mrb[6].mxu0  ;;  %9225 = vmatprep.subr.bf16.mxu1 %v13077_v22  ;;  %v1229_v12 = vadd.f32 %v8486_v62, %v1228_v41  ;;  %v1305_v61 = vadd.f32 %v8493_v14, %v1304_v51 }
 0x259   : > { %v1240_v37 = vadd.f32 %v9158_v52, %v8486_v62  ;;  %v1316_v44 = vadd.f32 %v9166_v5, %v8493_v14  ;;  %v1231_v10 = vpop.f32.mrb[11].mxu1  ;;  %v1307_v0 = vpop.f32.mrb[7].mxu0 }
 0x25a   : > { %v1232_v26 = vadd.f32 %v8486_v62, %v1231_v10  ;;  %v1308_v53 = vadd.f32 %v8493_v14, %v1307_v0 }
 0x25b   : > { %v11146_v30 = vpack.c.bf16 %v1240_v37, %v1237_v31  ;;  %v11148_v35 = vpack.c.bf16 %v1316_v44, %v1313_v63 }
 0x25c   : > { %v11150_v38 = vpack.c.bf16 %v1232_v26, %v1229_v12  ;;  %v11152_v42 = vpack.c.bf16 %v1308_v53, %v1305_v61 }
 0x25d   : > { %v1957_v55 = vsel %vm1811_vm2, %v11146_v30, 0 }
 0x25e   : > { %v9169_v50 = vpop.f32.mrb[8].mxu0  ;;  %9222 = vmatmul.mubr.msk.bf16.vlgmr.msra.gmra.mrb[28].mxu1 %vm1811_vm2, %v11136_v13  ;;  %v1910_v19 = vsel %vm1811_vm2, %v11150_v38, 0 }
 0x25f   : > { %v1329_v45 = vadd.f32 %v9169_v50, %v8493_v14  ;;  %v1320_v27 = vpop.f32.mrb[9].mxu0  ;;  %9226 = vmatpush3.bf16.xpose.msra.mxu1 %v1863_v18  ;;  %9232 = vmatpush3.bf16.xpose.msra.mxu0 %v1910_v19  ;;  %v8541_v19 = vld [vmem:[%s13072_s8 + $0x2] ss:$0 sm:$0xff] }
 0x260   : > { %v1321_v28 = vadd.f32 %v8493_v14, %v1320_v27  ;;  %v9170_v40 = vpop.f32.mrb[10].mxu0  ;;  %9227 = vmatprep.mubr.msk.bf16.mxu1 %vm10558_vm1, %v13077_v22  ;;  %9237 = vmatprep.subr.bf16.mxu1 %v13077_v22  ;;  %v8529_v27 = vld [vmem:[%s13070_s6 + $0x2] ss:$0 sm:$0xff] }
 0x261   : > { %v1332_v46 = vadd.f32 %v9170_v40, %v8493_v14  ;;  %v1323_v43 = vpop.f32.mrb[11].mxu0  ;;  %9243 = vmatprep.subr.bf16.mxu0 %v13077_v22 }
 0x262   : > { %v1324_v7 = vadd.f32 %v8493_v14, %v1323_v43 }
 0x263   : > { %v11164_v48 = vpack.c.bf16 %v1332_v46, %v1329_v45 }
 0x264   : > { %v11166_v49 = vpack.c.bf16 %v1324_v7, %v1321_v28 }
 0x266   : > { %9228 = vmatmul.mubr.msk.bf16.vlgmr.msra.gmra.mrb[32].mxu1 %vm1811_vm2, %v11132_v47  ;;  %9234 = vmatmul.mubr.msk.bf16.vlgmr.msra.gmra.mrb[28].mxu0 %vm1811_vm2, %v11127_v9 }
 0x267   : > { %9238 = vmatpush3.bf16.xpose.msra.mxu1 %v1957_v55  ;;  %9244 = vmatpush3.bf16.msra.mxu0 %v11152_v42 }
 0x268   : > { %9239 = vmatprep.mubr.msk.bf16.mxu1 %vm10558_vm1, %v13077_v22  ;;  %9249 = vmatprep.subr.bf16.mxu1 %v13077_v22 }
 0x269   : > { %9245 = vmatprep.mubr.msk.bf16.mxu0 %vm10558_vm1, %v13077_v22  ;;  %9255 = vmatprep.subr.bf16.mxu0 %v13077_v22 }
 0x26e   : > { %9240 = vmatmul.mubr.msk.bf16.vlgmr.msra.gmra.mrb[36].mxu1 %vm1811_vm2, %v11125_v33 }
 0x26f   : > { %9250 = vmatpush3.bf16.msra.mxu1 %v11148_v35  ;;  %9251 = vmatprep.mubr.msk.bf16.mxu1 %vm10558_vm1, %v13077_v22 }
 0x270   : > { %9261 = vmatprep.subr.bf16.mxu1 %v13077_v22 }
 0x2ea   : > { %v9177_v54 = vpop.f32.mrb[12].mxu1  ;;  %v9189_v8 = vpop.f32.mrb[12].mxu0 }
 0x2eb   : > { %v1414_v24 = vpop.f32.mrb[13].mxu1  ;;  %v1508_v17 = vpop.f32.mrb[13].mxu0  ;;  %v1423_v11 = vadd.f32 %v9177_v54, %v8505_v60  ;;  %v1517_v4 = vadd.f32 %v9189_v8, %v8517_v59 }
 0x2ec   : > { %v1509_v36 = vadd.f32 %v8517_v59, %v1508_v17  ;;  %v9178_v62 = vpop.f32.mrb[14].mxu1  ;;  %v9190_v3 = vpop.f32.mrb[14].mxu0  ;;  %v1415_v15 = vadd.f32 %v8505_v60, %v1414_v24 }
 0x2ed   : > { %v1426_v56 = vadd.f32 %v9178_v62, %v8505_v60  ;;  %v1520_v57 = vadd.f32 %v9190_v3, %v8517_v59  ;;  %v1417_v29 = vpop.f32.mrb[15].mxu1  ;;  %v1511_v39 = vpop.f32.mrb[15].mxu0 }
 0x2ee   : > { %v1418_v16 = vadd.f32 %v8505_v60, %v1417_v29  ;;  %v1512_v20 = vadd.f32 %v8517_v59, %v1511_v39 }
 0x2ef   : > { %v11193_v2 = vpack.c.bf16 %v1426_v56, %v1423_v11  ;;  %v11195_v58 = vpack.c.bf16 %v1520_v57, %v1517_v4 }
 0x2f0   : > { %v11197_v34 = vpack.c.bf16 %v1418_v16, %v1415_v15  ;;  %v11199_v25 = vpack.c.bf16 %v1512_v20, %v1509_v36 }
 0x2f2   : > { %13174 = vst [vmem:[#allocation5_spill] sm:$0xff] %v11199_v25  ;;  %v9181_v21 = vpop.f32.mrb[16].mxu1  ;;  %v9193_v1 = vpop.f32.mrb[16].mxu0 }
 0x2f3   : > { %v1533_v14 = vadd.f32 %v9193_v1, %v8517_v59  ;;  %v1430_v6 = vpop.f32.mrb[17].mxu1  ;;  %v1524_v41 = vpop.f32.mrb[17].mxu0  ;;  %v1439_v63 = vadd.f32 %v9181_v21, %v8505_v60 }
 0x2f4   : > { %v1431_v51 = vadd.f32 %v8505_v60, %v1430_v6  ;;  %v1525_v52 = vadd.f32 %v8517_v59, %v1524_v41  ;;  %v9182_v5 = vpop.f32.mrb[18].mxu1  ;;  %v9194_v31 = vpop.f32.mrb[18].mxu0 }
 0x2f5   : > { %v1442_v37 = vadd.f32 %v9182_v5, %v8505_v60  ;;  %v1536_v44 = vadd.f32 %v9194_v31, %v8517_v59  ;;  %v1433_v10 = vpop.f32.mrb[19].mxu1  ;;  %v1527_v0 = vpop.f32.mrb[19].mxu0 }
 0x2f6   : > { %v1434_v12 = vadd.f32 %v8505_v60, %v1433_v10  ;;  %v1528_v61 = vadd.f32 %v8517_v59, %v1527_v0 }
 0x2f7   : > { %v11201_v26 = vpack.c.bf16 %v1442_v37, %v1439_v63  ;;  %v11203_v53 = vpack.c.bf16 %v1536_v44, %v1533_v14 }
 0x2f8   : > { %v11205_v50 = vpack.c.bf16 %v1434_v12, %v1431_v51  ;;  %v11207_v18 = vpack.c.bf16 %v1528_v61, %v1525_v52  ;;  %v8794_v61 = vld [vmem:[%s13075_s11] sm:$0xff]  }
 0x2f9   : > { %13175 = vst [vmem:[#allocation6_spill] sm:$0xff] %v11203_v53 }
 0x2fa   : > { %13176 = vst [vmem:[#allocation7_spill] sm:$0xff] %v11207_v18  ;;  %v9201_v45 = vpop.f32.mrb[20].mxu1  ;;  %v9213_v28 = vpop.f32.mrb[20].mxu0 }
 0x2fb   : > { %v1618_v40 = vpop.f32.mrb[21].mxu1  ;;  %v1712_v46 = vpop.f32.mrb[21].mxu0  ;;  %v1627_v59 = vadd.f32 %v9201_v45, %v8529_v27  ;;  %v1721_v54 = vadd.f32 %v9213_v28, %v8541_v19  ;;  %v11234_v45 = vunpack.c.l.bf16 %v8794_v61  ;;  %v11236_v28 = vunpack.c.h.bf16 %v8794_v61 }
 0x2fc   : > { %v1713_v43 = vadd.f32 %v8541_v19, %v1712_v46  ;;  %v9202_v7 = vpop.f32.mrb[22].mxu1  ;;  %v9214_v55 = vpop.f32.mrb[22].mxu0  ;;  %v1619_v36 = vadd.f32 %v8529_v27, %v1618_v40 }
 0x2fd   : > { %v1630_v60 = vadd.f32 %v9202_v7, %v8529_v27  ;;  %v1724_v8 = vadd.f32 %v9214_v55, %v8541_v19  ;;  %v1621_v24 = vpop.f32.mrb[23].mxu1  ;;  %v1715_v17 = vpop.f32.mrb[23].mxu0 }
 0x2fe   : > { %v1622_v62 = vadd.f32 %v8529_v27, %v1621_v24  ;;  %v1716_v3 = vadd.f32 %v8541_v19, %v1715_v17 }
 0x2ff   : > { %v11215_v11 = vpack.c.bf16 %v1630_v60, %v1627_v59  ;;  %v11217_v4 = vpack.c.bf16 %v1724_v8, %v1721_v54  ;;  %v8869_v54 = vld [vmem:[%s13075_s11 + $0x10] sm:$0xff]  }
 0x300   : > { %v11219_v56 = vpack.c.bf16 %v1622_v62, %v1619_v36  ;;  %v11221_v57 = vpack.c.bf16 %v1716_v3, %v1713_v43  ;;  %v8868_v43 = vld [vmem:[%s13075_s11 + $0x8] sm:$0xff]   ;;  %v11250_v24 = vunpack.c.l.bf16 %v8869_v54 }
 0x301   : > { %13177 = vst [vmem:[#allocation8_spill] sm:$0xff] %v11215_v11  ;;  %13178 = vst [vmem:[#allocation9_spill] sm:$0xff] %v11217_v4  ;;  %v11248_v8 = vunpack.c.l.bf16 %v8868_v43  ;;  %v11252_v17 = vunpack.c.h.bf16 %v8868_v43 }
 0x302   : > { %13179 = vst [vmem:[#allocation10_spill] sm:$0xff] %v11219_v56  ;;  %13180 = vst [vmem:[#allocation11_spill] sm:$0xff] %v11221_v57  ;;  %v9205_v29 = vpop.f32.mrb[24].mxu1  ;;  %v9217_v39 = vpop.f32.mrb[24].mxu0 }
 0x303   : > { %v1737_v15 = vadd.f32 %v9217_v39, %v8541_v19  ;;  %v1634_v16 = vpop.f32.mrb[25].mxu1  ;;  %v1728_v20 = vpop.f32.mrb[25].mxu0  ;;  %v1643_v41 = vadd.f32 %v9205_v29, %v8529_v27  ;;  %13185 = vst [vmem:[#allocation16_spill] sm:$0xff] %v11250_v24 }
 0x304   : > { %v1635_v21 = vadd.f32 %v8529_v27, %v1634_v16  ;;  %v1729_v1 = vadd.f32 %v8541_v19, %v1728_v20  ;;  %v9206_v14 = vpop.f32.mrb[26].mxu1  ;;  %v9218_v6 = vpop.f32.mrb[26].mxu0 }
 0x305   : > { %v1646_v51 = vadd.f32 %v9206_v14, %v8529_v27  ;;  %v1740_v52 = vadd.f32 %v9218_v6, %v8541_v19  ;;  %v1637_v5 = vpop.f32.mrb[27].mxu1  ;;  %v1731_v31 = vpop.f32.mrb[27].mxu0 }
 0x306   : > { %v1638_v63 = vadd.f32 %v8529_v27, %v1637_v5  ;;  %v1732_v37 = vadd.f32 %v8541_v19, %v1731_v31 }
 0x307   : > { %v11223_v44 = vpack.c.bf16 %v1646_v51, %v1643_v41  ;;  %v11225_v10 = vpack.c.bf16 %v1740_v52, %v1737_v15  ;;  %v11255_v15 = vunpack.c.h.bf16 %v8869_v54 }
 0x308   : > { %v11227_v0 = vpack.c.bf16 %v1638_v63, %v1635_v21  ;;  %v11229_v12 = vpack.c.bf16 %v1732_v37, %v1729_v1  ;;  %v8870_v21 = vld [vmem:[%s13075_s11 + $0x18] sm:$0xff]  }
 0x309   : > { %13181 = vst [vmem:[#allocation12_spill] sm:$0xff] %v11223_v44  ;;  %13182 = vst [vmem:[#allocation13_spill] sm:$0xff] %v11225_v10  ;;  %v11265_v31 = vunpack.c.l.bf16 %v8870_v21  ;;  %v11268_v37 = vunpack.c.h.bf16 %v8870_v21 }
 0x30a   : > { %13183 = vst [vmem:[#allocation14_spill] sm:$0xff] %v11227_v0  ;;  %13184 = vst [vmem:[#allocation15_spill] sm:$0xff] %v11229_v12 }
 0x30b   : > { %13186 = vst [vmem:[#allocation17_spill] sm:$0xff] %v11255_v15  ;;  %13187 = vst [vmem:[#allocation18_spill] sm:$0xff] %v11265_v31 }
 0x30c   : > { %13188 = vst [vmem:[#allocation19_spill] sm:$0xff] %v11268_v37 }
 0x331   : > { %v1852_v40 = vpop.f32.mrb[28].mxu1 }
 0x332   : > { %v1853_v19 = vadd.f32 %v11234_v45, %v1852_v40  ;;  %v9223_v27 = vpop.f32.mrb[29].mxu1 }
 0x333   : > { %v1855_v46 = vpop.f32.mrb[30].mxu1 }
 0x334   : > { %v1856_v7 = vadd.f32 %v11236_v28, %v1855_v46  ;;  %v9224_v55 = vpop.f32.mrb[31].mxu1  ;;  %v2001_v59 = vsel %vm2000_vm3, %v1853_v19, -inf }
 0x335   : > { %2002 = vmax.xlane.f32.xlu0 %v2001_v59 }
 0x336   : > { %v2004_v60 = vsel %vm2000_vm3, %v1856_v7, -inf }
 0x337   : > { %2005 = vmax.xlane.f32.xlu1 %v2004_v60 }
 0x339   : > { %v1899_v36 = vpop.f32.mrb[32].mxu1  ;;  %v1946_v62 = vpop.f32.mrb[28].mxu0 }
 0x33a   : > { %v1900_v3 = vadd.f32 %v11248_v8, %v1899_v36  ;;  %v9229_v29 = vpop.f32.mrb[33].mxu1  ;;  %v9235_v39 = vpop.f32.mrb[29].mxu0  ;;  %v1947_v1 = vadd.f32 %v11250_v24, %v1946_v62 }
 0x33b   : > { %v1902_v16 = vpop.f32.mrb[34].mxu1  ;;  %v1949_v20 = vpop.f32.mrb[30].mxu0 }
 0x33c   : > { %v1903_v14 = vadd.f32 %v11252_v17, %v1902_v16  ;;  %v9230_v6 = vpop.f32.mrb[35].mxu1  ;;  %v9236_v41 = vpop.f32.mrb[31].mxu0  ;;  %v2007_v51 = vsel %vm2000_vm3, %v1900_v3, -inf  ;;  %v1950_v52 = vadd.f32 %v11255_v15, %v1949_v20  ;;  %v2013_v63 = vsel %vm2000_vm3, %v1947_v1, -inf }
 0x33d   : > { %2008 = vmax.xlane.f32.xlu0 %v2007_v51 }
 0x33e   : > { %v2010_v5 = vsel %vm2000_vm3, %v1903_v14, -inf  ;;  %v2016_v46 = vsel %vm2000_vm3, %v1950_v52, -inf }
 0x33f   : > { %2011 = vmax.xlane.f32.xlu1 %v2010_v5 }
 0x341   : > { %2014 = vmax.xlane.f32.xlu0 %v2013_v63  ;;  %v1993_v61 = vpop.f32.mrb[36].mxu1 }
 0x342   : > { %v1994_v40 = vadd.f32 %v11265_v31, %v1993_v61  ;;  %v9241_v27 = vpop.f32.mrb[37].mxu1 }
 0x343   : > { %2017 = vmax.xlane.f32.xlu1 %v2016_v46  ;;  %v1996_v43 = vpop.f32.mrb[38].mxu1 }
 0x344   : > { %v11273_v55 = vadd.f32 %v11268_v37, %v1996_v43  ;;  %v9242_v59 = vpop.f32.mrb[39].mxu1  ;;  %v2019_v54 = vsel %vm2000_vm3, %v1994_v40, -inf }
 0x345   : > { %2020 = vmax.xlane.f32.xlu0 %v2019_v54 }
 0x346   : > { %v2022_v60 = vsel %vm2000_vm3, %v11273_v55, -inf }
 0x347   : > { %2023 = vmax.xlane.f32.xlu1 %v2022_v60 }
 0x3c2   : > { %v2003_v36 = vpop.xlane.xlu0 %2002 }
 0x3c3   : > { %v2025_v62 = vsub.f32 %v1853_v19, %v2003_v36 }
 0x3c4   : > { %v2006_v29 = vpop.xlane.xlu1 %2005 }
 0x3c5   : > { %v2033_v39 = vmul.f32 1.442695, %v2025_v62  ;;  %v2026_v16 = vsub.f32 %v1856_v7, %v2006_v29 }
 0x3c7   : > { %10133 = vpow2.f32 %v2033_v39  ;;  %v2035_v20 = vmul.f32 1.442695, %v2026_v16 }
 0x3c9   : > { %10135 = vpow2.f32 %v2035_v20 }
 0x3ca   : > { %v2009_v21 = vpop.xlane.xlu0 %2008 }
 0x3cb   : > { %v2027_v6 = vsub.f32 %v1900_v3, %v2009_v21 }
 0x3cc   : > { %v2012_v41 = vpop.xlane.xlu1 %2011 }
 0x3cd   : > { %v2037_v51 = vmul.f32 1.442695, %v2027_v6  ;;  %v2028_v5 = vsub.f32 %v1903_v14, %v2012_v41 }
 0x3ce   : > { %v2015_v63 = vpop.xlane.xlu0 %2014 }
 0x3cf   : > { %10137 = vpow2.f32 %v2037_v51  ;;  %v2039_v61 = vmul.f32 1.442695, %v2028_v5  ;;  %v2029_v27 = vsub.f32 %v1947_v1, %v2015_v63 }
 0x3d0   : > { %v2018_v46 = vpop.xlane.xlu1 %2017 }
 0x3d1   : > { %v10134_v43 = vpop.eup %10133  ;;  %10139 = vpow2.f32 %v2039_v61  ;;  %v2041_v59 = vmul.f32 1.442695, %v2029_v27  ;;  %v2030_v19 = vsub.f32 %v1950_v52, %v2018_v46 }
 0x3d2   : > { %v2021_v54 = vpop.xlane.xlu0 %2020  ;;  %v2049_v7 = vsel %vm2000_vm3, %v10134_v43, 0.0 }
 0x3d3   : > { %v10136_v60 = vpop.eup %10135  ;;  %10141 = vpow2.f32 %v2041_v59  ;;  %v2043_v36 = vmul.f32 1.442695, %v2030_v19  ;;  %v2031_v62 = vsub.f32 %v1994_v40, %v2021_v54  ;;  %2050 = vadd.xlane.f32.xlu0 %v2049_v7 }
 0x3d4   : > { %v2052_v3 = vsel %vm2000_vm3, %v10136_v60, 0.0  ;;  %v2024_v51 = vpop.xlane.xlu1 %2023 }
 0x3d5   : > { %10143 = vpow2.f32 %v2043_v36  ;;  %v2045_v14 = vmul.f32 1.442695, %v2031_v62  ;;  %2053 = vadd.xlane.f32.xlu1 %v2052_v3  ;;  %v2032_v5 = vsub.f32 %v11273_v55, %v2024_v51 }
 0x3d7   : > { %10145 = vpow2.f32 %v2045_v14  ;;  %v2047_v63 = vmul.f32 1.442695, %v2032_v5 }
 0x3d9   : > { %v10138_v1 = vpop.eup %10137  ;;  %10147 = vpow2.f32 %v2047_v63 }
 0x3da   : > { %v2055_v29 = vsel %vm2000_vm3, %v10138_v1, 0.0 }
 0x3db   : > { %v10140_v39 = vpop.eup %10139  ;;  %2056 = vadd.xlane.f32.xlu0 %v2055_v29 }
 0x3dc   : > { %v2058_v52 = vsel %vm2000_vm3, %v10140_v39, 0.0 }
 0x3dd   : > { %v10142_v16 = vpop.eup %10141  ;;  %2059 = vadd.xlane.f32.xlu1 %v2058_v52 }
 0x3de   : > { %v2061_v20 = vsel %vm2000_vm3, %v10142_v16, 0.0 }
 0x3df   : > { %v10144_v21 = vpop.eup %10143  ;;  %2062 = vadd.xlane.f32.xlu0 %v2061_v20 }
 0x3e0   : > { %v2064_v40 = vsel %vm2000_vm3, %v10144_v21, 0.0 }
 0x3e1   : > { %v11284_v6 = vpop.eup %10145  ;;  %2065 = vadd.xlane.f32.xlu1 %v2064_v40 }
 0x3e2   : > { %v2067_v41 = vsel %vm2000_vm3, %v11284_v6, 0.0 }
 0x3e3   : > { %2068 = vadd.xlane.f32.xlu0 %v2067_v41  ;;  %v11299_v61 = vpop.eup %10147 }
 0x3e4   : > { %v2070_v27 = vsel %vm2000_vm3, %v11299_v61, 0.0 }
 0x3f2   : > { %2326 = vrot.lane.b32.xlu1 %v11134_v23, %s10559_s15 }
 0x3f6   : > { %2270 = vrot.lane.b32.xlu1 %v11136_v13, %s10559_s15 }
 0x3f9   : > { %2273 = vrot.lane.b32.xlu0 %v11138_v32, %s10559_s15 }
 0x3fd   : > { %2323 = vrot.lane.b32.xlu0 %v11132_v47, %s10559_s15 }
 0x401   : > { %2376 = vrot.lane.b32.xlu0 %v11127_v9, %s10559_s15 }
 0x41a   : > { %2071 = vadd.xlane.f32.xlu1 %v2070_v27 }
 0x42b   : > { %2379 = vrot.lane.b32.xlu1 %v11150_v38, %s10559_s15 }
 0x42f   : > { %2432 = vrot.lane.b32.xlu1 %v11146_v30, %s10559_s15 }
 0x433   : > { %2429 = vrot.lane.b32.xlu1 %v11125_v33, %s10559_s15 }
 0x460   : > { %v2051_v46 = vpop.xlane.xlu0 %2050 }
 0x461   : > { %10149 = vrcp.f32 %v2051_v46 }
 0x462   : > { %v2054_v55 = vpop.xlane.xlu1 %2053 }
 0x463   : > { %10151 = vrcp.f32 %v2054_v55 }
 0x468   : > { %v2057_v59 = vpop.xlane.xlu0 %2056 }
 0x469   : > { %10153 = vrcp.f32 %v2057_v59 }
 0x46a   : > { %v2060_v19 = vpop.xlane.xlu1 %2059 }
 0x46b   : > { %v10150_v54 = vpop.eup %10149  ;;  %10155 = vrcp.f32 %v2060_v19 }
 0x46c   : > { %v2063_v7 = vpop.xlane.xlu0 %2062  ;;  %v2081_v62 = vmul.f32 %v10150_v54, %v10134_v43 }
 0x46d   : > { %v10152_v36 = vpop.eup %10151  ;;  %10157 = vrcp.f32 %v2063_v7 }
 0x46e   : > { %v2082_v3 = vmul.f32 %v10152_v36, %v10136_v60  ;;  %v2066_v14 = vpop.xlane.xlu1 %2065 }
 0x46f   : > { %10159 = vrcp.f32 %v2066_v14 }
 0x470   : > { %v2089_v29 = vpack.c.bf16 %v2082_v3, %v2081_v62  ;;  %v2069_v40 = vpop.xlane.xlu0 %2068 }
 0x471   : > { %10161 = vrcp.f32 %v2069_v40 }
 0x472   : > { %9246 = vmatmul.mubr.msk.bf16.vlgmr.msra.gmra.mrb[32].mxu0 %vm2000_vm3, %v2089_v29 }
 0x473   : > { %v10154_v52 = vpop.eup %10153  ;;  %9256 = vmatpush3.bf16.msra.mxu0 %v11166_v49  ;;  %9257 = vmatprep.mubr.msk.bf16.mxu0 %vm10558_vm1, %v13077_v22 }
 0x474   : > { %9267 = vmatprep.subr.bf16.mxu0 %v13077_v22  ;;  %v2083_v41 = vmul.f32 %v10154_v52, %v10138_v1  ;;  %v2274_v46 = vpop.permute.xlu0 %2273  ;;  %v2327_v1 = vpop.permute.xlu1 %2326 }
 0x475   : > { %v10156_v20 = vpop.eup %10155  ;;  %v2279_v59 = vsel %vm1811_vm2, %v2274_v46, 0  ;;  %v2332_v52 = vsel %vm1811_vm2, %v2327_v1, 0  ;;  %v8871_v1 = vld [vmem:[%s13075_s11 + $0x20] sm:$0xff]  }
 0x476   : > { %v2084_v51 = vmul.f32 %v10156_v20, %v10140_v39 }
 0x477   : > { %v10158_v5 = vpop.eup %10157 }
 0x478   : > { %v2090_v43 = vpack.c.bf16 %v2084_v51, %v2083_v41  ;;  %v2085_v63 = vmul.f32 %v10158_v5, %v10142_v16  ;;  %v11324_v39 = vpop.permute.xlu1 %2270  ;;  %v11331_v54 = vpop.permute.xlu0 %2323 }
 0x479   : > { %v10160_v60 = vpop.eup %10159  ;;  %13189 = vst [vmem:[#allocation20_spill] sm:$0xff] %v11324_v39  ;;  %13190 = vst [vmem:[#allocation21_spill] sm:$0xff] %v11331_v54 }
 0x47a   : > { %v2086_v27 = vmul.f32 %v10160_v60, %v10144_v21  ;;  %9252 = vmatmul.mubr.msk.bf16.vlgmr.msra.gmra.mrb[40].mxu1 %vm2000_vm3, %v2090_v43 }
 0x47b   : > { %9262 = vmatpush3.bf16.msra.mxu1 %v11164_v48  ;;  %9263 = vmatprep.mubr.msk.bf16.mxu1 %vm10558_vm1, %v13077_v22  ;;  %v10162_v7 = vpop.eup %10161 }
 0x47c   : > { %v2091_v55 = vpack.c.bf16 %v2086_v27, %v2085_v63  ;;  %9273 = vmatprep.subr.bf16.mxu1 %v13077_v22  ;;  %v2087_v62 = vmul.f32 %v10162_v7, %v11284_v6  ;;  %v11335_v3 = vpop.permute.xlu0 %2376 }
 0x47d   : > { %13191 = vst [vmem:[#allocation22_spill] sm:$0xff] %v11335_v3 }
 0x47e   : > { %9258 = vmatmul.mubr.msk.bf16.vlgmr.msra.gmra.mrb[36].mxu0 %vm2000_vm3, %v2091_v55 }
 0x47f   : > { %9268 = vmatpush3.bf16.xpose.msra.mxu0 %v2279_v59  ;;  %9269 = vmatprep.mubr.msk.bf16.mxu0 %vm10558_vm1, %v13077_v22 }
 0x480   : > { %9279 = vmatprep.subr.bf16.mxu0 %v13077_v22 }
 0x486   : > { %9270 = vmatmul.mubr.msk.bf16.vlgmr.msra.gmra.mrb[40].mxu0 %vm1811_vm2, %v11324_v39 }
 0x487   : > { %9281 = vmatprep.mubr.msk.bf16.mxu0 %vm10558_vm1, %v13077_v22 }
 0x4a7   : > { %v2072_v16 = vpop.xlane.xlu1 %2071 }
 0x4a8   : > { %10163 = vrcp.f32 %v2072_v16 }
 0x4ab   : > { %v2380_v21 = vpop.permute.xlu1 %2379 }
 0x4ac   : > { %v2385_v19 = vsel %vm1811_vm2, %v2380_v21, 0  ;;  %v11374_v21 = vunpack.c.l.bf16 %v8871_v1 }
 0x4ad   : > { %9280 = vmatpush3.bf16.xpose.msra.mxu0 %v2385_v19  ;;  %v11376_v19 = vunpack.c.h.bf16 %v8871_v1 }
 0x4ae   : > { %9291 = vmatprep.subr.bf16.mxu0 %v13077_v22  ;;  %13193 = vst [vmem:[#allocation24_spill] sm:$0xff] %v11374_v21 }
 0x4af   : > { %v2433_v6 = vpop.permute.xlu1 %2432  ;;  %13194 = vst [vmem:[#allocation25_spill] sm:$0xff] %v11376_v19 }
 0x4b2   : > { %v10164_v36 = vpop.eup %10163 }
 0x4b3   : > { %v2088_v14 = vmul.f32 %v10164_v36, %v11299_v61  ;;  %v2438_v61 = vsel %vm1811_vm2, %v2433_v6, 0  ;;  %v11353_v20 = vpop.permute.xlu1 %2429 }
 0x4b4   : > { %9282 = vmatmul.mubr.msk.bf16.vlgmr.msra.gmra.mrb[44].mxu0 %vm1811_vm2, %v11335_v3  ;;  %13192 = vst [vmem:[#allocation23_spill] sm:$0xff] %v11353_v20 }
 0x4b5   : > { %v2092_v29 = vpack.c.bf16 %v2088_v14, %v2087_v62  ;;  %9293 = vmatprep.mubr.msk.bf16.mxu0 %vm10558_vm1, %v13077_v22 }
 0x4b7   : > { %9264 = vmatmul.mubr.msk.bf16.vlgmr.msra.gmra.mrb[44].mxu1 %vm2000_vm3, %v2092_v29 }
 0x4b8   : > { %9274 = vmatpush3.bf16.xpose.msra.mxu1 %v2332_v52  ;;  %9275 = vmatprep.mubr.msk.bf16.mxu1 %vm10558_vm1, %v13077_v22 }
 0x4b9   : > { %9285 = vmatprep.subr.bf16.mxu1 %v13077_v22 }
 0x4bf   : > { %9276 = vmatmul.mubr.msk.bf16.vlgmr.msra.gmra.mrb[48].mxu1 %vm1811_vm2, %v11331_v54 }
 0x4c0   : > { %9286 = vmatpush3.bf16.xpose.msra.mxu1 %v2438_v61  ;;  %9287 = vmatprep.mubr.msk.bf16.mxu1 %vm10558_vm1, %v13077_v22 }
 0x4c1   : > { %9297 = vmatprep.subr.bf16.mxu1 %v13077_v22 }
 0x4c7   : > { %9288 = vmatmul.mubr.msk.bf16.vlgmr.msra.gmra.mrb[52].mxu1 %vm1811_vm2, %v11353_v20 }
 0x4c8   : > { %9299 = vmatprep.mubr.msk.bf16.mxu1 %vm10558_vm1, %v13077_v22 }
 0x545   : > { %v11359_v40 = vpop.f32.mrb[32].mxu0 }
 0x546   : > { %v9247_v41 = vpop.f32.mrb[33].mxu0 }
 0x547   : > { %v11361_v51 = vpop.f32.mrb[34].mxu0  ;;  %v8873_v41 = vld [vmem:[%s13075_s11 + $0x30] sm:$0xff]  }
 0x548   : > { %v9248_v5 = vpop.f32.mrb[35].mxu0  ;;  %v11404_v12 = vunpack.c.l.bf16 %v8873_v41 }
 0x549   : > { %v11385_v5 = vunpack.c.h.bf16 %v8873_v41 }
 0x54a   : > { %13200 = vst [vmem:[#allocation31_spill] sm:$0xff] %v11404_v12 }
 0x54b   : > { %13195 = vst [vmem:[#allocation26_spill] sm:$0xff] %v11385_v5 }
 0x54d   : > { %v11363_v43 = vpop.f32.mrb[40].mxu1 }
 0x54e   : > { %v9253_v60 = vpop.f32.mrb[41].mxu1 }
 0x54f   : > { %v11365_v63 = vpop.f32.mrb[42].mxu1 }
 0x550   : > { %v9254_v27 = vpop.f32.mrb[43].mxu1 }
 0x551   : > { %v11367_v46 = vpop.f32.mrb[36].mxu0 }
 0x552   : > { %v9259_v55 = vpop.f32.mrb[37].mxu0 }
 0x553   : > { %v11369_v59 = vpop.f32.mrb[38].mxu0 }
 0x554   : > { %v9260_v16 = vpop.f32.mrb[39].mxu0 }
 0x559   : > { %v2315_v7 = vpop.f32.mrb[40].mxu0 }
 0x55a   : > { %v2316_v36 = vadd.f32 %v11374_v21, %v2315_v7  ;;  %v9271_v62 = vpop.f32.mrb[41].mxu0 }
 0x55b   : > { %v2318_v14 = vpop.f32.mrb[42].mxu0 }
 0x55c   : > { %v2319_v29 = vadd.f32 %v11376_v19, %v2318_v14  ;;  %v9272_v52 = vpop.f32.mrb[43].mxu0  ;;  %v2481_v6 = vsel %vm2000_vm3, %v2316_v36, -inf }
 0x55d   : > { %2482 = vmax.xlane.f32.xlu0 %v2481_v6  ;;  %v8872_v6 = vld [vmem:[%s13075_s11 + $0x28] sm:$0xff]  }
 0x55e   : > { %v2484_v61 = vsel %vm2000_vm3, %v2319_v29, -inf  ;;  %v11401_v22 = vunpack.c.h.bf16 %v8872_v6 }
 0x55f   : > { %2485 = vmax.xlane.f32.xlu1 %v2484_v61 }
 0x560   : > { %13199 = vst [vmem:[#allocation30_spill] sm:$0xff] %v11401_v22 }
 0x587   : > { %v2421_v60 = vpop.f32.mrb[44].mxu0 }
 0x588   : > { %v9283_v27 = vpop.f32.mrb[45].mxu0 }
 0x589   : > { %v2424_v55 = vpop.f32.mrb[46].mxu0  ;;  %v11399_v27 = vunpack.c.l.bf16 %v8872_v6  ;;  %v2422_v6 = vadd.f32 %v11404_v12, %v2421_v60 }
 0x58a   : > { %v11388_v1 = vadd.f32 %v11385_v5, %v2424_v55  ;;  %v11390_v16 = vpop.f32.mrb[44].mxu1  ;;  %v9284_v7 = vpop.f32.mrb[47].mxu0 }
 0x58b   : > { %13196 = vst [vmem:[#allocation27_spill] sm:$0xff] %v11390_v16  ;;  %v9265_v62 = vpop.f32.mrb[45].mxu1  ;;  %13198 = vst [vmem:[#allocation29_spill] sm:$0xff] %v11399_v27  ;;  %v2493_v11 = vsel %vm2000_vm3, %v2422_v6, -inf }
 0x58c   : > { %v11392_v14 = vpop.f32.mrb[46].mxu1  ;;  %v2496_v52 = vsel %vm2000_vm3, %v11388_v1, -inf }
 0x58d   : > { %13197 = vst [vmem:[#allocation28_spill] sm:$0xff] %v11392_v14  ;;  %2497 = vmax.xlane.f32.xlu1 %v2496_v52  ;;  %v9266_v61 = vpop.f32.mrb[47].mxu1  ;;  %v8874_v52 = vld [vmem:[%s13075_s11 + $0x38] sm:$0xff]  }
 0x58e   : > { %v11413_v44 = vunpack.c.l.bf16 %v8874_v52  ;;  %v11424_v60 = vunpack.c.h.bf16 %v8874_v52 }
 0x590   : > { %13201 = vst [vmem:[#allocation32_spill] sm:$0xff] %v11413_v44  ;;  %13202 = vst [vmem:[#allocation33_spill] sm:$0xff] %v11424_v60 }
 0x592   : > { %v2368_v55 = vpop.f32.mrb[48].mxu1 }
 0x593   : > { %v2369_v10 = vadd.f32 %v11399_v27, %v2368_v55  ;;  %v9277_v7 = vpop.f32.mrb[49].mxu1 }
 0x594   : > { %v2371_v62 = vpop.f32.mrb[50].mxu1 }
 0x595   : > { %v2372_v57 = vadd.f32 %v11401_v22, %v2371_v62  ;;  %v9278_v0 = vpop.f32.mrb[51].mxu1  ;;  %v2487_v4 = vsel %vm2000_vm3, %v2369_v10, -inf }
 0x596   : > { %2488 = vmax.xlane.f32.xlu0 %v2487_v4 }
 0x597   : > { %v2490_v61 = vsel %vm2000_vm3, %v2372_v57, -inf }
 0x59a   : > { %2491 = vmax.xlane.f32.xlu0 %v2490_v61  ;;  %v2474_v55 = vpop.f32.mrb[52].mxu1 }
 0x59b   : > { %v9289_v41 = vpop.f32.mrb[53].mxu1  ;;  %v2475_v62 = vadd.f32 %v11413_v44, %v2474_v55 }
 0x59c   : > { %v2477_v7 = vpop.f32.mrb[54].mxu1 }
 0x59d   : > { %v9290_v0 = vpop.f32.mrb[55].mxu1  ;;  %v2499_v4 = vsel %vm2000_vm3, %v2475_v62, -inf  ;;  %v11427_v61 = vadd.f32 %v11424_v60, %v2477_v7 }
 0x59e   : > { %2622 = vrot.lane.b32.xlu1 %v11148_v35, %s10559_s15  ;;  %2494 = vmax.xlane.f32.xlu0 %v2493_v11 }
 0x59f   : > { %v2502_v55 = vsel %vm2000_vm3, %v11427_v61, -inf }
 0x5a2   : > { %2670 = vrot.lane.b32.xlu1 %v11166_v49, %s10559_s15  ;;  %2500 = vmax.xlane.f32.xlu0 %v2499_v4 }
 0x5b8   : > { %2574 = vrot.lane.b32.xlu0 %v11152_v42, %s10559_s15 }
 0x5c6   : > { %2503 = vmax.xlane.f32.xlu1 %v2502_v55 }
 0x5d7   : > { %2718 = vrot.lane.b32.xlu1 %v11164_v48, %s10559_s15 }
 0x5ea   : > { %v2483_v11 = vpop.xlane.xlu0 %2482 }
 0x5eb   : > { %v2505_v41 = vsub.f32 %v2316_v36, %v2483_v11  ;;  %v13203_v11 = vmov 0.0  }
 0x5ec   : > { %v2486_v0 = vpop.xlane.xlu1 %2485 }
 0x5ed   : > { %v2513_v56 = vmul.f32 1.442695, %v2505_v41  ;;  %v2506_v4 = vsub.f32 %v2319_v29, %v2486_v0 }
 0x5ef   : > { %10165 = vpow2.f32 %v2513_v56  ;;  %v2515_v44 = vmul.f32 1.442695, %v2506_v4 }
 0x5f1   : > { %10167 = vpow2.f32 %v2515_v44 }
 0x5f9   : > { %v11433_v52 = vpop.eup %10165 }
 0x5fa   : > { %v2529_v7 = vsel %vm2000_vm3, %v11433_v52, 0.0 }
 0x5fb   : > { %v11437_v60 = vpop.eup %10167  ;;  %2530 = vadd.xlane.f32.xlu0 %v2529_v7 }
 0x5fc   : > { %v2532_v55 = vsel %vm2000_vm3, %v11437_v60, 0.0 }
 0x5fd   : > { %2533 = vadd.xlane.f32.xlu1 %v2532_v55 }
 0x61a   : > { %v2498_v5 = vpop.xlane.xlu1 %2497 }
 0x61b   : > { %v2510_v44 = vsub.f32 %v11388_v1, %v2498_v5 }
 0x61d   : > { %v2523_v12 = vmul.f32 1.442695, %v2510_v44 }
 0x61e   : > { %v2623_v36 = vpop.permute.xlu1 %2622 }
 0x61f   : > { %9298 = vmatpush3.bf16.msra.mxu1 %v2623_v36 }
 0x620   : > { %9309 = vmatprep.subr.bf16.mxu1 %v13203_v11 }
 0x623   : > { %v2489_v56 = vpop.xlane.xlu0 %2488 }
 0x624   : > { %v2507_v29 = vsub.f32 %v2369_v10, %v2489_v56 }
 0x626   : > { %v2517_v41 = vmul.f32 1.442695, %v2507_v29 }
 0x627   : > { %v2492_v0 = vpop.xlane.xlu0 %2491 }
 0x628   : > { %10169 = vpow2.f32 %v2517_v41  ;;  %v2508_v4 = vsub.f32 %v2372_v57, %v2492_v0 }
 0x62a   : > { %v2519_v22 = vmul.f32 1.442695, %v2508_v4 }
 0x62b   : > { %v2495_v7 = vpop.xlane.xlu0 %2494 }
 0x62c   : > { %10171 = vpow2.f32 %v2519_v22  ;;  %v2509_v19 = vsub.f32 %v2422_v6, %v2495_v7 }
 0x62d   : > { %10173 = vpow2.f32 %v2523_v12 }
 0x62e   : > { %v2521_v55 = vmul.f32 1.442695, %v2509_v19 }
 0x62f   : > { %v2501_v27 = vpop.xlane.xlu0 %2500 }
 0x630   : > { %10175 = vpow2.f32 %v2521_v55  ;;  %v2511_v36 = vsub.f32 %v2475_v62, %v2501_v27 }
 0x632   : > { %v10170_v21 = vpop.eup %10169  ;;  %v2525_v3 = vmul.f32 1.442695, %v2511_v36 }
 0x633   : > { %v2575_v39 = vpop.permute.xlu0 %2574  ;;  %v2535_v10 = vsel %vm2000_vm3, %v10170_v21, 0.0 }
 0x634   : > { %10177 = vpow2.f32 %v2525_v3  ;;  %2536 = vadd.xlane.f32.xlu0 %v2535_v10  ;;  %9292 = vmatpush3.bf16.msra.mxu0 %v2575_v39  ;;  %v2671_v39 = vpop.permute.xlu1 %2670 }
 0x635   : > { %9303 = vmatprep.subr.bf16.mxu0 %v13203_v11 }
 0x636   : > { %v10172_v57 = vpop.eup %10171 }
 0x637   : > { %v2538_v5 = vsel %vm2000_vm3, %v10172_v57, 0.0  ;;  %v10174_v22 = vpop.eup %10173 }
 0x638   : > { %2539 = vadd.xlane.f32.xlu1 %v2538_v5  ;;  %v2544_v1 = vsel %vm2000_vm3, %v10174_v22, 0.0 }
 0x63a   : > { %v10176_v12 = vpop.eup %10175 }
 0x63b   : > { %v2541_v19 = vsel %vm2000_vm3, %v10176_v12, 0.0 }
 0x63c   : > { %2542 = vadd.xlane.f32.xlu0 %v2541_v19  ;;  %2545 = vadd.xlane.f32.xlu1 %v2544_v1 }
 0x63e   : > { %v11448_v27 = vpop.eup %10177 }
 0x63f   : > { %v2547_v3 = vsel %vm2000_vm3, %v11448_v27, 0.0 }
 0x640   : > { %2548 = vadd.xlane.f32.xlu0 %v2547_v3 }
 0x64d   : > { %2818 = vrot.lane.b32.xlu1 %v11134_v23, %s10560_s14 }
 0x653   : > { %v2504_v6 = vpop.xlane.xlu1 %2503 }
 0x654   : > { %v2512_v62 = vsub.f32 %v11427_v61, %v2504_v6 }
 0x656   : > { %2767 = vrot.lane.b32.xlu0 %v11138_v32, %s10560_s14  ;;  %v2527_v56 = vmul.f32 1.442695, %v2512_v62 }
 0x657   : > { %v2719_v41 = vpop.permute.xlu1 %2718 }
 0x658   : > { %10179 = vpow2.f32 %v2527_v56 }
 0x65a   : > { %2765 = vrot.lane.b32.xlu0 %v11136_v13, %s10560_s14 }
 0x65e   : > { %2816 = vrot.lane.b32.xlu0 %v11132_v47, %s10560_s14 }
 0x662   : > { %2867 = vrot.lane.b32.xlu0 %v11127_v9, %s10560_s14  ;;  %v11463_v29 = vpop.eup %10179 }
 0x663   : > { %v2550_v44 = vsel %vm2000_vm3, %v11463_v29, 0.0 }
 0x671   : > { %2551 = vadd.xlane.f32.xlu1 %v2550_v44 }
 0x682   : > { %2869 = vrot.lane.b32.xlu1 %v11150_v38, %s10560_s14 }
 0x686   : > { %2920 = vrot.lane.b32.xlu1 %v11146_v30, %s10560_s14 }
 0x688   : > { %v2531_v61 = vpop.xlane.xlu0 %2530 }
 0x689   : > { %10181 = vrcp.f32 %v2531_v61 }
 0x68a   : > { %2918 = vrot.lane.b32.xlu1 %v11125_v33, %s10560_s14  ;;  %v2534_v0 = vpop.xlane.xlu1 %2533 }
 0x68b   : > { %10183 = vrcp.f32 %v2534_v0 }
 0x693   : > { %v10182_v4 = vpop.eup %10181 }
 0x694   : > { %v2561_v55 = vmul.f32 %v10182_v4, %v11433_v52 }
 0x695   : > { %v10184_v7 = vpop.eup %10183 }
 0x696   : > { %v2562_v36 = vmul.f32 %v10184_v7, %v11437_v60 }
 0x698   : > { %v2569_v10 = vpack.c.bf16 %v2562_v36, %v2561_v55 }
 0x69a   : > { %9294 = vmatmul.mubr.msk.bf16.vlgmr.msra.gmra.mrb[48].mxu0 %vm2000_vm3, %v2569_v10 }
 0x69b   : > { %9304 = vmatpush3.bf16.msra.mxu0 %v2671_v39  ;;  %9305 = vmatprep.mubr.msk.bf16.mxu0 %vm10558_vm1, %v13203_v11 }
 0x69c   : > { %9315 = vmatprep.subr.bf16.mxu0 %v13203_v11 }
 0x6c1   : > { %v2537_v5 = vpop.xlane.xlu0 %2536 }
 0x6c2   : > { %10185 = vrcp.f32 %v2537_v5 }
 0x6c5   : > { %v2540_v19 = vpop.xlane.xlu1 %2539 }
 0x6c6   : > { %10187 = vrcp.f32 %v2540_v19 }
 0x6c9   : > { %v2543_v1 = vpop.xlane.xlu0 %2542  ;;  %v2546_v3 = vpop.xlane.xlu1 %2545 }
 0x6ca   : > { %10189 = vrcp.f32 %v2543_v1 }
 0x6cb   : > { %10191 = vrcp.f32 %v2546_v3 }
 0x6cc   : > { %v10186_v52 = vpop.eup %10185 }
 0x6cd   : > { %v2563_v60 = vmul.f32 %v10186_v52, %v10170_v21  ;;  %v2549_v56 = vpop.xlane.xlu0 %2548 }
 0x6ce   : > { %10193 = vrcp.f32 %v2549_v56 }
 0x6d0   : > { %v10188_v6 = vpop.eup %10187 }
 0x6d1   : > { %v2564_v62 = vmul.f32 %v10188_v6, %v10172_v57  ;;  %v2768_v7 = vpop.permute.xlu0 %2767  ;;  %v2819_v57 = vpop.permute.xlu1 %2818 }
 0x6d2   : > { %v2773_v36 = vsel %vm1811_vm2, %v2768_v7, 0 }
 0x6d3   : > { %v2570_v44 = vpack.c.bf16 %v2564_v62, %v2563_v60  ;;  %v2824_v60 = vsel %vm1811_vm2, %v2819_v57, 0 }
 0x6d4   : > { %v10190_v39 = vpop.eup %10189 }
 0x6d5   : > { %v10192_v61 = vpop.eup %10191  ;;  %v2565_v0 = vmul.f32 %v10190_v39, %v10176_v12  ;;  %9300 = vmatmul.mubr.msk.bf16.vlgmr.msra.gmra.mrb[56].mxu1 %vm2000_vm3, %v2570_v44  ;;  %v11488_v21 = vpop.permute.xlu0 %2765 }
 0x6d6   : > { %v2566_v4 = vmul.f32 %v10192_v61, %v10174_v22  ;;  %9310 = vmatpush3.bf16.msra.mxu1 %v2719_v41  ;;  %9311 = vmatprep.mubr.msk.bf16.mxu1 %vm10558_vm1, %v13203_v11  ;;  %13204 = vst [vmem:[#allocation34_spill] sm:$0xff] %v11488_v21 }
 0x6d7   : > { %9321 = vmatprep.subr.bf16.mxu1 %v13203_v11 }
 0x6d8   : > { %v2571_v55 = vpack.c.bf16 %v2566_v4, %v2565_v0  ;;  %v10194_v5 = vpop.eup %10193 }
 0x6d9   : > { %v11495_v10 = vpop.permute.xlu0 %2816  ;;  %v2567_v1 = vmul.f32 %v10194_v5, %v11448_v27  ;;  %v8875_v5 = vld [vmem:[%s13075_s11 + $0x40] sm:$0xff]  }
 0x6da   : > { %9306 = vmatmul.mubr.msk.bf16.vlgmr.msra.gmra.mrb[52].mxu0 %vm2000_vm3, %v2571_v55  ;;  %13205 = vst [vmem:[#allocation35_spill] sm:$0xff] %v11495_v10 }
 0x6db   : > { %9316 = vmatpush3.bf16.xpose.msra.mxu0 %v2773_v36  ;;  %9317 = vmatprep.mubr.msk.bf16.mxu0 %vm10558_vm1, %v13203_v11 }
 0x6dc   : > { %9327 = vmatprep.subr.bf16.mxu0 %v13203_v11 }
 0x6dd   : > { %v11499_v3 = vpop.permute.xlu0 %2867 }
 0x6de   : > { %13206 = vst [vmem:[#allocation36_spill] sm:$0xff] %v11499_v3 }
 0x6e2   : > { %9318 = vmatmul.mubr.msk.bf16.vlgmr.msra.gmra.mrb[56].mxu0 %vm1811_vm2, %v11488_v21 }
 0x6e3   : > { %9329 = vmatprep.mubr.msk.bf16.mxu0 %vm10558_vm1, %v13203_v11 }
 0x6fe   : > { %v2552_v22 = vpop.xlane.xlu1 %2551 }
 0x6ff   : > { %10195 = vrcp.f32 %v2552_v22 }
 0x702   : > { %v2870_v12 = vpop.permute.xlu1 %2869 }
 0x703   : > { %v2875_v41 = vsel %vm1811_vm2, %v2870_v12, 0 }
 0x704   : > { %9328 = vmatpush3.bf16.xpose.msra.mxu0 %v2875_v41 }
 0x705   : > { %9339 = vmatprep.subr.bf16.mxu0 %v13203_v11 }
 0x706   : > { %v2921_v27 = vpop.permute.xlu1 %2920 }
 0x709   : > { %v10196_v19 = vpop.eup %10195 }
 0x70a   : > { %v2568_v52 = vmul.f32 %v10196_v19, %v11463_v29  ;;  %v2926_v29 = vsel %vm1811_vm2, %v2921_v27, 0  ;;  %v11517_v62 = vpop.permute.xlu1 %2918 }
 0x70b   : > { %9330 = vmatmul.mubr.msk.bf16.vlgmr.msra.gmra.mrb[60].mxu0 %vm1811_vm2, %v11499_v3  ;;  %13207 = vst [vmem:[#allocation37_spill] sm:$0xff] %v11517_v62 }
 0x70c   : > { %v2572_v6 = vpack.c.bf16 %v2568_v52, %v2567_v1  ;;  %9341 = vmatprep.mubr.msk.bf16.mxu0 %vm10558_vm1, %v13203_v11  ;;  %v11544_v52 = vunpack.c.l.bf16 %v8875_v5 }
 0x70e   : > { %9312 = vmatmul.mubr.msk.bf16.vlgmr.msra.gmra.mrb[60].mxu1 %vm2000_vm3, %v2572_v6  ;;  %13208 = vst [vmem:[#allocation38_spill] sm:$0xff] %v11544_v52  ;;  %v11546_v6 = vunpack.c.h.bf16 %v8875_v5 }
 0x70f   : > { %9322 = vmatpush3.bf16.xpose.msra.mxu1 %v2824_v60  ;;  %9323 = vmatprep.mubr.msk.bf16.mxu1 %vm10558_vm1, %v13203_v11 }
 0x710   : > { %9333 = vmatprep.subr.bf16.mxu1 %v13203_v11  ;;  %13209 = vst [vmem:[#allocation39_spill] sm:$0xff] %v11546_v6 }
 0x716   : > { %9324 = vmatmul.mubr.msk.bf16.vlgmr.msra.gmra.mrb[64].mxu1 %vm1811_vm2, %v11495_v10 }
 0x717   : > { %9334 = vmatpush3.bf16.xpose.msra.mxu1 %v2926_v29  ;;  %9335 = vmatprep.mubr.msk.bf16.mxu1 %vm10558_vm1, %v13203_v11 }
 0x718   : > { %9345 = vmatprep.subr.bf16.mxu1 %v13203_v11 }
 0x71e   : > { %9336 = vmatmul.mubr.msk.bf16.vlgmr.msra.gmra.mrb[68].mxu1 %vm1811_vm2, %v11517_v62 }
 0x71f   : > { %9347 = vmatprep.mubr.msk.bf16.mxu1 %vm10558_vm1, %v13203_v11 }
 0x76d   : > { %v11523_v56 = vpop.f32.mrb[48].mxu0 }
 0x76e   : > { %v9295_v44 = vpop.f32.mrb[49].mxu0 }
 0x76f   : > { %v11525_v39 = vpop.f32.mrb[50].mxu0 }
 0x770   : > { %v9296_v0 = vpop.f32.mrb[51].mxu0 }
 0x7a8   : > { %v11529_v4 = vpop.f32.mrb[56].mxu1 }
 0x7a9   : > { %v9301_v7 = vpop.f32.mrb[57].mxu1 }
 0x7aa   : > { %v11531_v55 = vpop.f32.mrb[58].mxu1 }
 0x7ab   : > { %v9302_v57 = vpop.f32.mrb[59].mxu1 }
 0x7ad   : > { %v11535_v22 = vpop.f32.mrb[52].mxu0 }
 0x7ae   : > { %v9307_v12 = vpop.f32.mrb[53].mxu0 }
 0x7af   : > { %v11537_v41 = vpop.f32.mrb[54].mxu0 }
 0x7b0   : > { %v9308_v1 = vpop.f32.mrb[55].mxu0 }
 0x7b1   : > { %v8877_v1 = vld [vmem:[%s13075_s11 + $0x50] sm:$0xff]  }
 0x7b2   : > { %v11555_v5 = vunpack.c.h.bf16 %v8877_v1  ;;  %v11576_v62 = vunpack.c.l.bf16 %v8877_v1 }
 0x7b4   : > { %13210 = vst [vmem:[#allocation40_spill] sm:$0xff] %v11555_v5  ;;  %13213 = vst [vmem:[#allocation43_spill] sm:$0xff] %v11576_v62 }
 0x7b5   : > { %v2809_v60 = vpop.f32.mrb[56].mxu0 }
 0x7b6   : > { %v2810_v27 = vadd.f32 %v11544_v52, %v2809_v60  ;;  %v9319_v29 = vpop.f32.mrb[57].mxu0 }
 0x7b7   : > { %v2812_v44 = vpop.f32.mrb[58].mxu0 }
 0x7b8   : > { %v2813_v0 = vadd.f32 %v11546_v6, %v2812_v44  ;;  %v9320_v7 = vpop.f32.mrb[59].mxu0  ;;  %v2969_v57 = vsel %vm2000_vm3, %v2810_v27, -inf  ;;  %v8876_v6 = vld [vmem:[%s13075_s11 + $0x48] sm:$0xff]  }
 0x7b9   : > { %2970 = vmax.xlane.f32.xlu0 %v2969_v57 }
 0x7ba   : > { %v2972_v12 = vsel %vm2000_vm3, %v2813_v0, -inf }
 0x7bb   : > { %2973 = vmax.xlane.f32.xlu1 %v2972_v12 }
 0x7de   : > { %v2911_v36 = vpop.f32.mrb[60].mxu0 }
 0x7df   : > { %v9331_v19 = vpop.f32.mrb[61].mxu0 }
 0x7e0   : > { %v2914_v60 = vpop.f32.mrb[62].mxu0 }
 0x7e1   : > { %v11558_v29 = vadd.f32 %v11555_v5, %v2914_v60  ;;  %v11560_v44 = vpop.f32.mrb[60].mxu1  ;;  %v9332_v7 = vpop.f32.mrb[63].mxu0  ;;  %v11571_v60 = vunpack.c.l.bf16 %v8876_v6  ;;  %v11573_v5 = vunpack.c.h.bf16 %v8876_v6  ;;  %v2912_v6 = vadd.f32 %v11576_v62, %v2911_v36 }
 0x7e2   : > { %v9313_v61 = vpop.f32.mrb[61].mxu1 }
 0x7e3   : > { %v11562_v57 = vpop.f32.mrb[62].mxu1  ;;  %v2984_v12 = vsel %vm2000_vm3, %v11558_v29, -inf  ;;  %13211 = vst [vmem:[#allocation41_spill] sm:$0xff] %v11571_v60  ;;  %13212 = vst [vmem:[#allocation42_spill] sm:$0xff] %v11573_v5 }
 0x7e4   : > { %2985 = vmax.xlane.f32.xlu1 %v2984_v12  ;;  %v9314_v52 = vpop.f32.mrb[63].mxu1 }
 0x7e5   : > { %v8878_v52 = vld [vmem:[%s13075_s11 + $0x58] sm:$0xff]  }
 0x7e6   : > { %v11585_v19 = vunpack.c.l.bf16 %v8878_v52  ;;  %v11596_v36 = vunpack.c.h.bf16 %v8878_v52 }
 0x7e8   : > { %13214 = vst [vmem:[#allocation44_spill] sm:$0xff] %v11585_v19  ;;  %13215 = vst [vmem:[#allocation45_spill] sm:$0xff] %v11596_v36 }
 0x7e9   : > { %v2860_v7 = vpop.f32.mrb[64].mxu1 }
 0x7ea   : > { %v2861_v61 = vadd.f32 %v11571_v60, %v2860_v7  ;;  %v9325_v3 = vpop.f32.mrb[65].mxu1 }
 0x7eb   : > { %v2863_v21 = vpop.f32.mrb[66].mxu1 }
 0x7ec   : > { %v2864_v10 = vadd.f32 %v11573_v5, %v2863_v21  ;;  %v9326_v20 = vpop.f32.mrb[67].mxu1  ;;  %v2975_v54 = vsel %vm2000_vm3, %v2861_v61, -inf  ;;  %v2981_v5 = vsel %vm2000_vm3, %v2912_v6, -inf }
 0x7ed   : > { %2976 = vmax.xlane.f32.xlu0 %v2975_v54 }
 0x7ee   : > { %v2978_v12 = vsel %vm2000_vm3, %v2864_v10, -inf }
 0x7f1   : > { %2979 = vmax.xlane.f32.xlu0 %v2978_v12  ;;  %v2962_v3 = vpop.f32.mrb[68].mxu1 }
 0x7f2   : > { %v9337_v1 = vpop.f32.mrb[69].mxu1  ;;  %v2963_v21 = vadd.f32 %v11585_v19, %v2962_v3 }
 0x7f3   : > { %v2965_v7 = vpop.f32.mrb[70].mxu1 }
 0x7f4   : > { %v9338_v20 = vpop.f32.mrb[71].mxu1  ;;  %v2987_v54 = vsel %vm2000_vm3, %v2963_v21, -inf  ;;  %v11599_v12 = vadd.f32 %v11596_v36, %v2965_v7 }
 0x7f5   : > { %3108 = vrot.lane.b32.xlu1 %v11148_v35, %s10560_s14  ;;  %2982 = vmax.xlane.f32.xlu0 %v2981_v5 }
 0x7f6   : > { %v2990_v3 = vsel %vm2000_vm3, %v11599_v12, -inf }
 0x7f9   : > { %3155 = vrot.lane.b32.xlu1 %v11166_v49, %s10560_s14  ;;  %2988 = vmax.xlane.f32.xlu0 %v2987_v54 }
 0x80f   : > { %3061 = vrot.lane.b32.xlu0 %v11152_v42, %s10560_s14 }
 0x81d   : > { %2991 = vmax.xlane.f32.xlu1 %v2990_v3 }
 0x82e   : > { %3202 = vrot.lane.b32.xlu1 %v11164_v48, %s10560_s14 }
 0x846   : > { %v2971_v5 = vpop.xlane.xlu0 %2970 }
 0x847   : > { %v2993_v1 = vsub.f32 %v2810_v27, %v2971_v5 }
 0x848   : > { %v2974_v20 = vpop.xlane.xlu1 %2973 }
 0x849   : > { %v3001_v19 = vmul.f32 1.442695, %v2993_v1  ;;  %v2994_v54 = vsub.f32 %v2813_v0, %v2974_v20 }
 0x84b   : > { %10197 = vpow2.f32 %v3001_v19  ;;  %v3003_v62 = vmul.f32 1.442695, %v2994_v54 }
 0x84d   : > { %10199 = vpow2.f32 %v3003_v62 }
 0x855   : > { %v11605_v52 = vpop.eup %10197 }
 0x856   : > { %v3017_v7 = vsel %vm2000_vm3, %v11605_v52, 0.0 }
 0x857   : > { %v11609_v36 = vpop.eup %10199  ;;  %3018 = vadd.xlane.f32.xlu0 %v3017_v7 }
 0x858   : > { %v3020_v3 = vsel %vm2000_vm3, %v11609_v36, 0.0 }
 0x859   : > { %3021 = vadd.xlane.f32.xlu1 %v3020_v3 }
 0x871   : > { %v2986_v60 = vpop.xlane.xlu1 %2985 }
 0x872   : > { %v2998_v62 = vsub.f32 %v11558_v29, %v2986_v60 }
 0x874   : > { %v3011_v54 = vmul.f32 1.442695, %v2998_v62 }
 0x875   : > { %v3109_v27 = vpop.permute.xlu1 %3108 }
 0x876   : > { %9346 = vmatpush3.bf16.msra.mxu1 %v3109_v27 }
 0x877   : > { %9357 = vmatprep.subr.bf16.mxu1 %v13203_v11 }
 0x87a   : > { %v2977_v0 = vpop.xlane.xlu0 %2976 }
 0x87b   : > { %v2995_v19 = vsub.f32 %v2861_v61, %v2977_v0 }
 0x87d   : > { %v3005_v5 = vmul.f32 1.442695, %v2995_v19 }
 0x87e   : > { %v2980_v1 = vpop.xlane.xlu0 %2979 }
 0x87f   : > { %10201 = vpow2.f32 %v3005_v5  ;;  %v2996_v20 = vsub.f32 %v2864_v10, %v2980_v1 }
 0x881   : > { %v3007_v53 = vmul.f32 1.442695, %v2996_v20 }
 0x882   : > { %v2983_v7 = vpop.xlane.xlu0 %2982 }
 0x883   : > { %10203 = vpow2.f32 %v3007_v53  ;;  %v2997_v18 = vsub.f32 %v2912_v6, %v2983_v7 }
 0x884   : > { %10205 = vpow2.f32 %v3011_v54 }
 0x885   : > { %v3009_v3 = vmul.f32 1.442695, %v2997_v18 }
 0x886   : > { %v2989_v37 = vpop.xlane.xlu0 %2988 }
 0x887   : > { %10207 = vpow2.f32 %v3009_v3  ;;  %v2999_v27 = vsub.f32 %v2963_v21, %v2989_v37 }
 0x889   : > { %v10202_v15 = vpop.eup %10201  ;;  %v3013_v31 = vmul.f32 1.442695, %v2999_v27 }
 0x88a   : > { %v3062_v24 = vpop.permute.xlu0 %3061  ;;  %v3023_v61 = vsel %vm2000_vm3, %v10202_v15, 0.0 }
 0x88b   : > { %10209 = vpow2.f32 %v3013_v31  ;;  %3024 = vadd.xlane.f32.xlu0 %v3023_v61  ;;  %9340 = vmatpush3.bf16.msra.mxu0 %v3062_v24  ;;  %v3156_v24 = vpop.permute.xlu1 %3155 }
 0x88c   : > { %9351 = vmatprep.subr.bf16.mxu0 %v13203_v11 }
 0x88d   : > { %v10204_v10 = vpop.eup %10203 }
 0x88e   : > { %v3026_v29 = vsel %vm2000_vm3, %v10204_v10, 0.0  ;;  %v10206_v53 = vpop.eup %10205 }
 0x88f   : > { %3027 = vadd.xlane.f32.xlu1 %v3026_v29  ;;  %v3032_v37 = vsel %vm2000_vm3, %v10206_v53, 0.0 }
 0x891   : > { %v10208_v60 = vpop.eup %10207 }
 0x892   : > { %v3029_v18 = vsel %vm2000_vm3, %v10208_v60, 0.0 }
 0x893   : > { %3030 = vadd.xlane.f32.xlu0 %v3029_v18  ;;  %3033 = vadd.xlane.f32.xlu1 %v3032_v37 }
 0x895   : > { %v11620_v6 = vpop.eup %10209 }
 0x896   : > { %v3035_v31 = vsel %vm2000_vm3, %v11620_v6, 0.0 }
 0x897   : > { %3036 = vadd.xlane.f32.xlu0 %v3035_v31 }
 0x8a4   : > { %3302 = vrot.lane.b32.xlu1 %v11134_v23, %s10561_s16 }
 0x8aa   : > { %v2992_v21 = vpop.xlane.xlu1 %2991 }
 0x8ab   : > { %v3000_v0 = vsub.f32 %v11599_v12, %v2992_v21 }
 0x8ad   : > { %3251 = vrot.lane.b32.xlu0 %v11138_v32, %s10561_s16  ;;  %v3015_v19 = vmul.f32 1.442695, %v3000_v0 }
 0x8ae   : > { %v3203_v32 = vpop.permute.xlu1 %3202 }
 0x8af   : > { %10211 = vpow2.f32 %v3015_v19 }
 0x8b1   : > { %3249 = vrot.lane.b32.xlu0 %v11136_v13, %s10561_s16 }
 0x8b5   : > { %3300 = vrot.lane.b32.xlu0 %v11132_v47, %s10561_s16 }
 0x8b9   : > { %3351 = vrot.lane.b32.xlu0 %v11127_v9, %s10561_s16  ;;  %v11635_v62 = vpop.eup %10211 }
 0x8ba   : > { %v3038_v23 = vsel %vm2000_vm3, %v11635_v62, 0.0 }
 0x8c8   : > { %3039 = vadd.xlane.f32.xlu1 %v3038_v23 }
 0x8d9   : > { %3353 = vrot.lane.b32.xlu1 %v11150_v38, %s10561_s16 }
 0x8dd   : > { %3404 = vrot.lane.b32.xlu1 %v11146_v30, %s10561_s16 }
 0x8e1   : > { %3402 = vrot.lane.b32.xlu1 %v11125_v33, %s10561_s16 }
 0x8e4   : > { %v3019_v12 = vpop.xlane.xlu0 %3018 }
 0x8e5   : > { %10213 = vrcp.f32 %v3019_v12 }
 0x8e6   : > { %v3022_v5 = vpop.xlane.xlu1 %3021 }
 0x8e7   : > { %10215 = vrcp.f32 %v3022_v5 }
 0x8ef   : > { %v10214_v1 = vpop.eup %10213 }
 0x8f0   : > { %v3049_v54 = vmul.f32 %v10214_v1, %v11605_v52 }
 0x8f1   : > { %v10216_v20 = vpop.eup %10215 }
 0x8f2   : > { %v3050_v7 = vmul.f32 %v10216_v20, %v11609_v36 }
 0x8f4   : > { %v3057_v3 = vpack.c.bf16 %v3050_v7, %v3049_v54 }
 0x8f6   : > { %9342 = vmatmul.mubr.msk.bf16.vlgmr.msra.gmra.mrb[64].mxu0 %vm2000_vm3, %v3057_v3 }
 0x8f7   : > { %9352 = vmatpush3.bf16.msra.mxu0 %v3156_v24  ;;  %9353 = vmatprep.mubr.msk.bf16.mxu0 %vm10558_vm1, %v13203_v11 }
 0x8f8   : > { %9363 = vmatprep.subr.bf16.mxu0 %v13203_v11 }
 0x918   : > { %v3025_v30 = vpop.xlane.xlu0 %3024 }
 0x919   : > { %10217 = vrcp.f32 %v3025_v30 }
 0x91c   : > { %v3028_v38 = vpop.xlane.xlu1 %3027 }
 0x91d   : > { %10219 = vrcp.f32 %v3028_v38 }
 0x920   : > { %v3031_v27 = vpop.xlane.xlu0 %3030  ;;  %v3034_v61 = vpop.xlane.xlu1 %3033 }
 0x921   : > { %10221 = vrcp.f32 %v3031_v27 }
 0x922   : > { %10223 = vrcp.f32 %v3034_v61 }
 0x923   : > { %v10218_v52 = vpop.eup %10217 }
 0x924   : > { %v3051_v36 = vmul.f32 %v10218_v52, %v10202_v15  ;;  %v3037_v37 = vpop.xlane.xlu0 %3036 }
 0x925   : > { %10225 = vrcp.f32 %v3037_v37 }
 0x927   : > { %v10220_v29 = vpop.eup %10219 }
 0x928   : > { %v3052_v18 = vmul.f32 %v10220_v29, %v10204_v10  ;;  %v3252_v23 = vpop.permute.xlu0 %3251  ;;  %v3303_v10 = vpop.permute.xlu1 %3302 }
 0x929   : > { %v3257_v5 = vsel %vm1811_vm2, %v3252_v23, 0  ;;  %v3308_v27 = vsel %vm1811_vm2, %v3303_v10, 0  ;;  %v8879_v10 = vld [vmem:[%s13075_s11 + $0x60] sm:$0xff]  }
 0x92a   : > { %v3058_v31 = vpack.c.bf16 %v3052_v18, %v3051_v36 }
 0x92b   : > { %v10222_v24 = vpop.eup %10221 }
 0x92c   : > { %v10224_v21 = vpop.eup %10223  ;;  %v3053_v0 = vmul.f32 %v10222_v24, %v10208_v60  ;;  %9348 = vmatmul.mubr.msk.bf16.vlgmr.msra.gmra.mrb[72].mxu1 %vm2000_vm3, %v3058_v31  ;;  %v11660_v15 = vpop.permute.xlu0 %3249 }
 0x92d   : > { %v3054_v19 = vmul.f32 %v10224_v21, %v10206_v53  ;;  %9358 = vmatpush3.bf16.msra.mxu1 %v3203_v32  ;;  %9359 = vmatprep.mubr.msk.bf16.mxu1 %vm10558_vm1, %v13203_v11  ;;  %13216 = vst [vmem:[#allocation46_spill] sm:$0xff] %v11660_v15 }
 0x92e   : > { %9369 = vmatprep.subr.bf16.mxu1 %v13203_v11 }
 0x92f   : > { %v3059_v12 = vpack.c.bf16 %v3054_v19, %v3053_v0  ;;  %v10226_v20 = vpop.eup %10225 }
 0x930   : > { %v11667_v1 = vpop.permute.xlu0 %3300  ;;  %v3055_v7 = vmul.f32 %v10226_v20, %v11620_v6  ;;  %v11718_v20 = vunpack.c.h.bf16 %v8879_v10 }
 0x931   : > { %9354 = vmatmul.mubr.msk.bf16.vlgmr.msra.gmra.mrb[68].mxu0 %vm2000_vm3, %v3059_v12  ;;  %13217 = vst [vmem:[#allocation47_spill] sm:$0xff] %v11667_v1 }
 0x932   : > { %9364 = vmatpush3.bf16.xpose.msra.mxu0 %v3257_v5  ;;  %9365 = vmatprep.mubr.msk.bf16.mxu0 %vm10558_vm1, %v13203_v11  ;;  %13221 = vst [vmem:[#allocation51_spill] sm:$0xff] %v11718_v20 }
 0x933   : > { %9375 = vmatprep.subr.bf16.mxu0 %v13203_v11 }
 0x934   : > { %v11671_v3 = vpop.permute.xlu0 %3351 }
 0x935   : > { %13218 = vst [vmem:[#allocation48_spill] sm:$0xff] %v11671_v3 }
 0x939   : > { %9366 = vmatmul.mubr.msk.bf16.vlgmr.msra.gmra.mrb[72].mxu0 %vm1811_vm2, %v11660_v15 }
 0x93a   : > { %9377 = vmatprep.mubr.msk.bf16.mxu0 %vm10558_vm1, %v13203_v11 }
 0x955   : > { %v3040_v53 = vpop.xlane.xlu1 %3039 }
 0x956   : > { %10227 = vrcp.f32 %v3040_v53 }
 0x959   : > { %v3354_v60 = vpop.permute.xlu1 %3353 }
 0x95a   : > { %v3359_v32 = vsel %vm1811_vm2, %v3354_v60, 0 }
 0x95b   : > { %9376 = vmatpush3.bf16.xpose.msra.mxu0 %v3359_v32  ;;  %v11716_v32 = vunpack.c.l.bf16 %v8879_v10 }
 0x95c   : > { %9387 = vmatprep.subr.bf16.mxu0 %v13203_v11 }
 0x95d   : > { %v3405_v6 = vpop.permute.xlu1 %3404  ;;  %13220 = vst [vmem:[#allocation50_spill] sm:$0xff] %v11716_v32 }
 0x960   : > { %v10228_v54 = vpop.eup %10227 }
 0x961   : > { %v3056_v30 = vmul.f32 %v10228_v54, %v11635_v62  ;;  %v3410_v62 = vsel %vm1811_vm2, %v3405_v6, 0  ;;  %v11689_v61 = vpop.permute.xlu1 %3402 }
 0x962   : > { %9378 = vmatmul.mubr.msk.bf16.vlgmr.msra.gmra.mrb[76].mxu0 %vm1811_vm2, %v11671_v3  ;;  %13219 = vst [vmem:[#allocation49_spill] sm:$0xff] %v11689_v61 }
 0x963   : > { %v3060_v38 = vpack.c.bf16 %v3056_v30, %v3055_v7  ;;  %9389 = vmatprep.mubr.msk.bf16.mxu0 %vm10558_vm1, %v13203_v11 }
 0x965   : > { %9360 = vmatmul.mubr.msk.bf16.vlgmr.msra.gmra.mrb[76].mxu1 %vm2000_vm3, %v3060_v38 }
 0x966   : > { %9370 = vmatpush3.bf16.xpose.msra.mxu1 %v3308_v27  ;;  %9371 = vmatprep.mubr.msk.bf16.mxu1 %vm10558_vm1, %v13203_v11 }
 0x967   : > { %9381 = vmatprep.subr.bf16.mxu1 %v13203_v11 }
 0x96d   : > { %9372 = vmatmul.mubr.msk.bf16.vlgmr.msra.gmra.mrb[80].mxu1 %vm1811_vm2, %v11667_v1 }
 0x96e   : > { %9382 = vmatpush3.bf16.xpose.msra.mxu1 %v3410_v62  ;;  %9383 = vmatprep.mubr.msk.bf16.mxu1 %vm10558_vm1, %v13203_v11 }
 0x96f   : > { %9393 = vmatprep.subr.bf16.mxu1 %v13203_v11 }
 0x975   : > { %9384 = vmatmul.mubr.msk.bf16.vlgmr.msra.gmra.mrb[84].mxu1 %vm1811_vm2, %v11689_v61 }
 0x976   : > { %9395 = vmatprep.mubr.msk.bf16.mxu1 %vm10558_vm1, %v13203_v11 }
 0x9c9   : > { %v11695_v52 = vpop.f32.mrb[64].mxu0 }
 0x9ca   : > { %v9343_v29 = vpop.f32.mrb[65].mxu0 }
 0x9cb   : > { %v11697_v36 = vpop.f32.mrb[66].mxu0 }
 0x9cc   : > { %v9344_v37 = vpop.f32.mrb[67].mxu0 }
 0x9cd   : > { %v8881_v37 = vld [vmem:[%s13075_s11 + $0x70] sm:$0xff]  }
 0x9ff   : > { %v11701_v31 = vpop.f32.mrb[72].mxu1 }
 0xa00   : > { %v9349_v24 = vpop.f32.mrb[73].mxu1 }
 0xa01   : > { %v11703_v21 = vpop.f32.mrb[74].mxu1  ;;  %v11727_v24 = vunpack.c.h.bf16 %v8881_v37 }
 0xa02   : > { %v9350_v19 = vpop.f32.mrb[75].mxu1 }
 0xa03   : > { %13222 = vst [vmem:[#allocation52_spill] sm:$0xff] %v11727_v24 }
 0xa04   : > { %v11707_v23 = vpop.f32.mrb[68].mxu0 }
 0xa05   : > { %v9355_v12 = vpop.f32.mrb[69].mxu0 }
 0xa06   : > { %v11709_v5 = vpop.f32.mrb[70].mxu0 }
 0xa07   : > { %v9356_v60 = vpop.f32.mrb[71].mxu0 }
 0xa0c   : > { %v3293_v54 = vpop.f32.mrb[72].mxu0 }
 0xa0d   : > { %v3294_v7 = vadd.f32 %v11716_v32, %v3293_v54  ;;  %v9367_v30 = vpop.f32.mrb[73].mxu0 }
 0xa0e   : > { %v3296_v38 = vpop.f32.mrb[74].mxu0 }
 0xa0f   : > { %v3297_v27 = vadd.f32 %v11718_v20, %v3296_v38  ;;  %v9368_v6 = vpop.f32.mrb[75].mxu0  ;;  %v3453_v62 = vsel %vm2000_vm3, %v3294_v7, -inf  ;;  %v11745_v20 = vunpack.c.l.bf16 %v8881_v37 }
 0xa10   : > { %3454 = vmax.xlane.f32.xlu0 %v3453_v62 }
 0xa11   : > { %v3456_v29 = vsel %vm2000_vm3, %v3297_v27, -inf  ;;  %13225 = vst [vmem:[#allocation55_spill] sm:$0xff] %v11745_v20 }
 0xa12   : > { %3457 = vmax.xlane.f32.xlu1 %v3456_v29  ;;  %v8880_v29 = vld [vmem:[%s13075_s11 + $0x68] sm:$0xff]  }
 0xa13   : > { %v11740_v0 = vunpack.c.l.bf16 %v8880_v29 }
 0xa15   : > { %13223 = vst [vmem:[#allocation53_spill] sm:$0xff] %v11740_v0 }
 0xa35   : > { %v3395_v19 = vpop.f32.mrb[76].mxu0 }
 0xa36   : > { %v9379_v12 = vpop.f32.mrb[77].mxu0 }
 0xa37   : > { %v3398_v10 = vpop.f32.mrb[78].mxu0 }
 0xa38   : > { %v3399_v60 = vadd.f32 %v11727_v24, %v3398_v10  ;;  %v11730_v54 = vpop.f32.mrb[76].mxu1  ;;  %v9380_v30 = vpop.f32.mrb[79].mxu0  ;;  %v11742_v10 = vunpack.c.h.bf16 %v8880_v29  ;;  %v3396_v29 = vadd.f32 %v11745_v20, %v3395_v19 }
 0xa39   : > { %v9361_v38 = vpop.f32.mrb[77].mxu1 }
 0xa3a   : > { %v11732_v6 = vpop.f32.mrb[78].mxu1  ;;  %v3468_v62 = vsel %vm2000_vm3, %v3399_v60, -inf  ;;  %13224 = vst [vmem:[#allocation54_spill] sm:$0xff] %v11742_v10 }
 0xa3b   : > { %3469 = vmax.xlane.f32.xlu1 %v3468_v62  ;;  %v9362_v12 = vpop.f32.mrb[79].mxu1  ;;  %v8882_v62 = vld [vmem:[%s13075_s11 + $0x78] sm:$0xff]  }
 0xa3c   : > { %v11754_v53 = vunpack.c.l.bf16 %v8882_v62 }
 0xa3e   : > { %13226 = vst [vmem:[#allocation56_spill] sm:$0xff] %v11754_v53 }
 0xa40   : > { %v3344_v18 = vpop.f32.mrb[80].mxu1 }
 0xa41   : > { %v3345_v30 = vadd.f32 %v11740_v0, %v3344_v18  ;;  %v9373_v38 = vpop.f32.mrb[81].mxu1  ;;  %v11756_v18 = vunpack.c.h.bf16 %v8882_v62  ;;  %v3465_v0 = vsel %vm2000_vm3, %v3396_v29, -inf }
 0xa42   : > { %v3347_v24 = vpop.f32.mrb[82].mxu1 }
 0xa43   : > { %v3348_v32 = vadd.f32 %v11742_v10, %v3347_v24  ;;  %v9374_v3 = vpop.f32.mrb[83].mxu1  ;;  %v3459_v15 = vsel %vm2000_vm3, %v3345_v30, -inf  ;;  %13227 = vst [vmem:[#allocation57_spill] sm:$0xff] %v11756_v18 }
 0xa44   : > { %3460 = vmax.xlane.f32.xlu0 %v3459_v15 }
 0xa45   : > { %v3462_v12 = vsel %vm2000_vm3, %v3348_v32, -inf }
 0xa48   : > { %3463 = vmax.xlane.f32.xlu0 %v3462_v12  ;;  %v3446_v37 = vpop.f32.mrb[84].mxu1 }
 0xa49   : > { %v9385_v38 = vpop.f32.mrb[85].mxu1  ;;  %v3447_v3 = vadd.f32 %v11754_v53, %v3446_v37 }
 0xa4a   : > { %v3449_v24 = vpop.f32.mrb[86].mxu1 }
 0xa4b   : > { %v11760_v15 = vadd.f32 %v11756_v18, %v3449_v24  ;;  %v9386_v10 = vpop.f32.mrb[87].mxu1  ;;  %v3471_v62 = vsel %vm2000_vm3, %v3447_v3, -inf }
 0xa4c   : > { %3466 = vmax.xlane.f32.xlu0 %v3465_v0 }
 0xa4d   : > { %v3474_v19 = vsel %vm2000_vm3, %v11760_v15, -inf }
 0xa4e   : > { %3475 = vmax.xlane.f32.xlu1 %v3474_v19 }
 0xa50   : > { %3472 = vmax.xlane.f32.xlu0 %v3471_v62 }
 0xa9d   : > { %v3455_v12 = vpop.xlane.xlu0 %3454 }
 0xa9e   : > { %v3477_v20 = vsub.f32 %v3294_v7, %v3455_v12 }
 0xa9f   : > { %v3458_v38 = vpop.xlane.xlu1 %3457 }
 0xaa0   : > { %v3485_v61 = vmul.f32 1.442695, %v3477_v20  ;;  %v3478_v1 = vsub.f32 %v3297_v27, %v3458_v38 }
 0xaa2   : > { %10229 = vpow2.f32 %v3485_v61  ;;  %v3487_v37 = vmul.f32 1.442695, %v3478_v1 }
 0xaa4   : > { %10231 = vpow2.f32 %v3487_v37 }
 0xaac   : > { %v11766_v24 = vpop.eup %10229 }
 0xaad   : > { %v3501_v0 = vsel %vm2000_vm3, %v11766_v24, 0.0 }
 0xaae   : > { %v11770_v10 = vpop.eup %10231  ;;  %3502 = vadd.xlane.f32.xlu0 %v3501_v0 }
 0xaaf   : > { %v3504_v19 = vsel %vm2000_vm3, %v11770_v10, 0.0 }
 0xab0   : > { %3505 = vadd.xlane.f32.xlu1 %v3504_v19 }
 0xac8   : > { %v3470_v62 = vpop.xlane.xlu1 %3469 }
 0xac9   : > { %v3482_v20 = vsub.f32 %v3399_v60, %v3470_v62 }
 0xacb   : > { %v3495_v38 = vmul.f32 1.442695, %v3482_v20 }
 0xad1   : > { %v3461_v7 = vpop.xlane.xlu0 %3460 }
 0xad2   : > { %v3479_v12 = vsub.f32 %v3345_v30, %v3461_v7 }
 0xad4   : > { %v3489_v27 = vmul.f32 1.442695, %v3479_v12 }
 0xad5   : > { %v3464_v61 = vpop.xlane.xlu0 %3463 }
 0xad6   : > { %10233 = vpow2.f32 %v3489_v27  ;;  %v3480_v1 = vsub.f32 %v3348_v32, %v3464_v61 }
 0xad8   : > { %v3491_v37 = vmul.f32 1.442695, %v3480_v1 }
 0xad9   : > { %v3467_v53 = vpop.xlane.xlu0 %3466 }
 0xada   : > { %10235 = vpow2.f32 %v3491_v37  ;;  %v3481_v18 = vsub.f32 %v3396_v29, %v3467_v53  ;;  %v13228_v29 = vpack.i.bf16 %v11525_v39, %v11523_v56  ;;  %v13231_v39 = vpack.i.bf16 %v11531_v55, %v11529_v4 }
 0xadb   : > { %10237 = vpow2.f32 %v3495_v38 }
 0xadc   : > { %v3493_v25 = vmul.f32 1.442695, %v3481_v18  ;;  %v3476_v18 = vpop.xlane.xlu1 %3475 }
 0xadd   : > { %v3473_v0 = vpop.xlane.xlu0 %3472 }
 0xade   : > { %10239 = vpow2.f32 %v3493_v25  ;;  %v3483_v9 = vsub.f32 %v3447_v3, %v3473_v0  ;;  %v13229_v3 = vpack.i.bf16 %v11697_v36, %v11695_v52  ;;  %v13232_v52 = vpack.i.bf16 %v11703_v21, %v11701_v31 }
 0xae0   : > { %v10234_v16 = vpop.eup %10233  ;;  %v3497_v19 = vmul.f32 1.442695, %v3483_v9 }
 0xae1   : > { %v3507_v14 = vsel %vm2000_vm3, %v10234_v16, 0.0 }
 0xae2   : > { %10241 = vpow2.f32 %v3497_v19  ;;  %3508 = vadd.xlane.f32.xlu0 %v3507_v14 }
 0xae4   : > { %v10236_v60 = vpop.eup %10235 }
 0xae5   : > { %v3510_v30 = vsel %vm2000_vm3, %v10236_v60, 0.0  ;;  %v11776_v32 = vpop.eup %10237 }
 0xae6   : > { %3511 = vadd.xlane.f32.xlu1 %v3510_v30  ;;  %v3516_v25 = vsel %vm2000_vm3, %v11776_v32, 0.0 }
 0xae8   : > { %v11778_v62 = vpop.eup %10239 }
 0xae9   : > { %v3513_v53 = vsel %vm2000_vm3, %v11778_v62, 0.0 }
 0xaea   : > { %3514 = vadd.xlane.f32.xlu0 %v3513_v53  ;;  %3517 = vadd.xlane.f32.xlu1 %v3516_v25 }
 0xaec   : > { %v11784_v9 = vpop.eup %10241 }
 0xaed   : > { %v3519_v14 = vsel %vm2000_vm3, %v11784_v9, 0.0 }
 0xaee   : > { %3520 = vadd.xlane.f32.xlu0 %v3519_v14 }
 0xafb   : > { %3592 = vrot.lane.b32.xlu1 %v11148_v35, %s10561_s16  ;;  %v3484_v35 = vsub.f32 %v11760_v15, %v3476_v18 }
 0xaff   : > { %3639 = vrot.lane.b32.xlu1 %v11166_v49, %s10561_s16  ;;  %v13230_v49 = vpack.i.bf16 %v11537_v41, %v11535_v22  ;;  %v13233_v22 = vpack.i.bf16 %v11562_v57, %v11560_v44 }
 0xb04   : > { %3545 = vrot.lane.b32.xlu0 %v11152_v42, %s10561_s16  ;;  %v3499_v42 = vmul.f32 1.442695, %v3484_v35 }
 0xb06   : > { %10243 = vpow2.f32 %v3499_v42  ;;  %v10079_v42 = vld [vmem:[%s13073_s9] sm:$0xff]  }
 0xb08   : > { %9886 = vrot.lane.b32.xlu0 %v13228_v29, %s10562_s18 }
 0xb0c   : > { %9896 = vrot.lane.b32.xlu0 %v13229_v3, %s10563_s19 }
 0xb10   : > { %9906 = vrot.lane.b32.xlu0 %v13230_v49, %s10562_s18  ;;  %v10244_v7 = vpop.eup %10243  ;;  %v4044_v49 = vsel %vm1811_vm2, %v11193_v2, 0 }
 0xb11   : > { %v3522_v56 = vsel %vm2000_vm3, %v10244_v7, 0.0 }
 0xb23   : > { %3523 = vadd.xlane.f32.xlu1 %v3522_v56 }
 0xb34   : > { %3686 = vrot.lane.b32.xlu1 %v11164_v48, %s10561_s16 }
 0xb38   : > { %9891 = vrot.lane.b32.xlu1 %v13231_v39, %s10562_s18 }
 0xb3b   : > { %v3503_v41 = vpop.xlane.xlu0 %3502 }
 0xb3c   : > { %9901 = vrot.lane.b32.xlu1 %v13232_v52, %s10563_s19 }
 0xb3d   : > { %v3506_v36 = vpop.xlane.xlu1 %3505 }
 0xb3e   : > { %10245 = vrcp.f32 %v3506_v36 }
 0xb3f   : > { %10247 = vrcp.f32 %v3503_v41 }
 0xb40   : > { %9911 = vrot.lane.b32.xlu1 %v13233_v22, %s10562_s18 }
 0xb48   : > { %v10246_v12 = vpop.eup %10245 }
 0xb49   : > { %v10248_v31 = vpop.eup %10247  ;;  %v3534_v44 = vmul.f32 %v10246_v12, %v11770_v10 }
 0xb4a   : > { %v3533_v61 = vmul.f32 %v10248_v31, %v11766_v24  ;;  %v13234_v31 = vpack.i.bf16 %v11709_v5, %v11707_v23 }
 0xb4c   : > { %v3541_v0 = vpack.c.bf16 %v3534_v44, %v3533_v61 }
 0xb6f   : > { %v3509_v15 = vpop.xlane.xlu0 %3508 }
 0xb70   : > { %10249 = vrcp.f32 %v3509_v15 }
 0xb73   : > { %v3512_v48 = vpop.xlane.xlu1 %3511 }
 0xb74   : > { %10251 = vrcp.f32 %v3512_v48 }
 0xb77   : > { %v3515_v4 = vpop.xlane.xlu0 %3514  ;;  %v3518_v55 = vpop.xlane.xlu1 %3517 }
 0xb78   : > { %10253 = vrcp.f32 %v3515_v4 }
 0xb79   : > { %10255 = vrcp.f32 %v3518_v55 }
 0xb7a   : > { %v10250_v27 = vpop.eup %10249 }
 0xb7b   : > { %v3521_v21 = vpop.xlane.xlu0 %3520  ;;  %v3593_v20 = vpop.permute.xlu1 %3592  ;;  %v3535_v1 = vmul.f32 %v10250_v27, %v10234_v16 }
 0xb7c   : > { %9394 = vmatpush3.bf16.msra.mxu1 %v3593_v20  ;;  %10257 = vrcp.f32 %v3521_v21  ;;  %v13235_v20 = vpack.i.bf16 %v11732_v6, %v11730_v54 }
 0xb7d   : > { %9405 = vmatprep.subr.bf16.mxu1 %v13203_v11 }
 0xb7e   : > { %v10252_v57 = vpop.eup %10251 }
 0xb7f   : > { %v3536_v38 = vmul.f32 %v10252_v57, %v10236_v60  ;;  %v3546_v37 = vpop.permute.xlu0 %3545  ;;  %v3640_v25 = vpop.permute.xlu1 %3639 }
 0xb80   : > { %9388 = vmatpush3.bf16.msra.mxu0 %v3546_v37 }
 0xb81   : > { %9399 = vmatprep.subr.bf16.mxu0 %v13203_v11  ;;  %v3542_v19 = vpack.c.bf16 %v3536_v38, %v3535_v1 }
 0xb82   : > { %v10254_v30 = vpop.eup %10253 }
 0xb83   : > { %v10256_v53 = vpop.eup %10255  ;;  %9390 = vmatmul.mubr.msk.bf16.vlgmr.msra.gmra.mrb[80].mxu0 %vm2000_vm3, %v3541_v0  ;;  %9396 = vmatmul.mubr.msk.bf16.vlgmr.msra.gmra.mrb[88].mxu1 %vm2000_vm3, %v3542_v19  ;;  %v3537_v16 = vmul.f32 %v10254_v30, %v11778_v62 }
 0xb84   : > { %9400 = vmatpush3.bf16.msra.mxu0 %v3640_v25  ;;  %9401 = vmatprep.mubr.msk.bf16.mxu0 %vm10558_vm1, %v13203_v11  ;;  %v3538_v24 = vmul.f32 %v10256_v53, %v11776_v32  ;;  %v4000_v32 = vsel %vm1811_vm2, %v11197_v34, 0 }
 0xb85   : > { %9407 = vmatprep.mubr.msk.bf16.mxu1 %vm10558_vm1, %v13203_v11  ;;  %9411 = vmatprep.subr.bf16.mxu0 %v10079_v42 }
 0xb86   : > { %v3543_v10 = vpack.c.bf16 %v3538_v24, %v3537_v16  ;;  %v10258_v29 = vpop.eup %10257 }
 0xb87   : > { %v3539_v3 = vmul.f32 %v10258_v29, %v11784_v9  ;;  %v4132_v9 = vsel %vm1811_vm2, %v11201_v26, 0 }
 0xb8b   : > { %9402 = vmatmul.mubr.msk.bf16.vlgmr.msra.gmra.mrb[84].mxu0 %vm2000_vm3, %v3543_v10 }
 0xb8c   : > { %9412 = vmatpush3.bf16.msra.mxu0 %v10079_v42 }
 0xbb0   : > { %v3524_v60 = vpop.xlane.xlu1 %3523 }
 0xbb1   : > { %10259 = vrcp.f32 %v3524_v60 }
 0xbb4   : > { %v3687_v14 = vpop.permute.xlu1 %3686 }
 0xbb5   : > { %9406 = vmatpush3.bf16.msra.mxu1 %v3687_v14 }
 0xbb6   : > { %9423 = vmatprep.subr.bf16.mxu1 %v13203_v11 }
 0xbb8   : > { %v9892_v42 = vpop.permute.xlu1 %9891 }
 0xbbb   : > { %v10260_v18 = vpop.eup %10259 }
 0xbbc   : > { %v3540_v62 = vmul.f32 %v10260_v18, %v10244_v7  ;;  %v10080_v7 = vld [vmem:[%s13073_s9 + $0x8] sm:$0xff]  }
 0xbbd   : > { %9413 = vmatprep.subr.bf16.mxu0 %v10080_v7 }
 0xbbe   : > { %v3544_v35 = vpack.c.bf16 %v3540_v62, %v3539_v3  ;;  %9414 = vmatpush3.bf16.msra.mxu0 %v10080_v7 }
 0xbbf   : > { %9435 = vmatprep.subr.bf16.mxu0 %v13203_v11 }
 0xbc0   : > { %9408 = vmatmul.mubr.msk.bf16.vlgmr.msra.gmra.mrb[92].mxu1 %vm2000_vm3, %v3544_v35 }
 0xbc1   : > { %9424 = vmatpush3.bf16.xpose.msra.mxu1 %v4000_v32  ;;  %9425 = vmatprep.mubr.msk.bf16.mxu1 %vm10558_vm1, %v13203_v11 }
 0xbc2   : > { %9429 = vmatprep.subr.bf16.mxu1 %v13203_v11 }
 0xbc8   : > { %9426 = vmatmul.mubr.msk.bf16.vlgmr.msra.gmra.mrb[96].mxu1 %vm1811_vm2, %v11136_v13 }
 0xbc9   : > { %9430 = vmatpush3.bf16.xpose.msra.mxu1 %v4044_v49  ;;  %9431 = vmatprep.mubr.msk.bf16.mxu1 %vm10558_vm1, %v13203_v11 }
 0xbca   : > { %9441 = vmatprep.subr.bf16.mxu1 %v13203_v11 }
 0xbd0   : > { %9432 = vmatmul.mubr.msk.bf16.vlgmr.msra.gmra.mrb[100].mxu1 %vm1811_vm2, %v11132_v47 }
 0xbd1   : > { %9442 = vmatpush3.bf16.xpose.msra.mxu1 %v4132_v9  ;;  %9443 = vmatprep.mubr.msk.bf16.mxu1 %vm10558_vm1, %v13203_v11  ;;  %v9887_v9 = vpop.permute.xlu0 %9886 }
 0xbd2   : > { %9453 = vmatprep.subr.bf16.mxu1 %v13203_v11 }
 0xbd5   : > { %v9897_v7 = vpop.permute.xlu0 %9896 }
 0xbd8   : > { %9444 = vmatmul.mubr.msk.bf16.vlgmr.msra.gmra.mrb[104].mxu1 %vm1811_vm2, %v11125_v33 }
 0xbd9   : > { %9454 = vmatpush3.bf16.msra.mxu1 %v11195_v58  ;;  %9455 = vmatprep.mubr.msk.bf16.mxu1 %vm10558_vm1, %v13203_v11 }
 0xbda   : > { %9465 = vmatprep.subr.bf16.mxu1 %v13203_v11 }
 0xc56   : > { %v3585_v56 = vpop.f32.mrb[80].mxu0  ;;  %v3632_v39 = vpop.f32.mrb[88].mxu1 }
 0xc57   : > { %v9391_v52 = vpop.f32.mrb[81].mxu0  ;;  %v9397_v22 = vpop.f32.mrb[89].mxu1 }
 0xc58   : > { %v3588_v41 = vpop.f32.mrb[82].mxu0  ;;  %v3635_v36 = vpop.f32.mrb[90].mxu1  ;;  %v9888_v52 = vunpack.i.l.bf16 %v9887_v9 }
 0xc59   : > { %v9915_v15 = vpack.i.bf16 %v3588_v41, %v3585_v56  ;;  %v9925_v48 = vpack.i.bf16 %v3635_v36, %v3632_v39  ;;  %v9392_v4 = vpop.f32.mrb[83].mxu0  ;;  %v9398_v55 = vpop.f32.mrb[91].mxu1  ;;  %v9889_v39 = vunpack.i.h.bf16 %v9887_v9  ;;  %v9894_v41 = vunpack.i.h.bf16 %v9892_v42 }
 0xc5a   : > { %v9902_v56 = vpop.permute.xlu1 %9901  ;;  %v9907_v22 = vpop.permute.xlu0 %9906  ;;  %v9893_v36 = vunpack.i.l.bf16 %v9892_v42  ;;  %v9898_v4 = vunpack.i.l.bf16 %v9897_v7 }
 0xc5b   : > { %9916 = vrot.lane.b32.xlu0 %v9915_v15, %s10564_s17  ;;  %9926 = vrot.lane.b32.xlu1 %v9925_v48, %s10564_s17  ;;  %v9899_v48 = vunpack.i.h.bf16 %v9897_v7  ;;  %v9904_v55 = vunpack.i.h.bf16 %v9902_v56 }
 0xc5e   : > { %v3679_v12 = vpop.f32.mrb[84].mxu0  ;;  %v9912_v15 = vpop.permute.xlu1 %9911 }
 0xc5f   : > { %9921 = vrot.lane.b32.xlu0 %v13234_v31, %s10563_s19  ;;  %v9403_v21 = vpop.f32.mrb[85].mxu0  ;;  %9931 = vrot.lane.b32.xlu1 %v13235_v20, %s10563_s19  ;;  %v3830_v31 = vsel %vm1811_vm2, %v11361_v51, %v9889_v39  ;;  %v3832_v20 = vsel %vm1811_vm2, %v11365_v63, %v9894_v41 }
 0xc60   : > { %v3682_v27 = vpop.f32.mrb[86].mxu0  ;;  %v3829_v21 = vsel %vm1811_vm2, %v11359_v40, %v9888_v52  ;;  %v3838_v51 = vsel %vm2000_vm3, %v3830_v31, %v9899_v48  ;;  %v3840_v40 = vsel %vm2000_vm3, %v3832_v20, %v9904_v55  ;;  %v13236_v55 = vld [vmem:[#allocation28_spill] sm:$0xff]  ;;  %v13237_v31 = vld [vmem:[#allocation27_spill] sm:$0xff] }
 0xc61   : > { %v9935_v44 = vpack.i.bf16 %v3682_v27, %v3679_v12  ;;  %v9404_v57 = vpop.f32.mrb[87].mxu0  ;;  %v9903_v12 = vunpack.i.l.bf16 %v9902_v56  ;;  %v3831_v27 = vsel %vm1811_vm2, %v11363_v43, %v9893_v36  ;;  %v9913_v36 = vunpack.i.l.bf16 %v9912_v15 }
 0xc63   : > { %9936 = vrot.lane.b32.xlu0 %v9935_v44, %s10564_s17 }
 0xc93   : > { %v3726_v61 = vpop.f32.mrb[92].mxu1 }
 0xc94   : > { %v9409_v1 = vpop.f32.mrb[93].mxu1 }
 0xc95   : > { %v3729_v38 = vpop.f32.mrb[94].mxu1 }
 0xc96   : > { %v9940_v37 = vpack.i.bf16 %v3729_v38, %v3726_v61  ;;  %v9410_v0 = vpop.f32.mrb[95].mxu1 }
 0xc97   : > { %v3837_v0 = vsel %vm2000_vm3, %v3829_v21, %v9898_v4  ;;  %v3835_v21 = vsel %vm1811_vm2, %v13237_v31, %v9913_v36 }
 0xc98   : > { %9941 = vrot.lane.b32.xlu1 %v9940_v37, %s10564_s17 }
 0xc9b   : > { %v4036_v23 = vpop.f32.mrb[96].mxu1 }
 0xc9c   : > { %v11883_v5 = vadd.f32 %v11234_v45, %v4036_v23  ;;  %v9427_v19 = vpop.f32.mrb[97].mxu1  ;;  %v3839_v23 = vsel %vm2000_vm3, %v3831_v27, %v9903_v12 }
 0xc9d   : > { %v4039_v30 = vpop.f32.mrb[98].mxu1 }
 0xc9e   : > { %v9428_v54 = vpop.f32.mrb[99].mxu1  ;;  %v4175_v6 = vsel %vm2000_vm3, %v11883_v5, -inf  ;;  %v11902_v32 = vadd.f32 %v11236_v28, %v4039_v30 }
 0xc9f   : > { %4176 = vmax.xlane.f32.xlu0 %v4175_v6 }
 0xca0   : > { %v4178_v49 = vsel %vm2000_vm3, %v11902_v32, -inf }
 0xca3   : > { %v4080_v53 = vpop.f32.mrb[100].mxu1 }
 0xca4   : > { %v11888_v25 = vadd.f32 %v11248_v8, %v4080_v53  ;;  %v9433_v16 = vpop.f32.mrb[101].mxu1 }
 0xca5   : > { %v4083_v24 = vpop.f32.mrb[102].mxu1  ;;  %v9909_v16 = vunpack.i.h.bf16 %v9907_v22 }
 0xca6   : > { %v11891_v10 = vadd.f32 %v11252_v17, %v4083_v24  ;;  %v9434_v60 = vpop.f32.mrb[103].mxu1  ;;  %v4181_v14 = vsel %vm2000_vm3, %v11888_v25, -inf  ;;  %v9908_v24 = vunpack.i.l.bf16 %v9907_v22 }
 0xca7   : > { %4182 = vmax.xlane.f32.xlu0 %v4181_v14 }
 0xca8   : > { %v4184_v29 = vsel %vm2000_vm3, %v11891_v10, -inf }
 0xcab   : > { %4185 = vmax.xlane.f32.xlu0 %v4184_v29  ;;  %v11897_v18 = vpop.f32.mrb[104].mxu1  ;;  %v4088_v29 = vsel %vm1811_vm2, %v11205_v50, 0 }
 0xcac   : > { %v9445_v3 = vpop.f32.mrb[105].mxu1 }
 0xcad   : > { %v11899_v62 = vpop.f32.mrb[106].mxu1 }
 0xcae   : > { %v9446_v35 = vpop.f32.mrb[107].mxu1 }
 0xcaf   : > { %v3834_v35 = vsel %vm1811_vm2, %v11369_v59, %v9909_v16  ;;  %v9914_v59 = vunpack.i.h.bf16 %v9912_v15 }
 0xcb1   : > { %v3836_v12 = vsel %vm1811_vm2, %v13236_v55, %v9914_v59 }
 0xcbc   : > { %4179 = vmax.xlane.f32.xlu1 %v4178_v49  ;;  %v3833_v49 = vsel %vm1811_vm2, %v11367_v46, %v9908_v24 }
 0xccd   : > { %v9917_v44 = vpop.permute.xlu0 %9916  ;;  %v9927_v57 = vpop.permute.xlu1 %9926 }
 0xcce   : > { %v9919_v61 = vunpack.i.h.bf16 %v9917_v44  ;;  %v9918_v1 = vunpack.i.l.bf16 %v9917_v44  ;;  %v9929_v38 = vunpack.i.h.bf16 %v9927_v57  ;;  %v9928_v37 = vunpack.i.l.bf16 %v9927_v57 }
 0xcd0   : > { %v3847_v63 = vsel %vm3845_vm4, %v3838_v51, %v9919_v61  ;;  %v3846_v19 = vsel %vm3845_vm4, %v3837_v0, %v9918_v1  ;;  %v3849_v43 = vsel %vm3845_vm4, %v3840_v40, %v9929_v38  ;;  %v3848_v30 = vsel %vm3845_vm4, %v3839_v23, %v9928_v37  ;;  %v13238_v38 = vld [vmem:[#allocation4_spill] sm:$0xff]  ;;  %v13239_v37 = vld [vmem:[#allocation5_spill] sm:$0xff] }
 0xcd1   : > { %v3860_v54 = vpack.c.bf16 %v3849_v43, %v3848_v30  ;;  %v9922_v6 = vpop.permute.xlu0 %9921  ;;  %v3859_v53 = vpack.c.bf16 %v3847_v63, %v3846_v19  ;;  %v9932_v41 = vpop.permute.xlu1 %9931  ;;  %v8580_v0 = vld [vmem:[%s13074_s10] ss:$0 sm:$0xff] }
 0xcd2   : > { %v9924_v60 = vunpack.i.h.bf16 %v9922_v6  ;;  %v9923_v14 = vunpack.i.l.bf16 %v9922_v6  ;;  %v9934_v48 = vunpack.i.h.bf16 %v9932_v41  ;;  %v9933_v46 = vunpack.i.l.bf16 %v9932_v41 }
 0xcd3   : > { %9415 = vmatprep.mubr.msk.bf16.mxu0 %vm607_vm0, %v3859_v53 }
 0xcd4   : > { %9416 = vmatmul.mubr.msk.bf16.vlgmr.msra.gmra.mrb[88].mxu0 %vm607_vm0, %v3860_v54  ;;  %v3842_v7 = vsel %vm2000_vm3, %v3834_v35, %v9924_v60  ;;  %v3841_v56 = vsel %vm2000_vm3, %v3833_v49, %v9923_v14  ;;  %v3844_v44 = vsel %vm2000_vm3, %v3836_v12, %v9934_v48  ;;  %v3843_v57 = vsel %vm2000_vm3, %v3835_v21, %v9933_v46  ;;  %v13240_v21 = vld [vmem:[#allocation16_spill] sm:$0xff] }
 0xcd5   : > { %9436 = vmatpush3.bf16.xpose.msra.mxu0 %v4088_v29  ;;  %v9937_v3 = vpop.permute.xlu0 %9936 }
 0xcd6   : > { %v9939_v9 = vunpack.i.h.bf16 %v9937_v3  ;;  %v9938_v42 = vunpack.i.l.bf16 %v9937_v3  ;;  %9447 = vmatprep.subr.bf16.mxu0 %v13203_v11 }
 0xcd8   : > { %v3851_v39 = vsel %vm3845_vm4, %v3842_v7, %v9939_v9  ;;  %v3850_v52 = vsel %vm3845_vm4, %v3841_v56, %v9938_v42 }
 0xcd9   : > { %v3861_v22 = vpack.c.bf16 %v3851_v39, %v3850_v52 }
 0xcdb   : > { %9419 = vmatprep.mubr.msk.bf16.mxu0 %vm607_vm0, %v3861_v22 }
 0xd0a   : > { %v9942_v4 = vpop.permute.xlu1 %9941 }
 0xd0b   : > { %v9944_v20 = vunpack.i.h.bf16 %v9942_v4  ;;  %v9943_v27 = vunpack.i.l.bf16 %v9942_v4 }
 0xd0d   : > { %v3853_v61 = vsel %vm3845_vm4, %v3844_v44, %v9944_v20  ;;  %v3852_v1 = vsel %vm3845_vm4, %v3843_v57, %v9943_v27  ;;  %v13241_v44 = vld [vmem:[#allocation18_spill] sm:$0xff] }
 0xd0e   : > { %v3862_v15 = vpack.c.bf16 %v3853_v61, %v3852_v1  ;;  %v4169_v57 = vadd.f32 %v13241_v44, %v11897_v18  ;;  %v13242_v61 = vld [vmem:[#allocation17_spill] sm:$0xff] }
 0xd10   : > { %9420 = vmatmul.mubr.msk.bf16.gmra.mrb[92].mxu0 %vm607_vm0, %v3862_v15 }
 0xd11   : > { %9437 = vmatprep.mubr.msk.bf16.mxu0 %vm10558_vm1, %v13203_v11 }
 0xd18   : > { %9438 = vmatmul.mubr.msk.bf16.vlgmr.msra.gmra.mrb[96].mxu0 %vm1811_vm2, %v13238_v38 }
 0xd19   : > { %9448 = vmatpush3.bf16.msra.mxu0 %v13239_v37  ;;  %9449 = vmatprep.mubr.msk.bf16.mxu0 %vm10558_vm1, %v13203_v11 }
 0xd1a   : > { %9459 = vmatprep.subr.bf16.mxu0 %v13203_v11 }
 0xd2c   : > { %v4177_v60 = vpop.xlane.xlu0 %4176 }
 0xd2d   : > { %v4199_v3 = vsub.f32 %v11883_v5, %v4177_v60 }
 0xd2f   : > { %v4207_v56 = vmul.f32 1.442695, %v4199_v3 }
 0xd31   : > { %10261 = vpow2.f32 %v4207_v56 }
 0xd34   : > { %v4183_v14 = vpop.xlane.xlu0 %4182 }
 0xd35   : > { %v4201_v39 = vsub.f32 %v11888_v25, %v4183_v14 }
 0xd37   : > { %v4211_v55 = vmul.f32 1.442695, %v4201_v39 }
 0xd38   : > { %v4186_v9 = vpop.xlane.xlu0 %4185 }
 0xd39   : > { %v4202_v5 = vsub.f32 %v11891_v10, %v4186_v9 }
 0xd3b   : > { %v4213_v12 = vmul.f32 1.442695, %v4202_v5 }
 0xd49   : > { %v4180_v29 = vpop.xlane.xlu1 %4179 }
 0xd4a   : > { %v4200_v35 = vsub.f32 %v11902_v32, %v4180_v29 }
 0xd4c   : > { %v4209_v48 = vmul.f32 1.442695, %v4200_v35 }
 0xd4e   : > { %10263 = vpow2.f32 %v4209_v48 }
 0xd4f   : > { %10265 = vpow2.f32 %v4211_v55 }
 0xd50   : > { %10267 = vpow2.f32 %v4213_v12 }
 0xda7   : > { %v9417_v51 = vpop.f32.mrb[88].mxu0 }
 0xda8   : > { %v3936_v23 = vadd.f32 %v9417_v51, %v8580_v0  ;;  %v3927_v40 = vpop.f32.mrb[89].mxu0  ;;  %v13243_v51 = vld [vmem:[#allocation19_spill] sm:$0xff] }
 0xda9   : > { %v3928_v63 = vadd.f32 %v8580_v0, %v3927_v40  ;;  %v9418_v19 = vpop.f32.mrb[90].mxu0 }
 0xdaa   : > { %v8722_v43 = vpack.c.bf16 %v3936_v23, %v3936_v23  ;;  %v3939_v30 = vadd.f32 %v9418_v19, %v8580_v0  ;;  %v3930_v54 = vpop.f32.mrb[91].mxu0  ;;  %v4172_v23 = vadd.f32 %v13243_v51, %v11899_v62  ;;  %v10262_v19 = vpop.eup %10261 }
 0xdab   : > { %v8720_v6 = vpack.c.bf16 %v3928_v63, %v3928_v63  ;;  %v3931_v53 = vadd.f32 %v8580_v0, %v3930_v54  ;;  %v4193_v63 = vsel %vm2000_vm3, %v4169_v57, -inf }
 0xdac   : > { %3993 = vst.msk [vmem:[%s11957_s29 + $0x8] sm:$0xf] %vm3990_vm5, %v8722_v43  ;;  %v8723_v16 = vpack.c.bf16 %v3939_v30, %v3939_v30  ;;  %v4196_v18 = vsel %vm2000_vm3, %v4172_v23, -inf  ;;  %v10264_v43 = vpop.eup %10263  ;;  %v4223_v30 = vsel %vm2000_vm3, %v10262_v19, 0.0 }
 0xdad   : > { %3991 = vst.msk [vmem:[%s11957_s29] sm:$0xf] %vm3990_vm5, %v8720_v6  ;;  %v8721_v24 = vpack.c.bf16 %v3931_v53, %v3931_v53  ;;  %v10266_v54 = vpop.eup %10265  ;;  %v4226_v6 = vsel %vm2000_vm3, %v10264_v43, 0.0 }
 0xdae   : > { %3994 = vst.msk [vmem:[%s11957_s29 + $0xc] sm:$0xf] %vm3990_vm5, %v8723_v16  ;;  %v10268_v53 = vpop.eup %10267  ;;  %v4229_v62 = vsel %vm2000_vm3, %v10266_v54, 0.0 }
 0xdaf   : > { %3992 = vst.msk [vmem:[%s11957_s29 + $0x4] sm:$0xf] %vm3990_vm5, %v8721_v24  ;;  %v4232_v16 = vsel %vm2000_vm3, %v10268_v53, 0.0 }
 0xde3   : > { %v9421_v49 = vpop.f32.mrb[92].mxu0 }
 0xde4   : > { %v3952_v42 = vadd.f32 %v9421_v49, %v8580_v0  ;;  %v3943_v7 = vpop.f32.mrb[93].mxu0 }
 0xde5   : > { %v3944_v52 = vadd.f32 %v8580_v0, %v3943_v7  ;;  %v9422_v22 = vpop.f32.mrb[94].mxu0 }
 0xde6   : > { %v8726_v41 = vpack.c.bf16 %v3952_v42, %v3952_v42  ;;  %v3955_v59 = vadd.f32 %v9422_v22, %v8580_v0  ;;  %v3946_v36 = vpop.f32.mrb[95].mxu0 }
 0xde7   : > { %v8724_v32 = vpack.c.bf16 %v3944_v52, %v3944_v52  ;;  %v3947_v46 = vadd.f32 %v8580_v0, %v3946_v36 }
 0xde8   : > { %3997 = vst.msk [vmem:[%s11957_s29 + $0x18] sm:$0xf] %vm3990_vm5, %v8726_v41  ;;  %v8727_v4 = vpack.c.bf16 %v3955_v59, %v3955_v59 }
 0xde9   : > { %3995 = vst.msk [vmem:[%s11957_s29 + $0x10] sm:$0xf] %vm3990_vm5, %v8724_v32  ;;  %v8725_v25 = vpack.c.bf16 %v3947_v46, %v3947_v46 }
 0xdea   : > { %3998 = vst.msk [vmem:[%s11957_s29 + $0x1c] sm:$0xf] %vm3990_vm5, %v8727_v4 }
 0xdeb   : > { %3996 = vst.msk [vmem:[%s11957_s29 + $0x14] sm:$0xf] %vm3990_vm5, %v8725_v25  ;;  %v4124_v31 = vpop.f32.mrb[96].mxu0 }
 0xdec   : > { %v4125_v10 = vadd.f32 %v13240_v21, %v4124_v31  ;;  %v9439_v20 = vpop.f32.mrb[97].mxu0 }
 0xded   : > { %v4127_v27 = vpop.f32.mrb[98].mxu0 }
 0xdee   : > { %v11983_v1 = vadd.f32 %v13242_v61, %v4127_v27  ;;  %v9440_v15 = vpop.f32.mrb[99].mxu0  ;;  %v4187_v0 = vsel %vm2000_vm3, %v4125_v10, -inf }
 0xdef   : > { %4188 = vmax.xlane.f32.xlu0 %v4187_v0  ;;  %v13245_v0 = vld [vmem:[#allocation6_spill] sm:$0xff] }
 0xdf0   : > { %v4190_v40 = vsel %vm2000_vm3, %v11983_v1, -inf }
 0xdf1   : > { %4191 = vmax.xlane.f32.xlu1 %v4190_v40 }
 0xdf3   : > { %4194 = vmax.xlane.f32.xlu0 %v4193_v63 }
 0xdf5   : > { %4197 = vmax.xlane.f32.xlu1 %v4196_v18 }
 0xdf7   : > { %4224 = vadd.xlane.f32.xlu0 %v4223_v30 }
 0xdf9   : > { %4227 = vadd.xlane.f32.xlu1 %v4226_v6 }
 0xdfb   : > { %4230 = vadd.xlane.f32.xlu0 %v4229_v62 }
 0xdfd   : > { %4233 = vadd.xlane.f32.xlu1 %v4232_v16 }
 0xe7c   : > { %v4189_v24 = vpop.xlane.xlu0 %4188 }
 0xe7d   : > { %v4203_v60 = vsub.f32 %v4125_v10, %v4189_v24  ;;  %v13246_v24 = vld [vmem:[#allocation21_spill] sm:$0xff] }
 0xe7e   : > { %v4192_v14 = vpop.xlane.xlu1 %4191 }
 0xe7f   : > { %v4215_v29 = vmul.f32 1.442695, %v4203_v60 }
 0xe80   : > { %v4195_v3 = vpop.xlane.xlu0 %4194 }
 0xe81   : > { %v4205_v35 = vsub.f32 %v4169_v57, %v4195_v3  ;;  %10269 = vpow2.f32 %v4215_v29  ;;  %v13244_v57 = vld [vmem:[#allocation7_spill] sm:$0xff] }
 0xe82   : > { %v4198_v49 = vpop.xlane.xlu1 %4197 }
 0xe83   : > { %v4219_v9 = vmul.f32 1.442695, %v4205_v35  ;;  %v4206_v42 = vsub.f32 %v4172_v23, %v4198_v49  ;;  %v4204_v23 = vsub.f32 %v11983_v1, %v4192_v14 }
 0xe84   : > { %v4225_v7 = vpop.xlane.xlu0 %4224 }
 0xe85   : > { %10271 = vpow2.f32 %v4219_v9  ;;  %v4221_v56 = vmul.f32 1.442695, %v4206_v42  ;;  %v4217_v40 = vmul.f32 1.442695, %v4204_v23 }
 0xe86   : > { %10273 = vrcp.f32 %v4225_v7  ;;  %v4228_v39 = vpop.xlane.xlu1 %4227 }
 0xe87   : > { %10275 = vpow2.f32 %v4221_v56 }
 0xe88   : > { %10277 = vrcp.f32 %v4228_v39  ;;  %v4231_v52 = vpop.xlane.xlu0 %4230 }
 0xe89   : > { %10279 = vrcp.f32 %v4231_v52 }
 0xe8a   : > { %v4234_v22 = vpop.xlane.xlu1 %4233 }
 0xe8b   : > { %10281 = vrcp.f32 %v4234_v22  ;;  %v11996_v41 = vpop.eup %10269  ;;  %v13247_v22 = vld [vmem:[#allocation23_spill] sm:$0xff] }
 0xe8c   : > { %v4235_v12 = vsel %vm2000_vm3, %v11996_v41, 0.0  ;;  %10283 = vpow2.f32 %v4217_v40 }
 0xe8f   : > { %v10272_v59 = vpop.eup %10271 }
 0xe90   : > { %v10274_v36 = vpop.eup %10273  ;;  %v4241_v5 = vsel %vm2000_vm3, %v10272_v59, 0.0 }
 0xe91   : > { %v10276_v48 = vpop.eup %10275  ;;  %4242 = vadd.xlane.f32.xlu0 %v4241_v5  ;;  %v4255_v55 = vmul.f32 %v10274_v36, %v10262_v19 }
 0xe92   : > { %v10278_v32 = vpop.eup %10277  ;;  %v4244_v46 = vsel %vm2000_vm3, %v10276_v48, 0.0 }
 0xe93   : > { %v10280_v4 = vpop.eup %10279  ;;  %v4256_v25 = vmul.f32 %v10278_v32, %v10264_v43  ;;  %4245 = vadd.xlane.f32.xlu1 %v4244_v46  ;;  %v13248_v46 = vld [vmem:[#allocation20_spill] sm:$0xff] }
 0xe94   : > { %v4257_v20 = vmul.f32 %v10280_v4, %v10266_v54 }
 0xe95   : > { %v10282_v31 = vpop.eup %10281  ;;  %4236 = vadd.xlane.f32.xlu0 %v4235_v12  ;;  %v4263_v10 = vpack.c.bf16 %v4256_v25, %v4255_v55  ;;  %v13249_v12 = vld [vmem:[#allocation22_spill] sm:$0xff] }
 0xe96   : > { %v4258_v27 = vmul.f32 %v10282_v31, %v10268_v53  ;;  %v10284_v63 = vpop.eup %10283 }
 0xe97   : > { %9450 = vmatmul.mubr.msk.bf16.vlgmr.msra.gmra.mrb[100].mxu0 %vm2000_vm3, %v4263_v10  ;;  %v4238_v19 = vsel %vm2000_vm3, %v10284_v63, 0.0 }
 0xe98   : > { %9460 = vmatpush3.bf16.msra.mxu0 %v13244_v57  ;;  %v4264_v15 = vpack.c.bf16 %v4258_v27, %v4257_v20  ;;  %9461 = vmatprep.mubr.msk.bf16.mxu0 %vm10558_vm1, %v13203_v11 }
 0xe99   : > { %9471 = vmatprep.subr.bf16.mxu0 %v13203_v11 }
 0xe9a   : > { %9456 = vmatmul.mubr.msk.bf16.vlgmr.msra.gmra.mrb[108].mxu1 %vm2000_vm3, %v4264_v15 }
 0xe9b   : > { %9466 = vmatpush3.bf16.msra.mxu1 %v13245_v0  ;;  %9467 = vmatprep.mubr.msk.bf16.mxu1 %vm10558_vm1, %v13203_v11 }
 0xe9c   : > { %9477 = vmatprep.subr.bf16.mxu1 %v13203_v11 }
 0xea4   : > { %4491 = vrot.lane.b32.xlu1 %v11193_v2, %s10559_s15 }
 0xeab   : > { %4444 = vrot.lane.b32.xlu0 %v11197_v34, %s10559_s15 }
 0xec8   : > { %4239 = vadd.xlane.f32.xlu1 %v4238_v19 }
 0xed9   : > { %4538 = vrot.lane.b32.xlu1 %v11205_v50, %s10559_s15 }
 0xedd   : > { %4585 = vrot.lane.b32.xlu1 %v11201_v26, %s10559_s15 }
 0xf1e   : > { %v4243_v18 = vpop.xlane.xlu0 %4242 }
 0xf1f   : > { %10285 = vrcp.f32 %v4243_v18 }
 0xf20   : > { %v4246_v43 = vpop.xlane.xlu1 %4245 }
 0xf21   : > { %10287 = vrcp.f32 %v4246_v43 }
 0xf22   : > { %v4237_v60 = vpop.xlane.xlu0 %4236 }
 0xf23   : > { %10289 = vrcp.f32 %v4237_v60 }
 0xf24   : > { %v4492_v53 = vpop.permute.xlu1 %4491 }
 0xf25   : > { %v4494_v16 = vsel %vm1811_vm2, %v4492_v53, 0 }
 0xf26   : > { %v4445_v56 = vpop.permute.xlu0 %4444 }
 0xf27   : > { %v4447_v52 = vsel %vm1811_vm2, %v4445_v56, 0 }
 0xf29   : > { %v10286_v30 = vpop.eup %10285 }
 0xf2a   : > { %v4261_v6 = vmul.f32 %v10286_v30, %v10272_v59 }
 0xf2b   : > { %v10288_v54 = vpop.eup %10287 }
 0xf2c   : > { %v4262_v1 = vmul.f32 %v10288_v54, %v10276_v48 }
 0xf2d   : > { %v10290_v35 = vpop.eup %10289 }
 0xf2e   : > { %v4266_v62 = vpack.c.bf16 %v4262_v1, %v4261_v6  ;;  %v4259_v42 = vmul.f32 %v10290_v35, %v11996_v41 }
 0xf30   : > { %9468 = vmatmul.mubr.msk.bf16.vlgmr.msra.gmra.mrb[112].mxu1 %vm2000_vm3, %v4266_v62 }
 0xf31   : > { %9478 = vmatpush3.bf16.xpose.msra.mxu1 %v4494_v16  ;;  %9479 = vmatprep.mubr.msk.bf16.mxu1 %vm10558_vm1, %v13203_v11  ;;  %v13250_v16 = vld [vmem:[#allocation24_spill] sm:$0xff] }
 0xf32   : > { %9489 = vmatprep.subr.bf16.mxu1 %v13203_v11 }
 0xf38   : > { %9480 = vmatmul.mubr.msk.bf16.vlgmr.msra.gmra.mrb[116].mxu1 %vm1811_vm2, %v13246_v24 }
 0xf39   : > { %9491 = vmatprep.mubr.msk.bf16.mxu1 %vm10558_vm1, %v13203_v11 }
 0xf55   : > { %v4240_v14 = vpop.xlane.xlu1 %4239 }
 0xf56   : > { %10291 = vrcp.f32 %v4240_v14 }
 0xf59   : > { %v4539_v29 = vpop.permute.xlu1 %4538 }
 0xf5a   : > { %v4541_v5 = vsel %vm1811_vm2, %v4539_v29, 0 }
 0xf5d   : > { %v4586_v3 = vpop.permute.xlu1 %4585 }
 0xf5e   : > { %v4588_v49 = vsel %vm1811_vm2, %v4586_v3, 0  ;;  %v13251_v3 = vld [vmem:[#allocation29_spill] sm:$0xff] }
 0xf5f   : > { %9490 = vmatpush3.bf16.xpose.msra.mxu1 %v4588_v49  ;;  %v13252_v49 = vld [vmem:[#allocation25_spill] sm:$0xff] }
 0xf60   : > { %v10292_v9 = vpop.eup %10291  ;;  %9501 = vmatprep.subr.bf16.mxu1 %v13203_v11 }
 0xf61   : > { %v4260_v7 = vmul.f32 %v10292_v9, %v10284_v63 }
 0xf63   : > { %v4265_v39 = vpack.c.bf16 %v4260_v7, %v4259_v42 }
 0xf65   : > { %9462 = vmatmul.mubr.msk.bf16.vlgmr.msra.gmra.mrb[104].mxu0 %vm2000_vm3, %v4265_v39  ;;  %v13253_v39 = vld [vmem:[#allocation30_spill] sm:$0xff] }
 0xf66   : > { %9472 = vmatpush3.bf16.xpose.msra.mxu0 %v4447_v52  ;;  %9492 = vmatmul.mubr.msk.bf16.vlgmr.msra.gmra.mrb[120].mxu1 %vm1811_vm2, %v13247_v22 }
 0xf67   : > { %9473 = vmatprep.mubr.msk.bf16.mxu0 %vm10558_vm1, %v13203_v11  ;;  %9483 = vmatprep.subr.bf16.mxu0 %v13203_v11 }
 0xf68   : > { %9503 = vmatprep.mubr.msk.bf16.mxu1 %vm10558_vm1, %v13203_v11 }
 0xf6a   : > { %v12043_v41 = vpop.f32.mrb[100].mxu0 }
 0xf6b   : > { %v9451_v59 = vpop.f32.mrb[101].mxu0 }
 0xf6c   : > { %v12045_v36 = vpop.f32.mrb[102].mxu0 }
 0xf6d   : > { %v9452_v48 = vpop.f32.mrb[103].mxu0  ;;  %v12048_v32 = vpop.f32.mrb[108].mxu1  ;;  %9474 = vmatmul.mubr.msk.bf16.vlgmr.msra.gmra.mrb[108].mxu0 %vm1811_vm2, %v13248_v46 }
 0xf6e   : > { %9484 = vmatpush3.bf16.xpose.msra.mxu0 %v4541_v5  ;;  %v9457_v4 = vpop.f32.mrb[109].mxu1  ;;  %9485 = vmatprep.mubr.msk.bf16.mxu0 %vm10558_vm1, %v13203_v11 }
 0xf6f   : > { %v12054_v55 = vpop.f32.mrb[110].mxu1  ;;  %9495 = vmatprep.subr.bf16.mxu0 %v13203_v11 }
 0xf70   : > { %v9458_v25 = vpop.f32.mrb[111].mxu1 }
 0xf71   : > { %v13254_v25 = vld [vmem:[#allocation31_spill] sm:$0xff] }
 0xf75   : > { %9486 = vmatmul.mubr.msk.bf16.vlgmr.msra.gmra.mrb[112].mxu0 %vm1811_vm2, %v13249_v12 }
 0xf76   : > { %9497 = vmatprep.mubr.msk.bf16.mxu0 %vm10558_vm1, %v13203_v11 }
0x1003   : > { %v12061_v31 = vpop.f32.mrb[112].mxu1 }
0x1004   : > { %v9469_v10 = vpop.f32.mrb[113].mxu1 }
0x1005   : > { %v12063_v20 = vpop.f32.mrb[114].mxu1 }
0x1006   : > { %v9470_v27 = vpop.f32.mrb[115].mxu1 }
0x1007   : > { %v13255_v27 = vld [vmem:[#allocation26_spill] sm:$0xff] }
0x100b   : > { %v4530_v15 = vpop.f32.mrb[116].mxu1 }
0x100c   : > { %v9481_v23 = vpop.f32.mrb[117].mxu1  ;;  %v4531_v35 = vadd.f32 %v13251_v3, %v4530_v15 }
0x100d   : > { %v4533_v40 = vpop.f32.mrb[118].mxu1 }
0x100e   : > { %v9482_v63 = vpop.f32.mrb[119].mxu1  ;;  %v4534_v52 = vadd.f32 %v13253_v39, %v4533_v40  ;;  %v4637_v59 = vsel %vm2000_vm3, %v4531_v35, -inf  ;;  %v13268_v39 = vld [vmem:[#allocation45_spill] sm:$0xff] }
0x1010   : > { %v4640_v63 = vsel %vm2000_vm3, %v4534_v52, -inf }
0x1038   : > { %v12065_v19 = vpop.f32.mrb[104].mxu0 }
0x1039   : > { %v9463_v18 = vpop.f32.mrb[105].mxu0  ;;  %v4624_v43 = vpop.f32.mrb[120].mxu1 }
0x103a   : > { %v12067_v30 = vpop.f32.mrb[106].mxu0  ;;  %v9493_v54 = vpop.f32.mrb[121].mxu1  ;;  %v13256_v18 = vld [vmem:[#allocation33_spill] sm:$0xff] }
0x103b   : > { %v9464_v6 = vpop.f32.mrb[107].mxu0  ;;  %v4627_v1 = vpop.f32.mrb[122].mxu1 }
0x103c   : > { %v9494_v53 = vpop.f32.mrb[123].mxu1  ;;  %v4628_v54 = vadd.f32 %v13256_v18, %v4627_v1  ;;  %v13257_v6 = vld [vmem:[#allocation32_spill] sm:$0xff] }
0x103d   : > { %v4625_v53 = vadd.f32 %v13257_v6, %v4624_v43 }
0x1040   : > { %v4483_v62 = vpop.f32.mrb[108].mxu0 }
0x1041   : > { %v4484_v60 = vadd.f32 %v13250_v16, %v4483_v62  ;;  %v9475_v14 = vpop.f32.mrb[109].mxu0 }
0x1042   : > { %v4486_v29 = vpop.f32.mrb[110].mxu0  ;;  %v4652_v14 = vsel %vm2000_vm3, %v4628_v54, -inf }
0x1043   : > { %v12072_v9 = vadd.f32 %v13252_v49, %v4486_v29  ;;  %v9476_v42 = vpop.f32.mrb[111].mxu0  ;;  %v4631_v7 = vsel %vm2000_vm3, %v4484_v60, -inf  ;;  %v4649_v29 = vsel %vm2000_vm3, %v4625_v53, -inf }
0x1044   : > { %4632 = vmax.xlane.f32.xlu0 %v4631_v7 }
0x1045   : > { %v4634_v56 = vsel %vm2000_vm3, %v12072_v9, -inf }
0x1046   : > { %4635 = vmax.xlane.f32.xlu1 %v4634_v56 }
0x1048   : > { %v4577_v5 = vpop.f32.mrb[112].mxu0  ;;  %4638 = vmax.xlane.f32.xlu0 %v4637_v59 }
0x1049   : > { %v9487_v48 = vpop.f32.mrb[113].mxu0  ;;  %v4578_v10 = vadd.f32 %v13254_v25, %v4577_v5 }
0x104a   : > { %v4580_v4 = vpop.f32.mrb[114].mxu0 }
0x104b   : > { %v12081_v15 = vadd.f32 %v13255_v27, %v4580_v4  ;;  %v9488_v23 = vpop.f32.mrb[115].mxu0  ;;  %v4643_v62 = vsel %vm2000_vm3, %v4578_v10, -inf }
0x104c   : > { %4641 = vmax.xlane.f32.xlu0 %v4640_v63 }
0x104d   : > { %v4646_v40 = vsel %vm2000_vm3, %v12081_v15, -inf }
0x104e   : > { %4647 = vmax.xlane.f32.xlu1 %v4646_v40 }
0x1050   : > { %4644 = vmax.xlane.f32.xlu0 %v4643_v62 }
0x1052   : > { %4653 = vmax.xlane.f32.xlu1 %v4652_v14 }
0x1054   : > { %4650 = vmax.xlane.f32.xlu0 %v4649_v29 }
0x10d1   : > { %v4633_v42 = vpop.xlane.xlu0 %4632 }
0x10d2   : > { %v4655_v40 = vsub.f32 %v4484_v60, %v4633_v42 }
0x10d3   : > { %v4636_v59 = vpop.xlane.xlu1 %4635 }
0x10d4   : > { %v4663_v29 = vmul.f32 1.442695, %v4655_v40  ;;  %v4656_v42 = vsub.f32 %v12072_v9, %v4636_v59 }
0x10d5   : > { %v4639_v7 = vpop.xlane.xlu0 %4638 }
0x10d6   : > { %v4657_v56 = vsub.f32 %v4531_v35, %v4639_v7 }
0x10d8   : > { %v4667_v1 = vmul.f32 1.442695, %v4657_v56 }
0x10d9   : > { %v4642_v5 = vpop.xlane.xlu0 %4641 }
0x10da   : > { %10293 = vpow2.f32 %v4667_v1  ;;  %v4658_v48 = vsub.f32 %v4534_v52, %v4642_v5  ;;  %v4665_v5 = vmul.f32 1.442695, %v4656_v42 }
0x10db   : > { %v4648_v4 = vpop.xlane.xlu1 %4647 }
0x10dc   : > { %v4669_v23 = vmul.f32 1.442695, %v4658_v48  ;;  %v4660_v48 = vsub.f32 %v12081_v15, %v4648_v4 }
0x10dd   : > { %v4645_v43 = vpop.xlane.xlu0 %4644 }
0x10de   : > { %10295 = vpow2.f32 %v4669_v23  ;;  %v4673_v23 = vmul.f32 1.442695, %v4660_v48 }
0x10df   : > { %v4654_v63 = vpop.xlane.xlu1 %4653 }
0x10e0   : > { %v4662_v62 = vsub.f32 %v4628_v54, %v4654_v63 }
0x10e1   : > { %v4651_v6 = vpop.xlane.xlu0 %4650 }
0x10e2   : > { %v4677_v14 = vmul.f32 1.442695, %v4662_v62  ;;  %v4661_v18 = vsub.f32 %v4625_v53, %v4651_v6 }
0x10e4   : > { %v10294_v27 = vpop.eup %10293  ;;  %10297 = vpow2.f32 %v4677_v14  ;;  %v4675_v25 = vmul.f32 1.442695, %v4661_v18 }
0x10e5   : > { %v4685_v35 = vsel %vm2000_vm3, %v10294_v27, 0.0 }
0x10e6   : > { %10299 = vpow2.f32 %v4675_v25  ;;  %4686 = vadd.xlane.f32.xlu0 %v4685_v35  ;;  %v4659_v25 = vsub.f32 %v4578_v10, %v4645_v43 }
0x10e7   : > { %10301 = vpow2.f32 %v4663_v29 }
0x10e8   : > { %v10296_v7 = vpop.eup %10295  ;;  %v4671_v1 = vmul.f32 1.442695, %v4659_v25 }
0x10e9   : > { %v4688_v52 = vsel %vm2000_vm3, %v10296_v7, 0.0 }
0x10ea   : > { %4689 = vadd.xlane.f32.xlu1 %v4688_v52  ;;  %10303 = vpow2.f32 %v4671_v1 }
0x10eb   : > { %10305 = vpow2.f32 %v4665_v5 }
0x10ec   : > { %10307 = vpow2.f32 %v4673_v23 }
0x10ee   : > { %v10298_v56 = vpop.eup %10297 }
0x10ef   : > { %v4700_v60 = vsel %vm2000_vm3, %v10298_v56, 0.0 }
0x10f0   : > { %v10300_v54 = vpop.eup %10299  ;;  %4701 = vadd.xlane.f32.xlu1 %v4700_v60 }
0x10f1   : > { %v4697_v6 = vsel %vm2000_vm3, %v10300_v54, 0.0  ;;  %v12095_v53 = vpop.eup %10301 }
0x10f2   : > { %4698 = vadd.xlane.f32.xlu0 %v4697_v6  ;;  %v4679_v18 = vsel %vm2000_vm3, %v12095_v53, 0.0 }
0x10f4   : > { %v12109_v63 = vpop.eup %10303 }
0x10f5   : > { %v10306_v40 = vpop.eup %10305  ;;  %v4691_v62 = vsel %vm2000_vm3, %v12109_v63, 0.0 }
0x10f6   : > { %4680 = vadd.xlane.f32.xlu0 %v4679_v18  ;;  %v4682_v14 = vsel %vm2000_vm3, %v10306_v40, 0.0  ;;  %v12114_v10 = vpop.eup %10307 }
0x10f7   : > { %v4694_v9 = vsel %vm2000_vm3, %v12114_v10, 0.0 }
0x1101   : > { %4772 = vrot.lane.b32.xlu1 %v11195_v58, %s10559_s15 }
0x1105   : > { %4820 = vrot.lane.b32.xlu1 %v13244_v57, %s10559_s15 }
0x1109   : > { %4868 = vrot.lane.b32.xlu1 %v13245_v0, %s10559_s15 }
0x110c   : > { %4724 = vrot.lane.b32.xlu0 %v13239_v37, %s10559_s15 }
0x112b   : > { %4692 = vadd.xlane.f32.xlu0 %v4691_v62 }
0x112d   : > { %4683 = vadd.xlane.f32.xlu1 %v4682_v14 }
0x1131   : > { %4695 = vadd.xlane.f32.xlu1 %v4694_v9 }
0x1141   : > { %4915 = vrot.lane.b32.xlu0 %v11197_v34, %s10560_s14 }
0x1142   : > { %4961 = vrot.lane.b32.xlu1 %v11193_v2, %s10560_s14 }
0x1145   : > { %5007 = vrot.lane.b32.xlu0 %v11205_v50, %s10560_s14 }
0x1146   : > { %5053 = vrot.lane.b32.xlu1 %v11201_v26, %s10560_s14 }
0x1173   : > { %v4687_v15 = vpop.xlane.xlu0 %4686 }
0x1174   : > { %10309 = vrcp.f32 %v4687_v15 }
0x1177   : > { %v4690_v59 = vpop.xlane.xlu1 %4689 }
0x1178   : > { %10311 = vrcp.f32 %v4690_v59 }
0x117d   : > { %v4702_v4 = vpop.xlane.xlu1 %4701 }
0x117e   : > { %10313 = vrcp.f32 %v4702_v4  ;;  %v10310_v29 = vpop.eup %10309 }
0x117f   : > { %v4699_v43 = vpop.xlane.xlu0 %4698  ;;  %v4713_v60 = vmul.f32 %v10310_v29, %v10294_v27 }
0x1180   : > { %10315 = vrcp.f32 %v4699_v43 }
0x1181   : > { %v4773_v35 = vpop.permute.xlu1 %4772 }
0x1182   : > { %v10312_v52 = vpop.eup %10311  ;;  %9502 = vmatpush3.bf16.msra.mxu1 %v4773_v35 }
0x1183   : > { %v4714_v6 = vmul.f32 %v10312_v52, %v10296_v7  ;;  %v4681_v18 = vpop.xlane.xlu0 %4680  ;;  %9513 = vmatprep.subr.bf16.mxu1 %v13203_v11 }
0x1184   : > { %10317 = vrcp.f32 %v4681_v18 }
0x1185   : > { %v4821_v25 = vpop.permute.xlu1 %4820  ;;  %v4720_v42 = vpack.c.bf16 %v4714_v6, %v4713_v60 }
0x1187   : > { %v4725_v1 = vpop.permute.xlu0 %4724  ;;  %9504 = vmatmul.mubr.msk.bf16.vlgmr.msra.gmra.mrb[124].mxu1 %vm2000_vm3, %v4720_v42  ;;  %v13258_v42 = vld [vmem:[#allocation35_spill] sm:$0xff] }
0x1188   : > { %v10314_v5 = vpop.eup %10313  ;;  %9496 = vmatpush3.bf16.msra.mxu0 %v4725_v1  ;;  %9515 = vmatprep.mubr.msk.bf16.mxu1 %vm10558_vm1, %v13203_v11 }
0x1189   : > { %v4869_v48 = vpop.permute.xlu1 %4868  ;;  %9507 = vmatprep.subr.bf16.mxu0 %v13203_v11  ;;  %v4718_v27 = vmul.f32 %v10314_v5, %v10298_v56 }
0x118a   : > { %v10316_v23 = vpop.eup %10315  ;;  %9514 = vmatpush3.bf16.msra.mxu1 %v4869_v48 }
0x118b   : > { %v4717_v7 = vmul.f32 %v10316_v23, %v10300_v54  ;;  %9525 = vmatprep.subr.bf16.mxu1 %v13203_v11  ;;  %v13260_v23 = vld [vmem:[#allocation34_spill] sm:$0xff] }
0x118d   : > { %v4722_v62 = vpack.c.bf16 %v4718_v27, %v4717_v7  ;;  %v13261_v27 = vld [vmem:[#allocation36_spill] sm:$0xff] }
0x118e   : > { %v10318_v4 = vpop.eup %10317 }
0x118f   : > { %9516 = vmatmul.mubr.msk.bf16.vlgmr.msra.gmra.mrb[128].mxu1 %vm2000_vm3, %v4722_v62  ;;  %v4711_v43 = vmul.f32 %v10318_v4, %v12095_v53 }
0x1190   : > { %9527 = vmatprep.mubr.msk.bf16.mxu1 %vm10558_vm1, %v13203_v11 }
0x11b8   : > { %v4693_v9 = vpop.xlane.xlu0 %4692 }
0x11ba   : > { %v4684_v14 = vpop.xlane.xlu1 %4683 }
0x11bb   : > { %10319 = vrcp.f32 %v4684_v14 }
0x11be   : > { %v4696_v15 = vpop.xlane.xlu1 %4695 }
0x11bf   : > { %10321 = vrcp.f32 %v4696_v15 }
0x11c0   : > { %10323 = vrcp.f32 %v4693_v9 }
0x11c2   : > { %v4962_v59 = vpop.permute.xlu1 %4961 }
0x11c3   : > { %v4964_v56 = vsel %vm1811_vm2, %v4962_v59, 0 }
0x11c4   : > { %9526 = vmatpush3.bf16.xpose.msra.mxu1 %v4964_v56 }
0x11c5   : > { %v10320_v54 = vpop.eup %10319  ;;  %9537 = vmatprep.subr.bf16.mxu1 %v13203_v11 }
0x11c6   : > { %v4712_v29 = vmul.f32 %v10320_v54, %v10306_v40  ;;  %v5054_v35 = vpop.permute.xlu1 %5053  ;;  %v4916_v40 = vpop.permute.xlu0 %4915  ;;  %v13262_v54 = vld [vmem:[#allocation38_spill] sm:$0xff] }
0x11c7   : > { %v5056_v18 = vsel %vm1811_vm2, %v5054_v35, 0  ;;  %v4918_v5 = vsel %vm1811_vm2, %v4916_v40, 0 }
0x11c8   : > { %v4719_v52 = vpack.c.bf16 %v4712_v29, %v4711_v43 }
0x11c9   : > { %v10322_v60 = vpop.eup %10321 }
0x11ca   : > { %9498 = vmatmul.mubr.msk.bf16.vlgmr.msra.gmra.mrb[116].mxu0 %vm2000_vm3, %v4719_v52  ;;  %v10324_v6 = vpop.eup %10323  ;;  %v4716_v1 = vmul.f32 %v10322_v60, %v12114_v10  ;;  %v13259_v10 = vld [vmem:[#allocation37_spill] sm:$0xff] }
0x11cb   : > { %9508 = vmatpush3.bf16.msra.mxu0 %v4821_v25  ;;  %9528 = vmatmul.mubr.msk.bf16.vlgmr.msra.gmra.mrb[132].mxu1 %vm1811_vm2, %v13258_v42  ;;  %v4715_v53 = vmul.f32 %v10324_v6, %v12109_v63  ;;  %v5008_v63 = vpop.permute.xlu0 %5007 }
0x11cc   : > { %9538 = vmatpush3.bf16.xpose.msra.mxu1 %v5056_v18  ;;  %9509 = vmatprep.mubr.msk.bf16.mxu0 %vm10558_vm1, %v13203_v11  ;;  %v5010_v48 = vsel %vm1811_vm2, %v5008_v63, 0 }
0x11cd   : > { %9519 = vmatprep.subr.bf16.mxu0 %v13203_v11  ;;  %9539 = vmatprep.mubr.msk.bf16.mxu1 %vm10558_vm1, %v13203_v11  ;;  %v4721_v25 = vpack.c.bf16 %v4716_v1, %v4715_v53 }
0x11ce   : > { %9549 = vmatprep.subr.bf16.mxu1 %v13203_v11 }
0x11d2   : > { %9510 = vmatmul.mubr.msk.bf16.vlgmr.msra.gmra.mrb[120].mxu0 %vm2000_vm3, %v4721_v25 }
0x11d3   : > { %9540 = vmatmul.mubr.msk.bf16.vlgmr.msra.gmra.mrb[136].mxu1 %vm1811_vm2, %v13259_v10  ;;  %9521 = vmatprep.mubr.msk.bf16.mxu0 %vm10558_vm1, %v13203_v11 }
0x11d4   : > { %9520 = vmatpush3.bf16.xpose.msra.mxu0 %v4918_v5  ;;  %9551 = vmatprep.mubr.msk.bf16.mxu1 %vm10558_vm1, %v13203_v11 }
0x11d5   : > { %9531 = vmatprep.subr.bf16.mxu0 %v13203_v11 }
0x11db   : > { %9522 = vmatmul.mubr.msk.bf16.vlgmr.msra.gmra.mrb[124].mxu0 %vm1811_vm2, %v13260_v23  ;;  %v13264_v23 = vld [vmem:[#allocation39_spill] sm:$0xff] }
0x11dc   : > { %9532 = vmatpush3.bf16.xpose.msra.mxu0 %v5010_v48  ;;  %9533 = vmatprep.mubr.msk.bf16.mxu0 %vm10558_vm1, %v13203_v11 }
0x11dd   : > { %9543 = vmatprep.subr.bf16.mxu0 %v13203_v11 }
0x11e3   : > { %9534 = vmatmul.mubr.msk.bf16.vlgmr.msra.gmra.mrb[128].mxu0 %vm1811_vm2, %v13261_v27  ;;  %v13263_v27 = vld [vmem:[#allocation41_spill] sm:$0xff] }
0x11e4   : > { %9545 = vmatprep.mubr.msk.bf16.mxu0 %vm10558_vm1, %v13203_v11 }
0x125a   : > { %v12169_v7 = vpop.f32.mrb[124].mxu1 }
0x125b   : > { %v9505_v62 = vpop.f32.mrb[125].mxu1 }
0x125c   : > { %v12171_v14 = vpop.f32.mrb[126].mxu1 }
0x125d   : > { %v9506_v15 = vpop.f32.mrb[127].mxu1 }
0x1262   : > { %v12175_v59 = vpop.f32.mrb[128].mxu1 }
0x1263   : > { %v9517_v4 = vpop.f32.mrb[129].mxu1 }
0x1264   : > { %v12177_v56 = vpop.f32.mrb[130].mxu1 }
0x1265   : > { %v9518_v43 = vpop.f32.mrb[131].mxu1 }
0x129d   : > { %v12181_v29 = vpop.f32.mrb[116].mxu0 }
0x129e   : > { %v9499_v35 = vpop.f32.mrb[117].mxu0  ;;  %v5000_v52 = vpop.f32.mrb[132].mxu1 }
0x129f   : > { %v12183_v60 = vpop.f32.mrb[118].mxu0  ;;  %v9529_v6 = vpop.f32.mrb[133].mxu1 }
0x12a0   : > { %v9500_v1 = vpop.f32.mrb[119].mxu0  ;;  %v5003_v53 = vpop.f32.mrb[134].mxu1 }
0x12a1   : > { %v9530_v40 = vpop.f32.mrb[135].mxu1 }
0x12a2   : > { %v5001_v40 = vadd.f32 %v13263_v27, %v5000_v52  ;;  %v13266_v52 = vld [vmem:[#allocation43_spill] sm:$0xff] }
0x12a4   : > { %v5105_v15 = vsel %vm2000_vm3, %v5001_v40, -inf }
0x12a5   : > { %v12187_v25 = vpop.f32.mrb[120].mxu0 }
0x12a6   : > { %v9511_v5 = vpop.f32.mrb[121].mxu0  ;;  %v5092_v63 = vpop.f32.mrb[136].mxu1 }
0x12a7   : > { %v12189_v48 = vpop.f32.mrb[122].mxu0  ;;  %v9541_v62 = vpop.f32.mrb[137].mxu1 }
0x12a8   : > { %v9512_v4 = vpop.f32.mrb[123].mxu0  ;;  %v5095_v43 = vpop.f32.mrb[138].mxu1 }
0x12a9   : > { %v9542_v35 = vpop.f32.mrb[139].mxu1  ;;  %v13265_v4 = vld [vmem:[#allocation42_spill] sm:$0xff]  ;;  %v5096_v49 = vadd.f32 %v13268_v39, %v5095_v43 }
0x12aa   : > { %v5004_v35 = vadd.f32 %v13265_v4, %v5003_v53 }
0x12ae   : > { %v4954_v6 = vpop.f32.mrb[124].mxu0 }
0x12af   : > { %v4955_v9 = vadd.f32 %v13262_v54, %v4954_v6  ;;  %v9523_v18 = vpop.f32.mrb[125].mxu0 }
0x12b0   : > { %v4957_v1 = vpop.f32.mrb[126].mxu0 }
0x12b1   : > { %v12196_v10 = vadd.f32 %v13264_v23, %v4957_v1  ;;  %v9524_v5 = vpop.f32.mrb[127].mxu0  ;;  %v5099_v42 = vsel %vm2000_vm3, %v4955_v9, -inf  ;;  %v13267_v1 = vld [vmem:[#allocation40_spill] sm:$0xff] }
0x12b2   : > { %5100 = vmax.xlane.f32.xlu0 %v5099_v42  ;;  %v5108_v42 = vsel %vm2000_vm3, %v5004_v35, -inf }
0x12b3   : > { %v5102_v62 = vsel %vm2000_vm3, %v12196_v10, -inf }
0x12b4   : > { %5103 = vmax.xlane.f32.xlu1 %v5102_v62  ;;  %v13269_v62 = vld [vmem:[#allocation44_spill] sm:$0xff] }
0x12b5   : > { %v5093_v4 = vadd.f32 %v13269_v62, %v5092_v63 }
0x12b6   : > { %v5046_v6 = vpop.f32.mrb[128].mxu0  ;;  %5106 = vmax.xlane.f32.xlu0 %v5105_v15 }
0x12b7   : > { %v9535_v18 = vpop.f32.mrb[129].mxu0  ;;  %v5047_v27 = vadd.f32 %v13266_v52, %v5046_v6  ;;  %v5120_v6 = vsel %vm2000_vm3, %v5096_v49, -inf }
0x12b8   : > { %v5049_v54 = vpop.f32.mrb[130].mxu0 }
0x12b9   : > { %v12205_v23 = vadd.f32 %v13267_v1, %v5049_v54  ;;  %v9536_v5 = vpop.f32.mrb[131].mxu0  ;;  %v5111_v15 = vsel %vm2000_vm3, %v5047_v27, -inf  ;;  %v5117_v54 = vsel %vm2000_vm3, %v5093_v4, -inf }
0x12ba   : > { %5109 = vmax.xlane.f32.xlu0 %v5108_v42 }
0x12bb   : > { %v5114_v53 = vsel %vm2000_vm3, %v12205_v23, -inf }
0x12bc   : > { %5115 = vmax.xlane.f32.xlu1 %v5114_v53 }
0x12be   : > { %5112 = vmax.xlane.f32.xlu0 %v5111_v15 }
0x12c0   : > { %5121 = vmax.xlane.f32.xlu1 %v5120_v6 }
0x12c2   : > { %5118 = vmax.xlane.f32.xlu0 %v5117_v54 }
0x133f   : > { %v5101_v18 = vpop.xlane.xlu0 %5100 }
0x1340   : > { %v5123_v15 = vsub.f32 %v4955_v9, %v5101_v18 }
0x1341   : > { %v5104_v1 = vpop.xlane.xlu1 %5103 }
0x1342   : > { %v5131_v54 = vmul.f32 1.442695, %v5123_v15 }
0x1343   : > { %v5107_v5 = vpop.xlane.xlu0 %5106 }
0x1344   : > { %v5125_v42 = vsub.f32 %v5001_v40, %v5107_v5 }
0x1346   : > { %v5135_v43 = vmul.f32 1.442695, %v5125_v42 }
0x1347   : > { %v5110_v39 = vpop.xlane.xlu0 %5109 }
0x1348   : > { %10325 = vpow2.f32 %v5135_v43  ;;  %v5126_v52 = vsub.f32 %v5004_v35, %v5110_v39 }
0x1349   : > { %v5116_v53 = vpop.xlane.xlu1 %5115 }
0x134a   : > { %v5137_v3 = vmul.f32 1.442695, %v5126_v52 }
0x134b   : > { %v5113_v63 = vpop.xlane.xlu0 %5112 }
0x134c   : > { %10327 = vpow2.f32 %v5137_v3 }
0x134d   : > { %v5122_v62 = vpop.xlane.xlu1 %5121 }
0x134e   : > { %v5130_v16 = vsub.f32 %v5096_v49, %v5122_v62  ;;  %v5128_v62 = vsub.f32 %v12205_v23, %v5116_v53 }
0x134f   : > { %v5119_v12 = vpop.xlane.xlu0 %5118 }
0x1350   : > { %v5145_v6 = vmul.f32 1.442695, %v5130_v16  ;;  %v5129_v46 = vsub.f32 %v5093_v4, %v5119_v12  ;;  %v5124_v4 = vsub.f32 %v12196_v10, %v5104_v1  ;;  %v5141_v18 = vmul.f32 1.442695, %v5128_v62 }
0x1352   : > { %v10326_v22 = vpop.eup %10325  ;;  %10329 = vpow2.f32 %v5145_v6  ;;  %v5143_v24 = vmul.f32 1.442695, %v5129_v46  ;;  %v5133_v52 = vmul.f32 1.442695, %v5124_v4 }
0x1353   : > { %v5153_v40 = vsel %vm2000_vm3, %v10326_v22, 0.0 }
0x1354   : > { %10331 = vpow2.f32 %v5143_v24  ;;  %5154 = vadd.xlane.f32.xlu0 %v5153_v40  ;;  %v5127_v24 = vsub.f32 %v5047_v27, %v5113_v63 }
0x1355   : > { %10333 = vpow2.f32 %v5131_v54 }
0x1356   : > { %v10328_v5 = vpop.eup %10327  ;;  %v5139_v35 = vmul.f32 1.442695, %v5127_v24 }
0x1357   : > { %v5156_v39 = vsel %vm2000_vm3, %v10328_v5, 0.0 }
0x1358   : > { %5157 = vadd.xlane.f32.xlu1 %v5156_v39  ;;  %10335 = vpow2.f32 %v5139_v35 }
0x1359   : > { %10337 = vpow2.f32 %v5133_v52 }
0x135a   : > { %10339 = vpow2.f32 %v5141_v18 }
0x135c   : > { %v10330_v3 = vpop.eup %10329 }
0x135d   : > { %v5168_v9 = vsel %vm2000_vm3, %v10330_v3, 0.0 }
0x135e   : > { %v10332_v49 = vpop.eup %10331  ;;  %5169 = vadd.xlane.f32.xlu1 %v5168_v9 }
0x135f   : > { %v5165_v12 = vsel %vm2000_vm3, %v10332_v49, 0.0  ;;  %v12219_v16 = vpop.eup %10333 }
0x1360   : > { %5166 = vadd.xlane.f32.xlu0 %v5165_v12  ;;  %v5147_v46 = vsel %vm2000_vm3, %v12219_v16, 0.0 }
0x1362   : > { %v12233_v42 = vpop.eup %10335 }
0x1363   : > { %v10338_v43 = vpop.eup %10337  ;;  %v5159_v15 = vsel %vm2000_vm3, %v12233_v42, 0.0 }
0x1364   : > { %5148 = vadd.xlane.f32.xlu0 %v5147_v46  ;;  %v5150_v6 = vsel %vm2000_vm3, %v10338_v43, 0.0  ;;  %v12238_v27 = vpop.eup %10339 }
0x1365   : > { %v5162_v10 = vsel %vm2000_vm3, %v12238_v27, 0.0 }
0x136f   : > { %5238 = vrot.lane.b32.xlu1 %v11195_v58, %s10560_s14 }
0x1373   : > { %5285 = vrot.lane.b32.xlu1 %v13244_v57, %s10560_s14 }
0x1377   : > { %5332 = vrot.lane.b32.xlu1 %v13245_v0, %s10560_s14 }
0x137a   : > { %5191 = vrot.lane.b32.xlu0 %v13239_v37, %s10560_s14 }
0x1399   : > { %5160 = vadd.xlane.f32.xlu0 %v5159_v15 }
0x139b   : > { %5151 = vadd.xlane.f32.xlu1 %v5150_v6 }
0x139f   : > { %5163 = vadd.xlane.f32.xlu1 %v5162_v10 }
0x13af   : > { %5379 = vrot.lane.b32.xlu0 %v11197_v34, %s10561_s16 }
0x13b0   : > { %5425 = vrot.lane.b32.xlu1 %v11193_v2, %s10561_s16 }
0x13b3   : > { %5471 = vrot.lane.b32.xlu0 %v11205_v50, %s10561_s16 }
0x13b4   : > { %5517 = vrot.lane.b32.xlu1 %v11201_v26, %s10561_s16 }
0x13e1   : > { %v5155_v23 = vpop.xlane.xlu0 %5154 }
0x13e2   : > { %10341 = vrcp.f32 %v5155_v23 }
0x13e5   : > { %v5158_v1 = vpop.xlane.xlu1 %5157 }
0x13e6   : > { %10343 = vrcp.f32 %v5158_v1 }
0x13eb   : > { %v5170_v53 = vpop.xlane.xlu1 %5169 }
0x13ec   : > { %10345 = vrcp.f32 %v5170_v53  ;;  %v10342_v54 = vpop.eup %10341 }
0x13ed   : > { %v5167_v63 = vpop.xlane.xlu0 %5166  ;;  %v5181_v39 = vmul.f32 %v10342_v54, %v10326_v22 }
0x13ee   : > { %10347 = vrcp.f32 %v5167_v63 }
0x13ef   : > { %v5239_v40 = vpop.permute.xlu1 %5238 }
0x13f0   : > { %v10344_v34 = vpop.eup %10343  ;;  %9550 = vmatpush3.bf16.msra.mxu1 %v5239_v40 }
0x13f1   : > { %v5182_v2 = vmul.f32 %v10344_v34, %v10328_v5  ;;  %v5149_v9 = vpop.xlane.xlu0 %5148  ;;  %9561 = vmatprep.subr.bf16.mxu1 %v13203_v11  ;;  %v13270_v34 = vld [vmem:[#allocation47_spill] sm:$0xff] }
0x13f2   : > { %10349 = vrcp.f32 %v5149_v9 }
0x13f3   : > { %v5286_v50 = vpop.permute.xlu1 %5285  ;;  %v5188_v12 = vpack.c.bf16 %v5182_v2, %v5181_v39 }
0x13f5   : > { %v5192_v26 = vpop.permute.xlu0 %5191  ;;  %9552 = vmatmul.mubr.msk.bf16.vlgmr.msra.gmra.mrb[140].mxu1 %vm2000_vm3, %v5188_v12  ;;  %v13272_v12 = vld [vmem:[#allocation46_spill] sm:$0xff] }
0x13f6   : > { %v10346_v46 = vpop.eup %10345  ;;  %9544 = vmatpush3.bf16.msra.mxu0 %v5192_v26  ;;  %9563 = vmatprep.mubr.msk.bf16.mxu1 %vm10558_vm1, %v13203_v11  ;;  %v13273_v26 = vld [vmem:[#allocation48_spill] sm:$0xff] }
0x13f7   : > { %v5333_v24 = vpop.permute.xlu1 %5332  ;;  %9555 = vmatprep.subr.bf16.mxu0 %v13203_v11  ;;  %v5186_v22 = vmul.f32 %v10346_v46, %v10330_v3 }
0x13f8   : > { %v10348_v4 = vpop.eup %10347  ;;  %9562 = vmatpush3.bf16.msra.mxu1 %v5333_v24 }
0x13f9   : > { %v5185_v5 = vmul.f32 %v10348_v4, %v10332_v49  ;;  %9573 = vmatprep.subr.bf16.mxu1 %v13203_v11 }
0x13fb   : > { %v5190_v35 = vpack.c.bf16 %v5186_v22, %v5185_v5 }
0x13fc   : > { %v10350_v6 = vpop.eup %10349 }
0x13fd   : > { %9564 = vmatmul.mubr.msk.bf16.vlgmr.msra.gmra.mrb[144].mxu1 %vm2000_vm3, %v5190_v35  ;;  %v5179_v10 = vmul.f32 %v10350_v6, %v12219_v16 }
0x13fe   : > { %9575 = vmatprep.mubr.msk.bf16.mxu1 %vm10558_vm1, %v13203_v11 }
0x1426   : > { %v5161_v62 = vpop.xlane.xlu0 %5160 }
0x1428   : > { %v5152_v52 = vpop.xlane.xlu1 %5151 }
0x1429   : > { %10351 = vrcp.f32 %v5152_v52 }
0x142c   : > { %v5164_v18 = vpop.xlane.xlu1 %5163 }
0x142d   : > { %10353 = vrcp.f32 %v5164_v18  ;;  %v13276_v18 = vld [vmem:[#allocation51_spill] sm:$0xff] }
0x142e   : > { %10355 = vrcp.f32 %v5161_v62 }
0x1430   : > { %v5426_v15 = vpop.permute.xlu1 %5425 }
0x1431   : > { %v5428_v3 = vsel %vm1811_vm2, %v5426_v15, 0 }
0x1432   : > { %9574 = vmatpush3.bf16.xpose.msra.mxu1 %v5428_v3 }
0x1433   : > { %v10352_v49 = vpop.eup %10351  ;;  %9585 = vmatprep.subr.bf16.mxu1 %v13203_v11 }
0x1434   : > { %v5180_v23 = vmul.f32 %v10352_v49, %v10338_v43  ;;  %v5518_v1 = vpop.permute.xlu1 %5517  ;;  %v5380_v43 = vpop.permute.xlu0 %5379 }
0x1435   : > { %v5520_v40 = vsel %vm1811_vm2, %v5518_v1, 0  ;;  %v5382_v9 = vsel %vm1811_vm2, %v5380_v43, 0 }
0x1436   : > { %v5187_v53 = vpack.c.bf16 %v5180_v23, %v5179_v10 }
0x1437   : > { %v10354_v63 = vpop.eup %10353 }
0x1438   : > { %9546 = vmatmul.mubr.msk.bf16.vlgmr.msra.gmra.mrb[132].mxu0 %vm2000_vm3, %v5187_v53  ;;  %v10356_v54 = vpop.eup %10355  ;;  %v5184_v39 = vmul.f32 %v10354_v63, %v12238_v27  ;;  %v13271_v27 = vld [vmem:[#allocation49_spill] sm:$0xff] }
0x1439   : > { %9556 = vmatpush3.bf16.msra.mxu0 %v5286_v50  ;;  %9576 = vmatmul.mubr.msk.bf16.vlgmr.msra.gmra.mrb[148].mxu1 %vm1811_vm2, %v13270_v34  ;;  %v5183_v16 = vmul.f32 %v10356_v54, %v12233_v42  ;;  %v5472_v42 = vpop.permute.xlu0 %5471 }
0x143a   : > { %9586 = vmatpush3.bf16.xpose.msra.mxu1 %v5520_v40  ;;  %9557 = vmatprep.mubr.msk.bf16.mxu0 %vm10558_vm1, %v13203_v11  ;;  %v5474_v50 = vsel %vm1811_vm2, %v5472_v42, 0 }
0x143b   : > { %9567 = vmatprep.subr.bf16.mxu0 %v13203_v11  ;;  %9587 = vmatprep.mubr.msk.bf16.mxu1 %vm10558_vm1, %v13203_v11  ;;  %v5189_v2 = vpack.c.bf16 %v5184_v39, %v5183_v16 }
0x143c   : > { %9597 = vmatprep.subr.bf16.mxu1 %v13203_v11 }
0x1440   : > { %9558 = vmatmul.mubr.msk.bf16.vlgmr.msra.gmra.mrb[136].mxu0 %vm2000_vm3, %v5189_v2 }
0x1441   : > { %9588 = vmatmul.mubr.msk.bf16.vlgmr.msra.gmra.mrb[152].mxu1 %vm1811_vm2, %v13271_v27  ;;  %9569 = vmatprep.mubr.msk.bf16.mxu0 %vm10558_vm1, %v13203_v11 }
0x1442   : > { %9568 = vmatpush3.bf16.xpose.msra.mxu0 %v5382_v9  ;;  %9599 = vmatprep.mubr.msk.bf16.mxu1 %vm10558_vm1, %v13203_v11  ;;  %v13277_v9 = vld [vmem:[#allocation54_spill] sm:$0xff] }
0x1443   : > { %9579 = vmatprep.subr.bf16.mxu0 %v13203_v11 }
0x1449   : > { %9570 = vmatmul.mubr.msk.bf16.vlgmr.msra.gmra.mrb[140].mxu0 %vm1811_vm2, %v13272_v12 }
0x144a   : > { %9580 = vmatpush3.bf16.xpose.msra.mxu0 %v5474_v50  ;;  %9581 = vmatprep.mubr.msk.bf16.mxu0 %vm10558_vm1, %v13203_v11 }
0x144b   : > { %9591 = vmatprep.subr.bf16.mxu0 %v13203_v11 }
0x1451   : > { %9582 = vmatmul.mubr.msk.bf16.vlgmr.msra.gmra.mrb[144].mxu0 %vm1811_vm2, %v13273_v26 }
0x1452   : > { %9593 = vmatprep.mubr.msk.bf16.mxu0 %vm10558_vm1, %v13203_v11 }
0x14c8   : > { %v12293_v46 = vpop.f32.mrb[140].mxu1 }
0x14c9   : > { %v9553_v24 = vpop.f32.mrb[141].mxu1 }
0x14ca   : > { %v12295_v4 = vpop.f32.mrb[142].mxu1 }
0x14cb   : > { %v9554_v5 = vpop.f32.mrb[143].mxu1 }
0x14d0   : > { %v12299_v35 = vpop.f32.mrb[144].mxu1 }
0x14d1   : > { %v9565_v52 = vpop.f32.mrb[145].mxu1 }
0x14d2   : > { %v12301_v62 = vpop.f32.mrb[146].mxu1  ;;  %v13274_v52 = vld [vmem:[#allocation50_spill] sm:$0xff] }
0x14d3   : > { %v9566_v15 = vpop.f32.mrb[147].mxu1 }
0x150b   : > { %v12305_v6 = vpop.f32.mrb[132].mxu0 }
0x150c   : > { %v9547_v3 = vpop.f32.mrb[133].mxu0  ;;  %v5464_v49 = vpop.f32.mrb[148].mxu1 }
0x150d   : > { %v12307_v10 = vpop.f32.mrb[134].mxu0  ;;  %v9577_v23 = vpop.f32.mrb[149].mxu1 }
0x150e   : > { %v9548_v53 = vpop.f32.mrb[135].mxu0  ;;  %v5467_v63 = vpop.f32.mrb[150].mxu1 }
0x150f   : > { %v9578_v54 = vpop.f32.mrb[151].mxu1  ;;  %v13275_v53 = vld [vmem:[#allocation53_spill] sm:$0xff] }
0x1510   : > { %v5465_v54 = vadd.f32 %v13275_v53, %v5464_v49  ;;  %v13279_v49 = vld [vmem:[#allocation52_spill] sm:$0xff] }
0x1513   : > { %v12311_v40 = vpop.f32.mrb[136].mxu0 }
0x1514   : > { %v9559_v39 = vpop.f32.mrb[137].mxu0  ;;  %v5556_v16 = vpop.f32.mrb[152].mxu1 }
0x1515   : > { %v12313_v43 = vpop.f32.mrb[138].mxu0  ;;  %v9589_v2 = vpop.f32.mrb[153].mxu1 }
0x1516   : > { %v9560_v42 = vpop.f32.mrb[139].mxu0  ;;  %v5559_v50 = vpop.f32.mrb[154].mxu1 }
0x1517   : > { %v9590_v24 = vpop.f32.mrb[155].mxu1  ;;  %v5468_v42 = vadd.f32 %v13277_v9, %v5467_v63 }
0x1518   : > { %v5569_v24 = vsel %vm2000_vm3, %v5465_v54, -inf }
0x151c   : > { %v5418_v5 = vpop.f32.mrb[140].mxu0 }
0x151d   : > { %v5419_v15 = vadd.f32 %v13274_v52, %v5418_v5  ;;  %v9571_v3 = vpop.f32.mrb[141].mxu0  ;;  %v13278_v52 = vld [vmem:[#allocation55_spill] sm:$0xff] }
0x151e   : > { %v5421_v23 = vpop.f32.mrb[142].mxu0 }
0x151f   : > { %v5422_v22 = vadd.f32 %v13276_v18, %v5421_v23  ;;  %v9572_v39 = vpop.f32.mrb[143].mxu0  ;;  %v5563_v1 = vsel %vm2000_vm3, %v5419_v15, -inf }
0x1520   : > { %5564 = vmax.xlane.f32.xlu0 %v5563_v1  ;;  %v5572_v39 = vsel %vm2000_vm3, %v5468_v42, -inf  ;;  %v13280_v1 = vld [vmem:[#allocation57_spill] sm:$0xff] }
0x1521   : > { %v5566_v2 = vsel %vm2000_vm3, %v5422_v22, -inf  ;;  %v5560_v18 = vadd.f32 %v13280_v1, %v5559_v50 }
0x1522   : > { %5567 = vmax.xlane.f32.xlu1 %v5566_v2  ;;  %v13281_v2 = vld [vmem:[#allocation56_spill] sm:$0xff] }
0x1523   : > { %v5557_v9 = vadd.f32 %v13281_v2, %v5556_v16 }
0x1524   : > { %v5510_v26 = vpop.f32.mrb[144].mxu0  ;;  %5570 = vmax.xlane.f32.xlu0 %v5569_v24 }
0x1525   : > { %v9583_v5 = vpop.f32.mrb[145].mxu0  ;;  %v5511_v12 = vadd.f32 %v13278_v52, %v5510_v26  ;;  %v5584_v26 = vsel %vm2000_vm3, %v5560_v18, -inf }
0x1526   : > { %v5513_v3 = vpop.f32.mrb[146].mxu0  ;;  %v5581_v5 = vsel %vm2000_vm3, %v5557_v9, -inf }
0x1527   : > { %v12326_v53 = vadd.f32 %v13279_v49, %v5513_v3  ;;  %v9584_v23 = vpop.f32.mrb[147].mxu0  ;;  %v5575_v24 = vsel %vm2000_vm3, %v5511_v12, -inf }
0x1528   : > { %5573 = vmax.xlane.f32.xlu0 %v5572_v39 }
0x1529   : > { %v5578_v63 = vsel %vm2000_vm3, %v12326_v53, -inf }
0x152a   : > { %5579 = vmax.xlane.f32.xlu1 %v5578_v63 }
0x152c   : > { %5576 = vmax.xlane.f32.xlu0 %v5575_v24 }
0x152e   : > { %5585 = vmax.xlane.f32.xlu1 %v5584_v26 }
0x1530   : > { %5582 = vmax.xlane.f32.xlu0 %v5581_v5 }
0x15ad   : > { %v5565_v3 = vpop.xlane.xlu0 %5564 }
0x15ae   : > { %v5587_v34 = vsub.f32 %v5419_v15, %v5565_v3  ;;  %v13283_v3 = vpack.i.bf16 %v12307_v10, %v12305_v6 }
0x15af   : > { %v5568_v49 = vpop.xlane.xlu1 %5567 }
0x15b0   : > { %v5588_v16 = vsub.f32 %v5422_v22, %v5568_v49  ;;  %v5595_v38 = vmul.f32 1.442695, %v5587_v34 }
0x15b1   : > { %v5571_v23 = vpop.xlane.xlu0 %5570 }
0x15b2   : > { %v5589_v39 = vsub.f32 %v5465_v54, %v5571_v23  ;;  %v5597_v26 = vmul.f32 1.442695, %v5588_v16 }
0x15b4   : > { %v5599_v50 = vmul.f32 1.442695, %v5589_v39 }
0x15b5   : > { %v5574_v1 = vpop.xlane.xlu0 %5573 }
0x15b6   : > { %10357 = vpow2.f32 %v5599_v50  ;;  %v5590_v52 = vsub.f32 %v5468_v42, %v5574_v1  ;;  %v13282_v1 = vpack.i.bf16 %v12183_v60, %v12181_v29  ;;  %v13285_v29 = vpack.i.bf16 %v12171_v14, %v12169_v7 }
0x15b7   : > { %v5580_v63 = vpop.xlane.xlu1 %5579  ;;  %v13286_v60 = vpack.i.bf16 %v12295_v4, %v12293_v46 }
0x15b8   : > { %v5601_v27 = vmul.f32 1.442695, %v5590_v52 }
0x15b9   : > { %v5577_v2 = vpop.xlane.xlu0 %5576 }
0x15ba   : > { %10359 = vpow2.f32 %v5601_v27  ;;  %v5591_v54 = vsub.f32 %v5511_v12, %v5577_v2  ;;  %v5592_v2 = vsub.f32 %v12326_v53, %v5580_v63 }
0x15bb   : > { %v5586_v24 = vpop.xlane.xlu1 %5585 }
0x15bc   : > { %v5594_v51 = vsub.f32 %v5560_v18, %v5586_v24  ;;  %v5603_v27 = vmul.f32 1.442695, %v5591_v54  ;;  %v5605_v39 = vmul.f32 1.442695, %v5592_v2  ;;  %v13289_v2 = vld [vmem:[#allocation8_spill] sm:$0xff] }
0x15bd   : > { %v5583_v61 = vpop.xlane.xlu0 %5582 }
0x15be   : > { %v5609_v44 = vmul.f32 1.442695, %v5594_v51  ;;  %v5593_v5 = vsub.f32 %v5557_v9, %v5583_v61 }
0x15c0   : > { %v10358_v21 = vpop.eup %10357  ;;  %10361 = vpow2.f32 %v5609_v44  ;;  %v5607_v23 = vmul.f32 1.442695, %v5593_v5 }
0x15c1   : > { %10363 = vpow2.f32 %v5597_v26  ;;  %v5617_v42 = vsel %vm2000_vm3, %v10358_v21, 0.0 }
0x15c2   : > { %10365 = vpow2.f32 %v5607_v23  ;;  %5618 = vadd.xlane.f32.xlu0 %v5617_v42 }
0x15c3   : > { %10367 = vpow2.f32 %v5595_v38 }
0x15c4   : > { %v10360_v22 = vpop.eup %10359  ;;  %10369 = vpow2.f32 %v5603_v27 }
0x15c5   : > { %v5620_v52 = vsel %vm2000_vm3, %v10360_v22, 0.0  ;;  %10371 = vpow2.f32 %v5605_v39 }
0x15c6   : > { %5621 = vadd.xlane.f32.xlu1 %v5620_v52 }
0x15ca   : > { %v12338_v18 = vpop.eup %10361 }
0x15cb   : > { %v10364_v61 = vpop.eup %10363  ;;  %v5632_v51 = vsel %vm2000_vm3, %v12338_v18, 0.0 }
0x15cc   : > { %v12342_v44 = vpop.eup %10365  ;;  %5633 = vadd.xlane.f32.xlu1 %v5632_v51  ;;  %v5614_v38 = vsel %vm2000_vm3, %v10364_v61, 0.0 }
0x15cd   : > { %v5629_v34 = vsel %vm2000_vm3, %v12342_v44, 0.0  ;;  %v10368_v12 = vpop.eup %10367 }
0x15ce   : > { %5630 = vadd.xlane.f32.xlu0 %v5629_v34  ;;  %v5611_v9 = vsel %vm2000_vm3, %v10368_v12, 0.0  ;;  %v12348_v15 = vpop.eup %10369 }
0x15cf   : > { %v5623_v49 = vsel %vm2000_vm3, %v12348_v15, 0.0 }
0x15d0   : > { %5615 = vadd.xlane.f32.xlu1 %v5614_v38 }
0x15d2   : > { %5612 = vadd.xlane.f32.xlu0 %v5611_v9 }
0x15d6   : > { %5624 = vadd.xlane.f32.xlu0 %v5623_v49 }
0x15e1   : > { %5702 = vrot.lane.b32.xlu1 %v11195_v58, %s10561_s16  ;;  %v13284_v58 = vpack.i.bf16 %v12189_v48, %v12187_v25  ;;  %v13287_v25 = vpack.i.bf16 %v12177_v56, %v12175_v59 }
0x15e5   : > { %5749 = vrot.lane.b32.xlu1 %v13244_v57, %s10561_s16 }
0x15ec   : > { %5655 = vrot.lane.b32.xlu0 %v13239_v37, %s10561_s16  ;;  %v10372_v37 = vpop.eup %10371 }
0x15ed   : > { %v5626_v57 = vsel %vm2000_vm3, %v10372_v37, 0.0 }
0x15f0   : > { %9946 = vrot.lane.b32.xlu0 %v13282_v1, %s10562_s18  ;;  %v13288_v1 = vld [vmem:[#allocation10_spill] sm:$0xff] }
0x15f4   : > { %9956 = vrot.lane.b32.xlu0 %v13283_v3, %s10563_s19  ;;  %v6155_v3 = vsel %vm1811_vm2, %v13289_v2, 0 }
0x15f8   : > { %9966 = vrot.lane.b32.xlu0 %v13284_v58, %s10562_s18  ;;  %v10082_v58 = vld [vmem:[%s13073_s9 + $0x18] sm:$0xff]  }
0x1609   : > { %5627 = vadd.xlane.f32.xlu1 %v5626_v57 }
0x161a   : > { %5796 = vrot.lane.b32.xlu1 %v13245_v0, %s10561_s16 }
0x161e   : > { %9951 = vrot.lane.b32.xlu1 %v13285_v29, %s10562_s18 }
0x1622   : > { %9961 = vrot.lane.b32.xlu1 %v13286_v60, %s10563_s19 }
0x1626   : > { %9971 = vrot.lane.b32.xlu1 %v13287_v25, %s10562_s18  ;;  %v13292_v25 = vpack.i.bf16 %v12301_v62, %v12299_v35 }
0x164f   : > { %v5619_v48 = vpop.xlane.xlu0 %5618 }
0x1650   : > { %10373 = vrcp.f32 %v5619_v48 }
0x1653   : > { %v5622_v6 = vpop.xlane.xlu1 %5621 }
0x1654   : > { %10375 = vrcp.f32 %v5622_v6 }
0x1659   : > { %v5634_v0 = vpop.xlane.xlu1 %5633 }
0x165a   : > { %v10374_v53 = vpop.eup %10373 }
0x165b   : > { %v5631_v10 = vpop.xlane.xlu0 %5630  ;;  %v5645_v46 = vmul.f32 %v10374_v53, %v10358_v21 }
0x165d   : > { %v5616_v50 = vpop.xlane.xlu1 %5615 }
0x165e   : > { %v10376_v7 = vpop.eup %10375  ;;  %10377 = vrcp.f32 %v5616_v50  ;;  %v13293_v50 = vpack.i.bf16 %v12313_v43, %v12311_v40 }
0x165f   : > { %v5646_v14 = vmul.f32 %v10376_v7, %v10360_v22  ;;  %v5613_v63 = vpop.xlane.xlu0 %5612 }
0x1660   : > { %10379 = vrcp.f32 %v5613_v63 }
0x1661   : > { %v5703_v4 = vpop.permute.xlu1 %5702  ;;  %v5652_v24 = vpack.c.bf16 %v5646_v14, %v5645_v46  ;;  %10381 = vrcp.f32 %v5631_v10 }
0x1662   : > { %9598 = vmatpush3.bf16.msra.mxu1 %v5703_v4  ;;  %10383 = vrcp.f32 %v5634_v0 }
0x1663   : > { %v5625_v16 = vpop.xlane.xlu0 %5624  ;;  %9609 = vmatprep.subr.bf16.mxu1 %v13203_v11 }
0x1664   : > { %10385 = vrcp.f32 %v5625_v16 }
0x1665   : > { %9600 = vmatmul.mubr.msk.bf16.vlgmr.msra.gmra.mrb[156].mxu1 %vm2000_vm3, %v5652_v24  ;;  %v5750_v23 = vpop.permute.xlu1 %5749 }
0x1666   : > { %9611 = vmatprep.mubr.msk.bf16.mxu1 %vm10558_vm1, %v13203_v11 }
0x1667   : > { %v5656_v59 = vpop.permute.xlu0 %5655 }
0x1668   : > { %v10378_v56 = vpop.eup %10377  ;;  %9592 = vmatpush3.bf16.msra.mxu0 %v5656_v59 }
0x1669   : > { %9603 = vmatprep.subr.bf16.mxu0 %v13203_v11  ;;  %v5644_v5 = vmul.f32 %v10378_v56, %v10364_v61 }
0x166a   : > { %v10380_v26 = vpop.eup %10379 }
0x166b   : > { %v5643_v54 = vmul.f32 %v10380_v26, %v10368_v12  ;;  %v10382_v42 = vpop.eup %10381 }
0x166c   : > { %v10384_v27 = vpop.eup %10383  ;;  %v5649_v52 = vmul.f32 %v10382_v42, %v12342_v44  ;;  %v6111_v44 = vsel %vm1811_vm2, %v13288_v1, 0 }
0x166d   : > { %v5651_v21 = vpack.c.bf16 %v5644_v5, %v5643_v54  ;;  %v5650_v61 = vmul.f32 %v10384_v27, %v12338_v18 }
0x166e   : > { %v10386_v12 = vpop.eup %10385 }
0x166f   : > { %9594 = vmatmul.mubr.msk.bf16.vlgmr.msra.gmra.mrb[148].mxu0 %vm2000_vm3, %v5651_v21  ;;  %v5654_v34 = vpack.c.bf16 %v5650_v61, %v5649_v52  ;;  %v5647_v9 = vmul.f32 %v10386_v12, %v12348_v15  ;;  %v13290_v15 = vld [vmem:[#allocation12_spill] sm:$0xff] }
0x1670   : > { %9604 = vmatpush3.bf16.msra.mxu0 %v5750_v23  ;;  %9605 = vmatprep.mubr.msk.bf16.mxu0 %vm10558_vm1, %v13203_v11  ;;  %v6243_v39 = vsel %vm1811_vm2, %v13290_v15, 0 }
0x1696   : > { %v5628_v22 = vpop.xlane.xlu1 %5627 }
0x1697   : > { %10387 = vrcp.f32 %v5628_v22 }
0x169a   : > { %v5797_v51 = vpop.permute.xlu1 %5796 }
0x169b   : > { %9610 = vmatpush3.bf16.msra.mxu1 %v5797_v51 }
0x169c   : > { %9627 = vmatprep.subr.bf16.mxu1 %v13203_v11 }
0x169e   : > { %9612 = vmatmul.mubr.msk.bf16.vlgmr.msra.gmra.mrb[160].mxu1 %vm2000_vm3, %v5654_v34 }
0x169f   : > { %9629 = vmatprep.mubr.msk.bf16.mxu1 %vm10558_vm1, %v13203_v11 }
0x16a1   : > { %v10388_v38 = vpop.eup %10387 }
0x16a2   : > { %v5648_v49 = vmul.f32 %v10388_v38, %v10372_v37 }
0x16a4   : > { %9628 = vmatpush3.bf16.xpose.msra.mxu1 %v6111_v44  ;;  %v5653_v18 = vpack.c.bf16 %v5648_v49, %v5647_v9  ;;  %v9952_v9 = vpop.permute.xlu1 %9951 }
0x16a5   : > { %9633 = vmatprep.subr.bf16.mxu1 %v13203_v11 }
0x16a6   : > { %9606 = vmatmul.mubr.msk.bf16.vlgmr.msra.gmra.mrb[152].mxu0 %vm2000_vm3, %v5653_v18  ;;  %v9947_v18 = vpop.permute.xlu0 %9946 }
0x16a8   : > { %v9962_v44 = vpop.permute.xlu1 %9961 }
0x16ab   : > { %9630 = vmatmul.mubr.msk.bf16.vlgmr.msra.gmra.mrb[164].mxu1 %vm1811_vm2, %v11136_v13  ;;  %v13291_v13 = vld [vmem:[#allocation9_spill] sm:$0xff] }
0x16ac   : > { %9634 = vmatpush3.bf16.xpose.msra.mxu1 %v6155_v3  ;;  %9635 = vmatprep.mubr.msk.bf16.mxu1 %vm10558_vm1, %v13203_v11  ;;  %v9954_v3 = vunpack.i.h.bf16 %v9952_v9 }
0x16ad   : > { %9645 = vmatprep.subr.bf16.mxu1 %v13203_v11 }
0x16b3   : > { %9636 = vmatmul.mubr.msk.bf16.vlgmr.msra.gmra.mrb[168].mxu1 %vm1811_vm2, %v11132_v47  ;;  %v10081_v47 = vld [vmem:[%s13073_s9 + $0x10] sm:$0xff]  }
0x16b4   : > { %9646 = vmatpush3.bf16.xpose.msra.mxu1 %v6243_v39  ;;  %9647 = vmatprep.mubr.msk.bf16.mxu1 %vm10558_vm1, %v13203_v11  ;;  %v9953_v39 = vunpack.i.l.bf16 %v9952_v9 }
0x16b5   : > { %9657 = vmatprep.subr.bf16.mxu1 %v13203_v11  ;;  %9615 = vmatprep.subr.bf16.mxu0 %v10081_v47 }
0x16b6   : > { %9616 = vmatpush3.bf16.msra.mxu0 %v10081_v47  ;;  %v9964_v47 = vunpack.i.h.bf16 %v9962_v44 }
0x16b7   : > { %9617 = vmatprep.subr.bf16.mxu0 %v10082_v58 }
0x16ba   : > { %9618 = vmatpush3.bf16.msra.mxu0 %v10082_v58  ;;  %v9963_v58 = vunpack.i.l.bf16 %v9962_v44 }
0x16bb   : > { %9648 = vmatmul.mubr.msk.bf16.vlgmr.msra.gmra.mrb[172].mxu1 %vm1811_vm2, %v11125_v33  ;;  %9639 = vmatprep.subr.bf16.mxu0 %v13203_v11 }
0x16bc   : > { %9658 = vmatpush3.bf16.msra.mxu1 %v13291_v13  ;;  %9659 = vmatprep.mubr.msk.bf16.mxu1 %vm10558_vm1, %v13203_v11 }
0x16bd   : > { %9669 = vmatprep.subr.bf16.mxu1 %v13203_v11 }
0x1738   : > { %v5742_v37 = vpop.f32.mrb[156].mxu1 }
0x1739   : > { %v9601_v33 = vpop.f32.mrb[157].mxu1 }
0x173a   : > { %v5745_v57 = vpop.f32.mrb[158].mxu1 }
0x173b   : > { %v9975_v29 = vpack.i.bf16 %v5745_v57, %v5742_v37  ;;  %v9602_v60 = vpop.f32.mrb[159].mxu1  ;;  %v9957_v37 = vpop.permute.xlu0 %9956  ;;  %v5941_v57 = vsel %vm1811_vm2, %v12048_v32, %v9953_v39 }
0x173d   : > { %9976 = vrot.lane.b32.xlu1 %v9975_v29, %s10564_s17 }
0x1741   : > { %9991 = vrot.lane.b32.xlu1 %v13292_v25, %s10563_s19  ;;  %v5949_v25 = vsel %vm2000_vm3, %v5941_v57, %v9963_v58 }
0x1742   : > { %v5695_v48 = vpop.f32.mrb[148].mxu0 }
0x1743   : > { %v9595_v6 = vpop.f32.mrb[149].mxu0 }
0x1744   : > { %v5698_v0 = vpop.f32.mrb[150].mxu0 }
0x1745   : > { %v9980_v10 = vpack.i.bf16 %v5698_v0, %v5695_v48  ;;  %v9596_v53 = vpop.f32.mrb[151].mxu0 }
0x1746   : > { %v9967_v53 = vpop.permute.xlu0 %9966 }
0x1747   : > { %9981 = vrot.lane.b32.xlu0 %v9980_v10, %s10564_s17 }
0x174b   : > { %9986 = vrot.lane.b32.xlu0 %v13293_v50, %s10563_s19  ;;  %v9949_v50 = vunpack.i.h.bf16 %v9947_v18 }
0x174d   : > { %v5940_v32 = vsel %vm1811_vm2, %v12045_v36, %v9949_v50 }
0x1771   : > { %v5836_v7 = vpop.f32.mrb[160].mxu1 }
0x1772   : > { %v9613_v14 = vpop.f32.mrb[161].mxu1 }
0x1773   : > { %v5839_v63 = vpop.f32.mrb[162].mxu1  ;;  %v9959_v14 = vunpack.i.h.bf16 %v9957_v37 }
0x1774   : > { %v10000_v46 = vpack.i.bf16 %v5839_v63, %v5836_v7  ;;  %v9614_v4 = vpop.f32.mrb[163].mxu1  ;;  %v9948_v7 = vunpack.i.l.bf16 %v9947_v18  ;;  %v9958_v63 = vunpack.i.l.bf16 %v9957_v37 }
0x1776   : > { %10001 = vrot.lane.b32.xlu1 %v10000_v46, %s10564_s17  ;;  %v5939_v46 = vsel %vm1811_vm2, %v12043_v41, %v9948_v7 }
0x1779   : > { %v5789_v35 = vpop.f32.mrb[152].mxu0 }
0x177a   : > { %v9607_v62 = vpop.f32.mrb[153].mxu0 }
0x177b   : > { %v5792_v16 = vpop.f32.mrb[154].mxu0  ;;  %v5947_v62 = vsel %vm2000_vm3, %v5939_v46, %v9958_v63 }
0x177c   : > { %v9995_v24 = vpack.i.bf16 %v5792_v16, %v5789_v35  ;;  %v9608_v59 = vpop.f32.mrb[155].mxu0  ;;  %v5948_v16 = vsel %vm2000_vm3, %v5940_v32, %v9959_v14 }
0x177e   : > { %9996 = vrot.lane.b32.xlu0 %v9995_v24, %s10564_s17  ;;  %v6147_v56 = vpop.f32.mrb[164].mxu1 }
0x177f   : > { %v9631_v26 = vpop.f32.mrb[165].mxu1  ;;  %v12452_v51 = vadd.f32 %v11234_v45, %v6147_v56 }
0x1780   : > { %v6150_v5 = vpop.f32.mrb[166].mxu1  ;;  %v13294_v26 = vld [vmem:[#allocation14_spill] sm:$0xff] }
0x1781   : > { %v9632_v54 = vpop.f32.mrb[167].mxu1  ;;  %v12449_v61 = vadd.f32 %v11236_v28, %v6150_v5  ;;  %v6286_v38 = vsel %vm2000_vm3, %v12452_v51, -inf  ;;  %v6199_v36 = vsel %vm1811_vm2, %v13294_v26, 0 }
0x1783   : > { %v6289_v34 = vsel %vm2000_vm3, %v12449_v61, -inf }
0x1786   : > { %v6191_v40 = vpop.f32.mrb[168].mxu1 }
0x1787   : > { %v9637_v43 = vpop.f32.mrb[169].mxu1  ;;  %v12457_v12 = vadd.f32 %v11248_v8, %v6191_v40  ;;  %v9972_v8 = vpop.permute.xlu1 %9971 }
0x1788   : > { %v6194_v21 = vpop.f32.mrb[170].mxu1  ;;  %v9974_v5 = vunpack.i.h.bf16 %v9972_v8  ;;  %v9973_v54 = vunpack.i.l.bf16 %v9972_v8  ;;  %v9969_v8 = vunpack.i.h.bf16 %v9967_v53 }
0x1789   : > { %v9638_v23 = vpop.f32.mrb[171].mxu1  ;;  %v12462_v49 = vadd.f32 %v11252_v17, %v6194_v21  ;;  %v6292_v28 = vsel %vm2000_vm3, %v12457_v12, -inf  ;;  %v5942_v17 = vsel %vm1811_vm2, %v12054_v55, %v9954_v3  ;;  %v9968_v3 = vunpack.i.l.bf16 %v9967_v53 }
0x178a   : > { %v5950_v48 = vsel %vm2000_vm3, %v5942_v17, %v9964_v47  ;;  %v5946_v23 = vsel %vm1811_vm2, %v12063_v20, %v9974_v5 }
0x178b   : > { %v6295_v45 = vsel %vm2000_vm3, %v12462_v49, -inf  ;;  %v5943_v58 = vsel %vm1811_vm2, %v12065_v19, %v9968_v3  ;;  %v13296_v19 = vld [vmem:[#allocation11_spill] sm:$0xff] }
0x178e   : > { %v12444_v42 = vpop.f32.mrb[172].mxu1 }
0x178f   : > { %v9649_v22 = vpop.f32.mrb[173].mxu1 }
0x1790   : > { %v12446_v27 = vpop.f32.mrb[174].mxu1  ;;  %v5945_v22 = vsel %vm1811_vm2, %v12061_v31, %v9973_v54  ;;  %v5944_v31 = vsel %vm1811_vm2, %v12067_v30, %v9969_v8  ;;  %v13295_v30 = vld [vmem:[#allocation4_spill] sm:$0xff] }
0x1791   : > { %v9650_v52 = vpop.f32.mrb[175].mxu1 }
0x179a   : > { %6290 = vmax.xlane.f32.xlu1 %v6289_v34 }
0x179d   : > { %6287 = vmax.xlane.f32.xlu0 %v6286_v38 }
0x17a1   : > { %6293 = vmax.xlane.f32.xlu0 %v6292_v28 }
0x17a5   : > { %6296 = vmax.xlane.f32.xlu0 %v6295_v45 }
0x17af   : > { %v9977_v33 = vpop.permute.xlu1 %9976 }
0x17b0   : > { %v9979_v29 = vunpack.i.h.bf16 %v9977_v33  ;;  %v9978_v60 = vunpack.i.l.bf16 %v9977_v33 }
0x17b2   : > { %v5958_v6 = vsel %vm3845_vm4, %v5950_v48, %v9979_v29  ;;  %v5957_v0 = vsel %vm3845_vm4, %v5949_v25, %v9978_v60  ;;  %v8632_v48 = vld [vmem:[%s13074_s10 + $0x1] ss:$0 sm:$0xff] }
0x17b3   : > { %v5971_v10 = vpack.c.bf16 %v5958_v6, %v5957_v0  ;;  %v9992_v41 = vpop.permute.xlu1 %9991 }
0x17b4   : > { %v9994_v40 = vunpack.i.h.bf16 %v9992_v41  ;;  %v9993_v43 = vunpack.i.l.bf16 %v9992_v41 }
0x17b6   : > { %v5954_v38 = vsel %vm2000_vm3, %v5946_v23, %v9994_v40  ;;  %v5953_v9 = vsel %vm2000_vm3, %v5945_v22, %v9993_v43 }
0x17b9   : > { %v9982_v55 = vpop.permute.xlu0 %9981 }
0x17ba   : > { %v9984_v4 = vunpack.i.h.bf16 %v9982_v55  ;;  %v9983_v35 = vunpack.i.l.bf16 %v9982_v55 }
0x17bc   : > { %v5956_v24 = vsel %vm3845_vm4, %v5948_v16, %v9984_v4  ;;  %v5955_v59 = vsel %vm3845_vm4, %v5947_v62, %v9983_v35 }
0x17bd   : > { %v5970_v56 = vpack.c.bf16 %v5956_v24, %v5955_v59  ;;  %v9987_v28 = vpop.permute.xlu0 %9986 }
0x17be   : > { %v9989_v39 = vunpack.i.h.bf16 %v9987_v28  ;;  %v9988_v47 = vunpack.i.l.bf16 %v9987_v28 }
0x17bf   : > { %9619 = vmatprep.mubr.msk.bf16.mxu0 %vm607_vm0, %v5970_v56 }
0x17c0   : > { %9620 = vmatmul.mubr.msk.bf16.vlgmr.msra.gmra.mrb[156].mxu0 %vm607_vm0, %v5971_v10  ;;  %v5952_v17 = vsel %vm2000_vm3, %v5944_v31, %v9989_v39  ;;  %v5951_v57 = vsel %vm2000_vm3, %v5943_v58, %v9988_v47  ;;  %v13298_v39 = vld [vmem:[#allocation18_spill] sm:$0xff] }
0x17c1   : > { %9640 = vmatpush3.bf16.xpose.msra.mxu0 %v6199_v36  ;;  %v6280_v47 = vadd.f32 %v13298_v39, %v12444_v42 }
0x17c2   : > { %9651 = vmatprep.subr.bf16.mxu0 %v13203_v11 }
0x17e8   : > { %v10002_v21 = vpop.permute.xlu1 %10001 }
0x17e9   : > { %v10004_v52 = vunpack.i.h.bf16 %v10002_v21  ;;  %v10003_v34 = vunpack.i.l.bf16 %v10002_v21 }
0x17eb   : > { %v5962_v45 = vsel %vm3845_vm4, %v5954_v38, %v10004_v52  ;;  %v5961_v44 = vsel %vm3845_vm4, %v5953_v9, %v10003_v34 }
0x17ec   : > { %v5973_v18 = vpack.c.bf16 %v5962_v45, %v5961_v44 }
0x17f0   : > { %v9997_v20 = vpop.permute.xlu0 %9996 }
0x17f1   : > { %v9999_v37 = vunpack.i.h.bf16 %v9997_v20  ;;  %v9998_v33 = vunpack.i.l.bf16 %v9997_v20  ;;  %v13299_v20 = vld [vmem:[#allocation17_spill] sm:$0xff] }
0x17f3   : > { %v5960_v29 = vsel %vm3845_vm4, %v5952_v17, %v9999_v37  ;;  %v5959_v60 = vsel %vm3845_vm4, %v5951_v57, %v9998_v33  ;;  %v13300_v33 = vld [vmem:[#allocation19_spill] sm:$0xff] }
0x17f4   : > { %v5972_v25 = vpack.c.bf16 %v5960_v29, %v5959_v60  ;;  %v6283_v17 = vadd.f32 %v13300_v33, %v12446_v27  ;;  %v6304_v29 = vsel %vm2000_vm3, %v6280_v47, -inf }
0x17f6   : > { %9623 = vmatprep.mubr.msk.bf16.mxu0 %vm607_vm0, %v5972_v25  ;;  %v6307_v42 = vsel %vm2000_vm3, %v6283_v17, -inf }
0x17f7   : > { %9624 = vmatmul.mubr.msk.bf16.gmra.mrb[160].mxu0 %vm607_vm0, %v5973_v18  ;;  %v13297_v18 = vld [vmem:[#allocation16_spill] sm:$0xff] }
0x17f8   : > { %9641 = vmatprep.mubr.msk.bf16.mxu0 %vm10558_vm1, %v13203_v11 }
0x17ff   : > { %9642 = vmatmul.mubr.msk.bf16.vlgmr.msra.gmra.mrb[164].mxu0 %vm1811_vm2, %v13295_v30 }
0x1800   : > { %9652 = vmatpush3.bf16.msra.mxu0 %v13296_v19  ;;  %9653 = vmatprep.mubr.msk.bf16.mxu0 %vm10558_vm1, %v13203_v11 }
0x1801   : > { %9663 = vmatprep.subr.bf16.mxu0 %v13203_v11 }
0x1827   : > { %v6291_v16 = vpop.xlane.xlu1 %6290 }
0x1828   : > { %v6311_v59 = vsub.f32 %v12449_v61, %v6291_v16 }
0x182a   : > { %v6288_v35 = vpop.xlane.xlu0 %6287  ;;  %v6320_v34 = vmul.f32 1.442695, %v6311_v59 }
0x182b   : > { %v6310_v24 = vsub.f32 %v12452_v51, %v6288_v35 }
0x182d   : > { %v6318_v54 = vmul.f32 1.442695, %v6310_v24 }
0x182e   : > { %v6294_v62 = vpop.xlane.xlu0 %6293 }
0x182f   : > { %v6312_v40 = vsub.f32 %v12457_v12, %v6294_v62  ;;  %10389 = vpow2.f32 %v6318_v54 }
0x1830   : > { %10391 = vpow2.f32 %v6320_v34 }
0x1831   : > { %v6322_v28 = vmul.f32 1.442695, %v6312_v40 }
0x1832   : > { %v6297_v36 = vpop.xlane.xlu0 %6296 }
0x1833   : > { %v6313_v51 = vsub.f32 %v12462_v49, %v6297_v36  ;;  %10393 = vpow2.f32 %v6322_v28 }
0x1835   : > { %v6324_v45 = vmul.f32 1.442695, %v6313_v51 }
0x1837   : > { %10395 = vpow2.f32 %v6324_v45 }
0x1839   : > { %v10390_v60 = vpop.eup %10389 }
0x183a   : > { %v10392_v25 = vpop.eup %10391  ;;  %v6334_v30 = vsel %vm2000_vm3, %v10390_v60, 0.0 }
0x1893   : > { %v9621_v6 = vpop.f32.mrb[156].mxu0 }
0x1894   : > { %v6047_v0 = vadd.f32 %v9621_v6, %v8632_v48  ;;  %v6038_v10 = vpop.f32.mrb[157].mxu0  ;;  %v6337_v6 = vsel %vm2000_vm3, %v10392_v25, 0.0 }
0x1895   : > { %v6039_v53 = vadd.f32 %v8632_v48, %v6038_v10  ;;  %v9622_v50 = vpop.f32.mrb[158].mxu0 }
0x1896   : > { %v8730_v7 = vpack.c.bf16 %v6047_v0, %v6047_v0  ;;  %v6050_v14 = vadd.f32 %v9622_v50, %v8632_v48  ;;  %v6041_v63 = vpop.f32.mrb[159].mxu0 }
0x1897   : > { %v8728_v55 = vpack.c.bf16 %v6039_v53, %v6039_v53  ;;  %v6042_v32 = vadd.f32 %v8632_v48, %v6041_v63 }
0x1898   : > { %8649 = vst.msk [vmem:[%s11957_s29 + $0x28] sm:$0xf] %vm3990_vm5, %v8730_v7  ;;  %v8731_v46 = vpack.c.bf16 %v6050_v14, %v6050_v14 }
0x1899   : > { %8647 = vst.msk [vmem:[%s11957_s29 + $0x20] sm:$0xf] %vm3990_vm5, %v8728_v55  ;;  %v8729_v4 = vpack.c.bf16 %v6042_v32, %v6042_v32 }
0x189a   : > { %8650 = vst.msk [vmem:[%s11957_s29 + $0x2c] sm:$0xf] %vm3990_vm5, %v8731_v46 }
0x189b   : > { %8648 = vst.msk [vmem:[%s11957_s29 + $0x24] sm:$0xf] %vm3990_vm5, %v8729_v4 }
0x18ca   : > { %v9625_v56 = vpop.f32.mrb[160].mxu0 }
0x18cb   : > { %v6063_v41 = vadd.f32 %v9625_v56, %v8632_v48  ;;  %v6054_v5 = vpop.f32.mrb[161].mxu0 }
0x18cc   : > { %v6055_v43 = vadd.f32 %v8632_v48, %v6054_v5  ;;  %v9626_v21 = vpop.f32.mrb[162].mxu0 }
0x18cd   : > { %v8734_v23 = vpack.c.bf16 %v6063_v41, %v6063_v41  ;;  %v6066_v22 = vadd.f32 %v9626_v21, %v8632_v48  ;;  %v6057_v52 = vpop.f32.mrb[163].mxu0 }
0x18ce   : > { %v8732_v61 = vpack.c.bf16 %v6055_v43, %v6055_v43  ;;  %v6058_v38 = vadd.f32 %v8632_v48, %v6057_v52  ;;  %v10394_v48 = vpop.eup %10393 }
0x18cf   : > { %8653 = vst.msk [vmem:[%s11957_s29 + $0x38] sm:$0xf] %vm3990_vm5, %v8734_v23  ;;  %v8735_v9 = vpack.c.bf16 %v6066_v22, %v6066_v22  ;;  %v10396_v0 = vpop.eup %10395  ;;  %v6340_v27 = vsel %vm2000_vm3, %v10394_v48, 0.0 }
0x18d0   : > { %8651 = vst.msk [vmem:[%s11957_s29 + $0x30] sm:$0xf] %vm3990_vm5, %v8732_v61  ;;  %v8733_v12 = vpack.c.bf16 %v6058_v38, %v6058_v38  ;;  %v6343_v10 = vsel %vm2000_vm3, %v10396_v0, 0.0 }
0x18d1   : > { %8654 = vst.msk [vmem:[%s11957_s29 + $0x3c] sm:$0xf] %vm3990_vm5, %v8735_v9  ;;  %v13301_v9 = vld [vmem:[#allocation15_spill] sm:$0xff] }
0x18d2   : > { %8652 = vst.msk [vmem:[%s11957_s29 + $0x34] sm:$0xf] %vm3990_vm5, %v8733_v12  ;;  %v6235_v44 = vpop.f32.mrb[164].mxu0  ;;  %v13302_v12 = vld [vmem:[#allocation13_spill] sm:$0xff] }
0x18d3   : > { %v6236_v8 = vadd.f32 %v13297_v18, %v6235_v44  ;;  %v9643_v49 = vpop.f32.mrb[165].mxu0 }
0x18d4   : > { %v6238_v3 = vpop.f32.mrb[166].mxu0 }
0x18d5   : > { %v12542_v31 = vadd.f32 %v13299_v20, %v6238_v3  ;;  %v9644_v58 = vpop.f32.mrb[167].mxu0  ;;  %v6298_v37 = vsel %vm2000_vm3, %v6236_v8, -inf }
0x18d6   : > { %6299 = vmax.xlane.f32.xlu0 %v6298_v37 }
0x18d7   : > { %v6301_v57 = vsel %vm2000_vm3, %v12542_v31, -inf }
0x18d8   : > { %6302 = vmax.xlane.f32.xlu1 %v6301_v57 }
0x18da   : > { %6305 = vmax.xlane.f32.xlu0 %v6304_v29 }
0x18dc   : > { %6308 = vmax.xlane.f32.xlu1 %v6307_v42 }
0x18de   : > { %6335 = vadd.xlane.f32.xlu0 %v6334_v30 }
0x18e0   : > { %6338 = vadd.xlane.f32.xlu1 %v6337_v6 }
0x18e2   : > { %6341 = vadd.xlane.f32.xlu0 %v6340_v27 }
0x18e4   : > { %6344 = vadd.xlane.f32.xlu1 %v6343_v10 }
0x1963   : > { %v6300_v53 = vpop.xlane.xlu0 %6299 }
0x1964   : > { %v6314_v50 = vsub.f32 %v6236_v8, %v6300_v53 }
0x1965   : > { %v6303_v7 = vpop.xlane.xlu1 %6302 }
0x1966   : > { %v6326_v14 = vmul.f32 1.442695, %v6314_v50  ;;  %v6315_v45 = vsub.f32 %v12542_v31, %v6303_v7  ;;  %v13304_v50 = vld [vmem:[#allocation23_spill] sm:$0xff] }
0x1967   : > { %v6306_v63 = vpop.xlane.xlu0 %6305 }
0x1968   : > { %v6316_v55 = vsub.f32 %v6280_v47, %v6306_v63  ;;  %10397 = vpow2.f32 %v6326_v14  ;;  %v6328_v44 = vmul.f32 1.442695, %v6315_v45  ;;  %v13307_v45 = vld [vmem:[#allocation24_spill] sm:$0xff] }
0x1969   : > { %v6309_v32 = vpop.xlane.xlu1 %6308 }
0x196a   : > { %v6330_v46 = vmul.f32 1.442695, %v6316_v55  ;;  %v6317_v4 = vsub.f32 %v6283_v17, %v6309_v32  ;;  %v13303_v17 = vld [vmem:[#allocation21_spill] sm:$0xff] }
0x196b   : > { %v6336_v35 = vpop.xlane.xlu0 %6335 }
0x196c   : > { %10399 = vpow2.f32 %v6330_v46  ;;  %v6332_v62 = vmul.f32 1.442695, %v6317_v4  ;;  %v13305_v4 = vld [vmem:[#allocation20_spill] sm:$0xff] }
0x196d   : > { %10401 = vrcp.f32 %v6336_v35  ;;  %v6339_v16 = vpop.xlane.xlu1 %6338 }
0x196e   : > { %10403 = vpow2.f32 %v6332_v62 }
0x196f   : > { %10405 = vrcp.f32 %v6339_v16  ;;  %v6342_v24 = vpop.xlane.xlu0 %6341 }
0x1970   : > { %10407 = vrcp.f32 %v6342_v24  ;;  %v13306_v24 = vld [vmem:[#allocation22_spill] sm:$0xff] }
0x1971   : > { %v6345_v59 = vpop.xlane.xlu1 %6344 }
0x1972   : > { %10409 = vrcp.f32 %v6345_v59  ;;  %v12555_v56 = vpop.eup %10397 }
0x1973   : > { %v6346_v52 = vsel %vm2000_vm3, %v12555_v56, 0.0  ;;  %10411 = vpow2.f32 %v6328_v44 }
0x1976   : > { %v10400_v36 = vpop.eup %10399 }
0x1977   : > { %v10402_v41 = vpop.eup %10401  ;;  %v6352_v5 = vsel %vm2000_vm3, %v10400_v36, 0.0 }
0x1978   : > { %v10404_v54 = vpop.eup %10403  ;;  %6353 = vadd.xlane.f32.xlu0 %v6352_v5  ;;  %v6366_v23 = vmul.f32 %v10402_v41, %v10390_v60 }
0x1979   : > { %v10406_v40 = vpop.eup %10405  ;;  %v6355_v43 = vsel %vm2000_vm3, %v10404_v54, 0.0 }
0x197a   : > { %v10408_v21 = vpop.eup %10407  ;;  %v6367_v22 = vmul.f32 %v10406_v40, %v10392_v25  ;;  %6356 = vadd.xlane.f32.xlu1 %v6355_v43 }
0x197b   : > { %v6368_v61 = vmul.f32 %v10408_v21, %v10394_v48 }
0x197c   : > { %v10410_v34 = vpop.eup %10409  ;;  %6347 = vadd.xlane.f32.xlu0 %v6346_v52  ;;  %v6374_v51 = vpack.c.bf16 %v6367_v22, %v6366_v23 }
0x197d   : > { %v6369_v38 = vmul.f32 %v10410_v34, %v10396_v0  ;;  %v10412_v18 = vpop.eup %10411 }
0x197e   : > { %9654 = vmatmul.mubr.msk.bf16.vlgmr.msra.gmra.mrb[168].mxu0 %vm2000_vm3, %v6374_v51  ;;  %v6349_v8 = vsel %vm2000_vm3, %v10412_v18, 0.0 }
0x197f   : > { %9664 = vmatpush3.bf16.msra.mxu0 %v13301_v9  ;;  %v6375_v28 = vpack.c.bf16 %v6369_v38, %v6368_v61  ;;  %9665 = vmatprep.mubr.msk.bf16.mxu0 %vm10558_vm1, %v13203_v11 }
0x1980   : > { %9675 = vmatprep.subr.bf16.mxu0 %v13203_v11 }
0x1981   : > { %9660 = vmatmul.mubr.msk.bf16.vlgmr.msra.gmra.mrb[176].mxu1 %vm2000_vm3, %v6375_v28 }
0x1982   : > { %9670 = vmatpush3.bf16.msra.mxu1 %v13302_v12  ;;  %9671 = vmatprep.mubr.msk.bf16.mxu1 %vm10558_vm1, %v13203_v11 }
0x1983   : > { %9681 = vmatprep.subr.bf16.mxu1 %v13203_v11 }
0x198b   : > { %6602 = vrot.lane.b32.xlu1 %v13289_v2, %s10559_s15 }
0x1992   : > { %6555 = vrot.lane.b32.xlu0 %v13288_v1, %s10559_s15 }
0x19af   : > { %6350 = vadd.xlane.f32.xlu1 %v6349_v8 }
0x19c0   : > { %6649 = vrot.lane.b32.xlu1 %v13294_v26, %s10559_s15 }
0x19c4   : > { %6696 = vrot.lane.b32.xlu1 %v13290_v15, %s10559_s15 }
0x1a05   : > { %v6354_v49 = vpop.xlane.xlu0 %6353 }
0x1a06   : > { %10413 = vrcp.f32 %v6354_v49  ;;  %v13308_v49 = vld [vmem:[#allocation29_spill] sm:$0xff] }
0x1a07   : > { %v6357_v3 = vpop.xlane.xlu1 %6356 }
0x1a08   : > { %10415 = vrcp.f32 %v6357_v3 }
0x1a09   : > { %v6348_v57 = vpop.xlane.xlu0 %6347 }
0x1a0a   : > { %10417 = vrcp.f32 %v6348_v57 }
0x1a0b   : > { %v6603_v58 = vpop.permute.xlu1 %6602 }
0x1a0c   : > { %v6605_v33 = vsel %vm1811_vm2, %v6603_v58, 0 }
0x1a0d   : > { %v6556_v27 = vpop.permute.xlu0 %6555 }
0x1a0e   : > { %v6558_v53 = vsel %vm1811_vm2, %v6556_v27, 0  ;;  %v13313_v27 = vld [vmem:[#allocation33_spill] sm:$0xff] }
0x1a10   : > { %v10414_v39 = vpop.eup %10413 }
0x1a11   : > { %v6372_v20 = vmul.f32 %v10414_v39, %v10400_v36  ;;  %v13309_v39 = vld [vmem:[#allocation25_spill] sm:$0xff] }
0x1a12   : > { %v10416_v47 = vpop.eup %10415 }
0x1a13   : > { %v6373_v31 = vmul.f32 %v10416_v47, %v10404_v54 }
0x1a14   : > { %v10418_v25 = vpop.eup %10417 }
0x1a15   : > { %v6377_v37 = vpack.c.bf16 %v6373_v31, %v6372_v20  ;;  %v6370_v6 = vmul.f32 %v10418_v25, %v12555_v56 }
0x1a17   : > { %9672 = vmatmul.mubr.msk.bf16.vlgmr.msra.gmra.mrb[180].mxu1 %vm2000_vm3, %v6377_v37  ;;  %v13310_v37 = vld [vmem:[#allocation30_spill] sm:$0xff] }
0x1a18   : > { %9682 = vmatpush3.bf16.xpose.msra.mxu1 %v6605_v33  ;;  %9683 = vmatprep.mubr.msk.bf16.mxu1 %vm10558_vm1, %v13203_v11 }
0x1a19   : > { %9693 = vmatprep.subr.bf16.mxu1 %v13203_v11 }
0x1a1f   : > { %9684 = vmatmul.mubr.msk.bf16.vlgmr.msra.gmra.mrb[184].mxu1 %vm1811_vm2, %v13303_v17 }
0x1a20   : > { %9695 = vmatprep.mubr.msk.bf16.mxu1 %vm10558_vm1, %v13203_v11 }
0x1a3c   : > { %v6351_v29 = vpop.xlane.xlu1 %6350 }
0x1a3d   : > { %10419 = vrcp.f32 %v6351_v29 }
0x1a40   : > { %v6650_v60 = vpop.permute.xlu1 %6649 }
0x1a41   : > { %v6652_v55 = vsel %vm1811_vm2, %v6650_v60, 0 }
0x1a44   : > { %v6697_v42 = vpop.permute.xlu1 %6696 }
0x1a45   : > { %v6699_v30 = vsel %vm1811_vm2, %v6697_v42, 0  ;;  %v13311_v42 = vld [vmem:[#allocation31_spill] sm:$0xff] }
0x1a46   : > { %9694 = vmatpush3.bf16.xpose.msra.mxu1 %v6699_v30  ;;  %v13312_v30 = vld [vmem:[#allocation26_spill] sm:$0xff] }
0x1a47   : > { %v10420_v48 = vpop.eup %10419  ;;  %9705 = vmatprep.subr.bf16.mxu1 %v13203_v11 }
0x1a48   : > { %v6371_v0 = vmul.f32 %v10420_v48, %v10412_v18 }
0x1a4a   : > { %v6376_v10 = vpack.c.bf16 %v6371_v0, %v6370_v6 }
0x1a4c   : > { %9666 = vmatmul.mubr.msk.bf16.vlgmr.msra.gmra.mrb[172].mxu0 %vm2000_vm3, %v6376_v10 }
0x1a4d   : > { %9676 = vmatpush3.bf16.xpose.msra.mxu0 %v6558_v53  ;;  %9696 = vmatmul.mubr.msk.bf16.vlgmr.msra.gmra.mrb[188].mxu1 %vm1811_vm2, %v13304_v50  ;;  %v13314_v50 = vld [vmem:[#allocation32_spill] sm:$0xff] }
0x1a4e   : > { %9677 = vmatprep.mubr.msk.bf16.mxu0 %vm10558_vm1, %v13203_v11  ;;  %9687 = vmatprep.subr.bf16.mxu0 %v13203_v11 }
0x1a4f   : > { %9707 = vmatprep.mubr.msk.bf16.mxu1 %vm10558_vm1, %v13203_v11 }
0x1a51   : > { %v12602_v7 = vpop.f32.mrb[168].mxu0 }
0x1a52   : > { %v9655_v14 = vpop.f32.mrb[169].mxu0 }
0x1a53   : > { %v12604_v63 = vpop.f32.mrb[170].mxu0 }
0x1a54   : > { %v9656_v32 = vpop.f32.mrb[171].mxu0  ;;  %v12607_v46 = vpop.f32.mrb[176].mxu1  ;;  %9678 = vmatmul.mubr.msk.bf16.vlgmr.msra.gmra.mrb[176].mxu0 %vm1811_vm2, %v13305_v4 }
0x1a55   : > { %9688 = vmatpush3.bf16.xpose.msra.mxu0 %v6652_v55  ;;  %v9661_v35 = vpop.f32.mrb[177].mxu1  ;;  %9689 = vmatprep.mubr.msk.bf16.mxu0 %vm10558_vm1, %v13203_v11 }
0x1a56   : > { %v12613_v62 = vpop.f32.mrb[178].mxu1  ;;  %9699 = vmatprep.subr.bf16.mxu0 %v13203_v11 }
0x1a57   : > { %v9662_v16 = vpop.f32.mrb[179].mxu1 }
0x1a5c   : > { %9690 = vmatmul.mubr.msk.bf16.vlgmr.msra.gmra.mrb[180].mxu0 %vm1811_vm2, %v13306_v24 }
0x1a5d   : > { %9701 = vmatprep.mubr.msk.bf16.mxu0 %vm10558_vm1, %v13203_v11 }
0x1aea   : > { %v12620_v59 = vpop.f32.mrb[180].mxu1 }
0x1aeb   : > { %v9673_v56 = vpop.f32.mrb[181].mxu1 }
0x1aec   : > { %v12622_v36 = vpop.f32.mrb[182].mxu1 }
0x1aed   : > { %v9674_v41 = vpop.f32.mrb[183].mxu1 }
0x1af2   : > { %v6641_v5 = vpop.f32.mrb[184].mxu1 }
0x1af3   : > { %v9685_v54 = vpop.f32.mrb[185].mxu1  ;;  %v6642_v3 = vadd.f32 %v13308_v49, %v6641_v5 }
0x1af4   : > { %v6644_v40 = vpop.f32.mrb[186].mxu1 }
0x1af5   : > { %v9686_v43 = vpop.f32.mrb[187].mxu1  ;;  %v6645_v33 = vadd.f32 %v13310_v37, %v6644_v40  ;;  %v6748_v17 = vsel %vm2000_vm3, %v6642_v3, -inf }
0x1af7   : > { %v6751_v0 = vsel %vm2000_vm3, %v6645_v33, -inf }
0x1b1f   : > { %v12624_v21 = vpop.f32.mrb[172].mxu0 }
0x1b20   : > { %v9667_v23 = vpop.f32.mrb[173].mxu0  ;;  %v6735_v22 = vpop.f32.mrb[188].mxu1 }
0x1b21   : > { %v12626_v52 = vpop.f32.mrb[174].mxu0  ;;  %v9697_v34 = vpop.f32.mrb[189].mxu1  ;;  %v6736_v14 = vadd.f32 %v13314_v50, %v6735_v22 }
0x1b22   : > { %v9668_v51 = vpop.f32.mrb[175].mxu0  ;;  %v6738_v61 = vpop.f32.mrb[190].mxu1 }
0x1b23   : > { %v9698_v38 = vpop.f32.mrb[191].mxu1  ;;  %v6739_v10 = vadd.f32 %v13313_v27, %v6738_v61  ;;  %v6760_v4 = vsel %vm2000_vm3, %v6736_v14, -inf }
0x1b25   : > { %v6763_v32 = vsel %vm2000_vm3, %v6739_v10, -inf }
0x1b27   : > { %v6594_v28 = vpop.f32.mrb[176].mxu0 }
0x1b28   : > { %v6595_v44 = vadd.f32 %v13307_v45, %v6594_v28  ;;  %v9679_v18 = vpop.f32.mrb[177].mxu0 }
0x1b29   : > { %v6597_v8 = vpop.f32.mrb[178].mxu0 }
0x1b2a   : > { %v12631_v47 = vadd.f32 %v13309_v39, %v6597_v8  ;;  %v9680_v20 = vpop.f32.mrb[179].mxu0  ;;  %v6742_v31 = vsel %vm2000_vm3, %v6595_v44, -inf }
0x1b2b   : > { %6743 = vmax.xlane.f32.xlu0 %v6742_v31 }
0x1b2c   : > { %v6745_v58 = vsel %vm2000_vm3, %v12631_v47, -inf }
0x1b2d   : > { %6746 = vmax.xlane.f32.xlu1 %v6745_v58 }
0x1b2f   : > { %6749 = vmax.xlane.f32.xlu0 %v6748_v17  ;;  %v6688_v57 = vpop.f32.mrb[180].mxu0 }
0x1b30   : > { %v9691_v29 = vpop.f32.mrb[181].mxu0  ;;  %v6689_v25 = vadd.f32 %v13311_v42, %v6688_v57 }
0x1b31   : > { %v6691_v60 = vpop.f32.mrb[182].mxu0 }
0x1b32   : > { %v12640_v48 = vadd.f32 %v13312_v30, %v6691_v60  ;;  %v9692_v6 = vpop.f32.mrb[183].mxu0  ;;  %v6754_v55 = vsel %vm2000_vm3, %v6689_v25, -inf }
0x1b33   : > { %6752 = vmax.xlane.f32.xlu0 %v6751_v0 }
0x1b34   : > { %v6757_v53 = vsel %vm2000_vm3, %v12640_v48, -inf }
0x1b35   : > { %6758 = vmax.xlane.f32.xlu1 %v6757_v53 }
0x1b37   : > { %6755 = vmax.xlane.f32.xlu0 %v6754_v55 }
0x1b39   : > { %6764 = vmax.xlane.f32.xlu1 %v6763_v32 }
0x1b3b   : > { %6761 = vmax.xlane.f32.xlu0 %v6760_v4 }
0x1bb8   : > { %v6744_v35 = vpop.xlane.xlu0 %6743 }
0x1bb9   : > { %v6766_v34 = vsub.f32 %v6595_v44, %v6744_v35 }
0x1bba   : > { %v6747_v56 = vpop.xlane.xlu1 %6746 }
0x1bbb   : > { %v6774_v18 = vmul.f32 1.442695, %v6766_v34  ;;  %v6767_v57 = vsub.f32 %v12631_v47, %v6747_v56 }
0x1bbc   : > { %v6750_v16 = vpop.xlane.xlu0 %6749 }
0x1bbd   : > { %v6768_v24 = vsub.f32 %v6642_v3, %v6750_v16  ;;  %v6776_v60 = vmul.f32 1.442695, %v6767_v57 }
0x1bbf   : > { %v6778_v41 = vmul.f32 1.442695, %v6768_v24 }
0x1bc0   : > { %v6753_v5 = vpop.xlane.xlu0 %6752 }
0x1bc1   : > { %10421 = vpow2.f32 %v6778_v41  ;;  %v6769_v54 = vsub.f32 %v6645_v33, %v6753_v5 }
0x1bc2   : > { %v6759_v40 = vpop.xlane.xlu1 %6758 }
0x1bc3   : > { %v6780_v43 = vmul.f32 1.442695, %v6769_v54  ;;  %v6771_v42 = vsub.f32 %v12640_v48, %v6759_v40 }
0x1bc4   : > { %v6756_v23 = vpop.xlane.xlu0 %6755 }
0x1bc5   : > { %10423 = vpow2.f32 %v6780_v43  ;;  %v6770_v17 = vsub.f32 %v6689_v25, %v6756_v23  ;;  %v6784_v30 = vmul.f32 1.442695, %v6771_v42  ;;  %v13316_v42 = vld [vmem:[#allocation37_spill] sm:$0xff] }
0x1bc6   : > { %v6765_v22 = vpop.xlane.xlu1 %6764 }
0x1bc7   : > { %v6773_v51 = vsub.f32 %v6739_v10, %v6765_v22  ;;  %v6782_v29 = vmul.f32 1.442695, %v6770_v17 }
0x1bc8   : > { %v6762_v61 = vpop.xlane.xlu0 %6761 }
0x1bc9   : > { %v6788_v38 = vmul.f32 1.442695, %v6773_v51  ;;  %v6772_v28 = vsub.f32 %v6736_v14, %v6762_v61 }
0x1bcb   : > { %v10422_v45 = vpop.eup %10421  ;;  %10425 = vpow2.f32 %v6788_v38  ;;  %v6786_v8 = vmul.f32 1.442695, %v6772_v28 }
0x1bcc   : > { %v6796_v49 = vsel %vm2000_vm3, %v10422_v45, 0.0 }
0x1bcd   : > { %10427 = vpow2.f32 %v6786_v8  ;;  %6797 = vadd.xlane.f32.xlu0 %v6796_v49 }
0x1bce   : > { %10429 = vpow2.f32 %v6774_v18 }
0x1bcf   : > { %v10424_v3 = vpop.eup %10423  ;;  %10431 = vpow2.f32 %v6782_v29 }
0x1bd0   : > { %v6799_v39 = vsel %vm2000_vm3, %v10424_v3, 0.0  ;;  %10433 = vpow2.f32 %v6776_v60 }
0x1bd1   : > { %6800 = vadd.xlane.f32.xlu1 %v6799_v39  ;;  %10435 = vpow2.f32 %v6784_v30 }
0x1bd5   : > { %v10426_v20 = vpop.eup %10425 }
0x1bd6   : > { %v6811_v44 = vsel %vm2000_vm3, %v10426_v20, 0.0 }
0x1bd7   : > { %v10428_v31 = vpop.eup %10427  ;;  %6812 = vadd.xlane.f32.xlu1 %v6811_v44 }
0x1bd8   : > { %v6808_v58 = vsel %vm2000_vm3, %v10428_v31, 0.0  ;;  %v12654_v37 = vpop.eup %10429 }
0x1bd9   : > { %6809 = vadd.xlane.f32.xlu0 %v6808_v58  ;;  %v6790_v33 = vsel %vm2000_vm3, %v12654_v37, 0.0  ;;  %v12668_v6 = vpop.eup %10431 }
0x1bda   : > { %v10434_v0 = vpop.eup %10433  ;;  %v6802_v27 = vsel %vm2000_vm3, %v12668_v6, 0.0 }
0x1bdb   : > { %v6793_v10 = vsel %vm2000_vm3, %v10434_v0, 0.0  ;;  %v12673_v25 = vpop.eup %10435 }
0x1bdc   : > { %v6805_v47 = vsel %vm2000_vm3, %v12673_v25, 0.0 }
0x1bdd   : > { %6791 = vadd.xlane.f32.xlu0 %v6790_v33  ;;  %v13315_v33 = vld [vmem:[#allocation35_spill] sm:$0xff] }
0x1be8   : > { %6883 = vrot.lane.b32.xlu1 %v13291_v13, %s10559_s15 }
0x1bec   : > { %6931 = vrot.lane.b32.xlu1 %v13301_v9, %s10559_s15 }
0x1bf0   : > { %6979 = vrot.lane.b32.xlu1 %v13302_v12, %s10559_s15 }
0x1bf3   : > { %6835 = vrot.lane.b32.xlu0 %v13296_v19, %s10559_s15 }
0x1c12   : > { %6803 = vadd.xlane.f32.xlu0 %v6802_v27  ;;  %v13318_v27 = vld [vmem:[#allocation36_spill] sm:$0xff] }
0x1c14   : > { %6794 = vadd.xlane.f32.xlu1 %v6793_v10 }
0x1c18   : > { %6806 = vadd.xlane.f32.xlu1 %v6805_v47 }
0x1c28   : > { %7026 = vrot.lane.b32.xlu0 %v13288_v1, %s10560_s14 }
0x1c29   : > { %7072 = vrot.lane.b32.xlu1 %v13289_v2, %s10560_s14 }
0x1c2c   : > { %7118 = vrot.lane.b32.xlu0 %v13294_v26, %s10560_s14 }
0x1c2d   : > { %7164 = vrot.lane.b32.xlu1 %v13290_v15, %s10560_s14 }
0x1c5a   : > { %v6798_v48 = vpop.xlane.xlu0 %6797 }
0x1c5b   : > { %10437 = vrcp.f32 %v6798_v48 }
0x1c5e   : > { %v6801_v53 = vpop.xlane.xlu1 %6800 }
0x1c5f   : > { %10439 = vrcp.f32 %v6801_v53 }
0x1c64   : > { %v6813_v50 = vpop.xlane.xlu1 %6812 }
0x1c65   : > { %10441 = vrcp.f32 %v6813_v50  ;;  %v10438_v55 = vpop.eup %10437 }
0x1c66   : > { %v6810_v14 = vpop.xlane.xlu0 %6809  ;;  %v6824_v35 = vmul.f32 %v10438_v55, %v10422_v45 }
0x1c67   : > { %10443 = vrcp.f32 %v6810_v14 }
0x1c68   : > { %v6884_v32 = vpop.permute.xlu1 %6883 }
0x1c69   : > { %v10440_v4 = vpop.eup %10439  ;;  %9706 = vmatpush3.bf16.msra.mxu1 %v6884_v32 }
0x1c6a   : > { %v6825_v16 = vmul.f32 %v10440_v4, %v10424_v3  ;;  %v6792_v24 = vpop.xlane.xlu0 %6791  ;;  %9717 = vmatprep.subr.bf16.mxu1 %v13203_v11 }
0x1c6b   : > { %10445 = vrcp.f32 %v6792_v24 }
0x1c6c   : > { %v6932_v56 = vpop.permute.xlu1 %6931  ;;  %v6831_v41 = vpack.c.bf16 %v6825_v16, %v6824_v35 }
0x1c6e   : > { %v6836_v5 = vpop.permute.xlu0 %6835  ;;  %9708 = vmatmul.mubr.msk.bf16.vlgmr.msra.gmra.mrb[192].mxu1 %vm2000_vm3, %v6831_v41 }
0x1c6f   : > { %v10442_v54 = vpop.eup %10441  ;;  %9700 = vmatpush3.bf16.msra.mxu0 %v6836_v5  ;;  %9719 = vmatprep.mubr.msk.bf16.mxu1 %vm10558_vm1, %v13203_v11 }
0x1c70   : > { %v6980_v40 = vpop.permute.xlu1 %6979  ;;  %9711 = vmatprep.subr.bf16.mxu0 %v13203_v11  ;;  %v6829_v23 = vmul.f32 %v10442_v54, %v10426_v20 }
0x1c71   : > { %v10444_v43 = vpop.eup %10443  ;;  %9718 = vmatpush3.bf16.msra.mxu1 %v6980_v40 }
0x1c72   : > { %v6828_v22 = vmul.f32 %v10444_v43, %v10428_v31  ;;  %9729 = vmatprep.subr.bf16.mxu1 %v13203_v11 }
0x1c74   : > { %v6833_v34 = vpack.c.bf16 %v6829_v23, %v6828_v22 }
0x1c75   : > { %v10446_v45 = vpop.eup %10445 }
0x1c76   : > { %9720 = vmatmul.mubr.msk.bf16.vlgmr.msra.gmra.mrb[196].mxu1 %vm2000_vm3, %v6833_v34  ;;  %v6822_v49 = vmul.f32 %v10446_v45, %v12654_v37 }
0x1c77   : > { %9731 = vmatprep.mubr.msk.bf16.mxu1 %vm10558_vm1, %v13203_v11 }
0x1c9f   : > { %v6804_v61 = vpop.xlane.xlu0 %6803 }
0x1ca1   : > { %v6795_v51 = vpop.xlane.xlu1 %6794 }
0x1ca2   : > { %10447 = vrcp.f32 %v6795_v51 }
0x1ca3   : > { %v7027_v57 = vpop.permute.xlu0 %7026 }
0x1ca4   : > { %v7029_v60 = vsel %vm1811_vm2, %v7027_v57, 0 }
0x1ca5   : > { %v6807_v38 = vpop.xlane.xlu1 %6806 }
0x1ca6   : > { %10449 = vrcp.f32 %v6807_v38 }
0x1ca7   : > { %10451 = vrcp.f32 %v6804_v61  ;;  %v7119_v30 = vpop.permute.xlu0 %7118 }
0x1ca9   : > { %v7073_v28 = vpop.permute.xlu1 %7072 }
0x1caa   : > { %v7075_v18 = vsel %vm1811_vm2, %v7073_v28, 0 }
0x1cab   : > { %9730 = vmatpush3.bf16.xpose.msra.mxu1 %v7075_v18 }
0x1cac   : > { %v10448_v8 = vpop.eup %10447  ;;  %9741 = vmatprep.subr.bf16.mxu1 %v13203_v11 }
0x1cad   : > { %v6823_v3 = vmul.f32 %v10448_v8, %v10434_v0  ;;  %v7165_v39 = vpop.permute.xlu1 %7164  ;;  %v13317_v0 = vld [vmem:[#allocation34_spill] sm:$0xff] }
0x1cae   : > { %v7167_v58 = vsel %vm1811_vm2, %v7165_v39, 0 }
0x1caf   : > { %v6830_v20 = vpack.c.bf16 %v6823_v3, %v6822_v49  ;;  %v13319_v49 = vld [vmem:[#allocation38_spill] sm:$0xff] }
0x1cb0   : > { %v10450_v44 = vpop.eup %10449 }
0x1cb1   : > { %9702 = vmatmul.mubr.msk.bf16.vlgmr.msra.gmra.mrb[184].mxu0 %vm2000_vm3, %v6830_v20  ;;  %v10452_v31 = vpop.eup %10451  ;;  %v6827_v17 = vmul.f32 %v10450_v44, %v12673_v25  ;;  %v13320_v44 = vld [vmem:[#allocation41_spill] sm:$0xff] }
0x1cb2   : > { %9712 = vmatpush3.bf16.msra.mxu0 %v6932_v56  ;;  %9732 = vmatmul.mubr.msk.bf16.vlgmr.msra.gmra.mrb[200].mxu1 %vm1811_vm2, %v13315_v33  ;;  %v6826_v37 = vmul.f32 %v10452_v31, %v12668_v6  ;;  %v7121_v6 = vsel %vm1811_vm2, %v7119_v30, 0 }
0x1cb3   : > { %9742 = vmatpush3.bf16.xpose.msra.mxu1 %v7167_v58  ;;  %9713 = vmatprep.mubr.msk.bf16.mxu0 %vm10558_vm1, %v13203_v11  ;;  %v13321_v58 = vld [vmem:[#allocation39_spill] sm:$0xff] }
0x1cb4   : > { %9723 = vmatprep.subr.bf16.mxu0 %v13203_v11  ;;  %9743 = vmatprep.mubr.msk.bf16.mxu1 %vm10558_vm1, %v13203_v11  ;;  %v6832_v29 = vpack.c.bf16 %v6827_v17, %v6826_v37 }
0x1cb5   : > { %9753 = vmatprep.subr.bf16.mxu1 %v13203_v11 }
0x1cb9   : > { %9714 = vmatmul.mubr.msk.bf16.vlgmr.msra.gmra.mrb[188].mxu0 %vm2000_vm3, %v6832_v29  ;;  %v13322_v29 = vld [vmem:[#allocation42_spill] sm:$0xff] }
0x1cba   : > { %9744 = vmatmul.mubr.msk.bf16.vlgmr.msra.gmra.mrb[204].mxu1 %vm1811_vm2, %v13316_v42  ;;  %9725 = vmatprep.mubr.msk.bf16.mxu0 %vm10558_vm1, %v13203_v11 }
0x1cbb   : > { %9724 = vmatpush3.bf16.xpose.msra.mxu0 %v7029_v60  ;;  %9755 = vmatprep.mubr.msk.bf16.mxu1 %vm10558_vm1, %v13203_v11 }
0x1cbc   : > { %9735 = vmatprep.subr.bf16.mxu0 %v13203_v11 }
0x1cc2   : > { %9726 = vmatmul.mubr.msk.bf16.vlgmr.msra.gmra.mrb[192].mxu0 %vm1811_vm2, %v13317_v0 }
0x1cc3   : > { %9736 = vmatpush3.bf16.xpose.msra.mxu0 %v7121_v6  ;;  %9737 = vmatprep.mubr.msk.bf16.mxu0 %vm10558_vm1, %v13203_v11 }
0x1cc4   : > { %9747 = vmatprep.subr.bf16.mxu0 %v13203_v11 }
0x1cca   : > { %9738 = vmatmul.mubr.msk.bf16.vlgmr.msra.gmra.mrb[196].mxu0 %vm1811_vm2, %v13318_v27  ;;  %v13323_v27 = vld [vmem:[#allocation43_spill] sm:$0xff] }
0x1ccb   : > { %9749 = vmatprep.mubr.msk.bf16.mxu0 %vm10558_vm1, %v13203_v11 }
0x1d41   : > { %v12728_v10 = vpop.f32.mrb[192].mxu1 }
0x1d42   : > { %v9709_v25 = vpop.f32.mrb[193].mxu1 }
0x1d43   : > { %v12730_v47 = vpop.f32.mrb[194].mxu1 }
0x1d44   : > { %v10010_v48 = vpack.i.bf16 %v12730_v47, %v12728_v10  ;;  %v9710_v53 = vpop.f32.mrb[195].mxu1 }
0x1d45   : > { %v13324_v53 = vld [vmem:[#allocation40_spill] sm:$0xff] }
0x1d49   : > { %v12734_v50 = vpop.f32.mrb[196].mxu1 }
0x1d4a   : > { %v9721_v14 = vpop.f32.mrb[197].mxu1 }
0x1d4b   : > { %v12736_v55 = vpop.f32.mrb[198].mxu1 }
0x1d4c   : > { %v10035_v32 = vpack.i.bf16 %v12736_v55, %v12734_v50  ;;  %v9722_v4 = vpop.f32.mrb[199].mxu1 }
0x1d84   : > { %v12740_v35 = vpop.f32.mrb[184].mxu0 }
0x1d85   : > { %v9703_v16 = vpop.f32.mrb[185].mxu0  ;;  %v7111_v24 = vpop.f32.mrb[200].mxu1 }
0x1d86   : > { %v12742_v56 = vpop.f32.mrb[186].mxu0  ;;  %v9733_v41 = vpop.f32.mrb[201].mxu1  ;;  %v7112_v31 = vadd.f32 %v13320_v44, %v7111_v24  ;;  %v13325_v24 = vld [vmem:[#allocation45_spill] sm:$0xff] }
0x1d87   : > { %v10005_v5 = vpack.i.bf16 %v12742_v56, %v12740_v35  ;;  %v9704_v54 = vpop.f32.mrb[187].mxu0  ;;  %v7114_v40 = vpop.f32.mrb[202].mxu1 }
0x1d88   : > { %v9734_v43 = vpop.f32.mrb[203].mxu1  ;;  %v7115_v60 = vadd.f32 %v13322_v29, %v7114_v40  ;;  %v7216_v42 = vsel %vm2000_vm3, %v7112_v31, -inf  ;;  %v13326_v40 = vld [vmem:[#allocation44_spill] sm:$0xff] }
0x1d8a   : > { %v7219_v16 = vsel %vm2000_vm3, %v7115_v60, -inf }
0x1d8c   : > { %v12746_v23 = vpop.f32.mrb[188].mxu0 }
0x1d8d   : > { %v9715_v22 = vpop.f32.mrb[189].mxu0  ;;  %v7203_v34 = vpop.f32.mrb[204].mxu1 }
0x1d8e   : > { %v12748_v51 = vpop.f32.mrb[190].mxu0  ;;  %v9745_v61 = vpop.f32.mrb[205].mxu1  ;;  %v7204_v43 = vadd.f32 %v13326_v40, %v7203_v34 }
0x1d8f   : > { %v10030_v38 = vpack.i.bf16 %v12748_v51, %v12746_v23  ;;  %v9716_v28 = vpop.f32.mrb[191].mxu0  ;;  %v7206_v45 = vpop.f32.mrb[206].mxu1 }
0x1d90   : > { %v9746_v18 = vpop.f32.mrb[207].mxu1  ;;  %v7207_v41 = vadd.f32 %v13325_v24, %v7206_v45  ;;  %v7228_v28 = vsel %vm2000_vm3, %v7204_v43, -inf }
0x1d92   : > { %v7231_v61 = vsel %vm2000_vm3, %v7207_v41, -inf }
0x1d95   : > { %v7065_v8 = vpop.f32.mrb[192].mxu0 }
0x1d96   : > { %v7066_v3 = vadd.f32 %v13319_v49, %v7065_v8  ;;  %v9727_v39 = vpop.f32.mrb[193].mxu0 }
0x1d97   : > { %v7068_v20 = vpop.f32.mrb[194].mxu0 }
0x1d98   : > { %v12755_v33 = vadd.f32 %v13321_v58, %v7068_v20  ;;  %v9728_v17 = vpop.f32.mrb[195].mxu0  ;;  %v7210_v37 = vsel %vm2000_vm3, %v7066_v3, -inf }
0x1d99   : > { %7211 = vmax.xlane.f32.xlu0 %v7210_v37 }
0x1d9a   : > { %v7213_v57 = vsel %vm2000_vm3, %v12755_v33, -inf }
0x1d9b   : > { %7214 = vmax.xlane.f32.xlu1 %v7213_v57 }
0x1d9d   : > { %7217 = vmax.xlane.f32.xlu0 %v7216_v42  ;;  %v7157_v30 = vpop.f32.mrb[196].mxu0 }
0x1d9e   : > { %v9739_v6 = vpop.f32.mrb[197].mxu0  ;;  %v7158_v25 = vadd.f32 %v13323_v27, %v7157_v30 }
0x1d9f   : > { %v7160_v0 = vpop.f32.mrb[198].mxu0 }
0x1da0   : > { %v12764_v14 = vadd.f32 %v13324_v53, %v7160_v0  ;;  %v9740_v4 = vpop.f32.mrb[199].mxu0  ;;  %v7222_v22 = vsel %vm2000_vm3, %v7158_v25, -inf }
0x1da1   : > { %7220 = vmax.xlane.f32.xlu0 %v7219_v16 }
0x1da2   : > { %v7225_v54 = vsel %vm2000_vm3, %v12764_v14, -inf }
0x1da3   : > { %7226 = vmax.xlane.f32.xlu1 %v7225_v54 }
0x1da5   : > { %7223 = vmax.xlane.f32.xlu0 %v7222_v22 }
0x1da7   : > { %7232 = vmax.xlane.f32.xlu1 %v7231_v61 }
0x1da9   : > { %7229 = vmax.xlane.f32.xlu0 %v7228_v28 }
0x1e26   : > { %v7212_v18 = vpop.xlane.xlu0 %7211 }
0x1e27   : > { %v7234_v57 = vsub.f32 %v7066_v3, %v7212_v18 }
0x1e28   : > { %v7215_v39 = vpop.xlane.xlu1 %7214 }
0x1e29   : > { %v7242_v27 = vmul.f32 1.442695, %v7234_v57  ;;  %v7235_v22 = vsub.f32 %v12755_v33, %v7215_v39 }
0x1e2a   : > { %v7218_v8 = vpop.xlane.xlu0 %7217 }
0x1e2b   : > { %v7236_v49 = vsub.f32 %v7112_v31, %v7218_v8  ;;  %v7244_v28 = vmul.f32 1.442695, %v7235_v22 }
0x1e2d   : > { %v7246_v45 = vmul.f32 1.442695, %v7236_v49 }
0x1e2e   : > { %v7221_v20 = vpop.xlane.xlu0 %7220 }
0x1e2f   : > { %10453 = vpow2.f32 %v7246_v45  ;;  %v7237_v44 = vsub.f32 %v7115_v60, %v7221_v20 }
0x1e30   : > { %v7227_v58 = vpop.xlane.xlu1 %7226 }
0x1e31   : > { %v7248_v17 = vmul.f32 1.442695, %v7237_v44  ;;  %v7239_v18 = vsub.f32 %v12764_v14, %v7227_v58 }
0x1e32   : > { %v7224_v34 = vpop.xlane.xlu0 %7223 }
0x1e33   : > { %10455 = vpow2.f32 %v7248_v17  ;;  %v7252_v8 = vmul.f32 1.442695, %v7239_v18 }
0x1e34   : > { %v7233_v37 = vpop.xlane.xlu1 %7232 }
0x1e35   : > { %v7241_v29 = vsub.f32 %v7207_v41, %v7233_v37 }
0x1e36   : > { %v7230_v42 = vpop.xlane.xlu0 %7229 }
0x1e37   : > { %v7256_v30 = vmul.f32 1.442695, %v7241_v29  ;;  %v7240_v6 = vsub.f32 %v7204_v43, %v7230_v42  ;;  %v7238_v43 = vsub.f32 %v7158_v25, %v7224_v34 }
0x1e39   : > { %v10454_v0 = vpop.eup %10453  ;;  %10457 = vpow2.f32 %v7256_v30  ;;  %v7254_v53 = vmul.f32 1.442695, %v7240_v6  ;;  %v7250_v61 = vmul.f32 1.442695, %v7238_v43 }
0x1e3a   : > { %v7264_v31 = vsel %vm2000_vm3, %v10454_v0, 0.0 }
0x1e3b   : > { %10459 = vpow2.f32 %v7254_v53  ;;  %7265 = vadd.xlane.f32.xlu0 %v7264_v31 }
0x1e3c   : > { %10461 = vpow2.f32 %v7242_v27 }
0x1e3d   : > { %v10456_v4 = vpop.eup %10455  ;;  %10463 = vpow2.f32 %v7250_v61 }
0x1e3e   : > { %v7267_v60 = vsel %vm2000_vm3, %v10456_v4, 0.0  ;;  %10465 = vpow2.f32 %v7244_v28 }
0x1e3f   : > { %7268 = vadd.xlane.f32.xlu1 %v7267_v60  ;;  %10467 = vpow2.f32 %v7252_v8 }
0x1e43   : > { %v10458_v16 = vpop.eup %10457 }
0x1e44   : > { %v7279_v3 = vsel %vm2000_vm3, %v10458_v16, 0.0 }
0x1e45   : > { %v10460_v24 = vpop.eup %10459  ;;  %7280 = vadd.xlane.f32.xlu1 %v7279_v3 }
0x1e46   : > { %v7276_v41 = vsel %vm2000_vm3, %v10460_v24, 0.0  ;;  %v12778_v54 = vpop.eup %10461 }
0x1e47   : > { %7277 = vadd.xlane.f32.xlu0 %v7276_v41  ;;  %v7258_v40 = vsel %vm2000_vm3, %v12778_v54, 0.0  ;;  %v12792_v49 = vpop.eup %10463 }
0x1e48   : > { %v10466_v45 = vpop.eup %10465  ;;  %v7270_v20 = vsel %vm2000_vm3, %v12792_v49, 0.0 }
0x1e49   : > { %v7261_v44 = vsel %vm2000_vm3, %v10466_v45, 0.0  ;;  %v12797_v25 = vpop.eup %10467 }
0x1e4a   : > { %v7273_v33 = vsel %vm2000_vm3, %v12797_v25, 0.0 }
0x1e4b   : > { %7259 = vadd.xlane.f32.xlu0 %v7258_v40 }
0x1e56   : > { %7349 = vrot.lane.b32.xlu1 %v13291_v13, %s10560_s14 }
0x1e5a   : > { %7396 = vrot.lane.b32.xlu1 %v13301_v9, %s10560_s14 }
0x1e5e   : > { %7443 = vrot.lane.b32.xlu1 %v13302_v12, %s10560_s14 }
0x1e61   : > { %7302 = vrot.lane.b32.xlu0 %v13296_v19, %s10560_s14 }
0x1e80   : > { %7271 = vadd.xlane.f32.xlu0 %v7270_v20 }
0x1e82   : > { %7262 = vadd.xlane.f32.xlu1 %v7261_v44  ;;  %v13327_v44 = vld [vmem:[#allocation47_spill] sm:$0xff] }
0x1e86   : > { %7274 = vadd.xlane.f32.xlu1 %v7273_v33 }
0x1e96   : > { %7490 = vrot.lane.b32.xlu0 %v13288_v1, %s10561_s16 }
0x1e97   : > { %7536 = vrot.lane.b32.xlu1 %v13289_v2, %s10561_s16 }
0x1e9a   : > { %7582 = vrot.lane.b32.xlu0 %v13294_v26, %s10561_s16 }
0x1e9b   : > { %7628 = vrot.lane.b32.xlu1 %v13290_v15, %s10561_s16 }
0x1ec8   : > { %v7266_v14 = vpop.xlane.xlu0 %7265 }
0x1ec9   : > { %10469 = vrcp.f32 %v7266_v14 }
0x1ecc   : > { %v7269_v39 = vpop.xlane.xlu1 %7268 }
0x1ecd   : > { %10471 = vrcp.f32 %v7269_v39 }
0x1ed2   : > { %v7281_v58 = vpop.xlane.xlu1 %7280 }
0x1ed3   : > { %10473 = vrcp.f32 %v7281_v58  ;;  %v10470_v34 = vpop.eup %10469 }
0x1ed4   : > { %v7278_v17 = vpop.xlane.xlu0 %7277  ;;  %v7292_v57 = vmul.f32 %v10470_v34, %v10454_v0  ;;  %v13330_v34 = vld [vmem:[#allocation48_spill] sm:$0xff] }
0x1ed5   : > { %10475 = vrcp.f32 %v7278_v17  ;;  %v13329_v17 = vld [vmem:[#allocation46_spill] sm:$0xff] }
0x1ed6   : > { %v7350_v37 = vpop.permute.xlu1 %7349 }
0x1ed7   : > { %v10472_v1 = vpop.eup %10471  ;;  %9754 = vmatpush3.bf16.msra.mxu1 %v7350_v37 }
0x1ed8   : > { %v7293_v2 = vmul.f32 %v10472_v1, %v10456_v4  ;;  %v7260_v29 = vpop.xlane.xlu0 %7259  ;;  %9765 = vmatprep.subr.bf16.mxu1 %v13203_v11 }
0x1ed9   : > { %10477 = vrcp.f32 %v7260_v29 }
0x1eda   : > { %v7397_v26 = vpop.permute.xlu1 %7396  ;;  %v7299_v42 = vpack.c.bf16 %v7293_v2, %v7292_v57 }
0x1edc   : > { %v7303_v15 = vpop.permute.xlu0 %7302  ;;  %9756 = vmatmul.mubr.msk.bf16.vlgmr.msra.gmra.mrb[208].mxu1 %vm2000_vm3, %v7299_v42 }
0x1edd   : > { %v10474_v30 = vpop.eup %10473  ;;  %9748 = vmatpush3.bf16.msra.mxu0 %v7303_v15  ;;  %9767 = vmatprep.mubr.msk.bf16.mxu1 %vm10558_vm1, %v13203_v11 }
0x1ede   : > { %v7444_v6 = vpop.permute.xlu1 %7443  ;;  %9759 = vmatprep.subr.bf16.mxu0 %v13203_v11  ;;  %v7297_v0 = vmul.f32 %v10474_v30, %v10458_v16 }
0x1edf   : > { %v10476_v27 = vpop.eup %10475  ;;  %9766 = vmatpush3.bf16.msra.mxu1 %v7444_v6 }
0x1ee0   : > { %v7296_v53 = vmul.f32 %v10476_v27, %v10460_v24  ;;  %9777 = vmatprep.subr.bf16.mxu1 %v13203_v11 }
0x1ee2   : > { %v7301_v31 = vpack.c.bf16 %v7297_v0, %v7296_v53 }
0x1ee3   : > { %v10478_v40 = vpop.eup %10477 }
0x1ee4   : > { %9768 = vmatmul.mubr.msk.bf16.vlgmr.msra.gmra.mrb[212].mxu1 %vm2000_vm3, %v7301_v31  ;;  %v7290_v43 = vmul.f32 %v10478_v40, %v12778_v54 }
0x1ee5   : > { %9779 = vmatprep.mubr.msk.bf16.mxu1 %vm10558_vm1, %v13203_v11 }
0x1f0d   : > { %v7272_v60 = vpop.xlane.xlu0 %7271 }
0x1f0f   : > { %v7263_v4 = vpop.xlane.xlu1 %7262 }
0x1f10   : > { %10479 = vrcp.f32 %v7263_v4 }
0x1f13   : > { %v7275_v3 = vpop.xlane.xlu1 %7274 }
0x1f14   : > { %10481 = vrcp.f32 %v7275_v3 }
0x1f15   : > { %10483 = vrcp.f32 %v7272_v60 }
0x1f17   : > { %v7537_v41 = vpop.permute.xlu1 %7536 }
0x1f18   : > { %v7539_v16 = vsel %vm1811_vm2, %v7537_v41, 0 }
0x1f19   : > { %9778 = vmatpush3.bf16.xpose.msra.mxu1 %v7539_v16 }
0x1f1a   : > { %v10480_v24 = vpop.eup %10479  ;;  %9789 = vmatprep.subr.bf16.mxu1 %v13203_v11 }
0x1f1b   : > { %v7291_v22 = vmul.f32 %v10480_v24, %v10466_v45  ;;  %v7629_v61 = vpop.permute.xlu1 %7628  ;;  %v7491_v45 = vpop.permute.xlu0 %7490 }
0x1f1c   : > { %v7631_v20 = vsel %vm1811_vm2, %v7629_v61, 0  ;;  %v7493_v39 = vsel %vm1811_vm2, %v7491_v45, 0 }
0x1f1d   : > { %v7298_v28 = vpack.c.bf16 %v7291_v22, %v7290_v43 }
0x1f1e   : > { %v10482_v18 = vpop.eup %10481 }
0x1f1f   : > { %9750 = vmatmul.mubr.msk.bf16.vlgmr.msra.gmra.mrb[200].mxu0 %vm2000_vm3, %v7298_v28  ;;  %v10484_v8 = vpop.eup %10483  ;;  %v7295_v33 = vmul.f32 %v10482_v18, %v12797_v25  ;;  %v13328_v25 = vld [vmem:[#allocation49_spill] sm:$0xff] }
0x1f20   : > { %9760 = vmatpush3.bf16.msra.mxu0 %v7397_v26  ;;  %9780 = vmatmul.mubr.msk.bf16.vlgmr.msra.gmra.mrb[216].mxu1 %vm1811_vm2, %v13327_v44  ;;  %v7294_v54 = vmul.f32 %v10484_v8, %v12792_v49  ;;  %v7583_v49 = vpop.permute.xlu0 %7582 }
0x1f21   : > { %9790 = vmatpush3.bf16.xpose.msra.mxu1 %v7631_v20  ;;  %9761 = vmatprep.mubr.msk.bf16.mxu0 %vm10558_vm1, %v13203_v11  ;;  %v7585_v58 = vsel %vm1811_vm2, %v7583_v49, 0  ;;  %v13333_v49 = vld [vmem:[#allocation51_spill] sm:$0xff] }
0x1f22   : > { %9771 = vmatprep.subr.bf16.mxu0 %v13203_v11  ;;  %9791 = vmatprep.mubr.msk.bf16.mxu1 %vm10558_vm1, %v13203_v11  ;;  %v7300_v14 = vpack.c.bf16 %v7295_v33, %v7294_v54  ;;  %v13331_v33 = vld [vmem:[#allocation50_spill] sm:$0xff] }
0x1f23   : > { %9801 = vmatprep.subr.bf16.mxu1 %v13203_v11 }
0x1f27   : > { %9762 = vmatmul.mubr.msk.bf16.vlgmr.msra.gmra.mrb[204].mxu0 %vm2000_vm3, %v7300_v14 }
0x1f28   : > { %9792 = vmatmul.mubr.msk.bf16.vlgmr.msra.gmra.mrb[220].mxu1 %vm1811_vm2, %v13328_v25  ;;  %9773 = vmatprep.mubr.msk.bf16.mxu0 %vm10558_vm1, %v13203_v11 }
0x1f29   : > { %9772 = vmatpush3.bf16.xpose.msra.mxu0 %v7493_v39  ;;  %9803 = vmatprep.mubr.msk.bf16.mxu1 %vm10558_vm1, %v13203_v11  ;;  %v13332_v39 = vld [vmem:[#allocation53_spill] sm:$0xff] }
0x1f2a   : > { %9783 = vmatprep.subr.bf16.mxu0 %v13203_v11 }
0x1f30   : > { %9774 = vmatmul.mubr.msk.bf16.vlgmr.msra.gmra.mrb[208].mxu0 %vm1811_vm2, %v13329_v17 }
0x1f31   : > { %9784 = vmatpush3.bf16.xpose.msra.mxu0 %v7585_v58  ;;  %9785 = vmatprep.mubr.msk.bf16.mxu0 %vm10558_vm1, %v13203_v11 }
0x1f32   : > { %9795 = vmatprep.subr.bf16.mxu0 %v13203_v11 }
0x1f38   : > { %9786 = vmatmul.mubr.msk.bf16.vlgmr.msra.gmra.mrb[212].mxu0 %vm1811_vm2, %v13330_v34 }
0x1f39   : > { %9797 = vmatprep.mubr.msk.bf16.mxu0 %vm10558_vm1, %v13203_v11 }
0x1faf   : > { %v12852_v37 = vpop.f32.mrb[208].mxu1 }
0x1fb0   : > { %v9757_v1 = vpop.f32.mrb[209].mxu1 }
0x1fb1   : > { %v12854_v57 = vpop.f32.mrb[210].mxu1 }
0x1fb2   : > { %v10020_v2 = vpack.i.bf16 %v12854_v57, %v12852_v37  ;;  %v9758_v29 = vpop.f32.mrb[211].mxu1 }
0x1fb3   : > { %v13334_v29 = vld [vmem:[#allocation54_spill] sm:$0xff] }
0x1fb7   : > { %v12858_v26 = vpop.f32.mrb[212].mxu1 }
0x1fb8   : > { %v9769_v42 = vpop.f32.mrb[213].mxu1 }
0x1fb9   : > { %v12860_v15 = vpop.f32.mrb[214].mxu1 }
0x1fba   : > { %v10050_v30 = vpack.i.bf16 %v12860_v15, %v12858_v26  ;;  %v9770_v6 = vpop.f32.mrb[215].mxu1 }
0x1ff2   : > { %v12864_v27 = vpop.f32.mrb[200].mxu0 }
0x1ff3   : > { %v9751_v0 = vpop.f32.mrb[201].mxu0  ;;  %v7575_v53 = vpop.f32.mrb[216].mxu1 }
0x1ff4   : > { %v12866_v31 = vpop.f32.mrb[202].mxu0  ;;  %v9781_v4 = vpop.f32.mrb[217].mxu1  ;;  %v7576_v25 = vadd.f32 %v13332_v39, %v7575_v53  ;;  %v13336_v53 = vld [vmem:[#allocation52_spill] sm:$0xff] }
0x1ff5   : > { %v10015_v60 = vpack.i.bf16 %v12866_v31, %v12864_v27  ;;  %v9752_v3 = vpop.f32.mrb[203].mxu0  ;;  %v7578_v41 = vpop.f32.mrb[218].mxu1 }
0x1ff6   : > { %v9782_v40 = vpop.f32.mrb[219].mxu1  ;;  %v7579_v42 = vadd.f32 %v13334_v29, %v7578_v41  ;;  %v7680_v6 = vsel %vm2000_vm3, %v7576_v25, -inf }
0x1ff7   : > { %v13335_v40 = vld [vmem:[#allocation55_spill] sm:$0xff] }
0x1ffa   : > { %v12870_v16 = vpop.f32.mrb[204].mxu0 }
0x1ffb   : > { %v9763_v24 = vpop.f32.mrb[205].mxu0  ;;  %v7667_v43 = vpop.f32.mrb[220].mxu1 }
0x1ffc   : > { %v12872_v22 = vpop.f32.mrb[206].mxu0  ;;  %v9793_v61 = vpop.f32.mrb[221].mxu1 }
0x1ffd   : > { %v9764_v18 = vpop.f32.mrb[207].mxu0  ;;  %v7670_v8 = vpop.f32.mrb[222].mxu1 }
0x1ffe   : > { %v9794_v20 = vpop.f32.mrb[223].mxu1 }
0x1fff   : > { %v7683_v20 = vsel %vm2000_vm3, %v7579_v42, -inf }
0x2003   : > { %v7529_v44 = vpop.f32.mrb[208].mxu0 }
0x2004   : > { %v7530_v54 = vadd.f32 %v13331_v33, %v7529_v44  ;;  %v9775_v45 = vpop.f32.mrb[209].mxu0  ;;  %v13337_v44 = vld [vmem:[#allocation57_spill] sm:$0xff] }
0x2005   : > { %v7532_v14 = vpop.f32.mrb[210].mxu0  ;;  %v7671_v33 = vadd.f32 %v13337_v44, %v7670_v8  ;;  %v13338_v45 = vld [vmem:[#allocation56_spill] sm:$0xff] }
0x2006   : > { %v7533_v58 = vadd.f32 %v13333_v49, %v7532_v14  ;;  %v9776_v17 = vpop.f32.mrb[211].mxu0  ;;  %v7674_v34 = vsel %vm2000_vm3, %v7530_v54, -inf  ;;  %v7668_v14 = vadd.f32 %v13338_v45, %v7667_v43 }
0x2007   : > { %7675 = vmax.xlane.f32.xlu0 %v7674_v34  ;;  %v7695_v49 = vsel %vm2000_vm3, %v7671_v33, -inf }
0x2008   : > { %v7677_v1 = vsel %vm2000_vm3, %v7533_v58, -inf  ;;  %v7692_v17 = vsel %vm2000_vm3, %v7668_v14, -inf }
0x2009   : > { %7678 = vmax.xlane.f32.xlu1 %v7677_v1 }
0x200b   : > { %7681 = vmax.xlane.f32.xlu0 %v7680_v6  ;;  %v7621_v0 = vpop.f32.mrb[212].mxu0 }
0x200c   : > { %v9787_v4 = vpop.f32.mrb[213].mxu0  ;;  %v7622_v24 = vadd.f32 %v13335_v40, %v7621_v0 }
0x200d   : > { %v7624_v3 = vpop.f32.mrb[214].mxu0 }
0x200e   : > { %v12885_v61 = vadd.f32 %v13336_v53, %v7624_v3  ;;  %v9788_v18 = vpop.f32.mrb[215].mxu0  ;;  %v7686_v39 = vsel %vm2000_vm3, %v7622_v24, -inf }
0x200f   : > { %7684 = vmax.xlane.f32.xlu0 %v7683_v20 }
0x2010   : > { %v7689_v41 = vsel %vm2000_vm3, %v12885_v61, -inf }
0x2011   : > { %7690 = vmax.xlane.f32.xlu1 %v7689_v41 }
0x2013   : > { %7687 = vmax.xlane.f32.xlu0 %v7686_v39 }
0x2015   : > { %7696 = vmax.xlane.f32.xlu1 %v7695_v49 }
0x2017   : > { %7693 = vmax.xlane.f32.xlu0 %v7692_v17 }
0x2094   : > { %v7676_v34 = vpop.xlane.xlu0 %7675 }
0x2095   : > { %v7698_v20 = vsub.f32 %v7530_v54, %v7676_v34 }
0x2096   : > { %v7679_v6 = vpop.xlane.xlu1 %7678 }
0x2097   : > { %v7699_v43 = vsub.f32 %v7533_v58, %v7679_v6  ;;  %v7706_v28 = vmul.f32 1.442695, %v7698_v20 }
0x2098   : > { %v7682_v1 = vpop.xlane.xlu0 %7681 }
0x2099   : > { %v7700_v29 = vsub.f32 %v7576_v25, %v7682_v1  ;;  %v7708_v41 = vmul.f32 1.442695, %v7699_v43 }
0x209b   : > { %v7710_v8 = vmul.f32 1.442695, %v7700_v29 }
0x209c   : > { %v7685_v0 = vpop.xlane.xlu0 %7684 }
0x209d   : > { %10485 = vpow2.f32 %v7710_v8  ;;  %v7701_v4 = vsub.f32 %v7579_v42, %v7685_v0 }
0x209e   : > { %v7691_v3 = vpop.xlane.xlu1 %7690 }
0x209f   : > { %v7712_v40 = vmul.f32 1.442695, %v7701_v4  ;;  %v7703_v43 = vsub.f32 %v12885_v61, %v7691_v3 }
0x20a0   : > { %v7688_v53 = vpop.xlane.xlu0 %7687 }
0x20a1   : > { %10487 = vpow2.f32 %v7712_v40  ;;  %v7702_v25 = vsub.f32 %v7622_v24, %v7688_v53  ;;  %v7716_v53 = vmul.f32 1.442695, %v7703_v43  ;;  %v13339_v43 = vpack.i.bf16 %v12872_v22, %v12870_v16 }
0x20a2   : > { %v7697_v18 = vpop.xlane.xlu1 %7696 }
0x20a3   : > { %v7705_v44 = vsub.f32 %v7671_v33, %v7697_v18  ;;  %v7714_v29 = vmul.f32 1.442695, %v7702_v25 }
0x20a4   : > { %v7694_v45 = vpop.xlane.xlu0 %7693 }
0x20a5   : > { %v7720_v39 = vmul.f32 1.442695, %v7705_v44  ;;  %v7704_v49 = vsub.f32 %v7668_v14, %v7694_v45 }
0x20a7   : > { %v10486_v17 = vpop.eup %10485  ;;  %10489 = vpow2.f32 %v7720_v39  ;;  %v7718_v1 = vmul.f32 1.442695, %v7704_v49 }
0x20a8   : > { %10491 = vpow2.f32 %v7708_v41  ;;  %v7728_v42 = vsel %vm2000_vm3, %v10486_v17, 0.0 }
0x20a9   : > { %10493 = vpow2.f32 %v7718_v1  ;;  %7729 = vadd.xlane.f32.xlu0 %v7728_v42 }
0x20aa   : > { %10495 = vpow2.f32 %v7706_v28 }
0x20ab   : > { %v10488_v58 = vpop.eup %10487  ;;  %10497 = vpow2.f32 %v7714_v29  ;;  %v10083_v29 = vld [vmem:[%s13073_s9 + $0x20] sm:$0xff]  }
0x20ac   : > { %v7731_v54 = vsel %vm2000_vm3, %v10488_v58, 0.0  ;;  %10499 = vpow2.f32 %v7716_v53 }
0x20ad   : > { %7732 = vadd.xlane.f32.xlu1 %v7731_v54 }
0x20b1   : > { %v12897_v33 = vpop.eup %10489 }
0x20b2   : > { %v10492_v14 = vpop.eup %10491  ;;  %v7743_v24 = vsel %vm2000_vm3, %v12897_v33, 0.0 }
0x20b3   : > { %v12901_v34 = vpop.eup %10493  ;;  %7744 = vadd.xlane.f32.xlu1 %v7743_v24  ;;  %v7725_v28 = vsel %vm2000_vm3, %v10492_v14, 0.0 }
0x20b4   : > { %v7740_v6 = vsel %vm2000_vm3, %v12901_v34, 0.0  ;;  %v10496_v8 = vpop.eup %10495 }
0x20b5   : > { %7741 = vadd.xlane.f32.xlu0 %v7740_v6  ;;  %v7722_v0 = vsel %vm2000_vm3, %v10496_v8, 0.0  ;;  %v12907_v4 = vpop.eup %10497  ;;  %v10084_v6 = vld [vmem:[%s13073_s9 + $0x28] sm:$0xff]  }
0x20b6   : > { %v7734_v40 = vsel %vm2000_vm3, %v12907_v4, 0.0 }
0x20b7   : > { %7726 = vadd.xlane.f32.xlu1 %v7725_v28 }
0x20b9   : > { %7723 = vadd.xlane.f32.xlu0 %v7722_v0 }
0x20bd   : > { %7735 = vadd.xlane.f32.xlu0 %v7734_v40 }
0x20c8   : > { %7813 = vrot.lane.b32.xlu1 %v13291_v13, %s10561_s16  ;;  %v10500_v13 = vpop.eup %10499 }
0x20cc   : > { %7860 = vrot.lane.b32.xlu1 %v13301_v9, %s10561_s16 }
0x20d3   : > { %7766 = vrot.lane.b32.xlu0 %v13296_v19, %s10561_s16  ;;  %v7737_v19 = vsel %vm2000_vm3, %v10500_v13, 0.0 }
0x20d7   : > { %10006 = vrot.lane.b32.xlu0 %v10005_v5, %s10562_s18 }
0x20db   : > { %10016 = vrot.lane.b32.xlu0 %v10015_v60, %s10563_s19 }
0x20df   : > { %10031 = vrot.lane.b32.xlu0 %v10030_v38, %s10562_s18 }
0x20f0   : > { %7738 = vadd.xlane.f32.xlu1 %v7737_v19 }
0x2101   : > { %7907 = vrot.lane.b32.xlu1 %v13302_v12, %s10561_s16 }
0x2105   : > { %10011 = vrot.lane.b32.xlu1 %v10010_v48, %s10562_s18 }
0x2109   : > { %10021 = vrot.lane.b32.xlu1 %v10020_v2, %s10563_s19 }
0x2136   : > { %v7730_v9 = vpop.xlane.xlu0 %7729 }
0x2137   : > { %10501 = vrcp.f32 %v7730_v9 }
0x213a   : > { %v7733_v35 = vpop.xlane.xlu1 %7732 }
0x213b   : > { %10503 = vrcp.f32 %v7733_v35 }
0x2140   : > { %v7745_v56 = vpop.xlane.xlu1 %7744 }
0x2141   : > { %v10502_v23 = vpop.eup %10501 }
0x2142   : > { %v7742_v5 = vpop.xlane.xlu0 %7741  ;;  %v7756_v10 = vmul.f32 %v10502_v23, %v10486_v17 }
0x2144   : > { %v7727_v51 = vpop.xlane.xlu1 %7726 }
0x2145   : > { %v10504_v38 = vpop.eup %10503  ;;  %10505 = vrcp.f32 %v7727_v51 }
0x2146   : > { %v7757_v12 = vmul.f32 %v10504_v38, %v10488_v58  ;;  %v7724_v27 = vpop.xlane.xlu0 %7723 }
0x2147   : > { %10507 = vrcp.f32 %v7724_v27 }
0x2148   : > { %v7814_v47 = vpop.permute.xlu1 %7813  ;;  %v7763_v31 = vpack.c.bf16 %v7757_v12, %v7756_v10  ;;  %10509 = vrcp.f32 %v7742_v5 }
0x2149   : > { %9802 = vmatpush3.bf16.msra.mxu1 %v7814_v47  ;;  %10511 = vrcp.f32 %v7745_v56 }
0x214a   : > { %v7736_v48 = vpop.xlane.xlu0 %7735  ;;  %9813 = vmatprep.subr.bf16.mxu1 %v13203_v11 }
0x214b   : > { %10513 = vrcp.f32 %v7736_v48 }
0x214c   : > { %9804 = vmatmul.mubr.msk.bf16.vlgmr.msra.gmra.mrb[224].mxu1 %vm2000_vm3, %v7763_v31  ;;  %v7861_v18 = vpop.permute.xlu1 %7860 }
0x214d   : > { %9815 = vmatprep.mubr.msk.bf16.mxu1 %vm10558_vm1, %v13203_v11 }
0x214e   : > { %v7767_v37 = vpop.permute.xlu0 %7766 }
0x214f   : > { %v10506_v57 = vpop.eup %10505  ;;  %9796 = vmatpush3.bf16.msra.mxu0 %v7767_v37 }
0x2150   : > { %9807 = vmatprep.subr.bf16.mxu0 %v13203_v11  ;;  %v7755_v60 = vmul.f32 %v10506_v57, %v10492_v14 }
0x2151   : > { %v10508_v2 = vpop.eup %10507 }
0x2152   : > { %v7754_v61 = vmul.f32 %v10508_v2, %v10496_v8  ;;  %v10510_v20 = vpop.eup %10509  ;;  %v10007_v56 = vpop.permute.xlu0 %10006 }
0x2153   : > { %v10512_v41 = vpop.eup %10511  ;;  %v7760_v45 = vmul.f32 %v10510_v20, %v12901_v34 }
0x2154   : > { %v7762_v3 = vpack.c.bf16 %v7755_v60, %v7754_v61  ;;  %v7761_v39 = vmul.f32 %v10512_v41, %v12897_v33 }
0x2155   : > { %v10514_v25 = vpop.eup %10513 }
0x2156   : > { %9798 = vmatmul.mubr.msk.bf16.vlgmr.msra.gmra.mrb[216].mxu0 %vm2000_vm3, %v7762_v3  ;;  %v7765_v17 = vpack.c.bf16 %v7761_v39, %v7760_v45  ;;  %v10017_v38 = vpop.permute.xlu0 %10016  ;;  %v10009_v3 = vunpack.i.h.bf16 %v10007_v56 }
0x2157   : > { %9808 = vmatpush3.bf16.msra.mxu0 %v7861_v18  ;;  %9809 = vmatprep.mubr.msk.bf16.mxu0 %vm10558_vm1, %v13203_v11  ;;  %v7758_v11 = vmul.f32 %v10514_v25, %v12907_v4  ;;  %v10008_v18 = vunpack.i.l.bf16 %v10007_v56  ;;  %v10019_v20 = vunpack.i.h.bf16 %v10017_v38 }
0x2158   : > { %9819 = vmatprep.subr.bf16.mxu0 %v10083_v29 }
0x2159   : > { %v8050_v41 = vsel %vm1811_vm2, %v12602_v7, %v10008_v18 }
0x215a   : > { %v10032_v61 = vpop.permute.xlu0 %10031 }
0x217d   : > { %v7739_v44 = vpop.xlane.xlu1 %7738 }
0x217e   : > { %10515 = vrcp.f32 %v7739_v44  ;;  %v10018_v44 = vunpack.i.l.bf16 %v10017_v38 }
0x2181   : > { %v7908_v49 = vpop.permute.xlu1 %7907 }
0x2182   : > { %9814 = vmatpush3.bf16.msra.mxu1 %v7908_v49  ;;  %v8058_v49 = vsel %vm2000_vm3, %v8050_v41, %v10018_v44  ;;  %v8247_v41 = vld [vmem:[%s11957_s29] sm:$0xff] (%p10665_p6)  }
0x2185   : > { %9816 = vmatmul.mubr.msk.bf16.vlgmr.msra.gmra.mrb[228].mxu1 %vm2000_vm3, %v7765_v17 }
0x2188   : > { %v10516_v1 = vpop.eup %10515 }
0x2189   : > { %v7759_v42 = vmul.f32 %v10516_v1, %v10500_v13 }
0x218b   : > { %v7764_v58 = vpack.c.bf16 %v7759_v42, %v7758_v11 }
0x218d   : > { %9810 = vmatmul.mubr.msk.bf16.vlgmr.msra.gmra.mrb[220].mxu0 %vm2000_vm3, %v7764_v58 }
0x218e   : > { %9820 = vmatpush3.bf16.msra.mxu0 %v10083_v29 }
0x218f   : > { %9821 = vmatprep.subr.bf16.mxu0 %v10084_v6 }
0x2192   : > { %9822 = vmatpush3.bf16.msra.mxu0 %v10084_v6 }
0x221f   : > { %v7853_v54 = vpop.f32.mrb[224].mxu1 }
0x2220   : > { %v9805_v14 = vpop.f32.mrb[225].mxu1 }
0x2221   : > { %v7856_v33 = vpop.f32.mrb[226].mxu1 }
0x2222   : > { %v10025_v24 = vpack.i.bf16 %v7856_v33, %v7853_v54  ;;  %v9806_v34 = vpop.f32.mrb[227].mxu1 }
0x2224   : > { %10026 = vrot.lane.b32.xlu1 %v10025_v24, %s10564_s17 }
0x2228   : > { %10036 = vrot.lane.b32.xlu1 %v10035_v32, %s10562_s18 }
0x2229   : > { %v7806_v8 = vpop.f32.mrb[216].mxu0 }
0x222a   : > { %v9799_v28 = vpop.f32.mrb[217].mxu0 }
0x222b   : > { %v7809_v0 = vpop.f32.mrb[218].mxu0 }
0x222c   : > { %v10040_v4 = vpack.i.bf16 %v7809_v0, %v7806_v8  ;;  %10051 = vrot.lane.b32.xlu1 %v10050_v30, %s10563_s19  ;;  %v9800_v40 = vpop.f32.mrb[219].mxu0  ;;  %v10012_v30 = vpop.permute.xlu1 %10011 }
0x222d   : > { %v10014_v23 = vunpack.i.h.bf16 %v10012_v30  ;;  %v10013_v16 = vunpack.i.l.bf16 %v10012_v30 }
0x222e   : > { %10041 = vrot.lane.b32.xlu0 %v10040_v4, %s10564_s17 }
0x222f   : > { %v8053_v27 = vsel %vm1811_vm2, %v12613_v62, %v10014_v23  ;;  %v8052_v10 = vsel %vm1811_vm2, %v12607_v46, %v10013_v16  ;;  %v8051_v46 = vsel %vm1811_vm2, %v12604_v63, %v10009_v3 }
0x2230   : > { %v10022_v5 = vpop.permute.xlu1 %10021  ;;  %v8059_v17 = vsel %vm2000_vm3, %v8051_v46, %v10019_v20 }
0x2231   : > { %v10024_v22 = vunpack.i.h.bf16 %v10022_v5  ;;  %v10023_v51 = vunpack.i.l.bf16 %v10022_v5 }
0x2232   : > { %10046 = vrot.lane.b32.xlu0 %v13339_v43, %s10563_s19 }
0x2233   : > { %v8060_v31 = vsel %vm2000_vm3, %v8052_v10, %v10023_v51  ;;  %v8061_v37 = vsel %vm2000_vm3, %v8053_v27, %v10024_v22 }
0x2258   : > { %v7947_v53 = vpop.f32.mrb[228].mxu1 }
0x2259   : > { %v9817_v50 = vpop.f32.mrb[229].mxu1 }
0x225a   : > { %v7950_v55 = vpop.f32.mrb[230].mxu1  ;;  %v10033_v50 = vunpack.i.l.bf16 %v10032_v61 }
0x225b   : > { %v10060_v32 = vpack.i.bf16 %v7950_v55, %v7947_v53  ;;  %v9818_v13 = vpop.f32.mrb[231].mxu1  ;;  %v10034_v53 = vunpack.i.h.bf16 %v10032_v61 }
0x225c   : > { %v8054_v13 = vsel %vm1811_vm2, %v12624_v21, %v10033_v50  ;;  %v8692_v21 = vld [vmem:[%s13074_s10 + $0x2] ss:$0 sm:$0xff] }
0x225d   : > { %10061 = vrot.lane.b32.xlu1 %v10060_v32, %s10564_s17 }
0x2260   : > { %v7900_v19 = vpop.f32.mrb[220].mxu0 }
0x2261   : > { %v9811_v9 = vpop.f32.mrb[221].mxu0 }
0x2262   : > { %v7903_v35 = vpop.f32.mrb[222].mxu0 }
0x2263   : > { %v10055_v26 = vpack.i.bf16 %v7903_v35, %v7900_v19  ;;  %v9812_v15 = vpop.f32.mrb[223].mxu0 }
0x2265   : > { %10056 = vrot.lane.b32.xlu0 %v10055_v26, %s10564_s17  ;;  %s8744_s17 = sshll.u32 (%p10665_p6), %s10547_s23, 5 }
0x2266   : > { %s8231_s21 = scalar_lea.vmem (%p10665_p6), %s13076_s12, %s8744_s17 }
0x2267   : > { %8248 = vst [vmem:[%s8231_s21] sm:$0xff] (%p10665_p6), %v8247_v41  }
0x2296   : > { %v10027_v12 = vpop.permute.xlu1 %10026 }
0x2297   : > { %v10029_v47 = vunpack.i.h.bf16 %v10027_v12  ;;  %v10028_v48 = vunpack.i.l.bf16 %v10027_v12 }
0x2299   : > { %v8068_v57 = vsel %vm3845_vm4, %v8060_v31, %v10028_v48  ;;  %v8069_v2 = vsel %vm3845_vm4, %v8061_v37, %v10029_v47 }
0x229a   : > { %v8082_v60 = vpack.c.bf16 %v8069_v2, %v8068_v57  ;;  %v10037_v42 = vpop.permute.xlu1 %10036 }
0x229b   : > { %v10039_v58 = vunpack.i.h.bf16 %v10037_v42  ;;  %v10038_v29 = vunpack.i.l.bf16 %v10037_v42 }
0x229d   : > { %v8057_v33 = vsel %vm1811_vm2, %v12622_v36, %v10039_v58  ;;  %v8056_v24 = vsel %vm1811_vm2, %v12620_v59, %v10038_v29  ;;  %v8055_v59 = vsel %vm1811_vm2, %v12626_v52, %v10034_v53 }
0x229e   : > { %v10052_v63 = vpop.permute.xlu1 %10051 }
0x229f   : > { %v10054_v7 = vunpack.i.h.bf16 %v10052_v63  ;;  %v10053_v54 = vunpack.i.l.bf16 %v10052_v63 }
0x22a0   : > { %v10042_v62 = vpop.permute.xlu0 %10041 }
0x22a1   : > { %v10044_v45 = vunpack.i.h.bf16 %v10042_v62  ;;  %v10043_v39 = vunpack.i.l.bf16 %v10042_v62  ;;  %v8064_v8 = vsel %vm2000_vm3, %v8056_v24, %v10053_v54  ;;  %v8065_v28 = vsel %vm2000_vm3, %v8057_v33, %v10054_v7 }
0x22a3   : > { %v8067_v25 = vsel %vm3845_vm4, %v8059_v17, %v10044_v45  ;;  %v8066_v1 = vsel %vm3845_vm4, %v8058_v49, %v10043_v39  ;;  %v8251_v45 = vld [vmem:[%s11957_s29 + $0x8] sm:$0xff] (%p10665_p6)   ;;  %v8255_v39 = vld [vmem:[%s11957_s29 + $0x10] sm:$0xff] (%p10665_p6)   ;;  %v8259_v49 = vld [vmem:[%s11957_s29 + $0x18] sm:$0xff] (%p10665_p6)  }
0x22a4   : > { %v8081_v11 = vpack.c.bf16 %v8067_v25, %v8066_v1  ;;  %v10047_v0 = vpop.permute.xlu0 %10046  ;;  %v8263_v17 = vld [vmem:[%s11957_s29 + $0x20] sm:$0xff] (%p10665_p6)   ;;  %v8267_v25 = vld [vmem:[%s11957_s29 + $0x28] sm:$0xff] (%p10665_p6)   ;;  %8252 = vst [vmem:[%s8231_s21 + $0x8] sm:$0xff] (%p10665_p6), %v8251_v45   ;;  %8256 = vst [vmem:[%s8231_s21 + $0x10] sm:$0xff] (%p10665_p6), %v8255_v39  }
0x22a5   : > { %v10049_v55 = vunpack.i.h.bf16 %v10047_v0  ;;  %v10048_v32 = vunpack.i.l.bf16 %v10047_v0  ;;  %8260 = vst [vmem:[%s8231_s21 + $0x18] sm:$0xff] (%p10665_p6), %v8259_v49   ;;  %8264 = vst [vmem:[%s8231_s21 + $0x40] sm:$0xff] (%p10665_p6), %v8263_v17   ;;  %v8271_v1 = vld [vmem:[%s11957_s29 + $0x30] sm:$0xff] (%p10665_p6)  }
0x22a6   : > { %9823 = vmatprep.mubr.msk.bf16.mxu0 %vm607_vm0, %v8081_v11  ;;  %8268 = vst [vmem:[%s8231_s21 + $0x48] sm:$0xff] (%p10665_p6), %v8267_v25   ;;  %v8275_v11 = vld [vmem:[%s11957_s29 + $0x38] sm:$0xff] (%p10665_p6)   ;;  %8272 = vst [vmem:[%s8231_s21 + $0x50] sm:$0xff] (%p10665_p6), %v8271_v1  }
0x22a7   : > { %9824 = vmatmul.mubr.msk.bf16.vlgmr.msra.gmra.mrb[224].mxu0 %vm607_vm0, %v8082_v60  ;;  %v8063_v35 = vsel %vm2000_vm3, %v8055_v59, %v10049_v55  ;;  %v8062_v26 = vsel %vm2000_vm3, %v8054_v13, %v10048_v32  ;;  %8276 = vst [vmem:[%s8231_s21 + $0x58] sm:$0xff] (%p10665_p6), %v8275_v11  }
0x22cf   : > { %v10062_v14 = vpop.permute.xlu1 %10061 }
0x22d0   : > { %v10064_v34 = vunpack.i.h.bf16 %v10062_v14  ;;  %v10063_v6 = vunpack.i.l.bf16 %v10062_v14 }
0x22d2   : > { %v8072_v4 = vsel %vm3845_vm4, %v8064_v8, %v10063_v6  ;;  %v8073_v40 = vsel %vm3845_vm4, %v8065_v28, %v10064_v34 }
0x22d3   : > { %v8084_v43 = vpack.c.bf16 %v8073_v40, %v8072_v4 }
0x22d7   : > { %v10057_v36 = vpop.permute.xlu0 %10056 }
0x22d8   : > { %v10059_v19 = vunpack.i.h.bf16 %v10057_v36  ;;  %v10058_v9 = vunpack.i.l.bf16 %v10057_v36 }
0x22da   : > { %v8071_v15 = vsel %vm3845_vm4, %v8063_v35, %v10059_v19  ;;  %v8070_v30 = vsel %vm3845_vm4, %v8062_v26, %v10058_v9 }
0x22db   : > { %v8083_v56 = vpack.c.bf16 %v8071_v15, %v8070_v30 }
0x22dd   : > { %9827 = vmatprep.mubr.msk.bf16.mxu0 %vm607_vm0, %v8083_v56 }
0x22de   : > { %9828 = vmatmul.mubr.msk.bf16.gmra.mrb[228].mxu0 %vm607_vm0, %v8084_v43 }
0x237a   : > { %v9825_v52 = vpop.f32.mrb[224].mxu0 }
0x237b   : > { %v8158_v5 = vadd.f32 %v9825_v52, %v8692_v21  ;;  %v8149_v23 = vpop.f32.mrb[225].mxu0 }
0x237c   : > { %v8150_v16 = vadd.f32 %v8692_v21, %v8149_v23  ;;  %v9826_v22 = vpop.f32.mrb[226].mxu0 }
0x237d   : > { %v8738_v51 = vpack.c.bf16 %v8158_v5, %v8158_v5  ;;  %v8161_v38 = vadd.f32 %v9826_v22, %v8692_v21  ;;  %v8152_v12 = vpop.f32.mrb[227].mxu0 }
0x237e   : > { %v8736_v27 = vpack.c.bf16 %v8150_v16, %v8150_v16  ;;  %v8153_v10 = vadd.f32 %v8692_v21, %v8152_v12 }
0x237f   : > { %8709 = vst.msk [vmem:[%s11957_s29 + $0x48] sm:$0xf] %vm3990_vm5, %v8738_v51  ;;  %v8739_v47 = vpack.c.bf16 %v8161_v38, %v8161_v38 }
0x2380   : > { %8707 = vst.msk [vmem:[%s11957_s29 + $0x40] sm:$0xf] %vm3990_vm5, %v8736_v27  ;;  %v8737_v48 = vpack.c.bf16 %v8153_v10, %v8153_v10 }
0x2381   : > { %8710 = vst.msk [vmem:[%s11957_s29 + $0x4c] sm:$0xf] %vm3990_vm5, %v8739_v47 }
0x2382   : > { %8708 = vst.msk [vmem:[%s11957_s29 + $0x44] sm:$0xf] %vm3990_vm5, %v8737_v48 }
0x2388   : > { %v8283_v63 = vld [vmem:[%s11957_s29 + $0x48] sm:$0xff] (%p10665_p6)  }
0x2389   : > { %v8279_v42 = vld [vmem:[%s11957_s29 + $0x40] sm:$0xff] (%p10665_p6)   ;;  %8284 = vst [vmem:[%s8231_s21 + $0x88] sm:$0xff] (%p10665_p6), %v8283_v63  }
0x238a   : > { %8280 = vst [vmem:[%s8231_s21 + $0x80] sm:$0xff] (%p10665_p6), %v8279_v42  }
0x23b1   : > { %v9829_v31 = vpop.f32.mrb[228].mxu0 }
0x23b2   : > { %v8174_v37 = vadd.f32 %v9829_v31, %v8692_v21  ;;  %v8165_v57 = vpop.f32.mrb[229].mxu0 }
0x23b3   : > { %v8166_v2 = vadd.f32 %v8692_v21, %v8165_v57  ;;  %v9830_v60 = vpop.f32.mrb[230].mxu0  ;;  %8227 = sbr.rel (!%p10665_p6) target bundleno = 9154 (0x23c2), region = 113 }
0x23b4   : > { %v8742_v61 = vpack.c.bf16 %v8174_v37, %v8174_v37  ;;  %v8177_v3 = vadd.f32 %v9830_v60, %v8692_v21  ;;  %v8168_v18 = vpop.f32.mrb[231].mxu0 }
0x23b5   : > { %v8740_v20 = vpack.c.bf16 %v8166_v2, %v8166_v2  ;;  %v8169_v44 = vadd.f32 %v8692_v21, %v8168_v18 }
0x23b6   : > { %8713 = vst.msk [vmem:[%s11957_s29 + $0x58] sm:$0xf] %vm3990_vm5, %v8742_v61  ;;  %v8743_v62 = vpack.c.bf16 %v8177_v3, %v8177_v3 }
0x23b7   : > { %8711 = vst.msk [vmem:[%s11957_s29 + $0x50] sm:$0xf] %vm3990_vm5, %v8740_v20  ;;  %v8741_v46 = vpack.c.bf16 %v8169_v44, %v8169_v44 }
0x23b8   : > { %8714 = vst.msk [vmem:[%s11957_s29 + $0x5c] sm:$0xf] %vm3990_vm5, %v8743_v62 }
0x23b9   : > { %8712 = vst.msk [vmem:[%s11957_s29 + $0x54] sm:$0xf] %vm3990_vm5, %v8741_v46 }
0x23bf   : > { %v8291_v29 = vld [vmem:[%s11957_s29 + $0x58] sm:$0xff]  }
0x23c0   : > { %v8287_v58 = vld [vmem:[%s11957_s29 + $0x50] sm:$0xff]   ;;  %8292 = vst [vmem:[%s8231_s21 + $0x98] sm:$0xff] %v8291_v29  }
0x23c1   : > { %8288 = vst [vmem:[%s8231_s21 + $0x90] sm:$0xff] %v8287_v58  }
0x23c2 PF: > { %s22_s25 = sadd.s32 1, %s10555_s25   ;;  %s13340_s21 = smov %s10543_s22 }
0x23c3   : > { %p19_p11 = scmp.ge.s32.totalorder %s22_s25, 4   ;;  %s13341_s22 = smov %s10670_s13 }
0x23c4   : > { %s13342_s23 = smov %s10551_s24  ;;  %s13343_s24 = smov %s13345_s26 }
0x23c5   :  { %21 = sbr.rel (!%p19_p11) target bundleno = 3 (0x3), region = 208 }

</bundles_post_ra>
